<compile_context>
chip_gen: v7x
topology: tpu7x:2x2x1
jax: 0.10.0
libtpu: 0.0.40
codegen_flags: <defaults>
</compile_context>

<pallas_src>
import functools
import math

import jax
import jax.numpy as jnp
from jax.experimental import pallas as pl
from jax.experimental.pallas import tpu as pltpu


# -----------------------------------------------------------------------------
# Main attention kernel.  Grid = (B // block_b,); heads are a static in-kernel loop.
# -----------------------------------------------------------------------------
def _attention2d_kernel(x_ref, wqkv_ref, bqkv_ref, qe_ref, sc_ref, bias_ref,
                        wp_ref, bp_ref, o_ref, ctx_ref, *, num_heads, eps):
    bt, n, c = x_ref.shape
    H = num_heads
    d = c // H
    m = bt * n
    cdt = x_ref.dtype                       # native MXU operand dtype (bf16 fast path)

    x2 = x_ref[...].reshape(m, c)

    # Fused QKV projection: one lane-dense (M, C) x (C, 3C) matmul, f32 accumulation.
    qkv = jnp.dot(x2, wqkv_ref[...], preferred_element_type=jnp.float32) + bqkv_ref[...]
    q = qkv[:, 0 * c:1 * c]                 # (M, C) f32, head-major columns
    k = qkv[:, 1 * c:2 * c]
    v = qkv[:, 2 * c:3 * c]

    qe = qe_ref[...]                        # (1, C) f32, head-major query embedding
    sc = sc_ref[...]                        # (1, C) f32, per-head scale broadcast over D

    # Per-head attention; everything but the MXU operands stays in f32.
    for h in range(H):                      # static loop (unrolled at trace time)
        lo, hi = h * d, (h + 1) * d
        qh = q[:, lo:hi]                    # (M, D)
        kh = k[:, lo:hi]
        vh = v[:, lo:hi]

        # F.normalize(., dim=-1, eps=1e-12) == x * rsqrt(max(sum(x^2), eps^2)).
        qh = qh * jax.lax.rsqrt(
            jnp.maximum(jnp.sum(qh * qh, axis=-1, keepdims=True), eps * eps))
        kh = kh * jax.lax.rsqrt(
            jnp.maximum(jnp.sum(kh * kh, axis=-1, keepdims=True), eps * eps))

        # (normalize(q) + query_embedding) * softplus(temperature) * seq_length_scale
        qh = (qh + qe[:, lo:hi]) * sc[:, lo:hi]

        q3 = qh.reshape(bt, n, d).astype(cdt)
        k3 = kh.reshape(bt, n, d).astype(cdt)
        v3 = vh.reshape(bt, n, d).astype(cdt)

        s = jnp.einsum('bnd,bmd->bnm', q3, k3, preferred_element_type=jnp.float32)
        s = s + bias_ref[h]                 # (N, N) rel-pos bias, broadcast over batch
        s = s - jnp.max(s, axis=-1, keepdims=True)
        p = jnp.exp(s)
        p = p * pl.reciprocal(jnp.sum(p, axis=-1, keepdims=True), approx=True)

        ctx = jnp.einsum('bnm,bmd->bnd', p.astype(cdt), v3,
                         preferred_element_type=jnp.float32)        # (bt, n, d)
        # Write this head's context into its D-wide column slice of the scratch.
        ctx_ref[:, lo:hi] = ctx.reshape(m, d).astype(ctx_ref.dtype)

    # Single full-width output projection: (M, C) x (C, C), f32 accumulation.
    out = jnp.dot(ctx_ref[...], wp_ref[...],
                  preferred_element_type=jnp.float32) + bp_ref[...]
    o_ref[...] = out.reshape(bt, n, c).astype(o_ref.dtype)


def attention2d(x, qkv_w, qkv_b, proj_w, proj_b, query_embedding, temperature,
                seq_length_scale, cpb_fc1_w, cpb_fc1_b, cpb_fc2_w, cpb_fc2_b,
                relative_pos_index, relative_coords_table, *, num_heads,
                block_b=None, vmem_limit_bytes=None):
    """Attention2D forward.  x: (B, N, C).  Weights are (in, out) layout.

    block_b is a per-generation tuning knob: pick it so block_b*N is a few hundred
    rows (MXU occupancy) while B // block_b stays >= 2 (v7x megacore) and the
    x / out / ctx tiles fit the generation's VMEM budget.
    """
    B, N, C = x.shape
    H = num_heads
    assert C % H == 0, "dim must be divisible by num_heads"
    D = C // H
    f32 = jnp.float32
    cdt = x.dtype

    if block_b is None:
        block_b = 1
        for cand in range(1, B + 1):
            if B % cand == 0 and cand * N <= 512 and (B // cand) >= 2:
                block_b = cand
    assert B % block_b == 0, "batch must be divisible by block_b"

    # --- one-time parameter re-layout (head-major columns, matmul-friendly) ----------
    wqkv = qkv_w.astype(cdt)                                   # (C, 3C)
    bqkv = qkv_b.reshape(1, 3 * C).astype(f32)
    wp = proj_w.astype(cdt)                                    # (C, C)
    bp = proj_b.reshape(1, C).astype(f32)
    qe = query_embedding.reshape(1, C).astype(f32)             # head-major (1, C)
    scale_h = (jax.nn.softplus(temperature.astype(f32)) * seq_length_scale).reshape(H)
    scale = jnp.repeat(scale_h, D).reshape(1, C)               # per-head, broadcast over D

    # --- relative position bias: tiny MLP + gather, done once in plain XLA -----------
    # TODO(synk): the K=2 CPB MLP and the N*N index gather run once per call and are left
    # to XLA; a Pallas kernel adds launch/layout overhead with no benefit at this size.
    t = jax.nn.relu(relative_coords_table.astype(f32) @ cpb_fc1_w.astype(f32)
                    + cpb_fc1_b.astype(f32))
    tbl = t @ cpb_fc2_w.astype(f32) + cpb_fc2_b.astype(f32)    # (T, H)
    rel_bias = tbl[relative_pos_index.reshape(-1)].T.reshape(H, N, N).astype(f32)

    kernel = functools.partial(_attention2d_kernel, num_heads=H, eps=1e-12)
    inv3 = lambda b: (0, 0, 0)
    inv2 = lambda b: (0, 0)
    single = pl.Buffered(1)          # grid-invariant operands: no second buffer

    return pl.pallas_call(
        kernel,
        out_shape=jax.ShapeDtypeStruct((B, N, C), cdt),
        grid_spec=pltpu.PrefetchScalarGridSpec(
            num_scalar_prefetch=0,
            grid=(B // block_b,),
            in_specs=[
                pl.BlockSpec((block_b, N, C), lambda b: (b, 0, 0)),          # x
                pl.BlockSpec((C, 3 * C), inv2, pipeline_mode=single),        # wqkv
                pl.BlockSpec((1, 3 * C), inv2, pipeline_mode=single),        # bqkv
                pl.BlockSpec((1, C), inv2, pipeline_mode=single),            # query emb
                pl.BlockSpec((1, C), inv2, pipeline_mode=single),            # scale
                pl.BlockSpec((H, N, N), inv3, pipeline_mode=single),         # rel_bias
                pl.BlockSpec((C, C), inv2, pipeline_mode=single),            # wproj
                pl.BlockSpec((1, C), inv2, pipeline_mode=single),            # bproj
            ],
            out_specs=pl.BlockSpec((block_b, N, C), lambda b: (b, 0, 0)),
            scratch_shapes=[pltpu.VMEM((block_b * N, C), cdt)],              # ctx slab
        ),
        compiler_params=pltpu.CompilerParams(
            dimension_semantics=("parallel",),
            vmem_limit_bytes=vmem_limit_bytes,
        ),
    )(x, wqkv, bqkv, qe, scale, rel_bias, wp, bp)


# -----------------------------------------------------------------------------
# Pure-JAX f32 reference mirroring the PyTorch forward (attn_drop/proj_drop = identity).
# -----------------------------------------------------------------------------
def attention2d_ref(x, qkv_w, qkv_b, proj_w, proj_b, query_embedding, temperature,
                    seq_length_scale, cpb_fc1_w, cpb_fc1_b, cpb_fc2_w, cpb_fc2_b,
                    relative_pos_index, relative_coords_table, *, num_heads, eps=1e-12):
    f32 = jnp.float32
    x = x.astype(f32)
    B, N, C = x.shape
    H = num_heads
    D = C // H

    qkv = x @ qkv_w.astype(f32) + qkv_b.astype(f32)                  # (B, N, 3C)
    qkv = qkv.reshape(B, N, 3 * H, D).transpose(0, 2, 1, 3)          # (B, 3H, N, D)
    q, k, v = jnp.split(qkv, 3, axis=1)                              # (B, H, N, D) each

    t = jax.nn.relu(relative_coords_table.astype(f32) @ cpb_fc1_w.astype(f32)
                    + cpb_fc1_b.astype(f32))
    tbl = t @ cpb_fc2_w.astype(f32) + cpb_fc2_b.astype(f32)          # (T, H)
    rel_bias = tbl.T[:, relative_pos_index.reshape(-1)].reshape(H, N, N)

    qn = q / jnp.maximum(jnp.linalg.norm(q, axis=-1, keepdims=True), eps)
    kn = k / jnp.maximum(jnp.linalg.norm(k, axis=-1, keepdims=True), eps)
    scale = jax.nn.softplus(temperature.astype(f32)) * seq_length_scale   # (H, 1, 1)

    attn = jnp.einsum('bhnd,bhmd->bhnm', (qn + query_embedding.astype(f32)) * scale, kn)
    attn = attn + rel_bias
    attn = jax.nn.softmax(attn, axis=-1)
    out = jnp.einsum('bhnm,bhmd->bhnd', attn, v)
    out = out.transpose(0, 2, 1, 3).reshape(B, N, C)
    return out @ proj_w.astype(f32) + proj_b.astype(f32)


if __name__ == "__main__":
    # Small, TPU-friendly shapes (output last dim C is lane-dense: multiple of 128).
    B = 4
    Hr, Wr = 8, 8
    N = Hr * Wr                       # 64 tokens
    C = 128                           # dim
    num_heads = 4
    D = C // num_heads                # 32
    T = (2 * Hr - 1) * (2 * Wr - 1)   # 225 relative offsets

    key = jax.random.PRNGKey(0)
    ks = jax.random.split(key, 10)

    x = jax.random.normal(ks[0], (B, N, C), jnp.float32)
    qkv_w = jax.random.normal(ks[1], (C, 3 * C), jnp.float32) * 0.02
    qkv_b = jax.random.normal(ks[2], (3 * C,), jnp.float32) * 0.02
    proj_w = jax.random.normal(ks[3], (C, C), jnp.float32) * 0.05
    proj_b = jax.random.normal(ks[4], (C,), jnp.float32) * 0.02
    query_embedding = jax.random.normal(ks[5], (num_heads, 1, D), jnp.float32) * 0.02
    temperature = jnp.full((num_heads, 1, 1),
                           jnp.log(jnp.expm1(1.0 / 0.24)), jnp.float32)
    seq_length_scale = float(math.log(Hr * Wr))
    cpb_fc1_w = jax.random.normal(ks[6], (2, 512), jnp.float32) * 0.5
    cpb_fc1_b = jax.random.normal(ks[7], (512,), jnp.float32) * 0.1
    cpb_fc2_w = jax.random.normal(ks[8], (512, num_heads), jnp.float32) * 0.05
    cpb_fc2_b = jax.random.normal(ks[9], (num_heads,), jnp.float32) * 0.01

    # Relative position index / normalized coordinate table (Swin-style).
    coords = jnp.stack(jnp.meshgrid(jnp.arange(Hr), jnp.arange(Wr),
                                    indexing="ij"), 0).reshape(2, -1)      # (2, N)
    rel = coords[:, :, None] - coords[:, None, :]                           # (2, N, N)
    rel0 = rel[0] + (Hr - 1)
    rel1 = rel[1] + (Wr - 1)
    relative_pos_index = (rel0 * (2 * Wr - 1) + rel1).astype(jnp.int32)     # (N, N)
    rh = jnp.arange(-(Hr - 1), Hr, dtype=jnp.float32) / (Hr - 1)
    rw = jnp.arange(-(Wr - 1), Wr, dtype=jnp.float32) / (Wr - 1)
    relative_coords_table = jnp.stack(jnp.meshgrid(rh, rw, indexing="ij"),
                                      -1).reshape(T, 2)                     # (T, 2)

    def run_and_check(compute_dtype, tol):
        xc = x.astype(compute_dtype)
        qkv_wc = qkv_w.astype(compute_dtype)
        proj_wc = proj_w.astype(compute_dtype)
        out = attention2d(xc, qkv_wc, qkv_b, proj_wc, proj_b, query_embedding,
                          temperature, seq_length_scale, cpb_fc1_w, cpb_fc1_b,
                          cpb_fc2_w, cpb_fc2_b, relative_pos_index,
                          relative_coords_table, num_heads=num_heads, block_b=2)
        out = jax.block_until_ready(out)
        ref = attention2d_ref(xc.astype(jnp.float32), qkv_wc.astype(jnp.float32), qkv_b,
                              proj_wc.astype(jnp.float32), proj_b, query_embedding,
                              temperature, seq_length_scale, cpb_fc1_w, cpb_fc1_b,
                              cpb_fc2_w, cpb_fc2_b, relative_pos_index,
                              relative_coords_table, num_heads=num_heads)
        err = float(jnp.max(jnp.abs(out.astype(jnp.float32) - ref)))
        scl = float(jnp.max(jnp.abs(ref)))
        assert err <= tol * scl + 1e-3, (
            f"{compute_dtype}: max_err={err:.5f} vs ref_scale={scl:.5f}")
        return out

    run_and_check(jnp.float32, 0.03)    # exact-path check (approx-recip only delta)
    run_and_check(jnp.bfloat16, 0.12)   # bf16 MXU fast path

    print("KERNEL_OK")
</pallas_src>

<mosaic_0001>
module attributes {stable_mosaic.version = 11 : i64} {
  func.func @_attention2d_kernel(%arg0: i32, %arg1: memref<2x64x128xf32, #tpu.memory_space<vmem>>, %arg2: memref<128x384xf32, #tpu.memory_space<vmem>>, %arg3: memref<1x384xf32, #tpu.memory_space<vmem>>, %arg4: memref<1x128xf32, #tpu.memory_space<vmem>>, %arg5: memref<1x128xf32, #tpu.memory_space<vmem>>, %arg6: memref<4x64x64xf32, #tpu.memory_space<vmem>>, %arg7: memref<128x128xf32, #tpu.memory_space<vmem>>, %arg8: memref<1x128xf32, #tpu.memory_space<vmem>>, %arg9: memref<2x64x128xf32, #tpu.memory_space<vmem>>, %arg10: memref<128x128xf32, #tpu.memory_space<vmem>>) attributes {dimension_semantics = [#tpu.dimension_semantics<parallel>], iteration_bounds = array<i64: 2>, scalar_prefetch = 0 : i64, scratch_operands = 1 : i64, tpu.core_type = #tpu.core_type<tc>, window_params = [{transform_indices = @transform_0, window_bounds = array<i64: 2, 64, 128>}, {pipeline_mode = #tpu.pipeline_mode<synchronous>, transform_indices = @transform_1, window_bounds = array<i64: 128, 384>}, {pipeline_mode = #tpu.pipeline_mode<synchronous>, transform_indices = @transform_2, window_bounds = array<i64: 1, 384>}, {pipeline_mode = #tpu.pipeline_mode<synchronous>, transform_indices = @transform_3, window_bounds = array<i64: 1, 128>}, {pipeline_mode = #tpu.pipeline_mode<synchronous>, transform_indices = @transform_4, window_bounds = array<i64: 1, 128>}, {pipeline_mode = #tpu.pipeline_mode<synchronous>, transform_indices = @transform_5, window_bounds = array<i64: 4, 64, 64>}, {pipeline_mode = #tpu.pipeline_mode<synchronous>, transform_indices = @transform_6, window_bounds = array<i64: 128, 128>}, {pipeline_mode = #tpu.pipeline_mode<synchronous>, transform_indices = @transform_7, window_bounds = array<i64: 1, 128>}, {transform_indices = @transform_8, window_bounds = array<i64: 2, 64, 128>}]} {
    %c0 = arith.constant 0 : index
    %c0_0 = arith.constant 0 : index
    %c0_1 = arith.constant 0 : index
    %0 = vector.load %arg1[%c0, %c0_0, %c0_1] : memref<2x64x128xf32, #tpu.memory_space<vmem>>, vector<2x64x128xf32>
    %1 = vector.shape_cast %0 : vector<2x64x128xf32> to vector<128x128xf32>
    %c0_2 = arith.constant 0 : index
    %c0_3 = arith.constant 0 : index
    %2 = vector.load %arg2[%c0_2, %c0_3] : memref<128x384xf32, #tpu.memory_space<vmem>>, vector<128x384xf32>
    %cst = arith.constant dense<0.000000e+00> : vector<128x384xf32>
    %3 = tpu.matmul %1, %2, %cst {dimension_numbers = #tpu.dot_dimension_numbers<[1], [0], [0], [1], [0, 0, 1, 1], [], []>} : vector<128x128xf32>, vector<128x384xf32>, vector<128x384xf32> -> vector<128x384xf32>
    %c0_4 = arith.constant 0 : index
    %c0_5 = arith.constant 0 : index
    %4 = vector.load %arg3[%c0_4, %c0_5] : memref<1x384xf32, #tpu.memory_space<vmem>>, vector<1x384xf32>
    %5 = vector.broadcast %4 : vector<1x384xf32> to vector<128x384xf32>
    %6 = arith.addf %3, %5 : vector<128x384xf32>
    %7 = vector.extract_strided_slice %6 {offsets = [0, 0], sizes = [128, 128], strides = [1, 1]} : vector<128x384xf32> to vector<128x128xf32>
    %8 = vector.extract_strided_slice %6 {offsets = [0, 128], sizes = [128, 128], strides = [1, 1]} : vector<128x384xf32> to vector<128x128xf32>
    %9 = vector.extract_strided_slice %6 {offsets = [0, 256], sizes = [128, 128], strides = [1, 1]} : vector<128x384xf32> to vector<128x128xf32>
    %c0_6 = arith.constant 0 : index
    %c0_7 = arith.constant 0 : index
    %10 = vector.load %arg4[%c0_6, %c0_7] : memref<1x128xf32, #tpu.memory_space<vmem>>, vector<1x128xf32>
    %c0_8 = arith.constant 0 : index
    %c0_9 = arith.constant 0 : index
    %11 = vector.load %arg5[%c0_8, %c0_9] : memref<1x128xf32, #tpu.memory_space<vmem>>, vector<1x128xf32>
    %12 = vector.extract_strided_slice %7 {offsets = [0, 0], sizes = [128, 32], strides = [1, 1]} : vector<128x128xf32> to vector<128x32xf32>
    %13 = vector.extract_strided_slice %8 {offsets = [0, 0], sizes = [128, 32], strides = [1, 1]} : vector<128x128xf32> to vector<128x32xf32>
    %14 = vector.extract_strided_slice %9 {offsets = [0, 0], sizes = [128, 32], strides = [1, 1]} : vector<128x128xf32> to vector<128x32xf32>
    %15 = arith.mulf %12, %12 : vector<128x32xf32>
    %cst_10 = arith.constant dense<0.000000e+00> : vector<128xf32>
    %16 = vector.multi_reduction <add>, %15, %cst_10 [1] : vector<128x32xf32> to vector<128xf32>
    %17 = vector.shape_cast %16 : vector<128xf32> to vector<128x1xf32>
    %cst_11 = arith.constant 1.000000e-24 : f32
    %18 = vector.broadcast %cst_11 : f32 to vector<128x1xf32>
    %19 = arith.maximumf %17, %18 : vector<128x1xf32>
    %20 = math.rsqrt %19 : vector<128x1xf32>
    %21 = vector.broadcast %20 : vector<128x1xf32> to vector<128x32xf32>
    %22 = arith.mulf %12, %21 : vector<128x32xf32>
    %23 = arith.mulf %13, %13 : vector<128x32xf32>
    %cst_12 = arith.constant dense<0.000000e+00> : vector<128xf32>
    %24 = vector.multi_reduction <add>, %23, %cst_12 [1] : vector<128x32xf32> to vector<128xf32>
    %25 = vector.shape_cast %24 : vector<128xf32> to vector<128x1xf32>
    %cst_13 = arith.constant 1.000000e-24 : f32
    %26 = vector.broadcast %cst_13 : f32 to vector<128x1xf32>
    %27 = arith.maximumf %25, %26 : vector<128x1xf32>
    %28 = math.rsqrt %27 : vector<128x1xf32>
    %29 = vector.broadcast %28 : vector<128x1xf32> to vector<128x32xf32>
    %30 = arith.mulf %13, %29 : vector<128x32xf32>
    %31 = vector.extract_strided_slice %10 {offsets = [0, 0], sizes = [1, 32], strides = [1, 1]} : vector<1x128xf32> to vector<1x32xf32>
    %32 = vector.broadcast %31 : vector<1x32xf32> to vector<128x32xf32>
    %33 = arith.addf %22, %32 : vector<128x32xf32>
    %34 = vector.extract_strided_slice %11 {offsets = [0, 0], sizes = [1, 32], strides = [1, 1]} : vector<1x128xf32> to vector<1x32xf32>
    %35 = vector.broadcast %34 : vector<1x32xf32> to vector<128x32xf32>
    %36 = arith.mulf %33, %35 : vector<128x32xf32>
    %37 = vector.shape_cast %36 : vector<128x32xf32> to vector<2x64x32xf32>
    %38 = vector.shape_cast %30 : vector<128x32xf32> to vector<2x64x32xf32>
    %39 = vector.shape_cast %14 : vector<128x32xf32> to vector<2x64x32xf32>
    "tpu.trace_start"() <{level = 10 : i32, message = "bnd,bmd->bnm"}> : () -> ()
    %cst_14 = arith.constant dense<0.000000e+00> : vector<2x64x64xf32>
    %40 = tpu.matmul %37, %38, %cst_14 {dimension_numbers = #tpu.dot_dimension_numbers<[2], [2], [1], [1], [0, 0, 0, 1, 1, 1], [0], [0]>} : vector<2x64x32xf32>, vector<2x64x32xf32>, vector<2x64x64xf32> -> vector<2x64x64xf32>
    "tpu.trace_stop"() : () -> ()
    %c0_15 = arith.constant 0 : index
    %c0_16 = arith.constant 0 : index
    %c0_17 = arith.constant 0 : index
    %41 = vector.load %arg6[%c0_15, %c0_16, %c0_17] : memref<4x64x64xf32, #tpu.memory_space<vmem>>, vector<1x64x64xf32>
    %42 = vector.shape_cast %41 : vector<1x64x64xf32> to vector<64x64xf32>
    %43 = vector.shape_cast %42 : vector<64x64xf32> to vector<1x64x64xf32>
    %44 = vector.broadcast %43 : vector<1x64x64xf32> to vector<2x64x64xf32>
    %45 = arith.addf %40, %44 : vector<2x64x64xf32>
    %cst_18 = arith.constant dense<0xFF800000> : vector<2x64xf32>
    %46 = vector.multi_reduction <maximumf>, %45, %cst_18 [2] : vector<2x64x64xf32> to vector<2x64xf32>
    %47 = vector.shape_cast %46 : vector<2x64xf32> to vector<2x64x1xf32>
    %48 = vector.broadcast %47 : vector<2x64x1xf32> to vector<2x64x64xf32>
    %49 = arith.subf %45, %48 : vector<2x64x64xf32>
    %50 = math.exp %49 : vector<2x64x64xf32>
    %cst_19 = arith.constant dense<0.000000e+00> : vector<2x64xf32>
    %51 = vector.multi_reduction <add>, %50, %cst_19 [2] : vector<2x64x64xf32> to vector<2x64xf32>
    %52 = vector.shape_cast %51 : vector<2x64xf32> to vector<2x64x1xf32>
    %53 = tpu.reciprocal %52 {approx = true} : vector<2x64x1xf32> -> vector<2x64x1xf32>
    %54 = vector.broadcast %53 : vector<2x64x1xf32> to vector<2x64x64xf32>
    %55 = arith.mulf %50, %54 : vector<2x64x64xf32>
    "tpu.trace_start"() <{level = 10 : i32, message = "bnm,bmd->bnd"}> : () -> ()
    %cst_20 = arith.constant dense<0.000000e+00> : vector<2x64x32xf32>
    %56 = tpu.matmul %55, %39, %cst_20 {dimension_numbers = #tpu.dot_dimension_numbers<[2], [1], [1], [2], [0, 0, 0, 1, 1, 2], [0], [0]>} : vector<2x64x64xf32>, vector<2x64x32xf32>, vector<2x64x32xf32> -> vector<2x64x32xf32>
    "tpu.trace_stop"() : () -> ()
    %57 = vector.shape_cast %56 : vector<2x64x32xf32> to vector<128x32xf32>
    %c0_21 = arith.constant 0 : index
    %c0_22 = arith.constant 0 : index
    %58 = vector.load %arg10[%c0_21, %c0_22] : memref<128x128xf32, #tpu.memory_space<vmem>>, vector<128x32xf32>
    tpu.vector_store %arg10[%c0_21, %c0_22], %57 {strides = array<i32>} : memref<128x128xf32, #tpu.memory_space<vmem>>, vector<128x32xf32>,
    %59 = vector.extract_strided_slice %7 {offsets = [0, 32], sizes = [128, 32], strides = [1, 1]} : vector<128x128xf32> to vector<128x32xf32>
    %60 = vector.extract_strided_slice %8 {offsets = [0, 32], sizes = [128, 32], strides = [1, 1]} : vector<128x128xf32> to vector<128x32xf32>
    %61 = vector.extract_strided_slice %9 {offsets = [0, 32], sizes = [128, 32], strides = [1, 1]} : vector<128x128xf32> to vector<128x32xf32>
    %62 = arith.mulf %59, %59 : vector<128x32xf32>
    %cst_23 = arith.constant dense<0.000000e+00> : vector<128xf32>
    %63 = vector.multi_reduction <add>, %62, %cst_23 [1] : vector<128x32xf32> to vector<128xf32>
    %64 = vector.shape_cast %63 : vector<128xf32> to vector<128x1xf32>
    %cst_24 = arith.constant 1.000000e-24 : f32
    %65 = vector.broadcast %cst_24 : f32 to vector<128x1xf32>
    %66 = arith.maximumf %64, %65 : vector<128x1xf32>
    %67 = math.rsqrt %66 : vector<128x1xf32>
    %68 = vector.broadcast %67 : vector<128x1xf32> to vector<128x32xf32>
    %69 = arith.mulf %59, %68 : vector<128x32xf32>
    %70 = arith.mulf %60, %60 : vector<128x32xf32>
    %cst_25 = arith.constant dense<0.000000e+00> : vector<128xf32>
    %71 = vector.multi_reduction <add>, %70, %cst_25 [1] : vector<128x32xf32> to vector<128xf32>
    %72 = vector.shape_cast %71 : vector<128xf32> to vector<128x1xf32>
    %cst_26 = arith.constant 1.000000e-24 : f32
    %73 = vector.broadcast %cst_26 : f32 to vector<128x1xf32>
    %74 = arith.maximumf %72, %73 : vector<128x1xf32>
    %75 = math.rsqrt %74 : vector<128x1xf32>
    %76 = vector.broadcast %75 : vector<128x1xf32> to vector<128x32xf32>
    %77 = arith.mulf %60, %76 : vector<128x32xf32>
    %78 = vector.extract_strided_slice %10 {offsets = [0, 32], sizes = [1, 32], strides = [1, 1]} : vector<1x128xf32> to vector<1x32xf32>
    %79 = vector.broadcast %78 : vector<1x32xf32> to vector<128x32xf32>
    %80 = arith.addf %69, %79 : vector<128x32xf32>
    %81 = vector.extract_strided_slice %11 {offsets = [0, 32], sizes = [1, 32], strides = [1, 1]} : vector<1x128xf32> to vector<1x32xf32>
    %82 = vector.broadcast %81 : vector<1x32xf32> to vector<128x32xf32>
    %83 = arith.mulf %80, %82 : vector<128x32xf32>
    %84 = vector.shape_cast %83 : vector<128x32xf32> to vector<2x64x32xf32>
    %85 = vector.shape_cast %77 : vector<128x32xf32> to vector<2x64x32xf32>
    %86 = vector.shape_cast %61 : vector<128x32xf32> to vector<2x64x32xf32>
    "tpu.trace_start"() <{level = 10 : i32, message = "bnd,bmd->bnm"}> : () -> ()
    %cst_27 = arith.constant dense<0.000000e+00> : vector<2x64x64xf32>
    %87 = tpu.matmul %84, %85, %cst_27 {dimension_numbers = #tpu.dot_dimension_numbers<[2], [2], [1], [1], [0, 0, 0, 1, 1, 1], [0], [0]>} : vector<2x64x32xf32>, vector<2x64x32xf32>, vector<2x64x64xf32> -> vector<2x64x64xf32>
    "tpu.trace_stop"() : () -> ()
    %c1 = arith.constant 1 : index
    %c0_28 = arith.constant 0 : index
    %c0_29 = arith.constant 0 : index
    %88 = vector.load %arg6[%c1, %c0_28, %c0_29] : memref<4x64x64xf32, #tpu.memory_space<vmem>>, vector<1x64x64xf32>
    %89 = vector.shape_cast %88 : vector<1x64x64xf32> to vector<64x64xf32>
    %90 = vector.shape_cast %89 : vector<64x64xf32> to vector<1x64x64xf32>
    %91 = vector.broadcast %90 : vector<1x64x64xf32> to vector<2x64x64xf32>
    %92 = arith.addf %87, %91 : vector<2x64x64xf32>
    %cst_30 = arith.constant dense<0xFF800000> : vector<2x64xf32>
    %93 = vector.multi_reduction <maximumf>, %92, %cst_30 [2] : vector<2x64x64xf32> to vector<2x64xf32>
    %94 = vector.shape_cast %93 : vector<2x64xf32> to vector<2x64x1xf32>
    %95 = vector.broadcast %94 : vector<2x64x1xf32> to vector<2x64x64xf32>
    %96 = arith.subf %92, %95 : vector<2x64x64xf32>
    %97 = math.exp %96 : vector<2x64x64xf32>
    %cst_31 = arith.constant dense<0.000000e+00> : vector<2x64xf32>
    %98 = vector.multi_reduction <add>, %97, %cst_31 [2] : vector<2x64x64xf32> to vector<2x64xf32>
    %99 = vector.shape_cast %98 : vector<2x64xf32> to vector<2x64x1xf32>
    %100 = tpu.reciprocal %99 {approx = true} : vector<2x64x1xf32> -> vector<2x64x1xf32>
    %101 = vector.broadcast %100 : vector<2x64x1xf32> to vector<2x64x64xf32>
    %102 = arith.mulf %97, %101 : vector<2x64x64xf32>
    "tpu.trace_start"() <{level = 10 : i32, message = "bnm,bmd->bnd"}> : () -> ()
    %cst_32 = arith.constant dense<0.000000e+00> : vector<2x64x32xf32>
    %103 = tpu.matmul %102, %86, %cst_32 {dimension_numbers = #tpu.dot_dimension_numbers<[2], [1], [1], [2], [0, 0, 0, 1, 1, 2], [0], [0]>} : vector<2x64x64xf32>, vector<2x64x32xf32>, vector<2x64x32xf32> -> vector<2x64x32xf32>
    "tpu.trace_stop"() : () -> ()
    %104 = vector.shape_cast %103 : vector<2x64x32xf32> to vector<128x32xf32>
    %c0_33 = arith.constant 0 : index
    %c32 = arith.constant 32 : index
    %105 = vector.load %arg10[%c0_33, %c32] : memref<128x128xf32, #tpu.memory_space<vmem>>, vector<128x32xf32>
    tpu.vector_store %arg10[%c0_33, %c32], %104 {strides = array<i32>} : memref<128x128xf32, #tpu.memory_space<vmem>>, vector<128x32xf32>,
    %106 = vector.extract_strided_slice %7 {offsets = [0, 64], sizes = [128, 32], strides = [1, 1]} : vector<128x128xf32> to vector<128x32xf32>
    %107 = vector.extract_strided_slice %8 {offsets = [0, 64], sizes = [128, 32], strides = [1, 1]} : vector<128x128xf32> to vector<128x32xf32>
    %108 = vector.extract_strided_slice %9 {offsets = [0, 64], sizes = [128, 32], strides = [1, 1]} : vector<128x128xf32> to vector<128x32xf32>
    %109 = arith.mulf %106, %106 : vector<128x32xf32>
    %cst_34 = arith.constant dense<0.000000e+00> : vector<128xf32>
    %110 = vector.multi_reduction <add>, %109, %cst_34 [1] : vector<128x32xf32> to vector<128xf32>
    %111 = vector.shape_cast %110 : vector<128xf32> to vector<128x1xf32>
    %cst_35 = arith.constant 1.000000e-24 : f32
    %112 = vector.broadcast %cst_35 : f32 to vector<128x1xf32>
    %113 = arith.maximumf %111, %112 : vector<128x1xf32>
    %114 = math.rsqrt %113 : vector<128x1xf32>
    %115 = vector.broadcast %114 : vector<128x1xf32> to vector<128x32xf32>
    %116 = arith.mulf %106, %115 : vector<128x32xf32>
    %117 = arith.mulf %107, %107 : vector<128x32xf32>
    %cst_36 = arith.constant dense<0.000000e+00> : vector<128xf32>
    %118 = vector.multi_reduction <add>, %117, %cst_36 [1] : vector<128x32xf32> to vector<128xf32>
    %119 = vector.shape_cast %118 : vector<128xf32> to vector<128x1xf32>
    %cst_37 = arith.constant 1.000000e-24 : f32
    %120 = vector.broadcast %cst_37 : f32 to vector<128x1xf32>
    %121 = arith.maximumf %119, %120 : vector<128x1xf32>
    %122 = math.rsqrt %121 : vector<128x1xf32>
    %123 = vector.broadcast %122 : vector<128x1xf32> to vector<128x32xf32>
    %124 = arith.mulf %107, %123 : vector<128x32xf32>
    %125 = vector.extract_strided_slice %10 {offsets = [0, 64], sizes = [1, 32], strides = [1, 1]} : vector<1x128xf32> to vector<1x32xf32>
    %126 = vector.broadcast %125 : vector<1x32xf32> to vector<128x32xf32>
    %127 = arith.addf %116, %126 : vector<128x32xf32>
    %128 = vector.extract_strided_slice %11 {offsets = [0, 64], sizes = [1, 32], strides = [1, 1]} : vector<1x128xf32> to vector<1x32xf32>
    %129 = vector.broadcast %128 : vector<1x32xf32> to vector<128x32xf32>
    %130 = arith.mulf %127, %129 : vector<128x32xf32>
    %131 = vector.shape_cast %130 : vector<128x32xf32> to vector<2x64x32xf32>
    %132 = vector.shape_cast %124 : vector<128x32xf32> to vector<2x64x32xf32>
    %133 = vector.shape_cast %108 : vector<128x32xf32> to vector<2x64x32xf32>
    "tpu.trace_start"() <{level = 10 : i32, message = "bnd,bmd->bnm"}> : () -> ()
    %cst_38 = arith.constant dense<0.000000e+00> : vector<2x64x64xf32>
    %134 = tpu.matmul %131, %132, %cst_38 {dimension_numbers = #tpu.dot_dimension_numbers<[2], [2], [1], [1], [0, 0, 0, 1, 1, 1], [0], [0]>} : vector<2x64x32xf32>, vector<2x64x32xf32>, vector<2x64x64xf32> -> vector<2x64x64xf32>
    "tpu.trace_stop"() : () -> ()
    %c2 = arith.constant 2 : index
    %c0_39 = arith.constant 0 : index
    %c0_40 = arith.constant 0 : index
    %135 = vector.load %arg6[%c2, %c0_39, %c0_40] : memref<4x64x64xf32, #tpu.memory_space<vmem>>, vector<1x64x64xf32>
    %136 = vector.shape_cast %135 : vector<1x64x64xf32> to vector<64x64xf32>
    %137 = vector.shape_cast %136 : vector<64x64xf32> to vector<1x64x64xf32>
    %138 = vector.broadcast %137 : vector<1x64x64xf32> to vector<2x64x64xf32>
    %139 = arith.addf %134, %138 : vector<2x64x64xf32>
    %cst_41 = arith.constant dense<0xFF800000> : vector<2x64xf32>
    %140 = vector.multi_reduction <maximumf>, %139, %cst_41 [2] : vector<2x64x64xf32> to vector<2x64xf32>
    %141 = vector.shape_cast %140 : vector<2x64xf32> to vector<2x64x1xf32>
    %142 = vector.broadcast %141 : vector<2x64x1xf32> to vector<2x64x64xf32>
    %143 = arith.subf %139, %142 : vector<2x64x64xf32>
    %144 = math.exp %143 : vector<2x64x64xf32>
    %cst_42 = arith.constant dense<0.000000e+00> : vector<2x64xf32>
    %145 = vector.multi_reduction <add>, %144, %cst_42 [2] : vector<2x64x64xf32> to vector<2x64xf32>
    %146 = vector.shape_cast %145 : vector<2x64xf32> to vector<2x64x1xf32>
    %147 = tpu.reciprocal %146 {approx = true} : vector<2x64x1xf32> -> vector<2x64x1xf32>
    %148 = vector.broadcast %147 : vector<2x64x1xf32> to vector<2x64x64xf32>
    %149 = arith.mulf %144, %148 : vector<2x64x64xf32>
    "tpu.trace_start"() <{level = 10 : i32, message = "bnm,bmd->bnd"}> : () -> ()
    %cst_43 = arith.constant dense<0.000000e+00> : vector<2x64x32xf32>
    %150 = tpu.matmul %149, %133, %cst_43 {dimension_numbers = #tpu.dot_dimension_numbers<[2], [1], [1], [2], [0, 0, 0, 1, 1, 2], [0], [0]>} : vector<2x64x64xf32>, vector<2x64x32xf32>, vector<2x64x32xf32> -> vector<2x64x32xf32>
    "tpu.trace_stop"() : () -> ()
    %151 = vector.shape_cast %150 : vector<2x64x32xf32> to vector<128x32xf32>
    %c0_44 = arith.constant 0 : index
    %c64 = arith.constant 64 : index
    %152 = vector.load %arg10[%c0_44, %c64] : memref<128x128xf32, #tpu.memory_space<vmem>>, vector<128x32xf32>
    tpu.vector_store %arg10[%c0_44, %c64], %151 {strides = array<i32>} : memref<128x128xf32, #tpu.memory_space<vmem>>, vector<128x32xf32>,
    %153 = vector.extract_strided_slice %7 {offsets = [0, 96], sizes = [128, 32], strides = [1, 1]} : vector<128x128xf32> to vector<128x32xf32>
    %154 = vector.extract_strided_slice %8 {offsets = [0, 96], sizes = [128, 32], strides = [1, 1]} : vector<128x128xf32> to vector<128x32xf32>
    %155 = vector.extract_strided_slice %9 {offsets = [0, 96], sizes = [128, 32], strides = [1, 1]} : vector<128x128xf32> to vector<128x32xf32>
    %156 = arith.mulf %153, %153 : vector<128x32xf32>
    %cst_45 = arith.constant dense<0.000000e+00> : vector<128xf32>
    %157 = vector.multi_reduction <add>, %156, %cst_45 [1] : vector<128x32xf32> to vector<128xf32>
    %158 = vector.shape_cast %157 : vector<128xf32> to vector<128x1xf32>
    %cst_46 = arith.constant 1.000000e-24 : f32
    %159 = vector.broadcast %cst_46 : f32 to vector<128x1xf32>
    %160 = arith.maximumf %158, %159 : vector<128x1xf32>
    %161 = math.rsqrt %160 : vector<128x1xf32>
    %162 = vector.broadcast %161 : vector<128x1xf32> to vector<128x32xf32>
    %163 = arith.mulf %153, %162 : vector<128x32xf32>
    %164 = arith.mulf %154, %154 : vector<128x32xf32>
    %cst_47 = arith.constant dense<0.000000e+00> : vector<128xf32>
    %165 = vector.multi_reduction <add>, %164, %cst_47 [1] : vector<128x32xf32> to vector<128xf32>
    %166 = vector.shape_cast %165 : vector<128xf32> to vector<128x1xf32>
    %cst_48 = arith.constant 1.000000e-24 : f32
    %167 = vector.broadcast %cst_48 : f32 to vector<128x1xf32>
    %168 = arith.maximumf %166, %167 : vector<128x1xf32>
    %169 = math.rsqrt %168 : vector<128x1xf32>
    %170 = vector.broadcast %169 : vector<128x1xf32> to vector<128x32xf32>
    %171 = arith.mulf %154, %170 : vector<128x32xf32>
    %172 = vector.extract_strided_slice %10 {offsets = [0, 96], sizes = [1, 32], strides = [1, 1]} : vector<1x128xf32> to vector<1x32xf32>
    %173 = vector.broadcast %172 : vector<1x32xf32> to vector<128x32xf32>
    %174 = arith.addf %163, %173 : vector<128x32xf32>
    %175 = vector.extract_strided_slice %11 {offsets = [0, 96], sizes = [1, 32], strides = [1, 1]} : vector<1x128xf32> to vector<1x32xf32>
    %176 = vector.broadcast %175 : vector<1x32xf32> to vector<128x32xf32>
    %177 = arith.mulf %174, %176 : vector<128x32xf32>
    %178 = vector.shape_cast %177 : vector<128x32xf32> to vector<2x64x32xf32>
    %179 = vector.shape_cast %171 : vector<128x32xf32> to vector<2x64x32xf32>
    %180 = vector.shape_cast %155 : vector<128x32xf32> to vector<2x64x32xf32>
    "tpu.trace_start"() <{level = 10 : i32, message = "bnd,bmd->bnm"}> : () -> ()
    %cst_49 = arith.constant dense<0.000000e+00> : vector<2x64x64xf32>
    %181 = tpu.matmul %178, %179, %cst_49 {dimension_numbers = #tpu.dot_dimension_numbers<[2], [2], [1], [1], [0, 0, 0, 1, 1, 1], [0], [0]>} : vector<2x64x32xf32>, vector<2x64x32xf32>, vector<2x64x64xf32> -> vector<2x64x64xf32>
    "tpu.trace_stop"() : () -> ()
    %c3 = arith.constant 3 : index
    %c0_50 = arith.constant 0 : index
    %c0_51 = arith.constant 0 : index
    %182 = vector.load %arg6[%c3, %c0_50, %c0_51] : memref<4x64x64xf32, #tpu.memory_space<vmem>>, vector<1x64x64xf32>
    %183 = vector.shape_cast %182 : vector<1x64x64xf32> to vector<64x64xf32>
    %184 = vector.shape_cast %183 : vector<64x64xf32> to vector<1x64x64xf32>
    %185 = vector.broadcast %184 : vector<1x64x64xf32> to vector<2x64x64xf32>
    %186 = arith.addf %181, %185 : vector<2x64x64xf32>
    %cst_52 = arith.constant dense<0xFF800000> : vector<2x64xf32>
    %187 = vector.multi_reduction <maximumf>, %186, %cst_52 [2] : vector<2x64x64xf32> to vector<2x64xf32>
    %188 = vector.shape_cast %187 : vector<2x64xf32> to vector<2x64x1xf32>
    %189 = vector.broadcast %188 : vector<2x64x1xf32> to vector<2x64x64xf32>
    %190 = arith.subf %186, %189 : vector<2x64x64xf32>
    %191 = math.exp %190 : vector<2x64x64xf32>
    %cst_53 = arith.constant dense<0.000000e+00> : vector<2x64xf32>
    %192 = vector.multi_reduction <add>, %191, %cst_53 [2] : vector<2x64x64xf32> to vector<2x64xf32>
    %193 = vector.shape_cast %192 : vector<2x64xf32> to vector<2x64x1xf32>
    %194 = tpu.reciprocal %193 {approx = true} : vector<2x64x1xf32> -> vector<2x64x1xf32>
    %195 = vector.broadcast %194 : vector<2x64x1xf32> to vector<2x64x64xf32>
    %196 = arith.mulf %191, %195 : vector<2x64x64xf32>
    "tpu.trace_start"() <{level = 10 : i32, message = "bnm,bmd->bnd"}> : () -> ()
    %cst_54 = arith.constant dense<0.000000e+00> : vector<2x64x32xf32>
    %197 = tpu.matmul %196, %180, %cst_54 {dimension_numbers = #tpu.dot_dimension_numbers<[2], [1], [1], [2], [0, 0, 0, 1, 1, 2], [0], [0]>} : vector<2x64x64xf32>, vector<2x64x32xf32>, vector<2x64x32xf32> -> vector<2x64x32xf32>
    "tpu.trace_stop"() : () -> ()
    %198 = vector.shape_cast %197 : vector<2x64x32xf32> to vector<128x32xf32>
    %c0_55 = arith.constant 0 : index
    %c96 = arith.constant 96 : index
    %199 = vector.load %arg10[%c0_55, %c96] : memref<128x128xf32, #tpu.memory_space<vmem>>, vector<128x32xf32>
    tpu.vector_store %arg10[%c0_55, %c96], %198 {strides = array<i32>} : memref<128x128xf32, #tpu.memory_space<vmem>>, vector<128x32xf32>,
    %c0_56 = arith.constant 0 : index
    %c0_57 = arith.constant 0 : index
    %200 = vector.load %arg10[%c0_56, %c0_57] : memref<128x128xf32, #tpu.memory_space<vmem>>, vector<128x128xf32>
    %c0_58 = arith.constant 0 : index
    %c0_59 = arith.constant 0 : index
    %201 = vector.load %arg7[%c0_58, %c0_59] : memref<128x128xf32, #tpu.memory_space<vmem>>, vector<128x128xf32>
    %cst_60 = arith.constant dense<0.000000e+00> : vector<128x128xf32>
    %202 = tpu.matmul %200, %201, %cst_60 {dimension_numbers = #tpu.dot_dimension_numbers<[1], [0], [0], [1], [0, 0, 1, 1], [], []>} : vector<128x128xf32>, vector<128x128xf32>, vector<128x128xf32> -> vector<128x128xf32>
    %c0_61 = arith.constant 0 : index
    %c0_62 = arith.constant 0 : index
    %203 = vector.load %arg8[%c0_61, %c0_62] : memref<1x128xf32, #tpu.memory_space<vmem>>, vector<1x128xf32>
    %204 = vector.broadcast %203 : vector<1x128xf32> to vector<128x128xf32>
    %205 = arith.addf %202, %204 : vector<128x128xf32>
    %206 = vector.shape_cast %205 : vector<128x128xf32> to vector<2x64x128xf32>
    %c0_63 = arith.constant 0 : index
    %c0_64 = arith.constant 0 : index
    %c0_65 = arith.constant 0 : index
    %207 = vector.load %arg9[%c0_63, %c0_64, %c0_65] : memref<2x64x128xf32, #tpu.memory_space<vmem>>, vector<2x64x128xf32>
    tpu.vector_store %arg9[%c0_63, %c0_64, %c0_65], %206 {strides = array<i32>} : memref<2x64x128xf32, #tpu.memory_space<vmem>>, vector<2x64x128xf32>,
    return
  }
  func.func @transform_0(%arg0: i32) -> (i32, i32, i32) {
    %c0_i32 = arith.constant 0 : i32
    %c0_i32_0 = arith.constant 0 : i32
    %c0_i32_1 = arith.constant 0 : i32
    return %arg0, %c0_i32, %c0_i32_0 : i32, i32, i32
  }
  func.func @transform_1(%arg0: i32) -> (i32, i32) {
    %c0_i32 = arith.constant 0 : i32
    %c0_i32_0 = arith.constant 0 : i32
    %c0_i32_1 = arith.constant 0 : i32
    return %c0_i32, %c0_i32_0 : i32, i32
  }
  func.func @transform_2(%arg0: i32) -> (i32, i32) {
    %c0_i32 = arith.constant 0 : i32
    %c0_i32_0 = arith.constant 0 : i32
    %c0_i32_1 = arith.constant 0 : i32
    return %c0_i32, %c0_i32_0 : i32, i32
  }
  func.func @transform_3(%arg0: i32) -> (i32, i32) {
    %c0_i32 = arith.constant 0 : i32
    %c0_i32_0 = arith.constant 0 : i32
    %c0_i32_1 = arith.constant 0 : i32
    return %c0_i32, %c0_i32_0 : i32, i32
  }
  func.func @transform_4(%arg0: i32) -> (i32, i32) {
    %c0_i32 = arith.constant 0 : i32
    %c0_i32_0 = arith.constant 0 : i32
    %c0_i32_1 = arith.constant 0 : i32
    return %c0_i32, %c0_i32_0 : i32, i32
  }
  func.func @transform_5(%arg0: i32) -> (i32, i32, i32) {
    %c0_i32 = arith.constant 0 : i32
    %c0_i32_0 = arith.constant 0 : i32
    %c0_i32_1 = arith.constant 0 : i32
    %c0_i32_2 = arith.constant 0 : i32
    return %c0_i32, %c0_i32_0, %c0_i32_1 : i32, i32, i32
  }
  func.func @transform_6(%arg0: i32) -> (i32, i32) {
    %c0_i32 = arith.constant 0 : i32
    %c0_i32_0 = arith.constant 0 : i32
    %c0_i32_1 = arith.constant 0 : i32
    return %c0_i32, %c0_i32_0 : i32, i32
  }
  func.func @transform_7(%arg0: i32) -> (i32, i32) {
    %c0_i32 = arith.constant 0 : i32
    %c0_i32_0 = arith.constant 0 : i32
    %c0_i32_1 = arith.constant 0 : i32
    return %c0_i32, %c0_i32_0 : i32, i32
  }
  func.func @transform_8(%arg0: i32) -> (i32, i32, i32) {
    %c0_i32 = arith.constant 0 : i32
    %c0_i32_0 = arith.constant 0 : i32
    %c0_i32_1 = arith.constant 0 : i32
    return %arg0, %c0_i32, %c0_i32_0 : i32, i32, i32
  }
}

</mosaic_0001>

<bundles_post_ra>
// kernel: tpu_custom_call.1
= control target key start
LH: loop header
LB: loop body
LE: loop exit
PB: predicated region body
PF: predicated region fallthrough
CT: control target
= control target key end

     0   :  { %s11721_s0 = inlined_call_operand.hbm [shape: f32[4,64,128], index: 0, kind: input, shape index: {}]   ;;  %s11722_s1 = inlined_call_operand.hbm [shape: f32[128,384], index: 1, kind: input, shape index: {}]   ;;  %s11723_s2 = inlined_call_operand.vmem [shape: f32[1,384], index: 2, kind: input, shape index: {}]   ;;  %s11724_s3 = inlined_call_operand.vmem [shape: f32[1,128], index: 3, kind: input, shape index: {}]   ;;  %s11725_s4 = inlined_call_operand.vmem [shape: f32[1,128], index: 4, kind: input, shape index: {}]   ;;  %s11726_s5 = inlined_call_operand.hbm [shape: f32[4,64,64], index: 5, kind: input, shape index: {}]   ;;  %s11727_s6 = inlined_call_operand.hbm [shape: f32[128,128], index: 6, kind: input, shape index: {}]   ;;  %s11728_s7 = inlined_call_operand.vmem [shape: f32[1,128], index: 7, kind: input, shape index: {}]   ;;  %s11729_s8 = inlined_call_operand.hbm [shape: f32[4,64,128], index: 8, kind: output, shape index: {}]  }
   0x1   :  { %11886 = sst [smem:[#allocation112_spill]] %s11722_s1 }
   0x2   :  { %13 = vsyncpa [#allocation4], 0 }
   0x3   :  { %15 = vsyncpa [#allocation4 + $0x1], 0 }
   0x4   :  { %16 = vsyncpa [#allocation7], 0 }
   0x5   :  { %17 = vsyncpa [#allocation10], 0 }
   0x6   :  { %18 = vsyncpa [#allocation5], 0 }
   0x7   :  { %20 = vsyncpa [#allocation5 + $0x1], 0  ;;  %s8574_s27 = smov 0   ;;  %s8576_s28 = smov 0  }
   0x8   :  { %s8578_s29 = smov 0   ;;  %s8580_s30 = smov 0  }
   0x9 LB: > { %11887 = sst [smem:[#allocation16_spill]] %s8500_s27  ;;  %s8595_s9 = sadd.s32 4294967295, %s8512_s30   ;;  %s8512_s30 = sphi %s8580_s30, %s12225_s30   ;;  %s8508_s29 = sphi %s8578_s29, %s12224_s29   ;;  %s8504_s28 = sphi %s8576_s28, %s12223_s28   ;;  %s8500_s27 = sphi %s8574_s27, %s12222_s27  }
   0xa   : > { %s5945_s10 = sadd.s32 4294967294, %s8512_s30   ;;  %p46_p0 = scmp.ne.s32.totalorder %s8504_s28, %s8500_s27 }
   0xb   : > { %p11730_p1 = scmp.eq.s32.totalorder %s8595_s9, 0  ;;  %p223_p3 = scmp.eq.s32.totalorder %s5945_s10, 1 }
   0xc   : > { %p5946_p5 = scmp.ge.s32.totalorder %s8512_s30, 1  ;;  %p230_p7 = scmp.lt.s32.totalorder %s8512_s30, 3 }
   0xd   : > { %p8604_p4 = por %p11730_p1, %p46_p0  ;;  %p8609_p6 = por %p223_p3, %p46_p0 }
   0xe   : > { %p8614_p8 = pnand %p5946_p5, %p230_p7  ;;  %s8514_s14 = smov [#allocation6]  }
   0xf   : > { %s11888_s11 = scalar_select %p8604_p4, 1, 0 }
  0x10   : > { %s11889_s12 = scalar_select %p8609_p6, 1, 0 }
  0x11   : > { %s11891_s13 = scalar_select %p8614_p8, 1, 0 }
  0x12   : > { %11890 = sst [smem:[#allocation17_spill]] %s11889_s12  ;;  %s242_s15 = sshll.u32 %s8514_s14, 4  ;;  %s8618_s15 = int_to_ptr.vmem [resolvable:$true] %s242_s15 }
  0x13   : > { %p7494_p9 = pneg %p8614_p8  ;;  %s8515_s17 = smov [#allocation8]  }
  0x14   : > { %s264_s18 = sshll.u32 %s8515_s17, 4  ;;  %s11893_s1 = sld [smem:[#allocation112_spill]]  ;;  %s8629_s18 = int_to_ptr.vmem [resolvable:$true] %s264_s18 }
  0x15   : > { %p8625_p11 = pnand %p7494_p9, %p11730_p1 }
  0x17   : > { %p8639_p13 = pneg %p8625_p11 }
  0x1a   : > { %s8324_s21 = scalar_lea.hbm %s11893_s1, 6144 }
  0x1b   : > { %p8325_p12 = scmp.ne.s32.totalorder %s11893_s1, %s8324_s21  ;;  %p8331_p5 = scmp.lt.u32.totalorder %s8324_s21, %s11893_s1 }
  0x1d   : > { %p8327_p0 = pnand %p8639_p13, %p8325_p12 }
  0x1f   : > { %p8328_p3 = pneg %p8327_p0 }
  0x21   : > { %p8333_p7 = pnand %p8331_p5, %p8328_p3 }
  0x23   : > { %8336 = shalt.err (!%p8333_p7)
}
  0x24   : > { %s8337_s10 = scalar_lea.vmem %s8618_s15, 6144  ;;  %p8345_p2 = scmp.lt.s32.totalorder %s8618_s15, %s8618_s15 }
  0x25   : > { %p8338_p9 = scmp.ne.s32.totalorder %s8618_s15, %s8337_s10  ;;  %p8346_p6 = scmp.lt.s32.totalorder %s8337_s10, %s8337_s10 }
  0x27   : > { %p8340_p10 = pnand %p8338_p9, %p8639_p13  ;;  %p8347_p12 = por %p8346_p6, %p8345_p2 }
  0x29   : > { %p8341_p1 = pneg %p8340_p10 }
  0x2b   : > { %p8348_p0 = pnand %p8347_p12, %p8341_p1 }
  0x2d   : > { %8351 = shalt.err (!%p8348_p0)
}
  0x2e   : > { %s8516_s14 = smov 384   ;;  %s8517_s17 = smov 24  }
  0x2f   : > { %7497 = dma.hbm_to_vmem [thread:$0]  (!%p8625_p11), %s11893_s1, 6144, %s8618_s15, [#allocation7], %s8516_s14, %s8516_s14, %s8517_s17  }
  0x30   : > { %s8352_s23 = scalar_lea.hbm %s11726_s5, 4096 }
  0x31   : > { %p8353_p2 = scmp.ne.s32.totalorder %s11726_s5, %s8352_s23  ;;  %p8359_p10 = scmp.lt.u32.totalorder %s8352_s23, %s11726_s5 }
  0x33   : > { %p8355_p1 = pnand %p8353_p2, %p8639_p13 }
  0x35   : > { %p8356_p6 = pneg %p8355_p1 }
  0x37   : > { %p8361_p3 = pnand %p8359_p10, %p8356_p6 }
  0x39   : > { %8364 = shalt.err (!%p8361_p3)
}
  0x3a   : > { %s8365_s15 = scalar_lea.vmem %s8629_s18, 4096  ;;  %p8373_p12 = scmp.lt.s32.totalorder %s8629_s18, %s8629_s18 }
  0x3b   : > { %p8366_p5 = scmp.ne.s32.totalorder %s8629_s18, %s8365_s15  ;;  %p8374_p0 = scmp.lt.s32.totalorder %s8365_s15, %s8365_s15 }
  0x3d   : > { %p8368_p7 = pnand %p8366_p5, %p8639_p13  ;;  %p8375_p2 = por %p8374_p0, %p8373_p12 }
  0x3f   : > { %p8369_p9 = pneg %p8368_p7 }
  0x41   : > { %p8376_p1 = pnand %p8375_p2, %p8369_p9 }
  0x43   : > { %8379 = shalt.err (!%p8376_p1)
}
  0x44   : > { %s8518_s14 = smov 128   ;;  %s8519_s12 = smov 8  }
  0x45   : > { %7500 = dma.hbm_to_vmem [thread:$0]  (!%p8625_p11), %s11726_s5, 4096, %s8629_s18, [#allocation7], %s8518_s14, %s8518_s14, %s8519_s12  }
  0x46   : > { %s8520_s20 = smov [#allocation9]   ;;  %s8687_s22 = sadd.s32 1, %s8512_s30  }
  0x47   : > { %s277_s21 = sshll.u32 %s8520_s20, 4  ;;  %s8380_s26 = scalar_lea.hbm %s11727_s6, 2048  ;;  %s278_s21 = int_to_ptr.vmem [resolvable:$true] %s277_s21 }
  0x48   : > { %p8381_p6 = scmp.ne.s32.totalorder %s11727_s6, %s8380_s26  ;;  %p8387_p5 = scmp.lt.u32.totalorder %s8380_s26, %s11727_s6 }
  0x4a   : > { %p8383_p10 = pnand %p8381_p6, %p8639_p13 }
  0x4c   : > { %p8384_p3 = pneg %p8383_p10 }
  0x4e   : > { %p8389_p7 = pnand %p8387_p5, %p8384_p3 }
  0x50   : > { %8392 = shalt.err (!%p8389_p7)
}
  0x51   : > { %s8393_s18 = scalar_lea.vmem %s278_s21, 2048  ;;  %p8401_p2 = scmp.lt.s32.totalorder %s278_s21, %s278_s21 }
  0x52   : > { %p8394_p9 = scmp.ne.s32.totalorder %s278_s21, %s8393_s18  ;;  %p8402_p1 = scmp.lt.s32.totalorder %s8393_s18, %s8393_s18 }
  0x54   : > { %p8396_p12 = pnand %p8394_p9, %p8639_p13  ;;  %p8403_p4 = por %p8402_p1, %p8401_p2 }
  0x56   : > { %p8397_p0 = pneg %p8396_p12 }
  0x58   : > { %p8404_p8 = pnand %p8403_p4, %p8397_p0 }
  0x5a   : > { %8407 = shalt.err (!%p8404_p8)
}
  0x5b   : > { %7503 = dma.hbm_to_vmem [thread:$0]  (!%p8625_p11), %s11727_s6, 2048, %s278_s21, [#allocation10], %s8518_s14, %s8518_s14, %s8519_s12  }
  0x5c   : > { %s30_s24 = ssub.s32 %s8512_s30, %s8687_s22  ;;  %s33_s16 = sadd.s32 1, %s8508_s29 }
  0x5d   : > { %p31_p4 = scmp.eq.s32.totalorder %s30_s24, 0  ;;  %p40_p8 = scmp.ne.s32.totalorder %s8508_s29, %s8504_s28 }
  0x5e   : > { %p41_p13 = scmp.eq.s32.totalorder %s8512_s30, 0  ;;  %p7515_p6 = scmp.lt.s32.totalorder %s8512_s30, 2 }
  0x5f   : > { %s8718_s17 = scalar_select %p31_p4, %s8508_s29, %s33_s16  }
  0x60   : > { %p42_p10 = por %p41_p13, %p40_p8  ;;  %p11895_p3 = scmp.eq.s32.totalorder %s8595_s9, 1 }
  0x61   : > { %s294_s20 = sand.u32 1, %s8508_s29   ;;  %s6163_s23 = sshll.u32 %s8512_s30, 11 }
  0x62   : > { %p8722_p5 = por %p11895_p3, %p40_p8  ;;  %s5951_s25 = sshll.u32 %s294_s20, 7 }
  0x63   : > { %s8731_s21 = scalar_lea.hbm %s11721_s0, %s6163_s23  ;;  %s298_s15 = scalar_lea.vmem [#allocation3], %s5951_s25 }
  0x64   : > { %s306_s18 = sshll.u32 %s298_s15, 4  ;;  %p8733_p11 = pnand %p7515_p6, %p42_p10  ;;  %s8737_s18 = int_to_ptr.vmem [resolvable:$true] %s306_s18 }
  0x65   : > { %s8739_s27 = scalar_lea.sflag [#allocation4], %s294_s20  ;;  %s8408_s24 = scalar_lea.hbm %s8731_s21, 2048 }
  0x66   : > { %p8409_p7 = scmp.ne.s32.totalorder %s8731_s21, %s8408_s24  ;;  %p8410_p9 = pneg %p8733_p11 }
  0x67   : > { %s8413_s25 = scalar_lea.hbm %s11721_s0, 4096  ;;  %p8414_p2 = scmp.lt.u32.totalorder %s8731_s21, %s11721_s0 }
  0x68   : > { %p8411_p12 = pnand %p8410_p9, %p8409_p7  ;;  %p8415_p1 = scmp.lt.u32.totalorder %s8413_s25, %s8408_s24 }
  0x69   : > { %p8417_p8 = scmp.lt.u32.totalorder %s8408_s24, %s8731_s21 }
  0x6a   : > { %p8412_p0 = pneg %p8411_p12  ;;  %p8416_p4 = por %p8415_p1, %p8414_p2 }
  0x6c   : > { %p8418_p13 = por %p8417_p8, %p8416_p4 }
  0x6e   : > { %p8419_p6 = pnand %p8418_p13, %p8412_p0 }
  0x70   : > { %8422 = shalt.err (!%p8419_p6)
}
  0x71   : > { %s8423_s20 = scalar_lea.vmem %s8737_s18, 2048  ;;  %s8521_s15 = smov [#allocation3]  }
  0x72   : > { %p8424_p10 = scmp.ne.s32.totalorder %s8737_s18, %s8423_s20  ;;  %s8428_s16 = sshll.u32 %s8521_s15, 4  ;;  %s8429_s16 = int_to_ptr.vmem [resolvable:$false] %s8428_s16 }
  0x73   : > { %s8430_s23 = scalar_lea.vmem %s8429_s16, 4096  ;;  %p8431_p12 = scmp.lt.s32.totalorder %s8737_s18, %s8429_s16 }
  0x74   : > { %p8426_p3 = pnand %p8424_p10, %p8410_p9  ;;  %p8432_p2 = scmp.lt.s32.totalorder %s8430_s23, %s8423_s20 }
  0x76   : > { %p8427_p7 = pneg %p8426_p3  ;;  %p8433_p1 = por %p8432_p2, %p8431_p12 }
  0x78   : > { %p8434_p4 = pnand %p8433_p1, %p8427_p7 }
  0x7a   : > { %8437 = shalt.err (!%p8434_p4)
}
  0x7b   : > { %7507 = dma.hbm_to_vmem [thread:$0]  (!%p8733_p11), %s8731_s21, 2048, %s8737_s18, %s8739_s27, %s8518_s14, %s8518_s14, %s8519_s12  }
  0x7c   : > { %p11898_p9 = scmp.ne.s32.totalorder %s11891_s13, 0 }
  0x7e   : > { %318 = sbr.rel (%p11898_p9) target bundleno = 4610 (0x1202), region = 52 }
  0x85   : > { %s8773_s24 = sand.u32 1, %s8504_s28   ;;  %p11899_p0 = scmp.ne.s32.totalorder %s11888_s11, 0 }
  0x86   : > { %s5956_s25 = sshll.u32 %s8773_s24, 7  ;;  %s321_s26 = scalar_lea.sflag [#allocation4], %s8773_s24 }
  0x87   : > { %s8779_s1 = scalar_lea.vmem [#allocation3], %s5956_s25 }
  0x88   : > { %8483 = dma.done.wait (%p11899_p0), %s321_s26, 2048  }
  0x89   : > { %8485 = vsyncadd (%p11899_p0), %s321_s26, 4294965248  ;;  %p11900_p11 = scmp.eq.s32.totalorder %s8595_s9, 0 }
  0x8b   : > { %8487 = dma.done.wait (%p11900_p11), [#allocation7], 10240   ;;  %p11901_p8 = pmov %p11900_p11 }
  0x8d   : > { %8489 = vsyncadd (%p11901_p8), [#allocation7], 4294957056  ;;  %p11902_p13 = pmov %p11901_p8 }
  0x8e   : > { %p11903_p6 = pmov %p11901_p8 }
  0x8f   : > { %8491 = dma.done.wait (%p11902_p13), [#allocation10], 2048  }
  0x90   : > { %8493 = vsyncadd (%p11903_p6), [#allocation10], 4294965248  ;;  %v8522_v0 = vmov 0.0   ;;  %v388_v1 = vld [vmem:[#allocation6 + $0x8] sm:$0xff]  ;;  %v391_v2 = vld [vmem:[#allocation6 + $0x20] sm:$0xff]  ;;  %v437_v61 = vlaneseq  ;;  %s8523_s14 = smov 96  }
  0x91   : > { %516 = vmatprep.mubr.f32.mxu0 %v8522_v0  ;;  %564 = vmatprep.mubr.f32.mxu1 %v8522_v0  ;;  %v387_v3 = vld [vmem:[#allocation6] sm:$0xff]  ;;  %v7046_v4 = vpack.c.bf16 %v391_v2, %v388_v1  ;;  %v390_v5 = vld [vmem:[#allocation6 + $0x18] sm:$0xff]  ;;  %v397_v7 = vld [vmem:[#allocation6 + $0x50] sm:$0xff]  ;;  %s8524_s12 = smov 64   ;;  %vm776_vm0 = vcmask 261120   ;;  %vm1343_vm2 = vcmask 523264  }
  0x92   : > { %v394_v6 = vld [vmem:[#allocation6 + $0x38] sm:$0xff]  ;;  %v7048_v8 = vpack.c.bf16 %v390_v5, %v387_v3  ;;  %v393_v10 = vld [vmem:[#allocation6 + $0x30] sm:$0xff]  ;;  %v396_v11 = vld [vmem:[#allocation6 + $0x48] sm:$0xff]  ;;  %v8855_v62 = vshrl.u32 %v437_v61, 7  ;;  %s8525_s27 = smov 32   ;;  %vm3087_vm3 = vcmask 523520  }
  0x93   : > { %v7050_v9 = vpack.c.bf16 %v397_v7, %v394_v6  ;;  %v400_v12 = vld [vmem:[#allocation6 + $0x68] sm:$0xff]  ;;  %7047 = vmatprep.subr.bf16.mxu0 %v7046_v4  ;;  %7462 = vmatprep.subr.bf16.mxu1 %v7046_v4  ;;  %v403_v13 = vld [vmem:[#allocation6 + $0x80] sm:$0xff]  ;;  %v7052_v14 = vpack.c.bf16 %v396_v11, %v393_v10  ;;  %v402_v17 = vld [vmem:[#allocation6 + $0x78] sm:$0xff]  ;;  %vm4349_vm4 = vcmask 785920   ;;  %vm5611_vm5 = vcmask 1048320   ;;  %s8526_s18 = smov [#allocation11]  }
  0x94   : > { %7049 = vmatpush1.bf16.msra.mxu0 %v7048_v8  ;;  %7470 = vmatpush1.bf16.msra.mxu1 %v7048_v8  ;;  %v7054_v15 = vpack.c.bf16 %v403_v13, %v400_v12  ;;  %v399_v16 = vld [vmem:[#allocation6 + $0x60] sm:$0xff]  ;;  %v406_v18 = vld [vmem:[#allocation6 + $0x98] sm:$0xff]  ;;  %v409_v19 = vld [vmem:[#allocation6 + $0xb0] sm:$0xff]  ;;  %11904 = vst [vmem:[#allocation18_spill] sm:$0xff] %v8855_v62  ;;  %v439_v63 = vsub.s32 0, %v8855_v62  ;;  %v443_v2 = vsub.s32 1, %v8855_v62 }
  0x95   : > { %7051 = vmatprep.subr.bf16.mxu0 %v7050_v9  ;;  %7463 = vmatprep.subr.bf16.mxu1 %v7050_v9  ;;  %v7056_v20 = vpack.c.bf16 %v402_v17, %v399_v16  ;;  %v7058_v21 = vpack.c.bf16 %v409_v19, %v406_v18  ;;  %v405_v22 = vld [vmem:[#allocation6 + $0x90] sm:$0xff]  ;;  %v408_v23 = vld [vmem:[#allocation6 + $0xa8] sm:$0xff]  ;;  %v415_v25 = vld [vmem:[#allocation6 + $0xe0] sm:$0xff] }
  0x96   : > { %v412_v24 = vld [vmem:[#allocation6 + $0xc8] sm:$0xff]  ;;  %v7060_v26 = vpack.c.bf16 %v408_v23, %v405_v22  ;;  %v411_v28 = vld [vmem:[#allocation6 + $0xc0] sm:$0xff]  ;;  %v414_v29 = vld [vmem:[#allocation6 + $0xd8] sm:$0xff] }
  0x97   : > { %v7062_v27 = vpack.c.bf16 %v415_v25, %v412_v24  ;;  %v418_v30 = vld [vmem:[#allocation6 + $0xf8] sm:$0xff]  ;;  %v421_v31 = vld [vmem:[#allocation6 + $0x110] sm:$0xff]  ;;  %v7064_v32 = vpack.c.bf16 %v414_v29, %v411_v28  ;;  %v420_v35 = vld [vmem:[#allocation6 + $0x108] sm:$0xff] }
  0x98   : > { %7053 = vmatpush1.bf16.msra.mxu0 %v7052_v14  ;;  %7471 = vmatpush1.bf16.msra.mxu1 %v7052_v14  ;;  %v7066_v33 = vpack.c.bf16 %v421_v31, %v418_v30  ;;  %v417_v34 = vld [vmem:[#allocation6 + $0xf0] sm:$0xff]  ;;  %v424_v36 = vld [vmem:[#allocation6 + $0x128] sm:$0xff]  ;;  %v427_v37 = vld [vmem:[#allocation6 + $0x140] sm:$0xff] }
  0x99   : > { %7055 = vmatprep.subr.bf16.mxu0 %v7054_v15  ;;  %7464 = vmatprep.subr.bf16.mxu1 %v7054_v15  ;;  %v7068_v38 = vpack.c.bf16 %v420_v35, %v417_v34  ;;  %v7070_v39 = vpack.c.bf16 %v427_v37, %v424_v36  ;;  %v423_v40 = vld [vmem:[#allocation6 + $0x120] sm:$0xff]  ;;  %v426_v41 = vld [vmem:[#allocation6 + $0x138] sm:$0xff]  ;;  %v433_v43 = vld [vmem:[#allocation6 + $0x170] sm:$0xff] }
  0x9a   : > { %v430_v42 = vld [vmem:[#allocation6 + $0x158] sm:$0xff]  ;;  %v7072_v44 = vpack.c.bf16 %v426_v41, %v423_v40  ;;  %v429_v46 = vld [vmem:[#allocation6 + $0x150] sm:$0xff]  ;;  %v432_v47 = vld [vmem:[#allocation6 + $0x168] sm:$0xff] }
  0x9b   : > { %v7074_v45 = vpack.c.bf16 %v433_v43, %v430_v42  ;;  %v7076_v48 = vpack.c.bf16 %v432_v47, %v429_v46  ;;  %v8796_v49 = vld [vmem:[%s8779_s1] sm:$0xff]  ;;  %v8805_v51 = vld [vmem:[%s8779_s1 + $0x8] sm:$0xff]  ;;  %v8815_v53 = vld [vmem:[%s8779_s1 + $0x10] sm:$0xff] }
  0x9c   : > { %7057 = vmatpush1.bf16.msra.mxu0 %v7056_v20  ;;  %7472 = vmatpush1.bf16.msra.mxu1 %v7056_v20  ;;  %v8799_v50 = vld [vmem:[%s8779_s1 + $0x40] sm:$0xff]  ;;  %v8809_v52 = vld [vmem:[%s8779_s1 + $0x48] sm:$0xff]  ;;  %v8819_v54 = vld [vmem:[%s8779_s1 + $0x50] sm:$0xff] }
  0x9d   : > { %7059 = vmatprep.subr.bf16.mxu0 %v7058_v21  ;;  %7465 = vmatprep.subr.bf16.mxu1 %v7058_v21  ;;  %v8825_v55 = vld [vmem:[%s8779_s1 + $0x58] sm:$0xff]  ;;  %v8836_v57 = vld [vmem:[%s8779_s1 + $0x20] sm:$0xff]  ;;  %v8845_v59 = vld [vmem:[%s8779_s1 + $0x28] sm:$0xff] }
  0x9e   : > { %v8831_v56 = vld [vmem:[%s8779_s1 + $0x18] sm:$0xff]  ;;  %v8839_v58 = vld [vmem:[%s8779_s1 + $0x60] sm:$0xff]  ;;  %v8849_v60 = vld [vmem:[%s8779_s1 + $0x68] sm:$0xff] }
  0x9f   : > { %v435_v1 = vld [vmem:[%s11723_s2] sm:$0x7]  ;;  %v389_v16 = vld [vmem:[#allocation6 + $0x10] sm:$0xff]  ;;  %v392_v17 = vld [vmem:[#allocation6 + $0x28] sm:$0xff] }
  0xa0   : > { %7061 = vmatpush1.bf16.msra.mxu0 %v7060_v26  ;;  %7473 = vmatpush1.bf16.msra.mxu1 %v7060_v26  ;;  %v8862_v3 = vrot.slane %v435_v1, %v439_v63  ;;  %v8864_v4 = vrot.slane %v435_v1, %v443_v2  ;;  %v395_v18 = vld [vmem:[#allocation6 + $0x40] sm:$0xff]  ;;  %v398_v23 = vld [vmem:[#allocation6 + $0x58] sm:$0xff]  ;;  %v7078_v26 = vpack.c.bf16 %v392_v17, %v389_v16  ;;  %v401_v29 = vld [vmem:[#allocation6 + $0x70] sm:$0xff] }
  0xa1   : > { %7063 = vmatprep.subr.bf16.mxu0 %v7062_v27  ;;  %7466 = vmatprep.subr.bf16.mxu1 %v7062_v27  ;;  %v7082_v27 = vpack.c.bf16 %v398_v23, %v395_v18  ;;  %v404_v30 = vld [vmem:[#allocation6 + $0x88] sm:$0xff]  ;;  %v407_v34 = vld [vmem:[#allocation6 + $0xa0] sm:$0xff]  ;;  %v410_v35 = vld [vmem:[#allocation6 + $0xb8] sm:$0xff] }
  0xa2   : > { %v7090_v36 = vpack.c.bf16 %v410_v35, %v407_v34  ;;  %v413_v37 = vld [vmem:[#allocation6 + $0xd0] sm:$0xff]  ;;  %v419_v40 = vld [vmem:[#allocation6 + $0x100] sm:$0xff]  ;;  %v422_v41 = vld [vmem:[#allocation6 + $0x118] sm:$0xff] }
  0xa3   : > { %v7098_v42 = vpack.c.bf16 %v422_v41, %v419_v40  ;;  %v428_v46 = vld [vmem:[#allocation6 + $0x148] sm:$0xff]  ;;  %v431_v61 = vld [vmem:[#allocation6 + $0x160] sm:$0xff]  ;;  %v434_v63 = vld [vmem:[#allocation6 + $0x178] sm:$0xff] }
  0xa4   : > { %7065 = vmatpush1.bf16.msra.mxu0 %v7064_v32  ;;  %7474 = vmatpush1.bf16.msra.mxu1 %v7064_v32  ;;  %v386_v1 = vld [vmem:[%s8779_s1 + $0x78] sm:$0xff]  ;;  %v7106_v2 = vpack.c.bf16 %v434_v63, %v431_v61  ;;  %v9073_v61 = vld [vmem:[%s11724_s3] ss:$0 sm:$0xff]  ;;  %vm9151_vm1 = vmpackc.low %vm776_vm0, %vm776_vm0 }
  0xa5   : > { %7067 = vmatprep.subr.bf16.mxu0 %v7066_v33  ;;  %7467 = vmatprep.subr.bf16.mxu1 %v7066_v33  ;;  %v7086_v33 = vpack.c.bf16 %v404_v30, %v401_v29 }
  0xa8   : > { %7069 = vmatpush1.bf16.msra.mxu0 %v7068_v38  ;;  %7475 = vmatpush1.bf16.msra.mxu1 %v7068_v38  ;;  %v416_v38 = vld [vmem:[#allocation6 + $0xe8] sm:$0xff] }
  0xa9   : > { %7071 = vmatprep.subr.bf16.mxu0 %v7070_v39  ;;  %7468 = vmatprep.subr.bf16.mxu1 %v7070_v39  ;;  %v7094_v39 = vpack.c.bf16 %v416_v38, %v413_v37 }
  0xac   : > { %7073 = vmatpush1.bf16.msra.mxu0 %v7072_v44  ;;  %7476 = vmatpush1.bf16.msra.mxu1 %v7072_v44  ;;  %v385_v44 = vld [vmem:[%s8779_s1 + $0x70] sm:$0xff] }
  0xad   : > { %7075 = vmatprep.subr.bf16.mxu0 %v7074_v45  ;;  %7469 = vmatprep.subr.bf16.mxu1 %v7074_v45  ;;  %v425_v45 = vld [vmem:[#allocation6 + $0x130] sm:$0xff] }
  0xae   : > { %v7102_v47 = vpack.c.bf16 %v428_v46, %v425_v45 }
  0xb0   : > { %7077 = vmatpush1.bf16.msra.mxu0 %v7076_v48  ;;  %7477 = vmatpush1.bf16.msra.mxu1 %v7076_v48 }
  0xb1   : > { %7079 = vmatprep.subr.bf16.mxu1 %v7078_v26 }
  0xb3   : > { %517 = vmatmul.mubr.f32.vlgmr.msra.gmra.mrb[0].mxu0 %v8796_v49  ;;  %565 = vmatmul.mubr.f32.vlgmr.msra.gmra.mrb[0].mxu1 %v8799_v50 }
  0xb4   : > { %522 = vmatprep.mubr.f32.mxu0 %v8522_v0  ;;  %570 = vmatprep.mubr.f32.mxu1 %v8522_v0 }
  0xb5   : > { %7081 = vmatpush3.bf16.msra.mxu1 %v7078_v26 }
  0xb6   : > { %7083 = vmatprep.subr.bf16.mxu1 %v7082_v27 }
  0xb7   : > { %523 = vmatmul.mubr.f32.gmra.mrb[2].mxu0 %v8805_v51  ;;  %571 = vmatmul.mubr.f32.gmra.mrb[2].mxu1 %v8809_v52 }
  0xb8   : > { %528 = vmatprep.mubr.f32.mxu0 %v8522_v0  ;;  %576 = vmatprep.mubr.f32.mxu1 %v8522_v0 }
  0xb9   : > { %7085 = vmatpush3.bf16.msra.mxu1 %v7082_v27 }
  0xba   : > { %7087 = vmatprep.subr.bf16.mxu1 %v7086_v33 }
  0xbb   : > { %529 = vmatmul.mubr.f32.gmra.mrb[4].mxu0 %v8815_v53  ;;  %577 = vmatmul.mubr.f32.gmra.mrb[4].mxu1 %v8819_v54 }
  0xbc   : > { %582 = vmatprep.mubr.f32.mxu1 %v8522_v0  ;;  %534 = vmatprep.mubr.f32.mxu0 %v8522_v0 }
  0xbd   : > { %7089 = vmatpush3.bf16.msra.mxu1 %v7086_v33 }
  0xbe   : > { %7091 = vmatprep.subr.bf16.mxu1 %v7090_v36 }
  0xbf   : > { %583 = vmatmul.mubr.f32.gmra.mrb[6].mxu1 %v8825_v55  ;;  %535 = vmatmul.mubr.f32.gmra.mrb[6].mxu0 %v8831_v56 }
  0xc0   : > { %588 = vmatprep.mubr.f32.mxu1 %v8522_v0  ;;  %540 = vmatprep.mubr.f32.mxu0 %v8522_v0 }
  0xc1   : > { %7093 = vmatpush3.bf16.msra.mxu1 %v7090_v36 }
  0xc2   : > { %7095 = vmatprep.subr.bf16.mxu1 %v7094_v39 }
  0xc3   : > { %541 = vmatmul.mubr.f32.gmra.mrb[8].mxu0 %v8836_v57  ;;  %589 = vmatmul.mubr.f32.gmra.mrb[8].mxu1 %v8839_v58 }
  0xc4   : > { %546 = vmatprep.mubr.f32.mxu0 %v8522_v0  ;;  %594 = vmatprep.mubr.f32.mxu1 %v8522_v0 }
  0xc5   : > { %7097 = vmatpush3.bf16.msra.mxu1 %v7094_v39 }
  0xc6   : > { %7099 = vmatprep.subr.bf16.mxu1 %v7098_v42 }
  0xc7   : > { %547 = vmatmul.mubr.f32.gmra.mrb[10].mxu0 %v8845_v59  ;;  %595 = vmatmul.mubr.f32.gmra.mrb[10].mxu1 %v8849_v60 }
  0xc8   : > { %600 = vmatprep.mubr.f32.mxu1 %v8522_v0  ;;  %552 = vmatprep.mubr.f32.mxu0 %v8522_v0 }
  0xc9   : > { %7101 = vmatpush3.bf16.msra.mxu1 %v7098_v42 }
  0xca   : > { %7103 = vmatprep.subr.bf16.mxu1 %v7102_v47 }
  0xcb   : > { %601 = vmatmul.mubr.f32.gmra.mrb[12].mxu1 %v385_v44 }
  0xcc   : > { %606 = vmatprep.mubr.f32.mxu1 %v8522_v0 }
  0xcd   : > { %7105 = vmatpush3.bf16.msra.mxu1 %v7102_v47 }
  0xce   : > { %7107 = vmatprep.subr.bf16.mxu1 %v7106_v2 }
  0xcf   : > { %607 = vmatmul.mubr.f32.gmra.mrb[14].mxu1 %v386_v1 }
  0xd0   : > { %6518 = vmatprep.mubr.f32.mxu1 %v8796_v49 }
  0xd1   : > { %7109 = vmatpush3.bf16.msra.mxu1 %v7106_v2 }
  0xd4   : > { %6519 = vmatmul.mubr.f32.vlgmr.msra.gmra.mrb[16].mxu1 %v8805_v51  ;;  %v378_v51 = vld [vmem:[%s8779_s1 + $0x38] sm:$0xff] }
  0xd5   : > { %6521 = vmatprep.mubr.f32.mxu1 %v8815_v53 }
  0xd8   : > { %6522 = vmatmul.mubr.f32.gmra.mrb[18].mxu1 %v8831_v56 }
  0xd9   : > { %6524 = vmatprep.mubr.f32.mxu1 %v8836_v57 }
  0xdc   : > { %6525 = vmatmul.mubr.f32.gmra.mrb[20].mxu1 %v8845_v59 }
 0x186   : > { %v518_v5 = vpop.f32.mrb[0].mxu0  ;;  %v566_v6 = vpop.f32.mrb[0].mxu1 }
 0x187   : > { %v8867_v7 = vadd.f32 %v518_v5, %v8862_v3  ;;  %v520_v8 = vpop.f32.mrb[1].mxu0  ;;  %v8870_v9 = vadd.f32 %v566_v6, %v8862_v3  ;;  %v8872_v10 = vpop.f32.mrb[1].mxu1 }
 0x188   : > { %v8875_v11 = vadd.f32 %v520_v8, %v8864_v4  ;;  %v8952_v56 = vadd.f32 %v8872_v10, %v8864_v4 }
 0x189   : > { %11905 = vst [vmem:[#allocation19_spill] sm:$0xff] %v8867_v7  ;;  %11906 = vst [vmem:[#allocation20_spill] sm:$0xff] %v8870_v9  ;;  %v8879_v12 = vmul.f32 %v8867_v7, %v8867_v7  ;;  %v8896_v22 = vmul.f32 %v8870_v9, %v8870_v9 }
 0x18a   : > { %11907 = vst [vmem:[#allocation21_spill] sm:$0xff] %v8875_v11  ;;  %v524_v13 = vpop.f32.mrb[2].mxu0  ;;  %v8883_v14 = vmul.f32 %v8875_v11, %v8875_v11  ;;  %v572_v15 = vpop.f32.mrb[2].mxu1  ;;  %11915 = vst [vmem:[#allocation29_spill] sm:$0xff] %v8952_v56 }
 0x18b   : > { %11908 = vst [vmem:[#allocation22_spill] sm:$0xff] %v8879_v12  ;;  %v8886_v19 = vadd.f32 %v524_v13, %v8862_v3  ;;  %v8888_v20 = vpop.f32.mrb[3].mxu0  ;;  %1810 = vrot.lane.b32.xlu0 %v8879_v12, %s8523_s14  ;;  %v8892_v21 = vpop.f32.mrb[3].mxu1  ;;  %11911 = vst [vmem:[#allocation25_spill] sm:$0xff] %v8896_v22  ;;  %v8901_v24 = vadd.f32 %v572_v15, %v8862_v3  ;;  %v777_v5 = vsel %vm776_vm0, %v8879_v12, 0.0  ;;  %v801_v6 = vsel %vm776_vm0, %v8896_v22, 0.0 }
 0x18c   : > { %11909 = vst [vmem:[#allocation23_spill] sm:$0xff] %v8883_v14  ;;  %3248 = vrot.lane.b32.xlu1 %v8883_v14, %s8524_s12  ;;  %v377_v13 = vld [vmem:[%s8779_s1 + $0x30] sm:$0xff]  ;;  %v8957_v57 = vadd.f32 %v8888_v20, %v8864_v4  ;;  %v889_v59 = vsel %vm776_vm0, %v8883_v14, 0.0 }
 0x18d   : > { %11910 = vst [vmem:[#allocation24_spill] sm:$0xff] %v8886_v19  ;;  %11912 = vst [vmem:[#allocation26_spill] sm:$0xff] %v8901_v24  ;;  %v8905_v25 = vmul.f32 %v8886_v19, %v8886_v19  ;;  %v8917_v32 = vmul.f32 %v8901_v24, %v8901_v24  ;;  %6527 = vmatprep.mubr.f32.mxu1 %v377_v13  ;;  %553 = vmatmul.mubr.f32.gmra.mrb[12].mxu0 %v377_v13 }
 0x18e   : > { %v8907_v28 = vpop.f32.mrb[4].mxu0  ;;  %v8921_v43 = vpop.f32.mrb[4].mxu1  ;;  %6528 = vmatmul.mubr.f32.gmra.mrb[22].mxu1 %v378_v51  ;;  %558 = vmatprep.mubr.f32.mxu0 %v8522_v0  ;;  %11916 = vst [vmem:[#allocation30_spill] sm:$0xff] %v8957_v57  ;;  %v8964_v0 = vmul.f32 %v8952_v56, %v8952_v56 }
 0x18f   : > { %11913 = vst [vmem:[#allocation27_spill] sm:$0xff] %v8905_v25  ;;  %1826 = vrot.lane.b32.xlu0 %v8896_v22, %s8523_s14  ;;  %v8911_v31 = vpop.f32.mrb[5].mxu0  ;;  %11914 = vst [vmem:[#allocation28_spill] sm:$0xff] %v8917_v32  ;;  %v8924_v48 = vpop.f32.mrb[5].mxu1  ;;  %v780_v49 = vsel %vm776_vm0, %v8905_v25, 0.0  ;;  %v804_v8 = vsel %vm776_vm0, %v8917_v32, 0.0  ;;  %6530 = vmatprep.mubr.f32.mxu1 %v8799_v50  ;;  %v8969_v50 = vadd.f32 %v8892_v21, %v8864_v4 }
 0x190   : > { %1812 = vrot.lane.b32.xlu1 %v8905_v25, %s8523_s14  ;;  %11917 = vst [vmem:[#allocation31_spill] sm:$0xff] %v8964_v0  ;;  %v8995_v16 = vadd.f32 %v8911_v31, %v8864_v4  ;;  %v9019_v27 = vadd.f32 %v8924_v48, %v8864_v4  ;;  %v9039_v37 = vadd.f32 %v8907_v28, %v8862_v3 }
 0x191   : > { %559 = vmatmul.mubr.f32.gmra.mrb[14].mxu0 %v378_v51  ;;  %11918 = vst [vmem:[#allocation32_spill] sm:$0xff] %v8969_v50  ;;  %v9047_v40 = vadd.f32 %v8921_v43, %v8862_v3 }
 0x192   : > { %v584_v15 = vpop.f32.mrb[6].mxu1  ;;  %6531 = vmatmul.mubr.f32.gmra.mrb[24].mxu1 %v8809_v52  ;;  %v8973_v52 = vmul.f32 %v8957_v57, %v8957_v57  ;;  %11921 = vst [vmem:[#allocation35_spill] sm:$0xff] %v8995_v16  ;;  %v8999_v17 = vmul.f32 %v8995_v16, %v8995_v16  ;;  %11923 = vst [vmem:[#allocation37_spill] sm:$0xff] %v9019_v27  ;;  %v9027_v31 = vmul.f32 %v9019_v27, %v9019_v27 }
 0x193   : > { %v8944_v53 = vpop.f32.mrb[7].mxu1  ;;  %6533 = vmatprep.mubr.f32.mxu1 %v8819_v54  ;;  %v8981_v54 = vmul.f32 %v8969_v50, %v8969_v50  ;;  %11925 = vst [vmem:[#allocation39_spill] sm:$0xff] %v9039_v37  ;;  %11926 = vst [vmem:[#allocation40_spill] sm:$0xff] %v9047_v40  ;;  %v9051_v41 = vmul.f32 %v9039_v37, %v9039_v37  ;;  %v9060_v45 = vmul.f32 %v9047_v40, %v9047_v40 }
 0x194   : > { %1828 = vrot.lane.b32.xlu1 %v8917_v32, %s8523_s14  ;;  %11919 = vst [vmem:[#allocation33_spill] sm:$0xff] %v8973_v52  ;;  %11922 = vst [vmem:[#allocation36_spill] sm:$0xff] %v8999_v17  ;;  %v892_v18 = vsel %vm776_vm0, %v8973_v52, 0.0  ;;  %v895_v33 = vsel %vm776_vm0, %v8999_v17, 0.0  ;;  %v919_v34 = vsel %vm776_vm0, %v9027_v31, 0.0 }
 0x195   : > { %11920 = vst [vmem:[#allocation34_spill] sm:$0xff] %v8981_v54  ;;  %v916_v10 = vsel %vm776_vm0, %v8981_v54, 0.0  ;;  %11924 = vst [vmem:[#allocation38_spill] sm:$0xff] %v9027_v31  ;;  %v783_v51 = vsel %vm776_vm0, %v9051_v41, 0.0 }
 0x196   : > { %6534 = vmatmul.mubr.f32.gmra.mrb[26].mxu1 %v8825_v55  ;;  %v536_v55 = vpop.f32.mrb[6].mxu0  ;;  %v9011_v21 = vpop.f32.mrb[8].mxu1  ;;  %11927 = vst [vmem:[#allocation41_spill] sm:$0xff] %v9051_v41  ;;  %11929 = vst [vmem:[#allocation43_spill] sm:$0xff] %v9060_v45 }
 0x197   : > { %6536 = vmatprep.mubr.f32.mxu1 %v8839_v58  ;;  %v8985_v58 = vpop.f32.mrb[7].mxu0  ;;  %v9015_v26 = vpop.f32.mrb[9].mxu1 }
 0x198   : > { %v9009_v20 = vpop.f32.mrb[8].mxu0 }
 0x199   : > { %v9013_v23 = vpop.f32.mrb[9].mxu0 }
 0x19a   : > { %6537 = vmatmul.mubr.f32.gmra.mrb[28].mxu1 %v8849_v60  ;;  %v913_v60 = vsel %vm776_vm0, %v8964_v0, 0.0  ;;  %v9021_v29 = vpop.f32.mrb[10].mxu0  ;;  %v9035_v36 = vpop.f32.mrb[10].mxu1 }
 0x19b   : > { %6539 = vmatprep.mubr.f32.mxu1 %v385_v44  ;;  %v9023_v30 = vpop.f32.mrb[11].mxu0  ;;  %v9041_v38 = vpop.f32.mrb[11].mxu1  ;;  %v9056_v44 = vadd.f32 %v584_v15, %v8862_v3 }
 0x19d   : > { %11928 = vst [vmem:[#allocation42_spill] sm:$0xff] %v9056_v44  ;;  %v9066_v46 = vmul.f32 %v9056_v44, %v9056_v44 }
 0x19e   : > { %6540 = vmatmul.mubr.f32.gmra.mrb[30].mxu1 %v386_v1  ;;  %v9079_v1 = vld [vmem:[%s11725_s4] ss:$0 sm:$0xff] }
 0x19f   : > { %11930 = vst [vmem:[#allocation44_spill] sm:$0xff] %v9066_v46 }
 0x1ae   : > { %778 = vadd.xlane.f32.xlu0 %v777_v5 }
 0x1b2   : > { %802 = vadd.xlane.f32.xlu0 %v801_v6 }
 0x1b8   : > { %781 = vadd.xlane.f32.xlu1 %v780_v49 }
 0x1bc   : > { %805 = vadd.xlane.f32.xlu1 %v804_v8 }
 0x1c8   : > { %1970 = vrot.lane.b32.xlu0 %v8883_v14, %s8523_s14 }
 0x1cc   : > { %1986 = vrot.lane.b32.xlu0 %v8964_v0, %s8523_s14 }
 0x1cd   : > { %1972 = vrot.lane.b32.xlu1 %v8973_v52, %s8523_s14 }
 0x1d1   : > { %1988 = vrot.lane.b32.xlu1 %v8981_v54, %s8523_s14 }
 0x1eb   : > { %890 = vadd.xlane.f32.xlu0 %v889_v59  ;;  %v9093_v59 = vadd.f32 %v536_v55, %v8862_v3  ;;  %v810_v55 = vsel %vm776_vm0, %v9066_v46, 0.0 }
 0x1ed   : > { %11932 = vst [vmem:[#allocation46_spill] sm:$0xff] %v9093_v59 }
 0x1ef   : > { %914 = vadd.xlane.f32.xlu0 %v913_v60  ;;  %v807_v60 = vsel %vm776_vm0, %v9060_v45, 0.0 }
 0x1f5   : > { %917 = vadd.xlane.f32.xlu1 %v916_v10  ;;  %v9099_v10 = vmul.f32 %v9093_v59, %v9093_v59 }
 0x1f7   : > { %11933 = vst [vmem:[#allocation47_spill] sm:$0xff] %v9099_v10 }
 0x1fd   : > { %v9033_v35 = vpop.permute.xlu0 %1810 }
 0x1fe   : > { %v9088_v15 = vpop.permute.xlu1 %3248 }
 0x1ff   : > { %11931 = vst [vmem:[#allocation45_spill] sm:$0xff] %v9088_v15  ;;  %v9197_v15 = vadd.f32 %v9035_v36, %v8862_v3 }
 0x201   : > { %v9043_v39 = vpop.permute.xlu0 %1826  ;;  %11946 = vst [vmem:[#allocation58_spill] sm:$0xff] %v9197_v15 }
 0x205   : > { %3250 = vrot.lane.b32.xlu0 %v8973_v52, %s8524_s12 }
 0x206   : > { %1974 = vrot.lane.b32.xlu1 %v8999_v17, %s8523_s14 }
 0x20a   : > { %3252 = vrot.lane.b32.xlu1 %v8999_v17, %s8524_s12 }
 0x224   : > { %893 = vadd.xlane.f32.xlu0 %v892_v18  ;;  %v9101_v18 = vpop.permute.xlu1 %1812 }
 0x22e   : > { %896 = vadd.xlane.f32.xlu1 %v895_v33  ;;  %v786_v33 = vsel %vm776_vm0, %v9099_v10, 0.0 }
 0x232   : > { %920 = vadd.xlane.f32.xlu1 %v919_v34  ;;  %v9105_v34 = vpop.permute.xlu1 %1828 }
 0x23a   : > { %1814 = vrot.lane.b32.xlu0 %v9051_v41, %s8523_s14 }
 0x23b   : > { %v779_v42 = vpop.xlane.xlu0 %778 }
 0x23c   : > { %v825_v28 = vmax.f32 %v779_v42, 1e-24 }
 0x23e   : > { %7805 = vrsqrt.f32 %v825_v28  ;;  %1830 = vrot.lane.b32.xlu0 %v9060_v45, %s8523_s14 }
 0x23f   : > { %v803_v43 = vpop.xlane.xlu0 %802 }
 0x240   : > { %v833_v47 = vmax.f32 %v803_v43, 1e-24 }
 0x242   : > { %7807 = vrsqrt.f32 %v833_v47 }
 0x243   : > { %1832 = vrot.lane.b32.xlu1 %v9066_v46, %s8523_s14  ;;  %v9111_v28 = vpop.permute.xlu0 %1970 }
 0x245   : > { %v9109_v42 = vpop.xlane.xlu1 %781 }
 0x247   : > { %v9115_v47 = vpop.permute.xlu0 %1986 }
 0x248   : > { %v7806_v48 = vpop.eup %7805 }
 0x249   : > { %v857_v63 = vmul.f32 %v7806_v48, %v8867_v7  ;;  %v9113_v43 = vpop.xlane.xlu1 %805  ;;  %v9119_v48 = vadd.f32 %v8985_v58, %v8864_v4 }
 0x24b   : > { %v991_v2 = vadd.f32 %v9073_v61, %v857_v63  ;;  %11934 = vst [vmem:[#allocation48_spill] sm:$0xff] %v9119_v48 }
 0x24c   : > { %v7808_v5 = vpop.eup %7807 }
 0x24d   : > { %v1013_v6 = vmul.f32 %v9079_v1, %v991_v2  ;;  %v865_v49 = vmul.f32 %v7808_v5, %v8870_v9  ;;  %v9123_v63 = vpop.permute.xlu1 %1972  ;;  %v9127_v5 = vadd.f32 %v8944_v53, %v8864_v4 }
 0x24f   : > { %6558 = vmatprep.mubr.msk.f32.mxu1 %vm776_vm0, %v1013_v6  ;;  %v999_v8 = vadd.f32 %v9073_v61, %v865_v49  ;;  %11935 = vst [vmem:[#allocation49_spill] sm:$0xff] %v9127_v5  ;;  %v9131_v6 = vmul.f32 %v9119_v48, %v9119_v48 }
 0x251   : > { %v1021_v13 = vmul.f32 %v9079_v1, %v999_v8  ;;  %11936 = vst [vmem:[#allocation50_spill] sm:$0xff] %v9131_v6  ;;  %v9137_v49 = vpop.permute.xlu1 %1988  ;;  %v9141_v8 = vmul.f32 %v9127_v5, %v9127_v5 }
 0x253   : > { %6586 = vmatprep.mubr.msk.f32.mxu0 %vm776_vm0, %v1021_v13  ;;  %11937 = vst [vmem:[#allocation51_spill] sm:$0xff] %v9141_v8 }
 0x25d   : > { %784 = vadd.xlane.f32.xlu0 %v783_v51 }
 0x260   : > { %v9147_v52 = vpop.f32.mrb[12].mxu0 }
 0x261   : > { %808 = vadd.xlane.f32.xlu0 %v807_v60 }
 0x267   : > { %787 = vadd.xlane.f32.xlu1 %v786_v33 }
 0x26b   : > { %811 = vadd.xlane.f32.xlu1 %v810_v55 }
 0x277   : > { %1990 = vrot.lane.b32.xlu0 %v9027_v31, %s8523_s14 }
 0x278   : > { %v891_v2 = vpop.xlane.xlu0 %890 }
 0x27b   : > { %1816 = vrot.lane.b32.xlu0 %v9099_v10, %s8523_s14  ;;  %v9211_v10 = vmul.f32 %v9197_v15, %v9197_v15 }
 0x27c   : > { %1976 = vrot.lane.b32.xlu1 %v9131_v6, %s8523_s14  ;;  %v915_v58 = vpop.xlane.xlu0 %914 }
 0x27d   : > { %v945_v13 = vmax.f32 %v915_v58, 1e-24  ;;  %11948 = vst [vmem:[#allocation60_spill] sm:$0xff] %v9211_v10 }
 0x27f   : > { %7809 = vrsqrt.f32 %v945_v13  ;;  %v9157_v13 = vpop.f32.mrb[12].mxu1 }
 0x280   : > { %1992 = vrot.lane.b32.xlu1 %v9141_v8, %s8523_s14 }
 0x282   : > { %v918_v53 = vpop.xlane.xlu1 %917 }
 0x283   : > { %v946_v51 = vmax.f32 %v918_v53, 1e-24  ;;  %v922_v53 = vsel %vm776_vm0, %v9141_v8, 0.0 }
 0x285   : > { %7811 = vrsqrt.f32 %v946_v51  ;;  %v898_v51 = vsel %vm776_vm0, %v9131_v6, 0.0 }
 0x289   : > { %v7810_v60 = vpop.eup %7809 }
 0x28a   : > { %v977_v55 = vmul.f32 %v7810_v60, %v8952_v56  ;;  %v9167_v60 = vadd.f32 %v9009_v20, %v8862_v3  ;;  %v937_v20 = vmax.f32 %v891_v2, 1e-24 }
 0x28c   : > { %11940 = vst [vmem:[#allocation52_spill] sm:$0xff] %v9167_v60  ;;  %7813 = vrsqrt.f32 %v937_v20 }
 0x28f   : > { %v7812_v33 = vpop.eup %7811 }
 0x290   : > { %v978_v17 = vmul.f32 %v7812_v33, %v8969_v50  ;;  %v9171_v33 = vpop.f32.mrb[13].mxu1 }
 0x291   : > { %v9223_v32 = vpop.f32.mrb[14].mxu1 }
 0x292   : > { %v7134_v58 = vpack.c.bf16 %v978_v17, %v977_v55  ;;  %v9169_v17 = vpop.f32.mrb[13].mxu0  ;;  %v9175_v55 = vadd.f32 %v9011_v21, %v8862_v3  ;;  %v9227_v8 = vpop.f32.mrb[15].mxu1 }
 0x293   : > { %v9187_v46 = vpop.f32.mrb[14].mxu0 }
 0x294   : > { %7136 = vmatprep.subr.msk.bf16.mxu0 %vm9151_vm1, %v7134_v58  ;;  %11941 = vst [vmem:[#allocation53_spill] sm:$0xff] %v9175_v55  ;;  %v9193_v21 = vmul.f32 %v9175_v55, %v9175_v55  ;;  %v9203_v2 = vpop.f32.mrb[15].mxu0 }
 0x295   : > { %7139 = vmatpush3.bf16.xpose.msk.msra.mxu0 %vm9151_vm1, %v7134_v58  ;;  %v9179_v58 = vmul.f32 %v9167_v60, %v9167_v60 }
 0x296   : > { %11945 = vst [vmem:[#allocation57_spill] sm:$0xff] %v9193_v21  ;;  %v7814_v36 = vpop.eup %7813  ;;  %v813_v25 = vsel %vm776_vm0, %v9193_v21, 0.0 }
 0x297   : > { %11942 = vst [vmem:[#allocation54_spill] sm:$0xff] %v9179_v58  ;;  %v789_v22 = vsel %vm776_vm0, %v9179_v58, 0.0 }
 0x29a   : > { %923 = vadd.xlane.f32.xlu0 %v922_v53  ;;  %v9181_v53 = vpop.permute.xlu0 %3250 }
 0x29b   : > { %11943 = vst [vmem:[#allocation55_spill] sm:$0xff] %v9181_v53 }
 0x2a4   : > { %899 = vadd.xlane.f32.xlu1 %v898_v51  ;;  %v9185_v51 = vadd.f32 %v9021_v29, %v8862_v3 }
 0x2a6   : > { %11944 = vst [vmem:[#allocation56_spill] sm:$0xff] %v9185_v51  ;;  %v9201_v53 = vmul.f32 %v9185_v51, %v9185_v51 }
 0x2a8   : > { %11947 = vst [vmem:[#allocation59_spill] sm:$0xff] %v9201_v53 }
 0x2b0   : > { %1818 = vrot.lane.b32.xlu0 %v9179_v58, %s8523_s14 }
 0x2b1   : > { %v894_v45 = vpop.xlane.xlu0 %893 }
 0x2b2   : > { %v938_v29 = vmax.f32 %v894_v45, 1e-24  ;;  %v969_v45 = vmul.f32 %v7814_v36, %v8875_v11  ;;  %v816_v36 = vsel %vm776_vm0, %v9211_v10, 0.0 }
 0x2b4   : > { %7815 = vrsqrt.f32 %v938_v29  ;;  %1834 = vrot.lane.b32.xlu0 %v9193_v21, %s8523_s14 }
 0x2b5   : > { %1820 = vrot.lane.b32.xlu1 %v9201_v53, %s8523_s14 }
 0x2b9   : > { %1836 = vrot.lane.b32.xlu1 %v9211_v10, %s8523_s14 }
 0x2be   : > { %v7816_v41 = vpop.eup %7815 }
 0x2bf   : > { %v970_v20 = vmul.f32 %v7816_v41, %v8957_v57  ;;  %v792_v41 = vsel %vm776_vm0, %v9201_v53, 0.0  ;;  %v9283_v53 = vadd.f32 %v9147_v52, %v8862_v3  ;;  %v9291_v57 = vadd.f32 %v9157_v13, %v8862_v3 }
 0x2c1   : > { %v7110_v29 = vpack.c.bf16 %v970_v20, %v969_v45  ;;  %v9235_v45 = vadd.f32 %v9013_v23, %v8864_v4  ;;  %v9257_v23 = vadd.f32 %v9041_v38, %v8864_v4  ;;  %11958 = vst [vmem:[#allocation70_spill] sm:$0xff] %v9283_v53  ;;  %11959 = vst [vmem:[#allocation71_spill] sm:$0xff] %v9291_v57 }
 0x2c3   : > { %7112 = vmatprep.subr.msk.bf16.mxu1 %vm9151_vm1, %v7110_v29  ;;  %11949 = vst [vmem:[#allocation61_spill] sm:$0xff] %v9235_v45  ;;  %v9243_v20 = vmul.f32 %v9235_v45, %v9235_v45  ;;  %11954 = vst [vmem:[#allocation66_spill] sm:$0xff] %v9257_v23 }
 0x2c4   : > { %7115 = vmatpush3.bf16.xpose.msk.msra.mxu1 %vm9151_vm1, %v7110_v29 }
 0x2c5   : > { %11951 = vst [vmem:[#allocation63_spill] sm:$0xff] %v9243_v20  ;;  %v901_v58 = vsel %vm776_vm0, %v9243_v20, 0.0 }
 0x2d3   : > { %790 = vadd.xlane.f32.xlu0 %v789_v22  ;;  %v9239_v22 = vadd.f32 %v9015_v26, %v8864_v4 }
 0x2d5   : > { %11950 = vst [vmem:[#allocation62_spill] sm:$0xff] %v9239_v22  ;;  %v9253_v29 = vmul.f32 %v9239_v22, %v9239_v22 }
 0x2d7   : > { %814 = vadd.xlane.f32.xlu0 %v813_v25  ;;  %v9247_v25 = vadd.f32 %v9023_v30, %v8864_v4  ;;  %11953 = vst [vmem:[#allocation65_spill] sm:$0xff] %v9253_v29  ;;  %v9269_v30 = vmul.f32 %v9257_v23, %v9257_v23  ;;  %v925_v11 = vsel %vm776_vm0, %v9253_v29, 0.0 }
 0x2d9   : > { %11952 = vst [vmem:[#allocation64_spill] sm:$0xff] %v9247_v25  ;;  %v9261_v26 = vmul.f32 %v9247_v25, %v9247_v25  ;;  %11956 = vst [vmem:[#allocation68_spill] sm:$0xff] %v9269_v30 }
 0x2db   : > { %11955 = vst [vmem:[#allocation67_spill] sm:$0xff] %v9261_v26  ;;  %v904_v13 = vsel %vm776_vm0, %v9261_v26, 0.0 }
 0x2dd   : > { %793 = vadd.xlane.f32.xlu1 %v792_v41  ;;  %v9273_v41 = vpop.permute.xlu1 %1974 }
 0x2e1   : > { %817 = vadd.xlane.f32.xlu1 %v816_v36  ;;  %v9275_v38 = vpop.permute.xlu1 %3252  ;;  %v9277_v36 = vpop.permute.xlu0 %1814 }
 0x2e2   : > { %11957 = vst [vmem:[#allocation69_spill] sm:$0xff] %v9275_v38  ;;  %v9295_v38 = vmul.f32 %v9283_v53, %v9283_v53 }
 0x2e4   : > { %11960 = vst [vmem:[#allocation72_spill] sm:$0xff] %v9295_v38  ;;  %v795_v52 = vsel %vm776_vm0, %v9295_v38, 0.0 }
 0x2e5   : > { %v897_v10 = vpop.xlane.xlu1 %896  ;;  %v9279_v21 = vpop.permute.xlu0 %1830 }
 0x2e6   : > { %v939_v7 = vmax.f32 %v897_v10, 1e-24 }
 0x2e9   : > { %v921_v12 = vpop.xlane.xlu1 %920 }
 0x2ea   : > { %v9287_v62 = vpop.xlane.xlu0 %784 }
 0x2ed   : > { %1978 = vrot.lane.b32.xlu0 %v9243_v20, %s8523_s14  ;;  %v9305_v15 = vpop.permute.xlu1 %1832 }
 0x2ee   : > { %v9307_v50 = vpop.xlane.xlu0 %808 }
 0x2f1   : > { %1994 = vrot.lane.b32.xlu0 %v9253_v29, %s8523_s14 }
 0x2f2   : > { %1980 = vrot.lane.b32.xlu1 %v9261_v26, %s8523_s14  ;;  %v9315_v29 = vpop.permute.xlu0 %1990 }
 0x2f6   : > { %1996 = vrot.lane.b32.xlu1 %v9269_v30, %s8523_s14  ;;  %v9321_v53 = vpop.permute.xlu0 %1816 }
 0x310   : > { %902 = vadd.xlane.f32.xlu0 %v901_v58  ;;  %v9303_v58 = vmul.f32 %v9291_v57, %v9291_v57  ;;  %v928_v57 = vsel %vm776_vm0, %v9269_v30, 0.0 }
 0x312   : > { %11961 = vst [vmem:[#allocation73_spill] sm:$0xff] %v9303_v58  ;;  %v819_v56 = vsel %vm776_vm0, %v9303_v58, 0.0 }
 0x314   : > { %926 = vadd.xlane.f32.xlu0 %v925_v11  ;;  %v9313_v11 = vpop.xlane.xlu1 %787 }
 0x318   : > { %796 = vadd.xlane.f32.xlu0 %v795_v52  ;;  %v9319_v55 = vpop.xlane.xlu1 %811  ;;  %v947_v52 = vmax.f32 %v921_v12, 1e-24  ;;  %v9339_v12 = vadd.f32 %v9171_v33, %v8864_v4 }
 0x31a   : > { %905 = vadd.xlane.f32.xlu1 %v904_v13  ;;  %7817 = vrsqrt.f32 %v947_v52  ;;  %11964 = vst [vmem:[#allocation76_spill] sm:$0xff] %v9339_v12  ;;  %v9355_v33 = vmul.f32 %v9339_v12, %v9339_v12 }
 0x31c   : > { %820 = vadd.xlane.f32.xlu0 %v819_v56  ;;  %v9323_v44 = vpop.permute.xlu1 %1976  ;;  %v9327_v56 = vadd.f32 %v9169_v17, %v8864_v4  ;;  %11967 = vst [vmem:[#allocation79_spill] sm:$0xff] %v9355_v33 }
 0x31e   : > { %929 = vadd.xlane.f32.xlu1 %v928_v57  ;;  %11962 = vst [vmem:[#allocation74_spill] sm:$0xff] %v9327_v56  ;;  %v9335_v57 = vadd.f32 %v9187_v46, %v8862_v3 }
 0x320   : > { %v9329_v13 = vpop.permute.xlu1 %1992  ;;  %11963 = vst [vmem:[#allocation75_spill] sm:$0xff] %v9335_v57  ;;  %v9351_v46 = vmul.f32 %v9335_v57, %v9335_v57 }
 0x322   : > { %11966 = vst [vmem:[#allocation78_spill] sm:$0xff] %v9351_v46 }
 0x327   : > { %v924_v51 = vpop.xlane.xlu0 %923 }
 0x328   : > { %v948_v40 = vmax.f32 %v924_v51, 1e-24  ;;  %v7818_v51 = vpop.eup %7817 }
 0x32a   : > { %7819 = vrsqrt.f32 %v948_v40  ;;  %v9343_v40 = vmul.f32 %v9327_v56, %v9327_v56 }
 0x32b   : > { %7821 = vrsqrt.f32 %v939_v7 }
 0x32c   : > { %11965 = vst [vmem:[#allocation77_spill] sm:$0xff] %v9343_v40 }
 0x32f   : > { %1822 = vrot.lane.b32.xlu1 %v9295_v38, %s8523_s14  ;;  %v979_v38 = vmul.f32 %v7818_v51, %v9019_v27 }
 0x331   : > { %v900_v17 = vpop.xlane.xlu1 %899 }
 0x332   : > { %v940_v52 = vmax.f32 %v900_v17, 1e-24  ;;  %1982 = vrot.lane.b32.xlu0 %v9343_v40, %s8523_s14 }
 0x333   : > { %1838 = vrot.lane.b32.xlu1 %v9303_v58, %s8523_s14 }
 0x334   : > { %v7820_v10 = vpop.eup %7819  ;;  %7823 = vrsqrt.f32 %v940_v52 }
 0x335   : > { %v980_v7 = vmul.f32 %v7820_v10, %v9127_v5  ;;  %v7822_v52 = vpop.eup %7821  ;;  %v2045_v5 = vsel %vm776_vm0, %v9137_v49, 0.0  ;;  %v1858_v49 = vsel %vm776_vm0, %v9033_v35, 0.0  ;;  %v1861_v35 = vsel %vm776_vm0, %v9101_v18, 0.0 }
 0x336   : > { %1998 = vrot.lane.b32.xlu0 %v9355_v33, %s8523_s14  ;;  %v971_v30 = vmul.f32 %v7822_v52, %v8995_v16 }
 0x337   : > { %1824 = vrot.lane.b32.xlu1 %v9351_v46, %s8523_s14  ;;  %v7140_v17 = vpack.c.bf16 %v980_v7, %v979_v38  ;;  %v907_v38 = vsel %vm776_vm0, %v9343_v40, 0.0  ;;  %v9377_v7 = vadd.f32 %v9223_v32, %v8862_v3  ;;  %v9391_v3 = vadd.f32 %v9203_v2, %v8864_v4  ;;  %v1819_v2 = vpop.permute.xlu0 %1818 }
 0x338   : > { %v9395_v32 = vadd.f32 %v9227_v8, %v8864_v4  ;;  %v9411_v8 = vpop.permute.xlu1 %1820 }
 0x339   : > { %7142 = vmatprep.subr.msk.bf16.mxu0 %vm9151_vm1, %v7140_v17  ;;  %11968 = vst [vmem:[#allocation80_spill] sm:$0xff] %v9377_v7  ;;  %11970 = vst [vmem:[#allocation82_spill] sm:$0xff] %v9391_v3 }
 0x33a   : > { %7145 = vmatpush3.bf16.xpose.msk.msra.mxu0 %vm9151_vm1, %v7140_v17  ;;  %v931_v17 = vsel %vm776_vm0, %v9355_v33, 0.0  ;;  %11971 = vst [vmem:[#allocation83_spill] sm:$0xff] %v9395_v32 }
 0x33b   : > { %v1835_v4 = vpop.permute.xlu0 %1834 }
 0x33e   : > { %v7824_v58 = vpop.eup %7823 }
 0x33f   : > { %v972_v51 = vmul.f32 %v7824_v58, %v9119_v48  ;;  %v798_v58 = vsel %vm776_vm0, %v9351_v46, 0.0  ;;  %v2018_v46 = vsel %vm776_vm0, %v9111_v28, 0.0 }
 0x341   : > { %v7116_v10 = vpack.c.bf16 %v972_v51, %v971_v30  ;;  %v9383_v30 = vmul.f32 %v9377_v7, %v9377_v7  ;;  %v9399_v51 = vmul.f32 %v9391_v3, %v9391_v3 }
 0x343   : > { %7118 = vmatprep.subr.msk.bf16.mxu1 %vm9151_vm1, %v7116_v10  ;;  %11969 = vst [vmem:[#allocation81_spill] sm:$0xff] %v9383_v30  ;;  %v822_v52 = vsel %vm776_vm0, %v9383_v30, 0.0  ;;  %11972 = vst [vmem:[#allocation84_spill] sm:$0xff] %v9399_v51  ;;  %v910_v48 = vsel %vm776_vm0, %v9399_v51, 0.0 }
 0x344   : > { %7121 = vmatpush3.bf16.xpose.msk.msra.mxu1 %vm9151_vm1, %v7116_v10  ;;  %v9407_v10 = vmul.f32 %v9395_v32, %v9395_v32 }
 0x346   : > { %11973 = vst [vmem:[#allocation85_spill] sm:$0xff] %v9407_v10  ;;  %v934_v28 = vsel %vm776_vm0, %v9407_v10, 0.0 }
 0x355   : > { %908 = vadd.xlane.f32.xlu0 %v907_v38 }
 0x359   : > { %932 = vadd.xlane.f32.xlu0 %v931_v17  ;;  %v9415_v17 = vpop.permute.xlu1 %1836 }
 0x35b   : > { %799 = vadd.xlane.f32.xlu1 %v798_v58 }
 0x35f   : > { %823 = vadd.xlane.f32.xlu1 %v822_v52  ;;  %v1882_v52 = vsel %vm776_vm0, %v9043_v39, 0.0 }
 0x360   : > { %v9413_v38 = vpop.xlane.xlu0 %790 }
 0x364   : > { %v9417_v58 = vpop.xlane.xlu0 %814 }
 0x368   : > { %v9425_v33 = vpop.permute.xlu0 %1978 }
 0x36c   : > { %v1995_v39 = vpop.permute.xlu0 %1994 }
 0x36f   : > { %1840 = vrot.lane.b32.xlu0 %v9383_v30, %s8523_s14  ;;  %v9421_v30 = vpop.xlane.xlu1 %793 }
 0x370   : > { %1984 = vrot.lane.b32.xlu1 %v9399_v51, %s8523_s14 }
 0x373   : > { %v9429_v27 = vpop.xlane.xlu1 %817 }
 0x374   : > { %2000 = vrot.lane.b32.xlu1 %v9407_v10, %s8523_s14 }
 0x38e   : > { %1883 = vadd.xlane.f32.xlu0 %v1882_v52  ;;  %v1864_v52 = vsel %vm776_vm0, %v9277_v36, 0.0  ;;  %v2024_v36 = vsel %vm776_vm0, %v9273_v41, 0.0 }
 0x392   : > { %2019 = vadd.xlane.f32.xlu0 %v2018_v46  ;;  %v9437_v46 = vpop.permute.xlu1 %1980 }
 0x396   : > { %2046 = vadd.xlane.f32.xlu0 %v2045_v5  ;;  %v1888_v5 = vsel %vm776_vm0, %v9279_v21, 0.0  ;;  %v1870_v21 = vsel %vm776_vm0, %v1819_v2, 0.0 }
 0x398   : > { %911 = vadd.xlane.f32.xlu1 %v910_v48 }
 0x39a   : > { %1865 = vadd.xlane.f32.xlu0 %v1864_v52  ;;  %v9445_v52 = vpop.permute.xlu1 %1996 }
 0x39c   : > { %935 = vadd.xlane.f32.xlu1 %v934_v28  ;;  %v2042_v28 = vsel %vm776_vm0, %v9115_v47, 0.0  ;;  %v1885_v47 = vsel %vm776_vm0, %v9105_v34, 0.0  ;;  %v2048_v34 = vsel %vm776_vm0, %v9315_v29, 0.0 }
 0x39d   : > { %v903_v16 = vpop.xlane.xlu0 %902 }
 0x39e   : > { %1889 = vadd.xlane.f32.xlu0 %v1888_v5  ;;  %v941_v10 = vmax.f32 %v903_v16, 1e-24 }
 0x3a0   : > { %1859 = vadd.xlane.f32.xlu1 %v1858_v49  ;;  %7825 = vrsqrt.f32 %v941_v10  ;;  %v2021_v10 = vsel %vm776_vm0, %v9123_v63, 0.0 }
 0x3a1   : > { %v927_v48 = vpop.xlane.xlu0 %926 }
 0x3a2   : > { %2025 = vadd.xlane.f32.xlu0 %v2024_v36  ;;  %v949_v49 = vmax.f32 %v927_v48, 1e-24  ;;  %v1894_v36 = vsel %vm776_vm0, %v1835_v4, 0.0 }
 0x3a4   : > { %2043 = vadd.xlane.f32.xlu1 %v2042_v28  ;;  %v2054_v28 = vsel %vm776_vm0, %v1995_v39, 0.0 }
 0x3a5   : > { %v9449_v7 = vpop.xlane.xlu0 %796 }
 0x3a6   : > { %1871 = vadd.xlane.f32.xlu0 %v1870_v21 }
 0x3a7   : > { %v906_v5 = vpop.xlane.xlu1 %905 }
 0x3a8   : > { %v942_v41 = vmax.f32 %v906_v5, 1e-24  ;;  %1862 = vadd.xlane.f32.xlu1 %v1861_v35 }
 0x3a9   : > { %v9455_v57 = vpop.xlane.xlu0 %820 }
 0x3aa   : > { %7827 = vrsqrt.f32 %v942_v41  ;;  %1895 = vadd.xlane.f32.xlu0 %v1894_v36  ;;  %v7826_v21 = vpop.eup %7825 }
 0x3ab   : > { %v930_v16 = vpop.xlane.xlu1 %929  ;;  %7829 = vrsqrt.f32 %v949_v49  ;;  %v973_v49 = vmul.f32 %v7826_v21, %v9235_v45 }
 0x3ac   : > { %v950_v2 = vmax.f32 %v930_v16, 1e-24  ;;  %1886 = vadd.xlane.f32.xlu1 %v1885_v47  ;;  %v1867_v16 = vsel %vm776_vm0, %v9321_v53, 0.0  ;;  %v1891_v53 = vsel %vm776_vm0, %v9305_v15, 0.0  ;;  %v2030_v15 = vsel %vm776_vm0, %v9425_v33, 0.0 }
 0x3ad   : > { %v1983_v4 = vpop.permute.xlu0 %1982 }
 0x3ae   : > { %7831 = vrsqrt.f32 %v950_v2  ;;  %2055 = vadd.xlane.f32.xlu0 %v2054_v28  ;;  %v2036_v33 = vsel %vm776_vm0, %v1983_v4, 0.0 }
 0x3af   : > { %v1823_v18 = vpop.permute.xlu1 %1822 }
 0x3b0   : > { %2022 = vadd.xlane.f32.xlu1 %v2021_v10  ;;  %v1876_v48 = vsel %vm776_vm0, %v1823_v18, 0.0 }
 0x3b1   : > { %v1999_v63 = vpop.permute.xlu0 %1998 }
 0x3b2   : > { %1877 = vadd.xlane.f32.xlu0 %v1876_v48  ;;  %v2060_v29 = vsel %vm776_vm0, %v1999_v63, 0.0 }
 0x3b3   : > { %v1839_v5 = vpop.permute.xlu1 %1838 }
 0x3b4   : > { %v7828_v35 = vpop.eup %7827  ;;  %2049 = vadd.xlane.f32.xlu1 %v2048_v34  ;;  %v1900_v39 = vsel %vm776_vm0, %v1839_v5, 0.0  ;;  %v2027_v5 = vsel %vm776_vm0, %v9323_v44, 0.0  ;;  %v2051_v34 = vsel %vm776_vm0, %v9329_v13, 0.0  ;;  %v2033_v44 = vsel %vm776_vm0, %v9437_v46, 0.0 }
 0x3b5   : > { %v974_v41 = vmul.f32 %v7828_v35, %v9247_v25  ;;  %v7830_v36 = vpop.eup %7829  ;;  %v1873_v35 = vsel %vm776_vm0, %v9411_v8, 0.0  ;;  %v2057_v13 = vsel %vm776_vm0, %v9445_v52, 0.0 }
 0x3b6   : > { %1901 = vadd.xlane.f32.xlu0 %v1900_v39  ;;  %v981_v28 = vmul.f32 %v7830_v36, %v9239_v22  ;;  %v1897_v39 = vsel %vm776_vm0, %v9415_v17, 0.0 }
 0x3b7   : > { %v7122_v47 = vpack.c.bf16 %v974_v41, %v973_v49  ;;  %v1825_v10 = vpop.permute.xlu1 %1824 }
 0x3b8   : > { %v7832_v2 = vpop.eup %7831  ;;  %1868 = vadd.xlane.f32.xlu1 %v1867_v16  ;;  %v1879_v21 = vsel %vm776_vm0, %v1825_v10, 0.0  ;;  %v826_v16 = vmax.f32 %v9109_v42, 1e-24 }
 0x3b9   : > { %7124 = vmatprep.subr.msk.bf16.mxu1 %vm9151_vm1, %v7122_v47  ;;  %v982_v18 = vmul.f32 %v7832_v2, %v9257_v23  ;;  %v827_v2 = vmax.f32 %v9287_v62, 1e-24 }
 0x3ba   : > { %7127 = vmatpush3.bf16.xpose.msk.msra.mxu1 %vm9151_vm1, %v7122_v47  ;;  %2061 = vadd.xlane.f32.xlu0 %v2060_v29  ;;  %v834_v47 = vmax.f32 %v9113_v43, 1e-24  ;;  %v836_v43 = vmax.f32 %v9319_v55, 1e-24  ;;  %v838_v55 = vmax.f32 %v9429_v27, 1e-24 }
 0x3bb   : > { %v7146_v48 = vpack.c.bf16 %v982_v18, %v981_v28  ;;  %v835_v28 = vmax.f32 %v9307_v50, 1e-24 }
 0x3bc   : > { %1892 = vadd.xlane.f32.xlu1 %v1891_v53 }
 0x3bd   : > { %7148 = vmatprep.subr.msk.bf16.mxu0 %vm9151_vm1, %v7146_v48 }
 0x3be   : > { %7151 = vmatpush3.bf16.xpose.msk.msra.mxu0 %vm9151_vm1, %v7146_v48  ;;  %1880 = vadd.xlane.f32.xlu0 %v1879_v21  ;;  %v828_v48 = vmax.f32 %v9313_v11, 1e-24  ;;  %v837_v11 = vmax.f32 %v9417_v58, 1e-24 }
 0x3c0   : > { %2028 = vadd.xlane.f32.xlu1 %v2027_v5  ;;  %v829_v5 = vmax.f32 %v9413_v38, 1e-24  ;;  %v831_v38 = vmax.f32 %v9449_v7, 1e-24 }
 0x3c4   : > { %2052 = vadd.xlane.f32.xlu1 %v2051_v34 }
 0x3c8   : > { %2031 = vadd.xlane.f32.xlu1 %v2030_v15 }
 0x3cc   : > { %1874 = vadd.xlane.f32.xlu1 %v1873_v35 }
 0x3d0   : > { %1898 = vadd.xlane.f32.xlu1 %v1897_v39  ;;  %v830_v39 = vmax.f32 %v9421_v30, 1e-24 }
 0x3d4   : > { %2034 = vadd.xlane.f32.xlu1 %v2033_v44  ;;  %3254 = vrot.lane.b32.xlu0 %v9131_v6, %s8524_s12 }
 0x3d8   : > { %2058 = vadd.xlane.f32.xlu1 %v2057_v13  ;;  %3258 = vrot.lane.b32.xlu0 %v9261_v26, %s8524_s12 }
 0x3dc   : > { %2037 = vadd.xlane.f32.xlu1 %v2036_v33  ;;  %3266 = vrot.lane.b32.xlu0 %v8981_v54, %s8524_s12 }
 0x3e0   : > { %3262 = vrot.lane.b32.xlu0 %v9399_v51, %s8524_s12 }
 0x3e2   : > { %v909_v8 = vpop.xlane.xlu0 %908 }
 0x3e3   : > { %v943_v53 = vmax.f32 %v909_v8, 1e-24 }
 0x3e6   : > { %v933_v46 = vpop.xlane.xlu0 %932 }
 0x3e7   : > { %v951_v21 = vmax.f32 %v933_v46, 1e-24 }
 0x3e8   : > { %v9515_v17 = vpop.xlane.xlu1 %799 }
 0x3ea   : > { %v1841_v4 = vpop.permute.xlu0 %1840 }
 0x3eb   : > { %v1903_v63 = vsel %vm776_vm0, %v1841_v4, 0.0 }
 0x3ec   : > { %v9517_v52 = vpop.xlane.xlu1 %823 }
 0x3ed   : > { %3256 = vrot.lane.b32.xlu1 %v9243_v20, %s8524_s12 }
 0x3f0   : > { %v1985_v49 = vpop.permute.xlu1 %1984 }
 0x3f1   : > { %3264 = vrot.lane.b32.xlu1 %v8964_v0, %s8524_s12  ;;  %v2039_v29 = vsel %vm776_vm0, %v1985_v49, 0.0 }
 0x3f4   : > { %v2001_v18 = vpop.permute.xlu1 %2000 }
 0x3f5   : > { %3260 = vrot.lane.b32.xlu1 %v9343_v40, %s8524_s12  ;;  %v2063_v42 = vsel %vm776_vm0, %v2001_v18, 0.0 }
 0x3f9   : > { %3268 = vrot.lane.b32.xlu1 %v9027_v31, %s8524_s12 }
 0x41b   : > { %v1884_v41 = vpop.xlane.xlu0 %1883 }
 0x41c   : > { %v1914_v36 = vmax.f32 %v1884_v41, 1e-24 }
 0x41d   : > { %1904 = vadd.xlane.f32.xlu1 %v1903_v63 }
 0x41e   : > { %7833 = vrsqrt.f32 %v1914_v36  ;;  %v832_v36 = vmax.f32 %v9515_v17, 1e-24 }
 0x41f   : > { %v9525_v10 = vpop.xlane.xlu0 %2019  ;;  %7835 = vrsqrt.f32 %v826_v16 }
 0x420   : > { %7837 = vrsqrt.f32 %v834_v47  ;;  %v839_v47 = vmax.f32 %v9455_v57, 1e-24 }
 0x421   : > { %2040 = vadd.xlane.f32.xlu1 %v2039_v29  ;;  %7839 = vrsqrt.f32 %v827_v2 }
 0x422   : > { %7841 = vrsqrt.f32 %v835_v28 }
 0x423   : > { %7843 = vrsqrt.f32 %v943_v53  ;;  %v2047_v34 = vpop.xlane.xlu0 %2046 }
 0x424   : > { %7845 = vrsqrt.f32 %v828_v48  ;;  %v2075_v58 = vmax.f32 %v2047_v34, 1e-24  ;;  %v840_v48 = vmax.f32 %v9517_v52, 1e-24 }
 0x425   : > { %v912_v62 = vpop.xlane.xlu1 %911  ;;  %2064 = vadd.xlane.f32.xlu1 %v2063_v42 }
 0x426   : > { %v944_v50 = vmax.f32 %v912_v62, 1e-24 }
 0x427   : > { %v1866_v46 = vpop.xlane.xlu0 %1865 }
 0x428   : > { %7847 = vrsqrt.f32 %v944_v50  ;;  %v7834_v15 = vpop.eup %7833  ;;  %v1908_v28 = vmax.f32 %v1866_v46, 1e-24  ;;  %v2066_v46 = vmax.f32 %v9525_v10, 1e-24  ;;  %v11975_v10 = vld [vmem:[#allocation40_spill] sm:$0xff] }
 0x429   : > { %7849 = vrsqrt.f32 %v836_v43  ;;  %v936_v35 = vpop.xlane.xlu1 %935  ;;  %v7836_v13 = vpop.eup %7835  ;;  %v1946_v33 = vmul.f32 %v7834_v15, %v8870_v9 }
 0x42a   : > { %7851 = vrsqrt.f32 %v951_v21  ;;  %v952_v44 = vmax.f32 %v936_v35, 1e-24  ;;  %v7838_v8 = vpop.eup %7837  ;;  %v858_v29 = vmul.f32 %v7836_v13, %v8886_v19 }
 0x42b   : > { %7853 = vrsqrt.f32 %v829_v5  ;;  %v7840_v49 = vpop.eup %7839  ;;  %v2122_v27 = vadd.f32 %v9073_v61, %v1946_v33  ;;  %v1890_v17 = vpop.xlane.xlu0 %1889  ;;  %v866_v33 = vmul.f32 %v7838_v8, %v8901_v24 }
 0x42c   : > { %7855 = vrsqrt.f32 %v952_v44  ;;  %v7842_v30 = vpop.eup %7841  ;;  %v859_v34 = vmul.f32 %v7840_v49, %v9039_v37 }
 0x42d   : > { %7857 = vrsqrt.f32 %v837_v11  ;;  %v1860_v4 = vpop.xlane.xlu1 %1859  ;;  %v7844_v63 = vpop.eup %7843  ;;  %v2138_v57 = vmul.f32 %v9079_v1, %v2122_v27  ;;  %v1916_v11 = vmax.f32 %v1890_v17, 1e-24  ;;  %v11977_v17 = vld [vmem:[#allocation42_spill] sm:$0xff] }
 0x42e   : > { %7859 = vrsqrt.f32 %v830_v39  ;;  %v1906_v41 = vmax.f32 %v1860_v4, 1e-24  ;;  %v7846_v16 = vpop.eup %7845  ;;  %v975_v42 = vmul.f32 %v7844_v63, %v9327_v56  ;;  %v992_v39 = vadd.f32 %v9073_v61, %v858_v29 }
 0x42f   : > { %7861 = vrsqrt.f32 %v838_v55  ;;  %v867_v29 = vmul.f32 %v7842_v30, %v11975_v10 }
 0x430   : > { %7863 = vrsqrt.f32 %v1906_v41  ;;  %v860_v41 = vmul.f32 %v7846_v16, %v9093_v59  ;;  %v1014_v8 = vmul.f32 %v9079_v1, %v992_v39  ;;  %v11976_v16 = vld [vmem:[#allocation56_spill] sm:$0xff] }
 0x431   : > { %7865 = vrsqrt.f32 %v831_v38  ;;  %v2044_v2 = vpop.xlane.xlu1 %2043 }
 0x432   : > { %v7848_v7 = vpop.eup %7847  ;;  %7867 = vrsqrt.f32 %v2075_v58  ;;  %v2074_v18 = vmax.f32 %v2044_v2, 1e-24  ;;  %v993_v58 = vadd.f32 %v9073_v61, %v859_v34  ;;  %v11974_v2 = vld [vmem:[#allocation19_spill] sm:$0xff]  ;;  %v994_v30 = vadd.f32 %v9073_v61, %v860_v41  ;;  %v9580_v41 = vpop.xlane.xlu0 %2025 }
 0x433   : > { %v7850_v53 = vpop.eup %7849  ;;  %7869 = vrsqrt.f32 %v832_v36  ;;  %v976_v43 = vmul.f32 %v7848_v7, %v9391_v3 }
 0x434   : > { %v7852_v62 = vpop.eup %7851  ;;  %7871 = vrsqrt.f32 %v2074_v18  ;;  %v1000_v18 = vadd.f32 %v9073_v61, %v866_v33  ;;  %v11981_v33 = vld [vmem:[#allocation32_spill] sm:$0xff] }
 0x435   : > { %v7854_v21 = vpop.eup %7853  ;;  %7873 = vrsqrt.f32 %v839_v47  ;;  %v1863_v50 = vpop.xlane.xlu1 %1862  ;;  %v7128_v5 = vpack.c.bf16 %v976_v43, %v975_v42  ;;  %v983_v44 = vmul.f32 %v7852_v62, %v9339_v12  ;;  %v868_v42 = vmul.f32 %v7850_v53, %v11977_v17 }
 0x436   : > { %v7856_v15 = vpop.eup %7855  ;;  %7875 = vrsqrt.f32 %v1908_v28  ;;  %v1907_v35 = vmax.f32 %v1863_v50, 1e-24  ;;  %2348 = vrot.lane.b32.xlu1 %v2138_v57, %s8523_s14  ;;  %v861_v27 = vmul.f32 %v7854_v21, %v9167_v60  ;;  %v1015_v57 = vmul.f32 %v9079_v1, %v993_v58 }
 0x437   : > { %v7858_v52 = vpop.eup %7857  ;;  %7877 = vrsqrt.f32 %v840_v48  ;;  %7130 = vmatprep.subr.msk.bf16.mxu1 %vm9151_vm1, %v7128_v5  ;;  %v984_v55 = vmul.f32 %v7856_v15, %v9395_v32  ;;  %v11978_v15 = vld [vmem:[#allocation70_spill] sm:$0xff]  ;;  %v1022_v58 = vmul.f32 %v9079_v1, %v1000_v18 }
 0x438   : > { %v7860_v13 = vpop.eup %7859  ;;  %7879 = vrsqrt.f32 %v1907_v35  ;;  %7133 = vmatpush3.bf16.xpose.msk.msra.mxu1 %vm9151_vm1, %v7128_v5  ;;  %v995_v34 = vadd.f32 %v9073_v61, %v861_v27  ;;  %v11979_v35 = vld [vmem:[#allocation53_spill] sm:$0xff] }
 0x439   : > { %v7862_v38 = vpop.eup %7861  ;;  %v1887_v4 = vpop.xlane.xlu1 %1886  ;;  %v7152_v49 = vpack.c.bf16 %v984_v55, %v983_v44  ;;  %7881 = vrsqrt.f32 %v1916_v11  ;;  %v862_v48 = vmul.f32 %v7860_v13, %v11976_v16  ;;  %v869_v39 = vmul.f32 %v7858_v52, %v11979_v35  ;;  %v11980_v55 = vld [vmem:[#allocation29_spill] sm:$0xff] }
 0x43a   : > { %v7864_v36 = vpop.eup %7863  ;;  %v1915_v63 = vmax.f32 %v1887_v4, 1e-24  ;;  %v1001_v4 = vadd.f32 %v9073_v61, %v867_v29 }
 0x43b   : > { %v7866_v47 = vpop.eup %7865  ;;  %7154 = vmatprep.subr.msk.bf16.mxu0 %vm9151_vm1, %v7152_v49  ;;  %v1938_v7 = vmul.f32 %v7864_v36, %v11974_v2  ;;  %v996_v52 = vadd.f32 %v9073_v61, %v862_v48  ;;  %v1002_v36 = vadd.f32 %v9073_v61, %v868_v42  ;;  %v1003_v48 = vadd.f32 %v9073_v61, %v869_v39  ;;  %v11984_v42 = vld [vmem:[#allocation71_spill] sm:$0xff]  ;;  %v1033_v2 = vld [vmem:[#allocation8 + $0x20] sm:$0xff] }
 0x43c   : > { %v7868_v28 = vpop.eup %7867  ;;  %7883 = vrsqrt.f32 %v1915_v63  ;;  %7157 = vmatpush3.bf16.xpose.msk.msra.mxu0 %vm9151_vm1, %v7152_v49  ;;  %v863_v11 = vmul.f32 %v7866_v47, %v11978_v15  ;;  %v1016_v47 = vmul.f32 %v9079_v1, %v994_v30  ;;  %v1023_v30 = vmul.f32 %v9079_v1, %v1001_v4 }
 0x43d   : > { %v7870_v43 = vpop.eup %7869  ;;  %7885 = vrsqrt.f32 %v2066_v46  ;;  %v2023_v62 = vpop.xlane.xlu1 %2022  ;;  %v2114_v21 = vadd.f32 %v9073_v61, %v1938_v7  ;;  %v2107_v46 = vmul.f32 %v7868_v28, %v11981_v33  ;;  %v11982_v7 = vld [vmem:[#allocation75_spill] sm:$0xff]  ;;  %v11983_v28 = vld [vmem:[#allocation58_spill] sm:$0xff] }
 0x43e   : > { %v7872_v50 = vpop.eup %7871  ;;  %v2067_v5 = vmax.f32 %v2023_v62, 1e-24  ;;  %v864_v29 = vmul.f32 %v7870_v43, %v11982_v7  ;;  %v870_v18 = vmul.f32 %v7862_v38, %v11983_v28  ;;  %v10031_v33 = vld [vmem:[#allocation8 + $0x68] sm:$0xff] }
 0x43f   : > { %v7874_v44 = vpop.eup %7873  ;;  %6559 = vmatmul.mubr.msk.f32.vlgmr.msra.gmra.mrb[32].mxu1 %vm776_vm0, %v1014_v8  ;;  %v2130_v53 = vmul.f32 %v9079_v1, %v2114_v21  ;;  %v2106_v13 = vmul.f32 %v7872_v50, %v11980_v55  ;;  %v1017_v21 = vmul.f32 %v9079_v1, %v995_v34  ;;  %v1018_v34 = vmul.f32 %v9079_v1, %v996_v52 }
 0x440   : > { %v7876_v49 = vpop.eup %7875  ;;  %7887 = vrsqrt.f32 %v2067_v5  ;;  %6561 = vmatprep.mubr.msk.f32.mxu1 %vm776_vm0, %v1015_v57  ;;  %v997_v57 = vadd.f32 %v9073_v61, %v863_v11  ;;  %v871_v50 = vmul.f32 %v7874_v44, %v11984_v42  ;;  %v1024_v11 = vmul.f32 %v9079_v1, %v1002_v36  ;;  %12024 = vst [vmem:[#allocation102_spill] sm:$0xff] %v10031_v33 }
 0x441   : > { %v7878_v63 = vpop.eup %7877  ;;  %v9585_v27 = vpop.xlane.xlu1 %2049  ;;  %2163 = vrot.lane.b32.xlu0 %v2130_v53, %s8523_s14  ;;  %v7570_v8 = vpack.i.bf16 %v2107_v46, %v2106_v13  ;;  %v1940_v43 = vmul.f32 %v7876_v49, %v9039_v37  ;;  %v998_v53 = vadd.f32 %v9073_v61, %v864_v29  ;;  %v1004_v13 = vadd.f32 %v9073_v61, %v870_v18  ;;  %v11985_v46 = vld [vmem:[#allocation80_spill] sm:$0xff] }
 0x442   : > { %v7880_v62 = vpop.eup %7879  ;;  %v872_v4 = vmul.f32 %v7878_v63, %v11985_v46  ;;  %v1025_v52 = vmul.f32 %v9079_v1, %v1003_v48  ;;  %v1005_v36 = vadd.f32 %v9073_v61, %v871_v50 }
 0x443   : > { %6562 = vmatmul.mubr.msk.f32.gmra.mrb[34].mxu1 %vm776_vm0, %v1016_v47  ;;  %6587 = vmatmul.mubr.msk.f32.vlgmr.msra.gmra.mrb[16].mxu0 %vm776_vm0, %v1022_v58  ;;  %v1939_v5 = vmul.f32 %v7880_v62, %v8886_v19  ;;  %v7882_v38 = vpop.eup %7881  ;;  %v1872_v58 = vpop.xlane.xlu0 %1871  ;;  %v2116_v18 = vadd.f32 %v9073_v61, %v1940_v43  ;;  %v1026_v48 = vmul.f32 %v9079_v1, %v1004_v13  ;;  %v2068_v43 = vmax.f32 %v9580_v41, 1e-24  ;;  %v11987_v13 = vld [vmem:[#allocation30_spill] sm:$0xff] }
 0x444   : > { %7571 = vrot.lane.b32.xlu1 %v7570_v8, %s8523_s14  ;;  %6564 = vmatprep.mubr.msk.f32.mxu1 %vm776_vm0, %v1017_v21  ;;  %v1019_v8 = vmul.f32 %v9079_v1, %v997_v57  ;;  %v1948_v63 = vmul.f32 %v7882_v38, %v11975_v10  ;;  %v1020_v57 = vmul.f32 %v9079_v1, %v998_v53 }
 0x445   : > { %6589 = vmatprep.mubr.msk.f32.mxu0 %vm776_vm0, %v1023_v30  ;;  %v1869_v39 = vpop.xlane.xlu1 %1868  ;;  %v2115_v44 = vadd.f32 %v9073_v61, %v1939_v5  ;;  %v1006_v50 = vadd.f32 %v9073_v61, %v872_v4  ;;  %v2132_v53 = vmul.f32 %v9079_v1, %v2116_v18  ;;  %v9634_v61 = vld [vmem:[%s11724_s3] ss:$0 sm:$0xff] }
 0x446   : > { %v7884_v49 = vpop.eup %7883  ;;  %v1909_v47 = vmax.f32 %v1869_v39, 1e-24  ;;  %v2124_v41 = vadd.f32 %v9634_v61, %v1948_v63 }
 0x447   : > { %v7886_v62 = vpop.eup %7885  ;;  %6565 = vmatmul.mubr.msk.f32.gmra.mrb[36].mxu1 %vm776_vm0, %v1018_v34  ;;  %6590 = vmatmul.mubr.msk.f32.gmra.mrb[18].mxu0 %vm776_vm0, %v1024_v11  ;;  %v2131_v29 = vmul.f32 %v9079_v1, %v2115_v44  ;;  %v1947_v30 = vmul.f32 %v7884_v49, %v8901_v24  ;;  %v1027_v34 = vmul.f32 %v9079_v1, %v1005_v36  ;;  %v11986_v11 = vld [vmem:[#allocation21_spill] sm:$0xff]  ;;  %v1910_v44 = vmax.f32 %v1872_v58, 1e-24  ;;  %v1896_v4 = vpop.xlane.xlu0 %1895  ;;  %v9642_v1 = vld [vmem:[%s11725_s4] ss:$0 sm:$0xff] }
 0x448   : > { %7889 = vrsqrt.f32 %v1909_v47  ;;  %6567 = vmatprep.mubr.msk.f32.mxu1 %vm776_vm0, %v1019_v8  ;;  %6592 = vmatprep.mubr.msk.f32.mxu0 %vm776_vm0, %v1025_v52  ;;  %v2098_v39 = vmul.f32 %v7886_v62, %v11986_v11  ;;  %v1028_v58 = vmul.f32 %v9642_v1, %v1006_v50  ;;  %v2076_v36 = vmax.f32 %v9585_v27, 1e-24  ;;  %v10033_v11 = vld [vmem:[#allocation8 + $0x60] sm:$0xff] }
 0x449   : > { %v1893_v21 = vpop.xlane.xlu1 %1892  ;;  %2165 = vrot.lane.b32.xlu1 %v2131_v29, %s8523_s14  ;;  %v2123_v52 = vadd.f32 %v9634_v61, %v1947_v30  ;;  %v1918_v29 = vmax.f32 %v1896_v4, 1e-24  ;;  %v2140_v18 = vmul.f32 %v9642_v1, %v2124_v41  ;;  %12025 = vst [vmem:[#allocation103_spill] sm:$0xff] %v10033_v11 }
 0x44a   : > { %v7888_v5 = vpop.eup %7887  ;;  %v1917_v38 = vmax.f32 %v1893_v21, 1e-24 }
 0x44b   : > { %6568 = vmatmul.mubr.msk.f32.gmra.mrb[38].mxu1 %vm776_vm0, %v1020_v57  ;;  %6593 = vmatmul.mubr.msk.f32.gmra.mrb[20].mxu0 %vm776_vm0, %v1026_v48  ;;  %v2099_v47 = vmul.f32 %v7888_v5, %v11987_v13  ;;  %v2139_v21 = vmul.f32 %v9642_v1, %v2123_v52  ;;  %v2056_v50 = vpop.xlane.xlu0 %2055  ;;  %v11989_v52 = vld [vmem:[#allocation48_spill] sm:$0xff] }
 0x44c   : > { %7891 = vrsqrt.f32 %v1917_v38  ;;  %6595 = vmatprep.mubr.msk.f32.mxu0 %vm776_vm0, %v1027_v34 }
 0x44d   : > { %v2029_v49 = vpop.xlane.xlu1 %2028  ;;  %2167 = vrot.lane.b32.xlu1 %v2132_v53, %s8523_s14  ;;  %v7565_v8 = vpack.i.bf16 %v2099_v47, %v2098_v39  ;;  %7893 = vrsqrt.f32 %v2068_v43 }
 0x44e   : > { %v2069_v62 = vmax.f32 %v2029_v49, 1e-24  ;;  %7895 = vrsqrt.f32 %v1910_v44 }
 0x44f   : > { %6596 = vmatmul.mubr.msk.f32.gmra.mrb[22].mxu0 %vm776_vm0, %v1028_v58  ;;  %7566 = vrot.lane.b32.xlu0 %v7565_v8, %s8523_s14  ;;  %v1878_v4 = vpop.xlane.xlu0 %1877  ;;  %v11988_v58 = vld [vmem:[#allocation35_spill] sm:$0xff] }
 0x450   : > { %7897 = vrsqrt.f32 %v2069_v62 }
 0x451   : > { %v2053_v63 = vpop.xlane.xlu1 %2052  ;;  %2352 = vrot.lane.b32.xlu1 %v2140_v18, %s8523_s14  ;;  %7899 = vrsqrt.f32 %v2076_v36 }
 0x452   : > { %v7890_v57 = vpop.eup %7889  ;;  %v2077_v48 = vmax.f32 %v2053_v63, 1e-24  ;;  %7901 = vrsqrt.f32 %v1918_v29  ;;  %v1912_v63 = vmax.f32 %v1878_v4, 1e-24 }
 0x453   : > { %2350 = vrot.lane.b32.xlu0 %v2139_v21, %s8523_s14  ;;  %v1941_v27 = vmul.f32 %v7890_v57, %v9093_v59 }
 0x454   : > { %7903 = vrsqrt.f32 %v2077_v48 }
 0x455   : > { %v2032_v30 = vpop.xlane.xlu1 %2031  ;;  %v2117_v5 = vadd.f32 %v9634_v61, %v1941_v27 }
 0x456   : > { %v7892_v43 = vpop.eup %7891 }
 0x457   : > { %v2133_v38 = vmul.f32 %v9642_v1, %v2117_v5  ;;  %v1949_v34 = vmul.f32 %v7892_v43, %v11977_v17  ;;  %v7894_v39 = vpop.eup %7893  ;;  %v2070_v5 = vmax.f32 %v2032_v30, 1e-24 }
 0x458   : > { %v7896_v44 = vpop.eup %7895  ;;  %v2100_v8 = vmul.f32 %v7894_v39, %v11988_v58  ;;  %v11991_v39 = vld [vmem:[#allocation49_spill] sm:$0xff] }
 0x459   : > { %v1875_v53 = vpop.xlane.xlu1 %1874  ;;  %2169 = vrot.lane.b32.xlu0 %v2133_v38, %s8523_s14  ;;  %v2125_v47 = vadd.f32 %v9634_v61, %v1949_v34  ;;  %v1942_v48 = vmul.f32 %v7896_v44, %v9167_v60  ;;  %v11990_v38 = vld [vmem:[#allocation37_spill] sm:$0xff] }
 0x45a   : > { %v7898_v41 = vpop.eup %7897  ;;  %v1911_v29 = vmax.f32 %v1875_v53, 1e-24 }
 0x45b   : > { %v2141_v49 = vmul.f32 %v9642_v1, %v2125_v47  ;;  %v2101_v36 = vmul.f32 %v7898_v41, %v11989_v52  ;;  %v7900_v62 = vpop.eup %7899  ;;  %v1902_v41 = vpop.xlane.xlu0 %1901  ;;  %v2118_v31 = vadd.f32 %v9634_v61, %v1942_v48 }
 0x45c   : > { %v7902_v18 = vpop.eup %7901  ;;  %v2108_v34 = vmul.f32 %v7900_v62, %v11990_v38  ;;  %7905 = vrsqrt.f32 %v1911_v29  ;;  %v1920_v30 = vmax.f32 %v1902_v41, 1e-24 }
 0x45d   : > { %v1899_v21 = vpop.xlane.xlu1 %1898  ;;  %2354 = vrot.lane.b32.xlu0 %v2141_v49, %s8523_s14  ;;  %v7575_v57 = vpack.i.bf16 %v2101_v36, %v2100_v8  ;;  %7907 = vrsqrt.f32 %v1912_v63  ;;  %v1950_v49 = vmul.f32 %v7902_v18, %v11979_v35  ;;  %v2078_v8 = vmax.f32 %v2056_v50, 1e-24 }
 0x45e   : > { %v7904_v27 = vpop.eup %7903  ;;  %v1919_v43 = vmax.f32 %v1899_v21, 1e-24  ;;  %7909 = vrsqrt.f32 %v2070_v5  ;;  %v2134_v62 = vmul.f32 %v9642_v1, %v2118_v31  ;;  %v11992_v5 = vld [vmem:[#allocation18_spill] sm:$0xff] }
 0x45f   : > { %7576 = vrot.lane.b32.xlu1 %v7575_v57, %s8523_s14  ;;  %v2109_v47 = vmul.f32 %v7904_v27, %v11991_v39  ;;  %v2126_v29 = vadd.f32 %v9634_v61, %v1950_v49  ;;  %v447_v31 = vsub.s32 2, %v11992_v5 }
 0x460   : > { %7911 = vrsqrt.f32 %v1919_v43  ;;  %v6520_v43 = vpop.f32.mrb[16].mxu1 }
 0x461   : > { %v2035_v53 = vpop.xlane.xlu1 %2034  ;;  %v7580_v4 = vpack.i.bf16 %v2109_v47, %v2108_v34  ;;  %v2142_v50 = vmul.f32 %v9642_v1, %v2126_v29 }
 0x462   : > { %v2071_v44 = vmax.f32 %v2035_v53, 1e-24 }
 0x463   : > { %7581 = vrot.lane.b32.xlu1 %v7580_v4, %s8523_s14  ;;  %v8319_v4 = vld [vmem:[%s11723_s2] sm:$0x7] }
 0x464   : > { %7913 = vrsqrt.f32 %v2071_v44  ;;  %v9683_v49 = vrot.slane %v8319_v4, %v447_v31 }
 0x465   : > { %v2059_v36 = vpop.xlane.xlu1 %2058  ;;  %7915 = vrsqrt.f32 %v2078_v8 }
 0x466   : > { %v2079_v63 = vmax.f32 %v2059_v36, 1e-24  ;;  %7917 = vrsqrt.f32 %v1920_v30  ;;  %v7906_v18 = vpop.eup %7905  ;;  %v685_v29 = vadd.f32 %v6520_v43, %v9683_v49 }
 0x467   : > { %2171 = vrot.lane.b32.xlu1 %v2134_v62, %s8523_s14  ;;  %v7908_v21 = vpop.eup %7907  ;;  %v1943_v27 = vmul.f32 %v7906_v18, %v11976_v16 }
 0x468   : > { %7919 = vrsqrt.f32 %v2079_v63  ;;  %v7910_v57 = vpop.eup %7909  ;;  %v1944_v53 = vmul.f32 %v7908_v21, %v11978_v15  ;;  %v679_v63 = vpop.f32.mrb[17].mxu1 }
 0x469   : > { %v2102_v47 = vmul.f32 %v7910_v57, %v9235_v45  ;;  %v2119_v36 = vadd.f32 %v9634_v61, %v1943_v27  ;;  %v680_v18 = vadd.f32 %v679_v63, %v9683_v49  ;;  %v6523_v21 = vpop.f32.mrb[18].mxu1 }
 0x46a   : > { %v7912_v48 = vpop.eup %7911  ;;  %v2120_v31 = vadd.f32 %v9634_v61, %v1944_v53  ;;  %v689_v27 = vpop.f32.mrb[19].mxu1 }
 0x46b   : > { %2356 = vrot.lane.b32.xlu1 %v2142_v50, %s8523_s14  ;;  %v1951_v62 = vmul.f32 %v7912_v48, %v11983_v28  ;;  %v690_v43 = vadd.f32 %v689_v27, %v9683_v49  ;;  %v2135_v4 = vmul.f32 %v9642_v1, %v2119_v36 }
 0x46e   : > { %v7914_v34 = vpop.eup %7913 }
 0x46f   : > { %v2103_v41 = vmul.f32 %v7914_v34, %v9247_v25  ;;  %v7916_v8 = vpop.eup %7915  ;;  %v695_v34 = vadd.f32 %v6523_v21, %v9683_v49 }
 0x470   : > { %v7918_v44 = vpop.eup %7917  ;;  %v2110_v57 = vmul.f32 %v7916_v8, %v9239_v22 }
 0x471   : > { %v7585_v30 = vpack.i.bf16 %v2103_v41, %v2102_v47  ;;  %v1952_v48 = vmul.f32 %v7918_v44, %v11984_v42  ;;  %v7158_v47 = vpack.c.bf16 %v685_v29, %v680_v18  ;;  %v6526_v41 = vpop.f32.mrb[20].mxu1  ;;  %v2136_v44 = vmul.f32 %v9642_v1, %v2120_v31 }
 0x472   : > { %v7920_v50 = vpop.eup %7919  ;;  %v705_v8 = vadd.f32 %v6526_v41, %v9683_v49  ;;  %v699_v51 = vpop.f32.mrb[21].mxu1  ;;  %v9705_v41 = vpack.i.bf16 %v685_v29, %v680_v18 }
 0x473   : > { %7586 = vrot.lane.b32.xlu0 %v7585_v30, %s8523_s14  ;;  %v2111_v5 = vmul.f32 %v7920_v50, %v9257_v23  ;;  %v2127_v30 = vadd.f32 %v9634_v61, %v1951_v62  ;;  %7159 = vmatprep.subr.bf16.mxu1 %v7158_v47  ;;  %v700_v53 = vadd.f32 %v699_v51, %v9683_v49  ;;  %v6529_v21 = vpop.f32.mrb[22].mxu1 }
 0x474   : > { %v7162_v50 = vpack.c.bf16 %v695_v34, %v690_v43  ;;  %v715_v27 = vadd.f32 %v6529_v21, %v9683_v49  ;;  %v709_v36 = vpop.f32.mrb[23].mxu1  ;;  %7161 = vmatpush3.bf16.msra.mxu1 %v7158_v47  ;;  %11993 = vst [vmem:[#allocation18_spill] sm:$0xff] %v9705_v41  ;;  %v2128_v40 = vadd.f32 %v9634_v61, %v1952_v48 }
 0x475   : > { %v7590_v63 = vpack.i.bf16 %v2111_v5, %v2110_v57  ;;  %v710_v62 = vadd.f32 %v709_v36, %v9683_v49  ;;  %v7166_v57 = vpack.c.bf16 %v705_v8, %v700_v53  ;;  %v6532_v5 = vpop.f32.mrb[24].mxu1  ;;  %v2143_v51 = vmul.f32 %v9642_v1, %v2127_v30 }
 0x476   : > { %7163 = vmatprep.subr.bf16.mxu1 %v7162_v50  ;;  %v9717_v36 = vpack.i.bf16 %v695_v34, %v690_v43  ;;  %v9725_v26 = vpack.i.bf16 %v705_v8, %v700_v53 }
 0x477   : > { %2173 = vrot.lane.b32.xlu0 %v2135_v4, %s8523_s14  ;;  %7591 = vrot.lane.b32.xlu1 %v7590_v63, %s8523_s14  ;;  %v725_v4 = vadd.f32 %v6532_v5, %v9683_v49  ;;  %v719_v63 = vpop.f32.mrb[25].mxu1  ;;  %v7170_v54 = vpack.c.bf16 %v715_v27, %v710_v62  ;;  %v2144_v5 = vmul.f32 %v9642_v1, %v2128_v40 }
 0x478   : > { %v720_v31 = vadd.f32 %v719_v63, %v9683_v49  ;;  %v6535_v21 = vpop.f32.mrb[26].mxu1  ;;  %7165 = vmatpush3.bf16.msra.mxu1 %v7162_v50  ;;  %11994 = vst [vmem:[#allocation86_spill] sm:$0xff] %v9717_v36  ;;  %11995 = vst [vmem:[#allocation87_spill] sm:$0xff] %v9725_v26  ;;  %v9727_v40 = vpack.i.bf16 %v715_v27, %v710_v62 }
 0x479   : > { %v735_v47 = vadd.f32 %v6535_v21, %v9683_v49  ;;  %v729_v29 = vpop.f32.mrb[27].mxu1  ;;  %7167 = vmatprep.subr.bf16.mxu1 %v7166_v57 }
 0x47a   : > { %v730_v18 = vadd.f32 %v729_v29, %v9683_v49  ;;  %v9715_v30 = vpack.c.bf16 %v725_v4, %v720_v31  ;;  %v6538_v48 = vpop.f32.mrb[28].mxu1  ;;  %11996 = vst [vmem:[#allocation88_spill] sm:$0xff] %v9727_v40  ;;  %v9730_v34 = vpack.i.bf16 %v725_v4, %v720_v31 }
 0x47b   : > { %2358 = vrot.lane.b32.xlu0 %v2143_v51, %s8523_s14  ;;  %2175 = vrot.lane.b32.xlu1 %v2136_v44, %s8523_s14  ;;  %v745_v63 = vadd.f32 %v6538_v48, %v9683_v49  ;;  %v739_v0 = vpop.f32.mrb[29].mxu1  ;;  %v2038_v48 = vpop.xlane.xlu1 %2037 }
 0x47c   : > { %v740_v51 = vadd.f32 %v739_v0, %v9683_v49  ;;  %v6541_v44 = vpop.f32.mrb[30].mxu1  ;;  %7169 = vmatpush3.bf16.msra.mxu1 %v7166_v57  ;;  %11997 = vst [vmem:[#allocation89_spill] sm:$0xff] %v9730_v34  ;;  %v9732_v0 = vpack.c.bf16 %v735_v47, %v730_v18  ;;  %v9734_v43 = vpack.i.bf16 %v735_v47, %v730_v18 }
 0x47d   : > { %v755_v50 = vadd.f32 %v6541_v44, %v9683_v49  ;;  %v749_v21 = vpop.f32.mrb[31].mxu1  ;;  %7171 = vmatprep.subr.bf16.mxu1 %v7170_v54  ;;  %v2072_v44 = vmax.f32 %v2038_v48, 1e-24 }
 0x47e   : > { %v750_v29 = vadd.f32 %v749_v21, %v9683_v49  ;;  %11998 = vst [vmem:[#allocation90_spill] sm:$0xff] %v9734_v43  ;;  %v9738_v57 = vpack.i.bf16 %v745_v63, %v740_v51  ;;  %v2062_v49 = vpop.xlane.xlu0 %2061 }
 0x47f   : > { %2360 = vrot.lane.b32.xlu1 %v2144_v5, %s8523_s14  ;;  %v9736_v5 = vpack.c.bf16 %v745_v63, %v740_v51  ;;  %v9740_v8 = vpop.permute.xlu1 %3256  ;;  %v2080_v6 = vmax.f32 %v2062_v49, 1e-24  ;;  %7921 = vrsqrt.f32 %v2072_v44 }
 0x480   : > { %7173 = vmatpush3.bf16.msra.mxu1 %v7170_v54  ;;  %11999 = vst [vmem:[#allocation91_spill] sm:$0xff] %v9738_v57  ;;  %v9742_v53 = vpack.c.bf16 %v755_v50, %v750_v29  ;;  %v9744_v54 = vpack.i.bf16 %v755_v50, %v750_v29 }
 0x481   : > { %7175 = vmatprep.subr.bf16.mxu1 %v9715_v30 }
 0x482   : > { %12000 = vst [vmem:[#allocation92_spill] sm:$0xff] %v9744_v54  ;;  %v1881_v27 = vpop.xlane.xlu0 %1880 }
 0x483   : > { %v9746_v62 = vpop.permute.xlu1 %3264  ;;  %v1913_v21 = vmax.f32 %v1881_v27, 1e-24 }
 0x485   : > { %7923 = vrsqrt.f32 %v1913_v21 }
 0x486   : > { %v9748_v4 = vpop.permute.xlu0 %3254 }
 0x487   : > { %v9750_v31 = vpop.permute.xlu1 %3260 }
 0x489   : > { %v7922_v48 = vpop.eup %7921 }
 0x48a   : > { %v9752_v47 = vpop.permute.xlu0 %3258 }
 0x48b   : > { %v9754_v18 = vpop.permute.xlu1 %3268 }
 0x48e   : > { %v9756_v63 = vpop.permute.xlu0 %3266 }
 0x48f   : > { %v7924_v27 = vpop.eup %7923 }
 0x492   : > { %v9758_v50 = vpop.permute.xlu0 %3262 }
 0x4aa   : > { %v1905_v51 = vpop.xlane.xlu1 %1904 }
 0x4ab   : > { %v1921_v42 = vmax.f32 %v1905_v51, 1e-24 }
 0x4ae   : > { %v2041_v20 = vpop.xlane.xlu1 %2040 }
 0x4af   : > { %v2073_v29 = vmax.f32 %v2041_v20, 1e-24  ;;  %v2104_v20 = vmul.f32 %v7922_v48, %v9327_v56 }
 0x4b1   : > { %7925 = vrsqrt.f32 %v2073_v29 }
 0x4b2   : > { %v2065_v28 = vpop.xlane.xlu1 %2064  ;;  %7927 = vrsqrt.f32 %v2080_v6  ;;  %v1945_v6 = vmul.f32 %v7924_v27, %v11982_v7 }
 0x4b3   : > { %v2081_v35 = vmax.f32 %v2065_v28, 1e-24  ;;  %v2164_v17 = vpop.permute.xlu0 %2163  ;;  %7929 = vrsqrt.f32 %v1921_v42 }
 0x4b4   : > { %6670 = vmatprep.mubr.msk.f32.mxu0 %vm776_vm0, %v2164_v17  ;;  %v2121_v60 = vadd.f32 %v9634_v61, %v1945_v6 }
 0x4b5   : > { %7931 = vrsqrt.f32 %v2081_v35 }
 0x4b6   : > { %v9761_v10 = vpop.permute.xlu1 %2348 }
 0x4ba   : > { %v9763_v15 = vpop.permute.xlu1 %7571 }
 0x4bb   : > { %v7926_v49 = vpop.eup %7925 }
 0x4bc   : > { %v2105_v51 = vmul.f32 %v7926_v49, %v9391_v3  ;;  %v7928_v44 = vpop.eup %7927 }
 0x4bd   : > { %v7930_v28 = vpop.eup %7929  ;;  %v2112_v17 = vmul.f32 %v7928_v44, %v9339_v12  ;;  %v1031_v12 = vld [vmem:[#allocation8 + $0x10] sm:$0xff] }
 0x4be   : > { %v7595_v21 = vpack.i.bf16 %v2105_v51, %v2104_v20  ;;  %v9771_v29 = vpop.permute.xlu1 %2165  ;;  %v1953_v37 = vmul.f32 %v7930_v28, %v11985_v46  ;;  %v2137_v20 = vmul.f32 %v9642_v1, %v2121_v60 }
 0x4bf   : > { %v7932_v42 = vpop.eup %7931 }
 0x4c0   : > { %7596 = vrot.lane.b32.xlu0 %v7595_v21, %s8523_s14  ;;  %v2113_v35 = vmul.f32 %v7932_v42, %v9395_v32  ;;  %v2129_v51 = vadd.f32 %v9634_v61, %v1953_v37 }
 0x4c1   : > { %v7567_v16 = vpop.permute.xlu0 %7566 }
 0x4c2   : > { %v7569_v48 = vunpack.i.h.bf16 %v7567_v16  ;;  %v7568_v59 = vunpack.i.l.bf16 %v7567_v16  ;;  %v7600_v49 = vpack.i.bf16 %v2113_v35, %v2112_v17  ;;  %v9780_v44 = vpop.permute.xlu1 %2167  ;;  %v2145_v16 = vmul.f32 %v9642_v1, %v2129_v51 }
 0x4c4   : > { %v7190_v27 = vpack.c.bf16 %v7569_v48, %v7568_v59  ;;  %7601 = vrot.lane.b32.xlu0 %v7600_v49, %s8523_s14  ;;  %v1030_v49 = vld [vmem:[#allocation8 + $0x8] sm:$0xff] }
 0x4c5   : > { %v9791_v37 = vpop.permute.xlu0 %2350 }
 0x4c6   : > { %7192 = vmatprep.subr.msk.bf16.mxu0 %vm9151_vm1, %v7190_v27  ;;  %v9787_v59 = vpop.permute.xlu1 %2352 }
 0x4c7   : > { %7195 = vmatpush3.bf16.xpose.msk.msra.mxu0 %vm9151_vm1, %v7190_v27 }
 0x4c8   : > { %2177 = vrot.lane.b32.xlu0 %v2137_v20, %s8523_s14 }
 0x4cb   : > { %v9795_v60 = vpop.permute.xlu0 %2169 }
 0x4cc   : > { %2362 = vrot.lane.b32.xlu0 %v2145_v16, %s8523_s14 }
 0x4cf   : > { %v9797_v61 = vpop.permute.xlu0 %2354 }
 0x4d1   : > { %v7577_v6 = vpop.permute.xlu1 %7576 }
 0x4d2   : > { %v7579_v28 = vunpack.i.h.bf16 %v7577_v6  ;;  %v7578_v21 = vunpack.i.l.bf16 %v7577_v6  ;;  %v1029_v6 = vld [vmem:[#allocation8] sm:$0xff] }
 0x4d4   : > { %v7196_v42 = vpack.c.bf16 %v7579_v28, %v7578_v21 }
 0x4d6   : > { %7198 = vmatprep.subr.msk.bf16.mxu0 %vm9151_vm1, %v7196_v42 }
 0x4d7   : > { %7201 = vmatpush3.bf16.xpose.msk.msra.mxu0 %vm9151_vm1, %v7196_v42  ;;  %v1032_v42 = vld [vmem:[#allocation8 + $0x18] sm:$0xff] }
 0x4e5   : > { %v7587_v1 = vpop.permute.xlu0 %7586 }
 0x4e6   : > { %v7589_v17 = vunpack.i.h.bf16 %v7587_v1  ;;  %v7588_v35 = vunpack.i.l.bf16 %v7587_v1 }
 0x4e8   : > { %v7202_v48 = vpack.c.bf16 %v7589_v17, %v7588_v35 }
 0x4e9   : > { %v2174_v38 = vpop.permute.xlu0 %2173 }
 0x4ea   : > { %7204 = vmatprep.subr.msk.bf16.mxu0 %vm9151_vm1, %v7202_v48 }
 0x4eb   : > { %7207 = vmatpush3.bf16.xpose.msk.msra.mxu0 %vm9151_vm1, %v7202_v48 }
 0x512   : > { %v6560_v27 = vpop.f32.mrb[32].mxu1 }
 0x513   : > { %v9803_v20 = vadd.f32 %v6560_v27, %v1030_v49  ;;  %v1151_v51 = vpop.f32.mrb[33].mxu1 }
 0x514   : > { %v9811_v48 = vadd.f32 %v1151_v51, %v1029_v6 }
 0x515   : > { %v1347_v16 = vsel %vm1343_vm2, %v9803_v20, -inf }
 0x516   : > { %v6563_v28 = vpop.f32.mrb[34].mxu1  ;;  %v6588_v21 = vpop.f32.mrb[16].mxu0  ;;  %1348 = vmax.xlane.f32.xlu1 %v1347_v16  ;;  %v1344_v51 = vsel %vm1343_vm2, %v9811_v48, -inf }
 0x517   : > { %v9807_v1 = vadd.f32 %v6588_v21, %v1030_v49  ;;  %v1161_v17 = vpop.f32.mrb[35].mxu1  ;;  %v1304_v35 = vpop.f32.mrb[17].mxu0  ;;  %v9815_v7 = vadd.f32 %v6563_v28, %v1032_v42 }
 0x518   : > { %v9809_v46 = vadd.f32 %v1304_v35, %v1029_v6  ;;  %v9819_v9 = vadd.f32 %v1161_v17, %v1031_v12 }
 0x519   : > { %v1371_v27 = vsel %vm1343_vm2, %v9807_v1, -inf  ;;  %v1353_v22 = vsel %vm1343_vm2, %v9815_v7, -inf }
 0x51a   : > { %v6566_v24 = vpop.f32.mrb[36].mxu1  ;;  %v6591_v32 = vpop.f32.mrb[18].mxu0  ;;  %1372 = vmax.xlane.f32.xlu0 %v1371_v27  ;;  %v1368_v16 = vsel %vm1343_vm2, %v9809_v46, -inf  ;;  %v1034_v27 = vld [vmem:[#allocation8 + $0x28] sm:$0xff]  ;;  %v1350_v17 = vsel %vm1343_vm2, %v9819_v9, -inf }
 0x51b   : > { %v1171_v49 = vpop.f32.mrb[37].mxu1  ;;  %v1314_v21 = vpop.f32.mrb[19].mxu0  ;;  %1369 = vmax.xlane.f32.xlu1 %v1368_v16  ;;  %v9823_v6 = vadd.f32 %v6591_v32, %v1032_v42  ;;  %v9831_v16 = vadd.f32 %v6566_v24, %v1034_v27 }
 0x51c   : > { %v9827_v56 = vadd.f32 %v1314_v21, %v1031_v12  ;;  %v9835_v3 = vadd.f32 %v1171_v49, %v1033_v2  ;;  %v1036_v21 = vld [vmem:[#allocation8 + $0x38] sm:$0xff]  ;;  %v1035_v49 = vld [vmem:[#allocation8 + $0x30] sm:$0xff] }
 0x51d   : > { %v1377_v42 = vsel %vm1343_vm2, %v9823_v6, -inf  ;;  %v1359_v24 = vsel %vm1343_vm2, %v9831_v16, -inf }
 0x51e   : > { %v6569_v35 = vpop.f32.mrb[38].mxu1  ;;  %v6594_v28 = vpop.f32.mrb[20].mxu0  ;;  %1345 = vmax.xlane.f32.xlu0 %v1344_v51  ;;  %v1356_v39 = vsel %vm1343_vm2, %v9835_v3, -inf }
 0x51f   : > { %v1181_v19 = vpop.f32.mrb[39].mxu1  ;;  %v1324_v23 = vpop.f32.mrb[21].mxu0  ;;  %1354 = vmax.xlane.f32.xlu1 %v1353_v22  ;;  %v1374_v22 = vsel %vm1343_vm2, %v9827_v56, -inf  ;;  %v9839_v12 = vadd.f32 %v6594_v28, %v1034_v27 }
 0x520   : > { %v9851_v27 = vadd.f32 %v1181_v19, %v1035_v49 }
 0x521   : > { %v1383_v28 = vsel %vm1343_vm2, %v9839_v12, -inf }
 0x522   : > { %v6597_v32 = vpop.f32.mrb[22].mxu0  ;;  %1351 = vmax.xlane.f32.xlu0 %v1350_v17  ;;  %v9843_v17 = vadd.f32 %v1324_v23, %v1033_v2 }
 0x523   : > { %v1334_v51 = vpop.f32.mrb[23].mxu0  ;;  %1378 = vmax.xlane.f32.xlu1 %v1377_v42  ;;  %v9847_v42 = vadd.f32 %v6569_v35, %v1036_v21  ;;  %v9857_v23 = vadd.f32 %v6597_v32, %v1036_v21  ;;  %v9863_v35 = vpop.permute.xlu1 %7581 }
 0x525   : > { %v1365_v2 = vsel %vm1343_vm2, %v9847_v42, -inf }
 0x526   : > { %1375 = vmax.xlane.f32.xlu0 %v1374_v22  ;;  %v1380_v22 = vsel %vm1343_vm2, %v9843_v17, -inf }
 0x527   : > { %1360 = vmax.xlane.f32.xlu1 %v1359_v24  ;;  %v9855_v24 = vpop.permute.xlu0 %2358  ;;  %v2172_v21 = vpop.permute.xlu1 %2171 }
 0x528   : > { %12001 = vst [vmem:[#allocation93_spill] sm:$0xff] %v9855_v24 }
 0x52a   : > { %1357 = vmax.xlane.f32.xlu0 %v1356_v39  ;;  %v1362_v39 = vsel %vm1343_vm2, %v9851_v27, -inf }
 0x52b   : > { %1384 = vmax.xlane.f32.xlu1 %v1383_v28  ;;  %v1389_v28 = vsel %vm1343_vm2, %v9857_v23, -inf }
 0x52e   : > { %1381 = vmax.xlane.f32.xlu0 %v1380_v22  ;;  %v9871_v22 = vpop.permute.xlu1 %2356 }
 0x52f   : > { %1366 = vmax.xlane.f32.xlu1 %v1365_v2 }
 0x532   : > { %1363 = vmax.xlane.f32.xlu0 %v1362_v39  ;;  %v7597_v19 = vpop.permute.xlu0 %7596  ;;  %v9877_v2 = vpop.permute.xlu1 %7591 }
 0x533   : > { %v7599_v25 = vunpack.i.h.bf16 %v7597_v19  ;;  %v7598_v45 = vunpack.i.l.bf16 %v7597_v19  ;;  %1390 = vmax.xlane.f32.xlu1 %v1389_v28  ;;  %v12006_v28 = vld [vmem:[#allocation68_spill] sm:$0xff] }
 0x535   : > { %v7208_v32 = vpack.c.bf16 %v7599_v25, %v7598_v45  ;;  %v12002_v25 = vld [vmem:[#allocation22_spill] sm:$0xff] }
 0x536   : > { %v9881_v45 = vpop.permute.xlu0 %7601  ;;  %v2176_v39 = vpop.permute.xlu1 %2175 }
 0x537   : > { %7210 = vmatprep.subr.msk.bf16.mxu0 %vm9151_vm1, %v7208_v32 }
 0x538   : > { %7213 = vmatpush3.bf16.xpose.msk.msra.mxu0 %vm9151_vm1, %v7208_v32  ;;  %v12008_v32 = vld [vmem:[#allocation28_spill] sm:$0xff] }
 0x53a   : > { %v2178_v19 = vpop.permute.xlu0 %2177 }
 0x53f   : > { %6671 = vmatmul.mubr.msk.f32.vlgmr.msra.gmra.mrb[24].mxu0 %vm776_vm0, %v9771_v29  ;;  %v12003_v29 = vld [vmem:[#allocation65_spill] sm:$0xff] }
 0x540   : > { %6673 = vmatprep.mubr.msk.f32.mxu0 %vm776_vm0, %v9780_v44  ;;  %v12004_v44 = vld [vmem:[#allocation51_spill] sm:$0xff] }
 0x543   : > { %6674 = vmatmul.mubr.msk.f32.gmra.mrb[26].mxu0 %vm776_vm0, %v9795_v60  ;;  %v12005_v60 = vld [vmem:[#allocation27_spill] sm:$0xff] }
 0x544   : > { %3104 = vrot.lane.b32.xlu1 %v12002_v25, %s8524_s12  ;;  %6676 = vmatprep.mubr.msk.f32.mxu0 %vm776_vm0, %v2172_v21  ;;  %v12009_v21 = vld [vmem:[#allocation54_spill] sm:$0xff] }
 0x547   : > { %6677 = vmatmul.mubr.msk.f32.gmra.mrb[28].mxu0 %vm776_vm0, %v2174_v38  ;;  %v12007_v38 = vld [vmem:[#allocation79_spill] sm:$0xff] }
 0x548   : > { %3272 = vrot.lane.b32.xlu1 %v12003_v29, %s8524_s12  ;;  %3270 = vrot.lane.b32.xlu0 %v12004_v44, %s8524_s12  ;;  %v9903_v29 = vadd.f32 %v1334_v51, %v1035_v49  ;;  %v12015_v51 = vld [vmem:[#allocation72_spill] sm:$0xff]  ;;  %v9919_v49 = vpop.permute.xlu1 %2360 }
 0x549   : > { %6679 = vmatprep.mubr.msk.f32.mxu0 %vm776_vm0, %v2176_v39  ;;  %12016 = vst [vmem:[#allocation94_spill] sm:$0xff] %v9919_v49 }
 0x54a   : > { %v1386_v39 = vsel %vm1343_vm2, %v9903_v29, -inf }
 0x54b   : > { %6680 = vmatmul.mubr.msk.f32.gmra.mrb[30].mxu0 %vm776_vm0, %v2178_v19  ;;  %v12010_v19 = vld [vmem:[#allocation85_spill] sm:$0xff] }
 0x54c   : > { %3106 = vrot.lane.b32.xlu0 %v12005_v60, %s8524_s12 }
 0x550   : > { %3274 = vrot.lane.b32.xlu0 %v12006_v28, %s8524_s12  ;;  %v12011_v28 = vld [vmem:[#allocation25_spill] sm:$0xff] }
 0x554   : > { %3276 = vrot.lane.b32.xlu0 %v12007_v38, %s8524_s12  ;;  %v12012_v38 = vld [vmem:[#allocation41_spill] sm:$0xff] }
 0x558   : > { %3122 = vrot.lane.b32.xlu0 %v12008_v32, %s8524_s12  ;;  %v12013_v32 = vld [vmem:[#allocation47_spill] sm:$0xff] }
 0x55c   : > { %3112 = vrot.lane.b32.xlu0 %v12009_v21, %s8524_s12  ;;  %v12014_v21 = vld [vmem:[#allocation59_spill] sm:$0xff] }
 0x56c   : > { %1387 = vmax.xlane.f32.xlu1 %v1386_v39  ;;  %v9921_v39 = vpop.permute.xlu0 %2362 }
 0x56d   : > { %12017 = vst [vmem:[#allocation95_spill] sm:$0xff] %v9921_v39 }
 0x57d   : > { %3278 = vrot.lane.b32.xlu1 %v12010_v19, %s8524_s12 }
 0x581   : > { %3120 = vrot.lane.b32.xlu1 %v12011_v28, %s8524_s12 }
 0x585   : > { %3108 = vrot.lane.b32.xlu1 %v12012_v38, %s8524_s12 }
 0x589   : > { %3110 = vrot.lane.b32.xlu1 %v12013_v32, %s8524_s12 }
 0x58d   : > { %3114 = vrot.lane.b32.xlu1 %v12014_v21, %s8524_s12 }
 0x591   : > { %3116 = vrot.lane.b32.xlu1 %v12015_v51, %s8524_s12 }
 0x5a3   : > { %v1349_v19 = vpop.xlane.xlu1 %1348 }
 0x5a4   : > { %v1393_v60 = vsub.f32 %v9803_v20, %v1349_v19 }
 0x5a6   : > { %v1410_v28 = vmul.f32 1.442695, %v1393_v60 }
 0x5a7   : > { %v1373_v25 = vpop.xlane.xlu0 %1372 }
 0x5a8   : > { %7933 = vpow2.f32 %v1410_v28  ;;  %v1401_v38 = vsub.f32 %v9807_v1, %v1373_v25  ;;  %v1370_v44 = vpop.xlane.xlu1 %1369 }
 0x5a9   : > { %v1400_v32 = vsub.f32 %v9809_v46, %v1370_v44 }
 0x5aa   : > { %v1426_v52 = vmul.f32 1.442695, %v1401_v38 }
 0x5ab   : > { %v1424_v21 = vmul.f32 1.442695, %v1400_v32  ;;  %v1346_v57 = vpop.xlane.xlu0 %1345 }
 0x5ac   : > { %7935 = vpow2.f32 %v1426_v52  ;;  %v1392_v51 = vsub.f32 %v9811_v48, %v1346_v57  ;;  %v1355_v58 = vpop.xlane.xlu1 %1354 }
 0x5ad   : > { %7937 = vpow2.f32 %v1424_v21  ;;  %v1395_v55 = vsub.f32 %v9815_v7, %v1355_v58 }
 0x5ae   : > { %v1408_v54 = vmul.f32 1.442695, %v1392_v51 }
 0x5af   : > { %v1414_v20 = vmul.f32 1.442695, %v1395_v55  ;;  %v1352_v60 = vpop.xlane.xlu0 %1351 }
 0x5b0   : > { %7939 = vpow2.f32 %v1408_v54  ;;  %v1394_v28 = vsub.f32 %v9819_v9, %v1352_v60  ;;  %v1379_v1 = vpop.xlane.xlu1 %1378 }
 0x5b1   : > { %v1403_v25 = vsub.f32 %v9823_v6, %v1379_v1  ;;  %7941 = vpow2.f32 %v1414_v20 }
 0x5b2   : > { %v9930_v46 = vpop.eup %7933  ;;  %v1412_v44 = vmul.f32 1.442695, %v1394_v28 }
 0x5b3   : > { %v1430_v52 = vmul.f32 1.442695, %v1403_v25  ;;  %v1376_v38 = vpop.xlane.xlu0 %1375  ;;  %v1443_v57 = vsel %vm1343_vm2, %v9930_v46, 0.0 }
 0x5b4   : > { %v1402_v7 = vsub.f32 %v9827_v56, %v1376_v38  ;;  %v1361_v58 = vpop.xlane.xlu1 %1360 }
 0x5b5   : > { %7943 = vpow2.f32 %v1430_v52  ;;  %v1397_v55 = vsub.f32 %v9831_v16, %v1361_v58  ;;  %1444 = vadd.xlane.f32.xlu1 %v1443_v57 }
 0x5b6   : > { %v9936_v9 = vpop.eup %7935  ;;  %v1428_v54 = vmul.f32 1.442695, %v1402_v7  ;;  %7945 = vpow2.f32 %v1412_v44 }
 0x5b7   : > { %v9938_v48 = vpop.eup %7937  ;;  %v1418_v6 = vmul.f32 1.442695, %v1397_v55  ;;  %v1358_v32 = vpop.xlane.xlu0 %1357  ;;  %v1467_v21 = vsel %vm1343_vm2, %v9936_v9, 0.0 }
 0x5b8   : > { %7947 = vpow2.f32 %v1428_v54  ;;  %v1396_v19 = vsub.f32 %v9835_v3, %v1358_v32  ;;  %v1385_v56 = vpop.xlane.xlu1 %1384  ;;  %v1464_v51 = vsel %vm1343_vm2, %v9938_v48, 0.0 }
 0x5b9   : > { %v1405_v16 = vsub.f32 %v9839_v12, %v1385_v56  ;;  %1465 = vadd.xlane.f32.xlu0 %v1464_v51  ;;  %1468 = vadd.xlane.f32.xlu1 %v1467_v21  ;;  %7949 = vpow2.f32 %v1418_v6 }
 0x5ba   : > { %v9946_v20 = vpop.eup %7939  ;;  %v1416_v60 = vmul.f32 1.442695, %v1396_v19 }
 0x5bb   : > { %v1434_v28 = vmul.f32 1.442695, %v1405_v16  ;;  %v1382_v1 = vpop.xlane.xlu0 %1381  ;;  %v1440_v25 = vsel %vm1343_vm2, %v9946_v20, 0.0  ;;  %v9951_v52 = vpop.eup %7941 }
 0x5bc   : > { %7951 = vpow2.f32 %v1416_v60  ;;  %v1404_v3 = vsub.f32 %v9843_v17, %v1382_v1  ;;  %v1367_v44 = vpop.xlane.xlu1 %1366  ;;  %v1449_v17 = vsel %vm1343_vm2, %v9951_v52, 0.0 }
 0x5bd   : > { %v1399_v38 = vsub.f32 %v9847_v42, %v1367_v44  ;;  %1441 = vadd.xlane.f32.xlu1 %v1440_v25  ;;  %7953 = vpow2.f32 %v1434_v28 }
 0x5be   : > { %v1432_v12 = vmul.f32 1.442695, %v1404_v3 }
 0x5bf   : > { %v9954_v57 = vpop.eup %7943  ;;  %v1422_v7 = vmul.f32 1.442695, %v1399_v38  ;;  %v1364_v58 = vpop.xlane.xlu0 %1363 }
 0x5c0   : > { %7955 = vpow2.f32 %v1432_v12  ;;  %v1398_v55 = vsub.f32 %v9851_v27, %v1364_v58  ;;  %v1391_v54 = vpop.xlane.xlu1 %1390  ;;  %v1473_v6 = vsel %vm1343_vm2, %v9954_v57, 0.0  ;;  %v9961_v32 = vpop.eup %7945 }
 0x5c1   : > { %v1407_v42 = vsub.f32 %v9857_v23, %v1391_v54  ;;  %1474 = vadd.xlane.f32.xlu0 %v1473_v6  ;;  %1450 = vadd.xlane.f32.xlu1 %v1449_v17  ;;  %7957 = vpow2.f32 %v1422_v7  ;;  %v1446_v51 = vsel %vm1343_vm2, %v9961_v32, 0.0 }
 0x5c2   : > { %v9964_v21 = vpop.eup %7947  ;;  %v1420_v19 = vmul.f32 1.442695, %v1398_v55 }
 0x5c3   : > { %v1438_v56 = vmul.f32 1.442695, %v1407_v42  ;;  %v1470_v27 = vsel %vm1343_vm2, %v9964_v21, 0.0  ;;  %v9970_v16 = vpop.eup %7949 }
 0x5c4   : > { %v1455_v28 = vsel %vm1343_vm2, %v9970_v16, 0.0  ;;  %v9998_v6 = vpop.permute.xlu1 %3104 }
 0x5c5   : > { %7959 = vpow2.f32 %v1438_v56  ;;  %1447 = vadd.xlane.f32.xlu0 %v1446_v51  ;;  %1471 = vadd.xlane.f32.xlu1 %v1470_v27 }
 0x5c6   : > { %v9972_v60 = vpop.eup %7951  ;;  %7961 = vpow2.f32 %v1420_v19 }
 0x5c7   : > { %v1452_v23 = vsel %vm1343_vm2, %v9972_v60, 0.0  ;;  %v9978_v1 = vpop.eup %7953 }
 0x5c8   : > { %v1479_v44 = vsel %vm1343_vm2, %v9978_v1, 0.0  ;;  %v10000_v17 = vpop.permute.xlu1 %3272 }
 0x5c9   : > { %1456 = vadd.xlane.f32.xlu1 %v1455_v28  ;;  %1453 = vadd.xlane.f32.xlu0 %v1452_v23  ;;  %v10007_v23 = vld [vmem:[#allocation8 + $0x48] sm:$0xff]  ;;  %v10009_v28 = vld [vmem:[#allocation8 + $0x40] sm:$0xff] }
 0x5ca   : > { %v9980_v25 = vpop.eup %7955  ;;  %12018 = vst [vmem:[#allocation96_spill] sm:$0xff] %v10007_v23  ;;  %12019 = vst [vmem:[#allocation97_spill] sm:$0xff] %v10009_v28 }
 0x5cb   : > { %v1476_v3 = vsel %vm1343_vm2, %v9980_v25, 0.0  ;;  %v9986_v38 = vpop.eup %7957 }
 0x5cc   : > { %v1461_v7 = vsel %vm1343_vm2, %v9986_v38, 0.0 }
 0x5cd   : > { %1480 = vadd.xlane.f32.xlu1 %v1479_v44  ;;  %1477 = vadd.xlane.f32.xlu0 %v1476_v3 }
 0x5cf   : > { %v9988_v12 = vpop.eup %7959 }
 0x5d0   : > { %v1485_v58 = vsel %vm1343_vm2, %v9988_v12, 0.0  ;;  %v9994_v55 = vpop.eup %7961 }
 0x5d1   : > { %1462 = vadd.xlane.f32.xlu1 %v1461_v7  ;;  %1486 = vadd.xlane.f32.xlu0 %v1485_v58  ;;  %v1458_v54 = vsel %vm1343_vm2, %v9994_v55, 0.0 }
 0x5d5   : > { %1459 = vadd.xlane.f32.xlu0 %v1458_v54 }
 0x5f9   : > { %v1388_v42 = vpop.xlane.xlu1 %1387 }
 0x5fa   : > { %v1406_v19 = vsub.f32 %v9903_v29, %v1388_v42  ;;  %v10017_v29 = vld [vmem:[#allocation8 + $0x58] sm:$0xff]  ;;  %v10021_v42 = vld [vmem:[#allocation8 + $0x50] sm:$0xff] }
 0x5fb   : > { %12020 = vst [vmem:[#allocation98_spill] sm:$0xff] %v10017_v29  ;;  %12021 = vst [vmem:[#allocation99_spill] sm:$0xff] %v10021_v42 }
 0x5fc   : > { %v1436_v56 = vmul.f32 1.442695, %v1406_v19 }
 0x5fe   : > { %7963 = vpow2.f32 %v1436_v56 }
 0x608   : > { %v10003_v27 = vpop.eup %7963 }
 0x609   : > { %v1482_v51 = vsel %vm1343_vm2, %v10003_v27, 0.0 }
 0x60a   : > { %1483 = vadd.xlane.f32.xlu1 %v1482_v51 }
 0x612   : > { %v6672_v3 = vpop.f32.mrb[24].mxu0 }
 0x613   : > { %v10012_v44 = vadd.f32 %v6672_v3, %v10007_v23  ;;  %v2301_v7 = vpop.f32.mrb[25].mxu0  ;;  %v10049_v23 = vpop.permute.xlu1 %3278 }
 0x614   : > { %v10015_v58 = vadd.f32 %v2301_v7, %v10009_v28 }
 0x615   : > { %v2528_v54 = vsel %vm1343_vm2, %v10012_v44, -inf }
 0x616   : > { %2529 = vmax.xlane.f32.xlu0 %v2528_v54  ;;  %v6675_v19 = vpop.f32.mrb[26].mxu0  ;;  %v2525_v56 = vsel %vm1343_vm2, %v10015_v58, -inf }
 0x617   : > { %v10026_v51 = vadd.f32 %v6675_v19, %v10017_v29  ;;  %v2311_v3 = vpop.f32.mrb[27].mxu0  ;;  %2526 = vmax.xlane.f32.xlu1 %v2525_v56 }
 0x618   : > { %v10029_v7 = vadd.f32 %v2311_v3, %v10021_v42 }
 0x619   : > { %12022 = vst [vmem:[#allocation100_spill] sm:$0xff] %v10026_v51  ;;  %v2534_v34 = vsel %vm1343_vm2, %v10026_v51, -inf }
 0x61a   : > { %12023 = vst [vmem:[#allocation101_spill] sm:$0xff] %v10029_v7  ;;  %v6678_v54 = vpop.f32.mrb[28].mxu0  ;;  %v2531_v43 = vsel %vm1343_vm2, %v10029_v7, -inf  ;;  %v12039_v7 = vld [vmem:[#allocation44_spill] sm:$0xff] }
 0x61b   : > { %v10040_v13 = vadd.f32 %v6678_v54, %v10031_v33  ;;  %v2321_v19 = vpop.f32.mrb[29].mxu0  ;;  %2532 = vmax.xlane.f32.xlu0 %v2531_v43  ;;  %2535 = vmax.xlane.f32.xlu1 %v2534_v34  ;;  %v12028_v54 = vld [vmem:[#allocation45_spill] sm:$0xff]  ;;  %v10055_v34 = vpop.permute.xlu1 %3120 }
 0x61c   : > { %v10043_v56 = vadd.f32 %v2321_v19, %v10033_v11  ;;  %v3296_v33 = vsel %vm776_vm0, %v12028_v54, 0.0  ;;  %v10053_v43 = vld [vmem:[#allocation8 + $0x78] sm:$0xff]  ;;  %v12031_v11 = vld [vmem:[#allocation55_spill] sm:$0xff] }
 0x61d   : > { %12026 = vst [vmem:[#allocation104_spill] sm:$0xff] %v10040_v13  ;;  %v2540_v3 = vsel %vm1343_vm2, %v10040_v13, -inf  ;;  %12029 = vst [vmem:[#allocation45_spill] sm:$0xff] %v10053_v43  ;;  %v3299_v13 = vsel %vm776_vm0, %v12031_v11, 0.0 }
 0x61e   : > { %12027 = vst [vmem:[#allocation105_spill] sm:$0xff] %v10043_v56  ;;  %v6681_v42 = vpop.f32.mrb[30].mxu0  ;;  %v2537_v29 = vsel %vm1343_vm2, %v10043_v56, -inf  ;;  %v10062_v56 = vpop.permute.xlu0 %3270 }
 0x61f   : > { %v2331_v28 = vpop.f32.mrb[31].mxu0  ;;  %2538 = vmax.xlane.f32.xlu0 %v2537_v29  ;;  %2541 = vmax.xlane.f32.xlu1 %v2540_v3  ;;  %v10058_v19 = vadd.f32 %v6681_v42, %v10053_v43  ;;  %v10066_v3 = vpop.permute.xlu1 %3108  ;;  %v12034_v42 = vld [vmem:[#allocation78_spill] sm:$0xff] }
 0x620   : > { %12032 = vst [vmem:[#allocation55_spill] sm:$0xff] %v10066_v3 }
 0x621   : > { %12030 = vst [vmem:[#allocation106_spill] sm:$0xff] %v10058_v19  ;;  %v2546_v29 = vsel %vm1343_vm2, %v10058_v19, -inf }
 0x622   : > { %v10068_v54 = vpop.permute.xlu0 %3106 }
 0x623   : > { %3297 = vadd.xlane.f32.xlu1 %v3296_v33  ;;  %v10070_v33 = vpop.permute.xlu1 %3110 }
 0x624   : > { %12033 = vst [vmem:[#allocation107_spill] sm:$0xff] %v10070_v33 }
 0x626   : > { %v10072_v51 = vpop.permute.xlu0 %3274 }
 0x627   : > { %3300 = vadd.xlane.f32.xlu1 %v3299_v13  ;;  %v10076_v43 = vpop.permute.xlu1 %3114  ;;  %v12036_v13 = vld [vmem:[#allocation43_spill] sm:$0xff] }
 0x628   : > { %12035 = vst [vmem:[#allocation108_spill] sm:$0xff] %v10076_v43  ;;  %v10090_v43 = vld [vmem:[#allocation8 + $0x70] sm:$0xff] }
 0x62a   : > { %v10078_v11 = vpop.permute.xlu0 %3276 }
 0x62b   : > { %2547 = vmax.xlane.f32.xlu1 %v2546_v29  ;;  %v10082_v19 = vpop.permute.xlu1 %3116 }
 0x62c   : > { %12037 = vst [vmem:[#allocation109_spill] sm:$0xff] %v10082_v19 }
 0x62e   : > { %v10084_v29 = vpop.permute.xlu0 %3122 }
 0x62f   : > { %12038 = vst [vmem:[#allocation110_spill] sm:$0xff] %v10084_v29 }
 0x632   : > { %v10088_v26 = vpop.permute.xlu0 %3112 }
 0x633   : > { %12040 = vst [vmem:[#allocation111_spill] sm:$0xff] %v10088_v26 }
 0x635   : > { %3118 = vrot.lane.b32.xlu0 %v12034_v42, %s8524_s12 }
 0x63c   : > { %3124 = vrot.lane.b32.xlu1 %v12036_v13, %s8524_s12  ;;  %v10093_v13 = vadd.f32 %v2331_v28, %v10090_v43  ;;  %v3305_v28 = vsel %vm776_vm0, %v9748_v4, 0.0 }
 0x640   : > { %3126 = vrot.lane.b32.xlu1 %v12039_v7, %s8524_s12  ;;  %v2543_v7 = vsel %vm1343_vm2, %v10093_v13, -inf }
 0x642   : > { %v1445_v40 = vpop.xlane.xlu1 %1444 }
 0x643   : > { %7965 = vrcp.f32 %v1445_v40 }
 0x646   : > { %v1469_v36 = vpop.xlane.xlu1 %1468  ;;  %v1466_v42 = vpop.xlane.xlu0 %1465 }
 0x64a   : > { %v1442_v41 = vpop.xlane.xlu1 %1441 }
 0x64b   : > { %7967 = vrcp.f32 %v1442_v41 }
 0x64d   : > { %v7966_v3 = vpop.eup %7965 }
 0x64e   : > { %v1451_v33 = vpop.xlane.xlu1 %1450  ;;  %v1475_v39 = vpop.xlane.xlu0 %1474  ;;  %v1505_v24 = vmul.f32 %v7966_v3, %v9930_v46  ;;  %v7574_v3 = vunpack.i.h.bf16 %v9763_v15 }
 0x64f   : > { %7969 = vrcp.f32 %v1451_v33 }
 0x652   : > { %v1472_v19 = vpop.xlane.xlu1 %1471  ;;  %v1448_v29 = vpop.xlane.xlu0 %1447 }
 0x653   : > { %7971 = vrcp.f32 %v1448_v29 }
 0x654   : > { %2544 = vmax.xlane.f32.xlu0 %v2543_v7 }
 0x655   : > { %v7968_v40 = vpop.eup %7967 }
 0x656   : > { %v1457_v26 = vpop.xlane.xlu1 %1456  ;;  %v1454_v49 = vpop.xlane.xlu0 %1453  ;;  %v1504_v41 = vmul.f32 %v7968_v40, %v9946_v20  ;;  %v7573_v40 = vunpack.i.l.bf16 %v9763_v15 }
 0x657   : > { %7973 = vrcp.f32 %v1457_v26 }
 0x658   : > { %7975 = vrcp.f32 %v1454_v49  ;;  %6614 = vmatprep.mubr.msk.f32.mxu1 %vm1343_vm2, %v1504_v41  ;;  %3306 = vadd.xlane.f32.xlu0 %v3305_v28  ;;  %v7214_v15 = vpack.c.bf16 %v7574_v3, %v7573_v40  ;;  %v12042_v28 = vld [vmem:[#allocation57_spill] sm:$0xff] }
 0x659   : > { %6615 = vmatmul.mubr.msk.f32.vlgmr.msra.gmra.mrb[40].mxu1 %vm1343_vm2, %v1505_v24  ;;  %v7970_v29 = vpop.eup %7969  ;;  %7977 = vrcp.f32 %v1466_v42  ;;  %v12045_v3 = vld [vmem:[#allocation81_spill] sm:$0xff] }
 0x65a   : > { %7177 = vmatpush3.bf16.msra.mxu1 %v9715_v30  ;;  %v1481_v7 = vpop.xlane.xlu1 %1480  ;;  %v1478_v33 = vpop.xlane.xlu0 %1477  ;;  %v1507_v46 = vmul.f32 %v7970_v29, %v9951_v52 }
 0x65b   : > { %7179 = vmatprep.subr.bf16.mxu1 %v9732_v0 }
 0x65d   : > { %v7972_v20 = vpop.eup %7971 }
 0x65e   : > { %7181 = vmatpush3.bf16.msra.mxu1 %v9732_v0  ;;  %v10106_v26 = vpop.xlane.xlu0 %1486  ;;  %v1463_v4 = vpop.xlane.xlu1 %1462  ;;  %v1506_v49 = vmul.f32 %v7972_v20, %v9961_v32  ;;  %v12041_v32 = vld [vmem:[#allocation69_spill] sm:$0xff] }
 0x65f   : > { %7183 = vmatprep.subr.bf16.mxu1 %v9736_v5  ;;  %7979 = vrcp.f32 %v1463_v4  ;;  %v3302_v42 = vsel %vm776_vm0, %v12041_v32, 0.0  ;;  %v3314_v32 = vsel %vm776_vm0, %v9750_v31, 0.0  ;;  %v3152_v31 = vsel %vm776_vm0, %v9998_v6, 0.0 }
 0x660   : > { %6617 = vmatprep.mubr.msk.f32.mxu1 %vm1343_vm2, %v1506_v49 }
 0x661   : > { %v7974_v24 = vpop.eup %7973  ;;  %6618 = vmatmul.mubr.msk.f32.gmra.mrb[42].mxu1 %vm1343_vm2, %v1507_v46 }
 0x662   : > { %v7976_v30 = vpop.eup %7975  ;;  %v1460_v0 = vpop.xlane.xlu0 %1459  ;;  %v1509_v41 = vmul.f32 %v7974_v24, %v9970_v16  ;;  %7185 = vmatpush3.bf16.msra.mxu1 %v9736_v5  ;;  %v7594_v24 = vunpack.i.h.bf16 %v9877_v2 }
 0x663   : > { %7981 = vrcp.f32 %v1460_v0  ;;  %v1508_v52 = vmul.f32 %v7976_v30, %v9972_v60  ;;  %7187 = vmatprep.subr.bf16.mxu1 %v9742_v53  ;;  %v7978_v5 = vpop.eup %7977  ;;  %v7593_v30 = vunpack.i.l.bf16 %v9877_v2  ;;  %v7604_v2 = vunpack.i.h.bf16 %v9881_v45 }
 0x664   : > { %3303 = vadd.xlane.f32.xlu1 %v3302_v42  ;;  %7983 = vrcp.f32 %v1469_v36  ;;  %v3308_v42 = vsel %vm776_vm0, %v9740_v8, 0.0 }
 0x665   : > { %6620 = vmatprep.mubr.msk.f32.mxu1 %vm1343_vm2, %v1508_v52  ;;  %7985 = vrcp.f32 %v1472_v19  ;;  %v7226_v0 = vpack.c.bf16 %v7594_v24, %v7593_v30  ;;  %v3323_v52 = vsel %vm776_vm0, %v9756_v63, 0.0 }
 0x666   : > { %6621 = vmatmul.mubr.msk.f32.gmra.mrb[44].mxu1 %vm1343_vm2, %v1509_v41  ;;  %7987 = vrcp.f32 %v1475_v39  ;;  %v7584_v39 = vunpack.i.h.bf16 %v9863_v35  ;;  %v3320_v41 = vsel %vm776_vm0, %v9746_v62, 0.0  ;;  %v3326_v62 = vsel %vm776_vm0, %v9754_v18, 0.0 }
 0x667   : > { %7189 = vmatpush3.bf16.msra.mxu1 %v9742_v53  ;;  %7989 = vrcp.f32 %v1478_v33  ;;  %v1512_v53 = vmul.f32 %v7978_v5, %v9938_v48  ;;  %v7583_v33 = vunpack.i.l.bf16 %v9863_v35  ;;  %v12044_v48 = vld [vmem:[#allocation60_spill] sm:$0xff]  ;;  %v3329_v18 = vsel %vm776_vm0, %v10062_v56, 0.0 }
 0x668   : > { %7216 = vmatprep.subr.msk.bf16.mxu1 %vm9151_vm1, %v7214_v15  ;;  %7991 = vrcp.f32 %v1481_v7  ;;  %v12043_v7 = vld [vmem:[#allocation73_spill] sm:$0xff] }
 0x669   : > { %v7980_v16 = vpop.eup %7979  ;;  %v7220_v46 = vpack.c.bf16 %v7584_v39, %v7583_v33  ;;  %7993 = vrcp.f32 %v10106_v26  ;;  %v12051_v39 = vld [vmem:[#allocation111_spill] sm:$0xff] }
 0x66a   : > { %v1511_v36 = vmul.f32 %v7980_v16, %v9986_v38  ;;  %v3164_v33 = vsel %vm776_vm0, %v12051_v39, 0.0 }
 0x66d   : > { %v7982_v60 = vpop.eup %7981 }
 0x66e   : > { %3128 = vrot.lane.b32.xlu0 %v12042_v28, %s8524_s12  ;;  %v1510_v29 = vmul.f32 %v7982_v60, %v9994_v55  ;;  %v7984_v20 = vpop.eup %7983  ;;  %v12047_v60 = vld [vmem:[#allocation94_spill] sm:$0xff] }
 0x66f   : > { %v7986_v19 = vpop.eup %7985  ;;  %v1513_v55 = vmul.f32 %v7984_v20, %v9936_v9  ;;  %v12050_v20 = vld [vmem:[#allocation95_spill] sm:$0xff] }
 0x670   : > { %6623 = vmatprep.mubr.msk.f32.mxu1 %vm1343_vm2, %v1510_v29  ;;  %v7988_v38 = vpop.eup %7987  ;;  %v1514_v4 = vmul.f32 %v7986_v19, %v9964_v21  ;;  %v12048_v29 = vld [vmem:[#allocation55_spill] sm:$0xff] }
 0x671   : > { %6624 = vmatmul.mubr.msk.f32.gmra.mrb[46].mxu1 %vm1343_vm2, %v1511_v36  ;;  %v7990_v49 = vpop.eup %7989  ;;  %v1515_v35 = vmul.f32 %v7988_v38, %v9954_v57  ;;  %v7603_v57 = vunpack.i.l.bf16 %v9881_v45  ;;  %v12049_v36 = vld [vmem:[#allocation110_spill] sm:$0xff] }
 0x672   : > { %6642 = vmatprep.mubr.msk.f32.mxu1 %vm1343_vm2, %v1512_v53  ;;  %3132 = vrot.lane.b32.xlu0 %v12043_v7, %s8524_s12  ;;  %v7992_v9 = vpop.eup %7991  ;;  %v1516_v21 = vmul.f32 %v7990_v49, %v9980_v25 }
 0x673   : > { %v1517_v40 = vmul.f32 %v7992_v9, %v9978_v1  ;;  %v7232_v25 = vpack.c.bf16 %v7604_v2, %v7603_v57  ;;  %v3311_v1 = vsel %vm776_vm0, %v9752_v47, 0.0  ;;  %v3317_v47 = vsel %vm776_vm0, %v9758_v50, 0.0  ;;  %v7994_v26 = vpop.eup %7993 }
 0x674   : > { %v1519_v8 = vmul.f32 %v7994_v26, %v9988_v12  ;;  %v3155_v12 = vsel %vm776_vm0, %v10068_v54, 0.0 }
 0x675   : > { %6643 = vmatmul.mubr.msk.f32.vlgmr.msra.gmra.mrb[48].mxu1 %vm1343_vm2, %v1513_v55  ;;  %3130 = vrot.lane.b32.xlu1 %v12044_v48, %s8524_s12  ;;  %v12052_v55 = vld [vmem:[#allocation107_spill] sm:$0xff] }
 0x676   : > { %7219 = vmatpush3.bf16.xpose.msk.msra.mxu1 %vm9151_vm1, %v7214_v15  ;;  %6645 = vmatprep.mubr.msk.f32.mxu1 %vm1343_vm2, %v1514_v4  ;;  %v3161_v38 = vsel %vm776_vm0, %v12052_v55, 0.0  ;;  %v12053_v4 = vld [vmem:[#allocation109_spill] sm:$0xff] }
 0x677   : > { %7222 = vmatprep.subr.msk.bf16.mxu1 %vm9151_vm1, %v7220_v46  ;;  %v3170_v49 = vsel %vm776_vm0, %v12053_v4, 0.0 }
 0x679   : > { %6646 = vmatmul.mubr.msk.f32.gmra.mrb[50].mxu1 %vm1343_vm2, %v1515_v35  ;;  %3134 = vrot.lane.b32.xlu1 %v12045_v3, %s8524_s12  ;;  %v12054_v35 = vld [vmem:[#allocation108_spill] sm:$0xff]  ;;  %v12070_v3 = vld [vmem:[#allocation90_spill] sm:$0xff] }
 0x67a   : > { %6648 = vmatprep.mubr.msk.f32.mxu1 %vm1343_vm2, %v1516_v21  ;;  %v3167_v9 = vsel %vm776_vm0, %v12054_v35, 0.0 }
 0x67d   : > { %6649 = vmatmul.mubr.msk.f32.gmra.mrb[52].mxu1 %vm1343_vm2, %v1517_v40 }
 0x67e   : > { %7225 = vmatpush3.bf16.xpose.msk.msra.mxu1 %vm9151_vm1, %v7220_v46 }
 0x67f   : > { %7228 = vmatprep.subr.msk.bf16.mxu1 %vm9151_vm1, %v7226_v0 }
 0x686   : > { %7231 = vmatpush3.bf16.xpose.msk.msra.mxu1 %vm9151_vm1, %v7226_v0 }
 0x687   : > { %7234 = vmatprep.subr.msk.bf16.mxu1 %vm9151_vm1, %v7232_v25 }
 0x68e   : > { %7237 = vmatpush3.bf16.xpose.msk.msra.mxu1 %vm9151_vm1, %v7232_v25 }
 0x691   : > { %3312 = vadd.xlane.f32.xlu0 %v3311_v1 }
 0x695   : > { %3321 = vadd.xlane.f32.xlu0 %v3320_v41  ;;  %v12055_v41 = vld [vmem:[#allocation18_spill] sm:$0xff] }
 0x697   : > { %v1484_v45 = vpop.xlane.xlu1 %1483 }
 0x698   : > { %7995 = vrcp.f32 %v1484_v45 }
 0x699   : > { %3324 = vadd.xlane.f32.xlu0 %v3323_v52 }
 0x69d   : > { %3315 = vadd.xlane.f32.xlu0 %v3314_v32  ;;  %3309 = vadd.xlane.f32.xlu1 %v3308_v42 }
 0x6a1   : > { %3327 = vadd.xlane.f32.xlu0 %v3326_v62  ;;  %3318 = vadd.xlane.f32.xlu1 %v3317_v47 }
 0x6a2   : > { %v7996_v15 = vpop.eup %7995 }
 0x6a3   : > { %v1518_v63 = vmul.f32 %v7996_v15, %v10003_v27  ;;  %v3332_v27 = vsel %vm776_vm0, %v10000_v17, 0.0  ;;  %v2530_v6 = vpop.xlane.xlu0 %2529  ;;  %v3335_v17 = vsel %vm776_vm0, %v10072_v51, 0.0  ;;  %v3341_v51 = vsel %vm776_vm0, %v10049_v23, 0.0 }
 0x6a4   : > { %v2527_v5 = vpop.xlane.xlu1 %2526  ;;  %v3179_v23 = vsel %vm776_vm0, %v12049_v36, 0.0  ;;  %v12058_v36 = vld [vmem:[#allocation88_spill] sm:$0xff] }
 0x6a5   : > { %6651 = vmatprep.mubr.msk.f32.mxu1 %vm1343_vm2, %v1518_v63  ;;  %3153 = vadd.xlane.f32.xlu0 %v3152_v31  ;;  %v2573_v54 = vsub.f32 %v10015_v58, %v2527_v5  ;;  %v12056_v5 = vld [vmem:[#allocation86_spill] sm:$0xff]  ;;  %v12057_v31 = vld [vmem:[#allocation87_spill] sm:$0xff] }
 0x6a6   : > { %3330 = vadd.xlane.f32.xlu1 %v3329_v18  ;;  %6652 = vmatmul.mubr.msk.f32.gmra.mrb[54].mxu1 %vm1343_vm2, %v1519_v8 }
 0x6a7   : > { %6698 = vmatprep.mubr.msk.f32.mxu1 %vm776_vm0, %v9761_v10  ;;  %v3338_v10 = vsel %vm776_vm0, %v10078_v11, 0.0  ;;  %v3176_v11 = vsel %vm776_vm0, %v10055_v34, 0.0  ;;  %v2589_v58 = vmul.f32 1.442695, %v2573_v54  ;;  %v3158_v34 = vsel %vm776_vm0, %v12048_v29, 0.0 }
 0x6a8   : > { %v10195_v50 = vpop.xlane.xlu1 %2535  ;;  %v10223_v16 = vpop.xlane.xlu0 %2532 }
 0x6a9   : > { %3333 = vadd.xlane.f32.xlu0 %v3332_v27  ;;  %7997 = vpow2.f32 %v2589_v58 }
 0x6aa   : > { %3156 = vadd.xlane.f32.xlu1 %v3155_v12  ;;  %6699 = vmatmul.mubr.msk.f32.vlgmr.msra.gmra.mrb[56].mxu1 %vm776_vm0, %v9791_v37 }
 0x6ab   : > { %6701 = vmatprep.mubr.msk.f32.mxu1 %vm776_vm0, %v9787_v59  ;;  %v2574_v59 = vsub.f32 %v10012_v44, %v2530_v6 }
 0x6ac   : > { %v10205_v56 = vpop.xlane.xlu1 %2541  ;;  %v10237_v53 = vpop.xlane.xlu0 %2538 }
 0x6ad   : > { %3339 = vadd.xlane.f32.xlu0 %v3338_v10 }
 0x6ae   : > { %3336 = vadd.xlane.f32.xlu1 %v3335_v17  ;;  %6702 = vmatmul.mubr.msk.f32.gmra.mrb[58].mxu1 %vm776_vm0, %v9797_v61  ;;  %v12046_v61 = vld [vmem:[#allocation93_spill] sm:$0xff] }
 0x6af   : > { %6704 = vmatprep.mubr.msk.f32.mxu1 %vm776_vm0, %v9871_v22  ;;  %v2591_v22 = vmul.f32 1.442695, %v2574_v59 }
 0x6b0   : > { %v10217_v37 = vpop.xlane.xlu1 %3297  ;;  %v3119_v21 = vpop.permute.xlu0 %3118 }
 0x6b1   : > { %3177 = vadd.xlane.f32.xlu0 %v3176_v11  ;;  %7999 = vpow2.f32 %v2591_v22  ;;  %v3173_v40 = vsel %vm776_vm0, %v3119_v21, 0.0 }
 0x6b2   : > { %3342 = vadd.xlane.f32.xlu1 %v3341_v51  ;;  %6705 = vmatmul.mubr.msk.f32.gmra.mrb[60].mxu1 %vm776_vm0, %v12046_v61 }
 0x6b3   : > { %6707 = vmatprep.mubr.msk.f32.mxu1 %vm776_vm0, %v12047_v60  ;;  %v10250_v30 = vpop.eup %7997 }
 0x6b4   : > { %v10229_v44 = vpop.xlane.xlu1 %3300  ;;  %v2621_v2 = vsel %vm1343_vm2, %v10250_v30, 0.0 }
 0x6b5   : > { %3159 = vadd.xlane.f32.xlu0 %v3158_v34 }
 0x6b6   : > { %3180 = vadd.xlane.f32.xlu1 %v3179_v23  ;;  %6708 = vmatmul.mubr.msk.f32.gmra.mrb[62].mxu1 %vm776_vm0, %v12050_v20 }
 0x6b8   : > { %v10239_v19 = vpop.xlane.xlu1 %2547 }
 0x6b9   : > { %3165 = vadd.xlane.f32.xlu0 %v3164_v33 }
 0x6ba   : > { %3162 = vadd.xlane.f32.xlu1 %v3161_v38 }
 0x6bb   : > { %v10253_v0 = vpop.eup %7999 }
 0x6bc   : > { %v3125_v46 = vpop.permute.xlu1 %3124  ;;  %v2624_v57 = vsel %vm1343_vm2, %v10253_v0, 0.0 }
 0x6bd   : > { %3171 = vadd.xlane.f32.xlu0 %v3170_v49  ;;  %v3182_v24 = vsel %vm776_vm0, %v3125_v46, 0.0 }
 0x6be   : > { %3168 = vadd.xlane.f32.xlu1 %v3167_v9 }
 0x6c0   : > { %v3127_v25 = vpop.permute.xlu1 %3126 }
 0x6c1   : > { %3183 = vadd.xlane.f32.xlu0 %v3182_v24  ;;  %v3185_v1 = vsel %vm776_vm0, %v3127_v25, 0.0 }
 0x6c2   : > { %3174 = vadd.xlane.f32.xlu1 %v3173_v40 }
 0x6c5   : > { %2622 = vadd.xlane.f32.xlu0 %v2621_v2 }
 0x6c6   : > { %2625 = vadd.xlane.f32.xlu1 %v2624_v57 }
 0x6ca   : > { %3186 = vadd.xlane.f32.xlu1 %v3185_v1 }
 0x6db   : > { %7606 = vrot.lane.b32.xlu0 %v12055_v41, %s8523_s14 }
 0x6e1   : > { %v10262_v45 = vpop.xlane.xlu0 %2544 }
 0x6e5   : > { %v10264_v52 = vpop.xlane.xlu0 %3306 }
 0x6e9   : > { %v3129_v32 = vpop.permute.xlu0 %3128 }
 0x6ea   : > { %v3188_v42 = vsel %vm776_vm0, %v3129_v32, 0.0 }
 0x6eb   : > { %3189 = vadd.xlane.f32.xlu1 %v3188_v42 }
 0x6ed   : > { %v3133_v26 = vpop.permute.xlu0 %3132 }
 0x6ee   : > { %v3194_v63 = vsel %vm776_vm0, %v3133_v26, 0.0 }
 0x6f1   : > { %v10267_v62 = vpop.xlane.xlu1 %3303 }
 0x6f5   : > { %v3131_v47 = vpop.permute.xlu1 %3130 }
 0x6f6   : > { %v3191_v15 = vsel %vm776_vm0, %v3131_v47, 0.0 }
 0x6f7   : > { %3192 = vadd.xlane.f32.xlu1 %v3191_v15 }
 0x6f9   : > { %v3135_v12 = vpop.permute.xlu1 %3134 }
 0x6fa   : > { %3195 = vadd.xlane.f32.xlu0 %v3194_v63  ;;  %v3197_v10 = vsel %vm776_vm0, %v3135_v12, 0.0 }
 0x708   : > { %7611 = vrot.lane.b32.xlu1 %v12056_v5, %s8523_s14 }
 0x710   : > { %7616 = vrot.lane.b32.xlu0 %v12057_v31, %s8523_s14 }
 0x71e   : > { %v10275_v8 = vpop.xlane.xlu0 %3312 }
 0x722   : > { %v10277_v18 = vpop.xlane.xlu0 %3321 }
 0x726   : > { %v10279_v27 = vpop.xlane.xlu0 %3324 }
 0x72a   : > { %v10281_v6 = vpop.xlane.xlu0 %3315  ;;  %v10294_v60 = vpop.xlane.xlu1 %3309 }
 0x72c   : > { %v6616_v17 = vpop.f32.mrb[40].mxu1  ;;  %3198 = vadd.xlane.f32.xlu1 %v3197_v10 }
 0x72d   : > { %1779 = vst.msk [vmem:[#allocation2 + $0x8] sm:$0xff] %vm776_vm0, %v6616_v17  ;;  %v1610_v54 = vpop.f32.mrb[41].mxu1 }
 0x72e   : > { %1778 = vst.msk [vmem:[#allocation2] sm:$0xff] %vm776_vm0, %v1610_v54  ;;  %v10286_v59 = vpop.xlane.xlu0 %3327  ;;  %v10304_v20 = vpop.xlane.xlu1 %3318 }
 0x732   : > { %v10288_v11 = vpop.xlane.xlu0 %3153 }
 0x733   : > { %v10309_v38 = vpop.xlane.xlu1 %3330 }
 0x734   : > { %v6619_v51 = vpop.f32.mrb[42].mxu1 }
 0x735   : > { %1781 = vst.msk [vmem:[#allocation2 + $0x18] sm:$0xff] %vm776_vm0, %v6619_v51  ;;  %v1620_v61 = vpop.f32.mrb[43].mxu1 }
 0x736   : > { %v10291_v58 = vpop.xlane.xlu0 %3333  ;;  %1780 = vst.msk [vmem:[#allocation2 + $0x10] sm:$0xff] %vm776_vm0, %v1620_v61 }
 0x737   : > { %v10318_v9 = vpop.xlane.xlu1 %3156 }
 0x739   : > { %v6622_v22 = vpop.f32.mrb[44].mxu1 }
 0x73a   : > { %1783 = vst.msk [vmem:[#allocation2 + $0x28] sm:$0xff] %vm776_vm0, %v6622_v22  ;;  %v1630_v29 = vpop.f32.mrb[45].mxu1  ;;  %v10297_v34 = vpop.xlane.xlu0 %3339  ;;  %v12059_v22 = vld [vmem:[#allocation101_spill] sm:$0xff] }
 0x73b   : > { %1782 = vst.msk [vmem:[#allocation2 + $0x20] sm:$0xff] %vm776_vm0, %v1630_v29  ;;  %v10325_v25 = vpop.xlane.xlu1 %3336  ;;  %v2575_v29 = vsub.f32 %v12059_v22, %v10223_v16 }
 0x73d   : > { %7621 = vrot.lane.b32.xlu1 %v12058_v36, %s8523_s14 }
 0x73e   : > { %v10302_v23 = vpop.xlane.xlu0 %3177 }
 0x73f   : > { %v10328_v26 = vpop.xlane.xlu1 %3342 }
 0x742   : > { %v10306_v39 = vpop.xlane.xlu0 %3159 }
 0x743   : > { %v10330_v12 = vpop.xlane.xlu1 %3180 }
 0x744   : > { %v6625_v33 = vpop.f32.mrb[46].mxu1 }
 0x745   : > { %1785 = vst.msk [vmem:[#allocation2 + $0x38] sm:$0xff] %vm776_vm0, %v6625_v33  ;;  %v1640_v55 = vpop.f32.mrb[47].mxu1 }
 0x746   : > { %1784 = vst.msk [vmem:[#allocation2 + $0x30] sm:$0xff] %vm776_vm0, %v1640_v55  ;;  %v10312_v4 = vpop.xlane.xlu0 %3165 }
 0x747   : > { %v10334_v17 = vpop.xlane.xlu1 %3162 }
 0x748   : > { %v6644_v49 = vpop.f32.mrb[48].mxu1 }
 0x749   : > { %1787 = vst.msk [vmem:[#allocation2 + $0x48] sm:$0xff] %vm776_vm0, %v6644_v49  ;;  %v1739_v46 = vpop.f32.mrb[49].mxu1  ;;  %v12060_v49 = vld [vmem:[#allocation100_spill] sm:$0xff] }
 0x74a   : > { %1786 = vst.msk [vmem:[#allocation2 + $0x40] sm:$0xff] %vm776_vm0, %v1739_v46  ;;  %v10316_v35 = vpop.xlane.xlu0 %3171  ;;  %v2593_v46 = vmul.f32 1.442695, %v2575_v29 }
 0x74b   : > { %v10336_v54 = vpop.xlane.xlu1 %3168 }
 0x74c   : > { %v6647_v21 = vpop.f32.mrb[50].mxu1 }
 0x74d   : > { %1789 = vst.msk [vmem:[#allocation2 + $0x58] sm:$0xff] %vm776_vm0, %v6647_v21  ;;  %v1749_v24 = vpop.f32.mrb[51].mxu1  ;;  %v12061_v21 = vld [vmem:[#allocation105_spill] sm:$0xff] }
 0x74e   : > { %1788 = vst.msk [vmem:[#allocation2 + $0x50] sm:$0xff] %vm776_vm0, %v1749_v24  ;;  %v10322_v40 = vpop.xlane.xlu0 %3183  ;;  %v2577_v24 = vsub.f32 %v12061_v21, %v10237_v53  ;;  %v12066_v21 = vld [vmem:[#allocation99_spill] sm:$0xff] }
 0x74f   : > { %v10338_v51 = vpop.xlane.xlu1 %3174 }
 0x750   : > { %v6650_v2 = vpop.f32.mrb[52].mxu1 }
 0x751   : > { %1791 = vst.msk [vmem:[#allocation2 + $0x68] sm:$0xff] %vm776_vm0, %v6650_v2  ;;  %v1759_v57 = vpop.f32.mrb[53].mxu1 }
 0x752   : > { %1790 = vst.msk [vmem:[#allocation2 + $0x60] sm:$0xff] %vm776_vm0, %v1759_v57  ;;  %v2623_v1 = vpop.xlane.xlu0 %2622 }
 0x753   : > { %8001 = vrcp.f32 %v2623_v1  ;;  %v10340_v61 = vpop.xlane.xlu1 %2625  ;;  %v12062_v1 = vld [vmem:[#allocation96_spill] sm:$0xff] }
 0x754   : > { %8003 = vpow2.f32 %v2593_v46 }
 0x756   : > { %v7607_v32 = vpop.permute.xlu0 %7606 }
 0x757   : > { %v7609_v42 = vunpack.i.h.bf16 %v7607_v32  ;;  %v7608_v47 = vunpack.i.l.bf16 %v7607_v32  ;;  %v10350_v2 = vpop.xlane.xlu1 %3186 }
 0x759   : > { %v7238_v15 = vpack.c.bf16 %v7609_v42, %v7608_v47  ;;  %v12063_v47 = vld [vmem:[#allocation97_spill] sm:$0xff] }
 0x75b   : > { %7239 = vmatprep.subr.bf16.mxu0 %v7238_v15 }
 0x75c   : > { %7241 = vmatpush3.bf16.msra.mxu0 %v7238_v15 }
 0x75d   : > { %v8002_v63 = vpop.eup %8001 }
 0x75e   : > { %v2685_v10 = vmul.f32 %v8002_v63, %v10250_v30  ;;  %v2576_v30 = vsub.f32 %v12060_v49, %v10195_v50  ;;  %v2597_v63 = vmul.f32 1.442695, %v2577_v24  ;;  %v12064_v50 = vld [vmem:[#allocation104_spill] sm:$0xff] }
 0x760   : > { %6726 = vmatprep.mubr.msk.f32.mxu0 %vm1343_vm2, %v2685_v10  ;;  %v2595_v42 = vmul.f32 1.442695, %v2576_v30  ;;  %v2578_v10 = vsub.f32 %v12064_v50, %v10205_v56 }
 0x762   : > { %8005 = vpow2.f32 %v2595_v42  ;;  %v2599_v46 = vmul.f32 1.442695, %v2578_v10  ;;  %v12068_v10 = vld [vmem:[#allocation102_spill] sm:$0xff] }
 0x763   : > { %8007 = vpow2.f32 %v2597_v63 }
 0x764   : > { %8009 = vpow2.f32 %v2599_v46 }
 0x778   : > { %v10360_v22 = vpop.xlane.xlu1 %3189 }
 0x779   : > { %v6653_v33 = vpop.f32.mrb[54].mxu1 }
 0x77a   : > { %1793 = vst.msk [vmem:[#allocation2 + $0x78] sm:$0xff] %vm776_vm0, %v6653_v33  ;;  %v1769_v55 = vpop.f32.mrb[55].mxu1 }
 0x77b   : > { %1792 = vst.msk [vmem:[#allocation2 + $0x70] sm:$0xff] %vm776_vm0, %v1769_v55  ;;  %v12065_v55 = vld [vmem:[#allocation98_spill] sm:$0xff] }
 0x77d   : > { %v6700_v57 = vpop.f32.mrb[56].mxu1 }
 0x77e   : > { %v10353_v32 = vadd.f32 %v6700_v57, %v12062_v1  ;;  %v2486_v16 = vpop.f32.mrb[57].mxu1 }
 0x77f   : > { %v10356_v15 = vadd.f32 %v2486_v16, %v12063_v47  ;;  %v12067_v47 = vld [vmem:[#allocation103_spill] sm:$0xff] }
 0x780   : > { %v2552_v53 = vsel %vm1343_vm2, %v10353_v32, -inf }
 0x781   : > { %v6703_v29 = vpop.f32.mrb[58].mxu1  ;;  %2553 = vmax.xlane.f32.xlu1 %v2552_v53  ;;  %v2549_v33 = vsel %vm1343_vm2, %v10356_v15, -inf }
 0x782   : > { %v10367_v49 = vadd.f32 %v6703_v29, %v12065_v55  ;;  %v2496_v30 = vpop.f32.mrb[59].mxu1  ;;  %2550 = vmax.xlane.f32.xlu0 %v2549_v33 }
 0x783   : > { %v10370_v56 = vadd.f32 %v2496_v30, %v12066_v21 }
 0x784   : > { %v10372_v24 = vpop.xlane.xlu1 %3192  ;;  %v2558_v57 = vsel %vm1343_vm2, %v10367_v49, -inf }
 0x785   : > { %v6706_v1 = vpop.f32.mrb[60].mxu1  ;;  %v2555_v63 = vsel %vm1343_vm2, %v10370_v56, -inf }
 0x786   : > { %v2506_v16 = vpop.f32.mrb[61].mxu1  ;;  %2559 = vmax.xlane.f32.xlu0 %v2558_v57  ;;  %v10384_v29 = vadd.f32 %v6706_v1, %v12068_v10  ;;  %v10388_v57 = vpop.eup %8003 }
 0x787   : > { %v10377_v50 = vadd.f32 %v2506_v16, %v12067_v47  ;;  %v10379_v53 = vpop.xlane.xlu0 %3195  ;;  %v10390_v5 = vpop.eup %8005 }
 0x788   : > { %v7612_v42 = vpop.permute.xlu1 %7611  ;;  %v2564_v1 = vsel %vm1343_vm2, %v10384_v29, -inf  ;;  %v10396_v10 = vpop.eup %8007 }
 0x789   : > { %v7614_v33 = vunpack.i.h.bf16 %v7612_v42  ;;  %v7613_v55 = vunpack.i.l.bf16 %v7612_v42  ;;  %v6709_v30 = vpop.f32.mrb[62].mxu1  ;;  %v2561_v21 = vsel %vm1343_vm2, %v10377_v50, -inf  ;;  %v2627_v42 = vsel %vm1343_vm2, %v10388_v57, 0.0 }
 0x78a   : > { %v2516_v16 = vpop.f32.mrb[63].mxu1  ;;  %2556 = vmax.xlane.f32.xlu0 %v2555_v63  ;;  %2562 = vmax.xlane.f32.xlu1 %v2561_v21  ;;  %v2630_v63 = vsel %vm1343_vm2, %v10390_v5, 0.0  ;;  %v3345_v21 = vmax.f32 %v10229_v44, 1e-24 }
 0x78b   : > { %v7617_v47 = vpop.permute.xlu0 %7616  ;;  %v7242_v46 = vpack.c.bf16 %v7614_v33, %v7613_v55  ;;  %v2633_v33 = vsel %vm1343_vm2, %v10396_v10, 0.0  ;;  %v10402_v55 = vpop.eup %8009 }
 0x78c   : > { %v7619_v36 = vunpack.i.h.bf16 %v7617_v47  ;;  %v7618_v31 = vunpack.i.l.bf16 %v7617_v47  ;;  %v2636_v47 = vsel %vm1343_vm2, %v10402_v55, 0.0  ;;  %8011 = vrsqrt.f32 %v3345_v21 }
 0x78d   : > { %7243 = vmatprep.subr.bf16.mxu0 %v7242_v46 }
 0x78e   : > { %2565 = vmax.xlane.f32.xlu0 %v2564_v1  ;;  %2628 = vadd.xlane.f32.xlu1 %v2627_v42  ;;  %v7246_v41 = vpack.c.bf16 %v7619_v36, %v7618_v31  ;;  %v3344_v31 = vmax.f32 %v10217_v37, 1e-24  ;;  %v12069_v1 = vld [vmem:[#allocation30_spill] sm:$0xff] }
 0x78f   : > { %7245 = vmatpush3.bf16.msra.mxu0 %v7242_v46 }
 0x790   : > { %7247 = vmatprep.subr.bf16.mxu0 %v7246_v41  ;;  %8013 = vrsqrt.f32 %v3344_v31 }
 0x791   : > { %8015 = vrcp.f32 %v10340_v61 }
 0x792   : > { %2631 = vadd.xlane.f32.xlu0 %v2630_v63  ;;  %2634 = vadd.xlane.f32.xlu1 %v2633_v33  ;;  %v12071_v63 = vld [vmem:[#allocation89_spill] sm:$0xff] }
 0x793   : > { %7249 = vmatpush3.bf16.msra.mxu0 %v7246_v41  ;;  %v12072_v41 = vld [vmem:[#allocation21_spill] sm:$0xff] }
 0x796   : > { %2637 = vadd.xlane.f32.xlu1 %v2636_v47  ;;  %v8012_v36 = vpop.eup %8011  ;;  %v12073_v47 = vld [vmem:[#allocation106_spill] sm:$0xff] }
 0x797   : > { %v3377_v42 = vmul.f32 %v8012_v36, %v12069_v1  ;;  %v2580_v37 = vsub.f32 %v12073_v47, %v10239_v19  ;;  %v2579_v36 = vsub.f32 %v10093_v13, %v10262_v45  ;;  %v12074_v19 = vld [vmem:[#allocation45_spill] sm:$0xff]  ;;  %v3353_v13 = vmax.f32 %v10279_v27, 1e-24 }
 0x798   : > { %v10424_v61 = vadd.f32 %v6709_v30, %v12074_v19  ;;  %v10431_v45 = vadd.f32 %v2516_v16, %v10090_v43  ;;  %v3346_v27 = vmax.f32 %v10267_v62, 1e-24  ;;  %v3348_v47 = vmax.f32 %v10294_v60, 1e-24 }
 0x799   : > { %v2603_v21 = vmul.f32 1.442695, %v2580_v37  ;;  %v12075_v37 = vld [vmem:[#allocation32_spill] sm:$0xff] }
 0x79a   : > { %v8014_v46 = vpop.eup %8013  ;;  %v2567_v30 = vsel %vm1343_vm2, %v10431_v45, -inf }
 0x79b   : > { %v3376_v44 = vmul.f32 %v8014_v46, %v12072_v41  ;;  %8017 = vpow2.f32 %v2603_v21  ;;  %v8016_v46 = vpop.eup %8015 }
 0x79d   : > { %v7635_v33 = vpack.i.bf16 %v3377_v42, %v3376_v44  ;;  %v2601_v42 = vmul.f32 1.442695, %v2579_v36  ;;  %v2686_v44 = vmul.f32 %v8016_v46, %v10253_v0  ;;  %v3352_v0 = vmax.f32 %v10277_v18, 1e-24  ;;  %v12076_v46 = vld [vmem:[#allocation92_spill] sm:$0xff] }
 0x79e   : > { %v3349_v36 = vmax.f32 %v10275_v8, 1e-24 }
 0x79f   : > { %8019 = vpow2.f32 %v2601_v42  ;;  %v12077_v42 = vld [vmem:[#allocation29_spill] sm:$0xff] }
 0x7a0   : > { %8021 = vrsqrt.f32 %v3353_v13  ;;  %v12078_v13 = vld [vmem:[#allocation35_spill] sm:$0xff] }
 0x7a1   : > { %8023 = vrsqrt.f32 %v3352_v0  ;;  %v12080_v0 = vld [vmem:[#allocation48_spill] sm:$0xff] }
 0x7a2   : > { %8025 = vrsqrt.f32 %v3346_v27  ;;  %v12081_v27 = vld [vmem:[#allocation61_spill] sm:$0xff] }
 0x7a7   : > { %7631 = vrot.lane.b32.xlu1 %v12070_v3, %s8523_s14 }
 0x7a8   : > { %7626 = vrot.lane.b32.xlu0 %v12071_v63, %s8523_s14 }
 0x7ac   : > { %7636 = vrot.lane.b32.xlu0 %v7635_v33, %s8524_s12  ;;  %v10427_v33 = vpop.eup %8017 }
 0x7b9   : > { %v10418_v31 = vpop.xlane.xlu1 %3198 }
 0x7bd   : > { %v7622_v3 = vpop.permute.xlu1 %7621 }
 0x7be   : > { %v7624_v1 = vunpack.i.h.bf16 %v7622_v3  ;;  %v7623_v63 = vunpack.i.l.bf16 %v7622_v3  ;;  %v2570_v3 = vsel %vm1343_vm2, %v10424_v61, -inf }
 0x7c0   : > { %v7250_v7 = vpack.c.bf16 %v7624_v1, %v7623_v63  ;;  %v10440_v1 = vpop.eup %8019  ;;  %v3347_v63 = vmax.f32 %v10264_v52, 1e-24 }
 0x7c1   : > { %v2639_v43 = vsel %vm1343_vm2, %v10440_v1, 0.0  ;;  %v8022_v16 = vpop.eup %8021 }
 0x7c2   : > { %7251 = vmatprep.subr.bf16.mxu0 %v7250_v7  ;;  %v8024_v18 = vpop.eup %8023  ;;  %v3385_v21 = vmul.f32 %v8022_v16, %v12075_v37  ;;  %8027 = vrsqrt.f32 %v3347_v63  ;;  %v12082_v63 = vld [vmem:[#allocation64_spill] sm:$0xff] }
 0x7c3   : > { %7253 = vmatpush3.bf16.msra.mxu0 %v7250_v7  ;;  %v2642_v7 = vsel %vm1343_vm2, %v10427_v33, 0.0  ;;  %8029 = vrsqrt.f32 %v3348_v47  ;;  %v8026_v52 = vpop.eup %8025 }
 0x7c4   : > { %8031 = vrsqrt.f32 %v3349_v36 }
 0x7c6   : > { %6727 = vmatmul.mubr.msk.f32.vlgmr.msra.gmra.mrb[32].mxu0 %vm1343_vm2, %v2686_v44  ;;  %v3384_v44 = vmul.f32 %v8024_v18, %v12077_v42 }
 0x7c8   : > { %v7660_v19 = vpack.i.bf16 %v3385_v21, %v3384_v44 }
 0x7cb   : > { %2571 = vmax.xlane.f32.xlu0 %v2570_v3  ;;  %2643 = vadd.xlane.f32.xlu1 %v2642_v7  ;;  %v3378_v3 = vmul.f32 %v8026_v52, %v12078_v13  ;;  %v12079_v7 = vld [vmem:[#allocation91_spill] sm:$0xff] }
 0x7cc   : > { %v8028_v62 = vpop.eup %8027 }
 0x7cd   : > { %v8030_v60 = vpop.eup %8029  ;;  %v3379_v8 = vmul.f32 %v8028_v62, %v12080_v0 }
 0x7ce   : > { %v3380_v16 = vmul.f32 %v8030_v60, %v12081_v27 }
 0x7cf   : > { %2568 = vmax.xlane.f32.xlu0 %v2567_v30  ;;  %v8032_v30 = vpop.eup %8031 }
 0x7d0   : > { %v3381_v18 = vmul.f32 %v8032_v30, %v12082_v63 }
 0x7d2   : > { %v7655_v47 = vpack.i.bf16 %v3381_v18, %v3380_v16 }
 0x7d3   : > { %2640 = vadd.xlane.f32.xlu0 %v2639_v43  ;;  %v7650_v43 = vpack.i.bf16 %v3379_v8, %v3378_v3 }
 0x7dc   : > { %7646 = vrot.lane.b32.xlu1 %v12076_v46, %s8523_s14 }
 0x7e0   : > { %7661 = vrot.lane.b32.xlu1 %v7660_v19, %s8524_s12 }
 0x7e9   : > { %7641 = vrot.lane.b32.xlu0 %v12079_v7, %s8523_s14 }
 0x7ed   : > { %7651 = vrot.lane.b32.xlu0 %v7650_v43, %s8524_s12 }
 0x7f1   : > { %7656 = vrot.lane.b32.xlu0 %v7655_v47, %s8524_s12 }
 0x80e   : > { %v2554_v21 = vpop.xlane.xlu1 %2553 }
 0x80f   : > { %v2582_v36 = vsub.f32 %v10353_v32, %v2554_v21  ;;  %v2551_v44 = vpop.xlane.xlu0 %2550 }
 0x810   : > { %v2581_v19 = vsub.f32 %v10356_v15, %v2551_v44 }
 0x811   : > { %v2607_v52 = vmul.f32 1.442695, %v2582_v36 }
 0x812   : > { %v2605_v37 = vmul.f32 1.442695, %v2581_v19 }
 0x813   : > { %8033 = vpow2.f32 %v2607_v52  ;;  %v2560_v62 = vpop.xlane.xlu0 %2559 }
 0x814   : > { %8035 = vpow2.f32 %v2605_v37  ;;  %v2584_v3 = vsub.f32 %v10367_v49, %v2560_v62 }
 0x816   : > { %v2611_v60 = vmul.f32 1.442695, %v2584_v3 }
 0x817   : > { %v2557_v8 = vpop.xlane.xlu0 %2556  ;;  %v2563_v43 = vpop.xlane.xlu1 %2562 }
 0x818   : > { %8037 = vpow2.f32 %v2611_v60  ;;  %v2583_v30 = vsub.f32 %v10370_v56, %v2557_v8  ;;  %v2585_v16 = vsub.f32 %v10377_v50, %v2563_v43 }
 0x81a   : > { %v2609_v18 = vmul.f32 1.442695, %v2583_v30  ;;  %v2613_v32 = vmul.f32 1.442695, %v2585_v16 }
 0x81b   : > { %v2566_v47 = vpop.xlane.xlu0 %2565  ;;  %v2629_v21 = vpop.xlane.xlu1 %2628 }
 0x81c   : > { %8039 = vpow2.f32 %v2609_v18  ;;  %v2586_v15 = vsub.f32 %v10384_v29, %v2566_v47 }
 0x81d   : > { %v10467_v36 = vpop.eup %8033  ;;  %8041 = vrcp.f32 %v2629_v21 }
 0x81e   : > { %v10469_v37 = vpop.eup %8035  ;;  %v2615_v49 = vmul.f32 1.442695, %v2586_v15  ;;  %v2648_v44 = vsel %vm1343_vm2, %v10467_v36, 0.0  ;;  %8043 = vpow2.f32 %v2613_v32 }
 0x81f   : > { %v2632_v56 = vpop.xlane.xlu0 %2631  ;;  %2649 = vadd.xlane.f32.xlu0 %v2648_v44  ;;  %v2635_v50 = vpop.xlane.xlu1 %2634  ;;  %v2645_v19 = vsel %vm1343_vm2, %v10469_v37, 0.0 }
 0x820   : > { %8045 = vpow2.f32 %v2615_v49  ;;  %2646 = vadd.xlane.f32.xlu1 %v2645_v19 }
 0x821   : > { %8047 = vrcp.f32 %v2632_v56 }
 0x822   : > { %v10475_v29 = vpop.eup %8037  ;;  %8049 = vrcp.f32 %v2635_v50 }
 0x823   : > { %v7627_v52 = vpop.permute.xlu0 %7626  ;;  %v2638_v62 = vpop.xlane.xlu1 %2637  ;;  %v2654_v3 = vsel %vm1343_vm2, %v10475_v29, 0.0 }
 0x824   : > { %v7629_v60 = vunpack.i.h.bf16 %v7627_v52  ;;  %v7628_v8 = vunpack.i.l.bf16 %v7627_v52  ;;  %8051 = vrcp.f32 %v2638_v62  ;;  %2655 = vadd.xlane.f32.xlu1 %v2654_v3 }
 0x826   : > { %v10479_v43 = vpop.eup %8039  ;;  %v7254_v30 = vpack.c.bf16 %v7629_v60, %v7628_v8 }
 0x827   : > { %v7637_v16 = vpop.permute.xlu0 %7636  ;;  %v7632_v18 = vpop.permute.xlu1 %7631  ;;  %v2651_v32 = vsel %vm1343_vm2, %v10479_v43, 0.0 }
 0x828   : > { %v8042_v47 = vpop.eup %8041  ;;  %v7639_v21 = vunpack.i.h.bf16 %v7637_v16  ;;  %v7638_v15 = vunpack.i.l.bf16 %v7637_v16  ;;  %v7634_v49 = vunpack.i.h.bf16 %v7632_v18  ;;  %v7633_v44 = vunpack.i.l.bf16 %v7632_v18  ;;  %7255 = vmatprep.subr.bf16.mxu1 %v7254_v30  ;;  %2652 = vadd.xlane.f32.xlu0 %v2651_v32 }
 0x829   : > { %v10483_v56 = vpop.eup %8043  ;;  %v2687_v50 = vmul.f32 %v8042_v47, %v10388_v57  ;;  %7257 = vmatpush3.bf16.msra.mxu1 %v7254_v30 }
 0x82a   : > { %v10486_v19 = vpop.eup %8045  ;;  %v7270_v52 = vpack.c.bf16 %v7639_v21, %v7638_v15  ;;  %v7258_v62 = vpack.c.bf16 %v7634_v49, %v7633_v44  ;;  %v2657_v18 = vsel %vm1343_vm2, %v10483_v56, 0.0 }
 0x82b   : > { %v8048_v3 = vpop.eup %8047  ;;  %6729 = vmatprep.mubr.msk.f32.mxu0 %vm1343_vm2, %v2687_v50  ;;  %v2660_v60 = vsel %vm1343_vm2, %v10486_v19, 0.0 }
 0x82c   : > { %v8050_v8 = vpop.eup %8049  ;;  %2661 = vadd.xlane.f32.xlu0 %v2660_v60  ;;  %7259 = vmatprep.subr.bf16.mxu1 %v7258_v62  ;;  %v2688_v16 = vmul.f32 %v8048_v3, %v10390_v5 }
 0x82d   : > { %7272 = vmatprep.subr.msk.bf16.mxu0 %vm9151_vm1, %v7270_v52  ;;  %7261 = vmatpush3.bf16.msra.mxu1 %v7258_v62  ;;  %v2689_v57 = vmul.f32 %v8050_v8, %v10396_v10  ;;  %v3354_v62 = vmax.f32 %v10286_v59, 1e-24 }
 0x82e   : > { %v8052_v30 = vpop.eup %8051  ;;  %6730 = vmatmul.mubr.msk.f32.gmra.mrb[34].mxu0 %vm1343_vm2, %v2688_v16 }
 0x82f   : > { %7275 = vmatpush3.bf16.xpose.msk.msra.mxu0 %vm9151_vm1, %v7270_v52  ;;  %6732 = vmatprep.mubr.msk.f32.mxu0 %vm1343_vm2, %v2689_v57  ;;  %v2690_v32 = vmul.f32 %v8052_v30, %v10402_v55  ;;  %v3350_v55 = vmax.f32 %v10281_v6, 1e-24  ;;  %v3355_v57 = vmax.f32 %v10309_v38, 1e-24 }
 0x830   : > { %2658 = vadd.xlane.f32.xlu0 %v2657_v18 }
 0x832   : > { %6733 = vmatmul.mubr.msk.f32.gmra.mrb[36].mxu0 %vm1343_vm2, %v2690_v32 }
 0x858   : > { %v2572_v5 = vpop.xlane.xlu0 %2571  ;;  %v2644_v10 = vpop.xlane.xlu1 %2643 }
 0x859   : > { %v2588_v47 = vsub.f32 %v10424_v61, %v2572_v5  ;;  %v3200_v5 = vmax.f32 %v10288_v11, 1e-24  ;;  %v3357_v11 = vmax.f32 %v10325_v25, 1e-24 }
 0x85b   : > { %v2619_v21 = vmul.f32 1.442695, %v2588_v47 }
 0x85c   : > { %v2569_v15 = vpop.xlane.xlu0 %2568  ;;  %v7647_v50 = vpop.permute.xlu1 %7646 }
 0x85d   : > { %8053 = vpow2.f32 %v2619_v21  ;;  %v2587_v49 = vsub.f32 %v10431_v45, %v2569_v15  ;;  %v7649_v3 = vunpack.i.h.bf16 %v7647_v50  ;;  %v7648_v60 = vunpack.i.l.bf16 %v7647_v50 }
 0x85e   : > { %8055 = vrcp.f32 %v2644_v10  ;;  %v3351_v45 = vmax.f32 %v10304_v20, 1e-24 }
 0x85f   : > { %v2617_v44 = vmul.f32 1.442695, %v2587_v49  ;;  %v7266_v47 = vpack.c.bf16 %v7649_v3, %v7648_v60 }
 0x860   : > { %v2641_v52 = vpop.xlane.xlu0 %2640  ;;  %v7662_v30 = vpop.permute.xlu1 %7661 }
 0x861   : > { %8057 = vpow2.f32 %v2617_v44  ;;  %v7664_v10 = vunpack.i.h.bf16 %v7662_v30  ;;  %v7663_v21 = vunpack.i.l.bf16 %v7662_v30  ;;  %v3201_v44 = vmax.f32 %v10318_v9, 1e-24 }
 0x862   : > { %8059 = vrcp.f32 %v2641_v52  ;;  %v3358_v30 = vmax.f32 %v10297_v34, 1e-24 }
 0x863   : > { %8061 = vrsqrt.f32 %v3350_v55  ;;  %v3356_v55 = vmax.f32 %v10291_v58, 1e-24  ;;  %v10521_v60 = vpack.c.bf16 %v7664_v10, %v7663_v21  ;;  %v3205_v10 = vmax.f32 %v10336_v54, 1e-24  ;;  %v12084_v21 = vld [vmem:[#allocation37_spill] sm:$0xff] }
 0x864   : > { %v7642_v8 = vpop.permute.xlu0 %7641  ;;  %8063 = vrsqrt.f32 %v3354_v62 }
 0x865   : > { %v7644_v61 = vunpack.i.h.bf16 %v7642_v8  ;;  %v7643_v16 = vunpack.i.l.bf16 %v7642_v8  ;;  %8065 = vrsqrt.f32 %v3355_v57 }
 0x866   : > { %8067 = vrsqrt.f32 %v3351_v45 }
 0x867   : > { %v10508_v18 = vpop.eup %8053  ;;  %v7262_v32 = vpack.c.bf16 %v7644_v61, %v7643_v16  ;;  %8069 = vrsqrt.f32 %v3200_v5  ;;  %v3208_v61 = vmax.f32 %v10302_v23, 1e-24  ;;  %v3359_v16 = vmax.f32 %v10328_v26, 1e-24 }
 0x868   : > { %v7652_v6 = vpop.permute.xlu0 %7651  ;;  %v2666_v59 = vsel %vm1343_vm2, %v10508_v18, 0.0  ;;  %v8056_v38 = vpop.eup %8055  ;;  %8071 = vrsqrt.f32 %v3201_v44  ;;  %v3202_v26 = vmax.f32 %v10306_v39, 1e-24 }
 0x869   : > { %v7654_v15 = vunpack.i.h.bf16 %v7652_v6  ;;  %v7653_v49 = vunpack.i.l.bf16 %v7652_v6  ;;  %2667 = vadd.xlane.f32.xlu0 %v2666_v59  ;;  %7263 = vmatprep.subr.bf16.mxu1 %v7262_v32  ;;  %v2692_v58 = vmul.f32 %v8056_v38, %v10427_v33  ;;  %8073 = vrsqrt.f32 %v3357_v11  ;;  %v12083_v59 = vld [vmem:[#allocation49_spill] sm:$0xff]  ;;  %v12086_v38 = vld [vmem:[#allocation19_spill] sm:$0xff] }
 0x86a   : > { %7265 = vmatpush3.bf16.msra.mxu1 %v7262_v32  ;;  %8075 = vrsqrt.f32 %v3356_v55  ;;  %v3203_v32 = vmax.f32 %v10334_v17, 1e-24  ;;  %v3204_v6 = vmax.f32 %v10312_v4, 1e-24  ;;  %v12087_v55 = vld [vmem:[#allocation74_spill] sm:$0xff] }
 0x86b   : > { %v10515_v20 = vpop.eup %8057  ;;  %v7276_v50 = vpack.c.bf16 %v7654_v15, %v7653_v49  ;;  %7267 = vmatprep.subr.bf16.mxu1 %v7266_v47  ;;  %8077 = vrsqrt.f32 %v3208_v61  ;;  %v12085_v49 = vld [vmem:[#allocation82_spill] sm:$0xff] }
 0x86c   : > { %v8060_v52 = vpop.eup %8059  ;;  %v7657_v62 = vpop.permute.xlu0 %7656  ;;  %v2663_v3 = vsel %vm1343_vm2, %v10515_v20, 0.0  ;;  %8079 = vrsqrt.f32 %v3359_v16  ;;  %v10558_v16 = vld [vmem:[%s11724_s3] ss:$0 sm:$0xff] }
 0x86d   : > { %v7659_v8 = vunpack.i.h.bf16 %v7657_v62  ;;  %v7658_v9 = vunpack.i.l.bf16 %v7657_v62  ;;  %2664 = vadd.xlane.f32.xlu1 %v2663_v3  ;;  %7278 = vmatprep.subr.msk.bf16.mxu0 %vm9151_vm1, %v7276_v50  ;;  %v2691_v25 = vmul.f32 %v8060_v52, %v10440_v1  ;;  %v3209_v1 = vmax.f32 %v10330_v12, 1e-24  ;;  %v8062_v23 = vpop.eup %8061 }
 0x86e   : > { %7269 = vmatpush3.bf16.msra.mxu1 %v7266_v47  ;;  %7281 = vmatpush3.bf16.xpose.msk.msra.mxu0 %vm9151_vm1, %v7276_v50  ;;  %v8064_v33 = vpop.eup %8063  ;;  %v3206_v50 = vmax.f32 %v10316_v35, 1e-24  ;;  %v3382_v4 = vmul.f32 %v8062_v23, %v12087_v55  ;;  %v3207_v3 = vmax.f32 %v10338_v51, 1e-24  ;;  %v3210_v51 = vmax.f32 %v10322_v40, 1e-24 }
 0x86f   : > { %v7282_v57 = vpack.c.bf16 %v7659_v8, %v7658_v9  ;;  %6735 = vmatprep.mubr.msk.f32.mxu0 %vm1343_vm2, %v2691_v25  ;;  %7296 = vmatprep.subr.msk.bf16.mxu1 %vm9151_vm1, %v10521_v60  ;;  %v8066_v45 = vpop.eup %8065  ;;  %8081 = vrsqrt.f32 %v3209_v1  ;;  %v3386_v15 = vmul.f32 %v8064_v33, %v12084_v21  ;;  %v12088_v8 = vld [vmem:[#allocation66_spill] sm:$0xff]  ;;  %v12089_v9 = vld [vmem:[#allocation24_spill] sm:$0xff]  ;;  %v12092_v40 = vld [vmem:[#allocation83_spill] sm:$0xff] }
 0x870   : > { %6736 = vmatmul.mubr.msk.f32.gmra.mrb[38].mxu0 %vm1343_vm2, %v2692_v58  ;;  %v8068_v5 = vpop.eup %8067  ;;  %8083 = vrsqrt.f32 %v3358_v30  ;;  %v3387_v47 = vmul.f32 %v8066_v45, %v12083_v59  ;;  %v12090_v1 = vld [vmem:[#allocation62_spill] sm:$0xff]  ;;  %v12091_v33 = vld [vmem:[#allocation20_spill] sm:$0xff]  ;;  %v3211_v45 = vmax.f32 %v10350_v2, 1e-24  ;;  %v3212_v2 = vmax.f32 %v10360_v22, 1e-24 }
 0x871   : > { %7284 = vmatprep.subr.msk.bf16.mxu0 %vm9151_vm1, %v7282_v57  ;;  %v8070_v12 = vpop.eup %8069  ;;  %8085 = vrsqrt.f32 %v3202_v26  ;;  %v3383_v17 = vmul.f32 %v8068_v5, %v12085_v49 }
 0x872   : > { %v8072_v34 = vpop.eup %8071  ;;  %8087 = vrsqrt.f32 %v3203_v32  ;;  %v3232_v44 = vmul.f32 %v8070_v12, %v12086_v38  ;;  %v7670_v52 = vpack.i.bf16 %v3387_v47, %v3386_v15 }
 0x873   : > { %v8074_v39 = vpop.eup %8073  ;;  %8089 = vrsqrt.f32 %v3204_v6  ;;  %v3233_v25 = vmul.f32 %v8072_v34, %v12089_v9  ;;  %v7665_v58 = vpack.i.bf16 %v3383_v17, %v3382_v4  ;;  %v10571_v6 = vld [vmem:[%s11725_s4] ss:$0 sm:$0xff]  ;;  %v12094_v17 = vld [vmem:[#allocation76_spill] sm:$0xff]  ;;  %v12095_v4 = vld [vmem:[#allocation39_spill] sm:$0xff] }
 0x874   : > { %v8076_v11 = vpop.eup %8075  ;;  %8091 = vrsqrt.f32 %v3205_v10  ;;  %v3389_v54 = vmul.f32 %v8074_v39, %v12088_v8  ;;  %v3392_v35 = vadd.f32 %v10558_v16, %v3232_v44  ;;  %v12093_v10 = vld [vmem:[#allocation26_spill] sm:$0xff] }
 0x875   : > { %v8078_v62 = vpop.eup %8077  ;;  %v3388_v23 = vmul.f32 %v8076_v11, %v12090_v1  ;;  %8093 = vrsqrt.f32 %v3206_v50  ;;  %v3393_v5 = vadd.f32 %v10558_v16, %v3233_v25  ;;  %v3213_v50 = vmax.f32 %v10372_v24, 1e-24 }
 0x876   : > { %7287 = vmatpush3.bf16.xpose.msk.msra.mxu0 %vm9151_vm1, %v7282_v57  ;;  %v8080_v61 = vpop.eup %8079  ;;  %v3240_v30 = vmul.f32 %v8078_v62, %v12091_v33  ;;  %8095 = vrsqrt.f32 %v3207_v3  ;;  %v3408_v47 = vmul.f32 %v10571_v6, %v3392_v35  ;;  %v3214_v35 = vmax.f32 %v10379_v53, 1e-24 }
 0x877   : > { %v7675_v32 = vpack.i.bf16 %v3389_v54, %v3388_v23  ;;  %v3391_v34 = vmul.f32 %v8080_v61, %v12092_v40  ;;  %8097 = vrsqrt.f32 %v3210_v51  ;;  %v12096_v61 = vld [vmem:[#allocation46_spill] sm:$0xff]  ;;  %v12097_v51 = vld [vmem:[#allocation52_spill] sm:$0xff] }
 0x878   : > { %v3400_v11 = vadd.f32 %v10558_v16, %v3240_v30  ;;  %8099 = vrsqrt.f32 %v3211_v45 }
 0x879   : > { %v8082_v57 = vpop.eup %8081  ;;  %8101 = vrsqrt.f32 %v3212_v2 }
 0x87a   : > { %v8084_v26 = vpop.eup %8083  ;;  %v3241_v39 = vmul.f32 %v8082_v57, %v12093_v10  ;;  %v3416_v24 = vmul.f32 %v10571_v6, %v3400_v11  ;;  %8103 = vrsqrt.f32 %v3213_v50  ;;  %v3215_v57 = vmax.f32 %v10418_v31, 1e-24  ;;  %v12100_v11 = vld [vmem:[#allocation75_spill] sm:$0xff] }
 0x87b   : > { %v8086_v12 = vpop.eup %8085  ;;  %v3390_v44 = vmul.f32 %v8084_v26, %v12094_v17  ;;  %8105 = vrsqrt.f32 %v3214_v35 }
 0x87c   : > { %v8088_v15 = vpop.eup %8087  ;;  %v3234_v62 = vmul.f32 %v8086_v12, %v12095_v4  ;;  %v3401_v25 = vadd.f32 %v10558_v16, %v3241_v39  ;;  %8107 = vrsqrt.f32 %v3215_v57 }
 0x87d   : > { %v8090_v3 = vpop.eup %8089  ;;  %v7680_v54 = vpack.i.bf16 %v3391_v34, %v3390_v44  ;;  %v12099_v34 = vld [vmem:[#allocation70_spill] sm:$0xff] }
 0x87e   : > { %7671 = vrot.lane.b32.xlu1 %v7670_v52, %s8524_s12  ;;  %v3409_v52 = vmul.f32 %v10571_v6, %v3393_v5  ;;  %v8092_v22 = vpop.eup %8091  ;;  %v3394_v23 = vadd.f32 %v10558_v16, %v3234_v62  ;;  %v3236_v30 = vmul.f32 %v8090_v3, %v12097_v51  ;;  %v3417_v45 = vmul.f32 %v10571_v6, %v3401_v25  ;;  %v12098_v5 = vld [vmem:[#allocation56_spill] sm:$0xff] }
 0x87f   : > { %7666 = vrot.lane.b32.xlu0 %v7665_v58, %s8524_s12  ;;  %v3235_v58 = vmul.f32 %v8088_v15, %v12096_v61  ;;  %v8094_v26 = vpop.eup %8093  ;;  %v3237_v12 = vmul.f32 %v8092_v22, %v12098_v5 }
 0x880   : > { %v3410_v53 = vmul.f32 %v10571_v6, %v3394_v23  ;;  %v3396_v31 = vadd.f32 %v10558_v16, %v3236_v30  ;;  %v3238_v39 = vmul.f32 %v8094_v26, %v12099_v34 }
 0x881   : > { %v3397_v44 = vadd.f32 %v10558_v16, %v3237_v12 }
 0x882   : > { %7676 = vrot.lane.b32.xlu1 %v7675_v32, %s8524_s12  ;;  %v3395_v32 = vadd.f32 %v10558_v16, %v3235_v58  ;;  %v3412_v62 = vmul.f32 %v10571_v6, %v3396_v31  ;;  %v3398_v3 = vadd.f32 %v10558_v16, %v3238_v39  ;;  %v12104_v31 = vld [vmem:[#allocation58_spill] sm:$0xff] }
 0x883   : > { %3441 = vrot.lane.b32.xlu0 %v3408_v47, %s8524_s12  ;;  %v8096_v47 = vpop.eup %8095  ;;  %v3413_v22 = vmul.f32 %v10571_v6, %v3397_v44 }
 0x884   : > { %v8098_v15 = vpop.eup %8097  ;;  %v3411_v2 = vmul.f32 %v10571_v6, %v3395_v32  ;;  %v3239_v50 = vmul.f32 %v8096_v47, %v12100_v11  ;;  %v3414_v30 = vmul.f32 %v10571_v6, %v3398_v3 }
 0x886   : > { %3443 = vrot.lane.b32.xlu1 %v3409_v52, %s8524_s12  ;;  %v8100_v52 = vpop.eup %8099  ;;  %v3399_v35 = vadd.f32 %v10558_v16, %v3239_v50  ;;  %v12105_v50 = vld [vmem:[#allocation71_spill] sm:$0xff] }
 0x887   : > { %7681 = vrot.lane.b32.xlu0 %v7680_v54, %s8524_s12  ;;  %v12101_v54 = vld [vmem:[#allocation40_spill] sm:$0xff]  ;;  %v8102_v58 = vpop.eup %8101 }
 0x888   : > { %v3242_v25 = vmul.f32 %v8098_v15, %v12101_v54  ;;  %v8104_v23 = vpop.eup %8103  ;;  %v3415_v47 = vmul.f32 %v10571_v6, %v3399_v35 }
 0x889   : > { %v8106_v12 = vpop.eup %8105  ;;  %v3245_v39 = vmul.f32 %v8104_v23, %v12104_v31 }
 0x88a   : > { %3626 = vrot.lane.b32.xlu1 %v3416_v24, %s8524_s12  ;;  %v12102_v24 = vld [vmem:[#allocation42_spill] sm:$0xff]  ;;  %v3402_v26 = vadd.f32 %v10558_v16, %v3242_v25  ;;  %v8108_v15 = vpop.eup %8107 }
 0x88b   : > { %3628 = vrot.lane.b32.xlu0 %v3417_v45, %s8524_s12  ;;  %v3243_v57 = vmul.f32 %v8100_v52, %v12102_v24  ;;  %v12103_v45 = vld [vmem:[#allocation53_spill] sm:$0xff]  ;;  %v3246_v52 = vmul.f32 %v8106_v12, %v12105_v50  ;;  %v3405_v25 = vadd.f32 %v10558_v16, %v3245_v39  ;;  %v12112_v39 = vld [vmem:[#allocation50_spill] sm:$0xff] }
 0x88c   : > { %v3244_v32 = vmul.f32 %v8102_v58, %v12103_v45  ;;  %v12107_v58 = vld [vmem:[#allocation80_spill] sm:$0xff] }
 0x88d   : > { %v3406_v23 = vadd.f32 %v10558_v16, %v3246_v52 }
 0x88e   : > { %3445 = vrot.lane.b32.xlu1 %v3410_v53, %s8524_s12  ;;  %v3403_v53 = vadd.f32 %v10558_v16, %v3243_v57  ;;  %v3404_v44 = vadd.f32 %v10558_v16, %v3244_v32 }
 0x88f   : > { %3447 = vrot.lane.b32.xlu0 %v3411_v2, %s8524_s12  ;;  %v3418_v2 = vmul.f32 %v10571_v6, %v3402_v26  ;;  %v3422_v32 = vmul.f32 %v10571_v6, %v3406_v23 }
 0x890   : > { %v3419_v3 = vmul.f32 %v10571_v6, %v3403_v53  ;;  %v3420_v57 = vmul.f32 %v10571_v6, %v3404_v44  ;;  %v12110_v53 = vld [vmem:[#allocation33_spill] sm:$0xff]  ;;  %v12114_v44 = vld [vmem:[#allocation67_spill] sm:$0xff] }
 0x892   : > { %3449 = vrot.lane.b32.xlu1 %v3412_v62, %s8524_s12 }
 0x893   : > { %3451 = vrot.lane.b32.xlu0 %v3413_v22, %s8524_s12  ;;  %v3247_v22 = vmul.f32 %v8108_v15, %v12107_v58 }
 0x895   : > { %v3407_v26 = vadd.f32 %v10558_v16, %v3247_v22  ;;  %v12111_v16 = vld [vmem:[#allocation36_spill] sm:$0xff] }
 0x896   : > { %3453 = vrot.lane.b32.xlu1 %v3414_v30, %s8524_s12  ;;  %v3421_v30 = vmul.f32 %v10571_v6, %v3405_v25  ;;  %v12116_v25 = vld [vmem:[#allocation34_spill] sm:$0xff] }
 0x897   : > { %3455 = vrot.lane.b32.xlu0 %v3415_v47, %s8524_s12  ;;  %v3423_v12 = vmul.f32 %v10571_v6, %v3407_v26  ;;  %v12109_v47 = vld [vmem:[#allocation23_spill] sm:$0xff] }
 0x899   : > { %v10625_v62 = vpop.f32.mrb[32].mxu0 }
 0x89a   : > { %12106 = vst [vmem:[#allocation69_spill] sm:$0xff] %v10625_v62  ;;  %3630 = vrot.lane.b32.xlu1 %v3418_v2, %s8524_s12  ;;  %v10631_v35 = vpop.f32.mrb[33].mxu0  ;;  %v12113_v2 = vld [vmem:[#allocation63_spill] sm:$0xff]  ;;  %v12141_v62 = vld [vmem:[#allocation54_spill] sm:$0xff] }
 0x89b   : > { %12108 = vst [vmem:[#allocation57_spill] sm:$0xff] %v10631_v35  ;;  %3632 = vrot.lane.b32.xlu0 %v3419_v3, %s8524_s12  ;;  %v12115_v3 = vld [vmem:[#allocation31_spill] sm:$0xff] }
 0x89e   : > { %3634 = vrot.lane.b32.xlu1 %v3420_v57, %s8524_s12  ;;  %v12117_v57 = vld [vmem:[#allocation77_spill] sm:$0xff] }
 0x89f   : > { %3636 = vrot.lane.b32.xlu0 %v3421_v30, %s8524_s12  ;;  %v12118_v30 = vld [vmem:[#allocation84_spill] sm:$0xff] }
 0x8a2   : > { %3638 = vrot.lane.b32.xlu1 %v3422_v32, %s8524_s12 }
 0x8a3   : > { %3640 = vrot.lane.b32.xlu0 %v3423_v12, %s8524_s12 }
 0x8a6   : > { %4510 = vrot.lane.b32.xlu1 %v12109_v47, %s8525_s27 }
 0x8a7   : > { %4512 = vrot.lane.b32.xlu0 %v12110_v53, %s8525_s27  ;;  %v12119_v53 = vld [vmem:[#allocation38_spill] sm:$0xff] }
 0x8aa   : > { %4514 = vrot.lane.b32.xlu1 %v12111_v16, %s8525_s27  ;;  %v12120_v16 = vld [vmem:[#allocation51_spill] sm:$0xff] }
 0x8ab   : > { %4516 = vrot.lane.b32.xlu0 %v12112_v39, %s8525_s27 }
 0x8ac   : > { %v2650_v15 = vpop.xlane.xlu0 %2649 }
 0x8ad   : > { %8109 = vrcp.f32 %v2650_v15  ;;  %v2647_v6 = vpop.xlane.xlu1 %2646  ;;  %v12122_v15 = vld [vmem:[#allocation27_spill] sm:$0xff] }
 0x8ae   : > { %8111 = vrcp.f32 %v2647_v6  ;;  %4518 = vrot.lane.b32.xlu1 %v12113_v2, %s8525_s27 }
 0x8af   : > { %4520 = vrot.lane.b32.xlu0 %v12114_v44, %s8525_s27  ;;  %v12123_v44 = vld [vmem:[#allocation65_spill] sm:$0xff] }
 0x8b1   : > { %v2656_v52 = vpop.xlane.xlu1 %2655 }
 0x8b2   : > { %4526 = vrot.lane.b32.xlu1 %v12115_v3, %s8525_s27  ;;  %8113 = vrcp.f32 %v2656_v52  ;;  %v12124_v3 = vld [vmem:[#allocation68_spill] sm:$0xff] }
 0x8b3   : > { %4528 = vrot.lane.b32.xlu0 %v12116_v25, %s8525_s27  ;;  %v12125_v25 = vld [vmem:[#allocation41_spill] sm:$0xff] }
 0x8b5   : > { %v2653_v22 = vpop.xlane.xlu0 %2652 }
 0x8b6   : > { %8115 = vrcp.f32 %v2653_v22  ;;  %4522 = vrot.lane.b32.xlu1 %v12117_v57, %s8525_s27 }
 0x8b7   : > { %v8110_v23 = vpop.eup %8109  ;;  %4524 = vrot.lane.b32.xlu0 %v12118_v30, %s8525_s27 }
 0x8b8   : > { %v8112_v26 = vpop.eup %8111  ;;  %v2694_v47 = vmul.f32 %v8110_v23, %v10467_v36 }
 0x8b9   : > { %v2662_v32 = vpop.xlane.xlu0 %2661  ;;  %v2693_v12 = vmul.f32 %v8112_v26, %v10469_v37  ;;  %v12121_v37 = vld [vmem:[#allocation22_spill] sm:$0xff] }
 0x8ba   : > { %4530 = vrot.lane.b32.xlu1 %v12119_v53, %s8525_s27  ;;  %8117 = vrcp.f32 %v2662_v32 }
 0x8bb   : > { %4532 = vrot.lane.b32.xlu0 %v12120_v16, %s8525_s27  ;;  %6754 = vmatprep.mubr.msk.f32.mxu1 %vm1343_vm2, %v2693_v12 }
 0x8bc   : > { %6755 = vmatmul.mubr.msk.f32.vlgmr.msra.gmra.mrb[64].mxu1 %vm1343_vm2, %v2694_v47  ;;  %v8114_v36 = vpop.eup %8113 }
 0x8bd   : > { %7299 = vmatpush3.bf16.xpose.msk.msra.mxu1 %vm9151_vm1, %v10521_v60  ;;  %v2659_v39 = vpop.xlane.xlu0 %2658  ;;  %v2696_v52 = vmul.f32 %v8114_v36, %v10475_v29 }
 0x8be   : > { %8119 = vrcp.f32 %v2659_v39  ;;  %4366 = vrot.lane.b32.xlu1 %v12121_v37, %s8525_s27 }
 0x8bf   : > { %4368 = vrot.lane.b32.xlu0 %v12122_v15, %s8525_s27 }
 0x8c0   : > { %v8116_v6 = vpop.eup %8115 }
 0x8c1   : > { %v2695_v2 = vmul.f32 %v8116_v6, %v10479_v43 }
 0x8c2   : > { %4534 = vrot.lane.b32.xlu1 %v12123_v44, %s8525_s27 }
 0x8c3   : > { %4536 = vrot.lane.b32.xlu0 %v12124_v3, %s8525_s27  ;;  %6757 = vmatprep.mubr.msk.f32.mxu1 %vm1343_vm2, %v2695_v2 }
 0x8c4   : > { %6758 = vmatmul.mubr.msk.f32.gmra.mrb[66].mxu1 %vm1343_vm2, %v2696_v52  ;;  %v8118_v60 = vpop.eup %8117 }
 0x8c5   : > { %v2698_v43 = vmul.f32 %v8118_v60, %v10486_v19 }
 0x8c7   : > { %4370 = vrot.lane.b32.xlu0 %v12125_v25, %s8525_s27 }
 0x8c8   : > { %v8120_v22 = vpop.eup %8119 }
 0x8c9   : > { %v2697_v57 = vmul.f32 %v8120_v22, %v10483_v56 }
 0x8cb   : > { %6760 = vmatprep.mubr.msk.f32.mxu1 %vm1343_vm2, %v2697_v57 }
 0x8cc   : > { %6761 = vmatmul.mubr.msk.f32.gmra.mrb[68].mxu1 %vm1343_vm2, %v2698_v43 }
 0x8f6   : > { %v2668_v29 = vpop.xlane.xlu0 %2667 }
 0x8f7   : > { %8121 = vrcp.f32 %v2668_v29 }
 0x8fa   : > { %v7667_v23 = vpop.permute.xlu0 %7666  ;;  %v2665_v30 = vpop.xlane.xlu1 %2664 }
 0x8fb   : > { %v7669_v26 = vunpack.i.h.bf16 %v7667_v23  ;;  %v7668_v32 = vunpack.i.l.bf16 %v7667_v23  ;;  %8123 = vrcp.f32 %v2665_v30 }
 0x8fd   : > { %v7288_v12 = vpack.c.bf16 %v7669_v26, %v7668_v32 }
 0x8fe   : > { %v3442_v47 = vpop.permute.xlu0 %3441  ;;  %v7672_v53 = vpop.permute.xlu1 %7671 }
 0x8ff   : > { %v7674_v16 = vunpack.i.h.bf16 %v7672_v53  ;;  %v7673_v39 = vunpack.i.l.bf16 %v7672_v53  ;;  %7290 = vmatprep.subr.msk.bf16.mxu0 %vm9151_vm1, %v7288_v12  ;;  %6782 = vmatprep.mubr.msk.f32.mxu0 %vm776_vm0, %v3442_v47 }
 0x900   : > { %7293 = vmatpush3.bf16.xpose.msk.msra.mxu0 %vm9151_vm1, %v7288_v12 }
 0x901   : > { %v7300_v56 = vpack.c.bf16 %v7674_v16, %v7673_v39  ;;  %v10698_v19 = vpop.f32.mrb[34].mxu0  ;;  %v8122_v6 = vpop.eup %8121 }
 0x902   : > { %12126 = vst [vmem:[#allocation60_spill] sm:$0xff] %v10698_v19  ;;  %v10700_v37 = vpop.f32.mrb[35].mxu0  ;;  %v7682_v36 = vpop.permute.xlu0 %7681  ;;  %v2700_v30 = vmul.f32 %v8122_v6, %v10508_v18 }
 0x903   : > { %12127 = vst [vmem:[#allocation93_spill] sm:$0xff] %v10700_v37  ;;  %v7677_v15 = vpop.permute.xlu1 %7676  ;;  %7302 = vmatprep.subr.msk.bf16.mxu1 %vm9151_vm1, %v7300_v56  ;;  %v7684_v43 = vunpack.i.h.bf16 %v7682_v36  ;;  %v7683_v29 = vunpack.i.l.bf16 %v7682_v36 }
 0x904   : > { %v7679_v2 = vunpack.i.h.bf16 %v7677_v15  ;;  %v7678_v44 = vunpack.i.l.bf16 %v7677_v15  ;;  %7305 = vmatpush3.bf16.xpose.msk.msra.mxu1 %vm9151_vm1, %v7300_v56 }
 0x905   : > { %v8124_v52 = vpop.eup %8123  ;;  %v10706_v3 = vpop.f32.mrb[36].mxu0  ;;  %v7312_v32 = vpack.c.bf16 %v7684_v43, %v7683_v29 }
 0x906   : > { %12128 = vst [vmem:[#allocation94_spill] sm:$0xff] %v10706_v3  ;;  %v7306_v60 = vpack.c.bf16 %v7679_v2, %v7678_v44  ;;  %v10708_v25 = vpop.f32.mrb[37].mxu0  ;;  %v3629_v22 = vpop.permute.xlu0 %3628  ;;  %v2699_v57 = vmul.f32 %v8124_v52, %v10515_v20  ;;  %v3427_v3 = vld [vmem:[#allocation8 + $0x90] sm:$0xff] }
 0x907   : > { %12129 = vst [vmem:[#allocation55_spill] sm:$0xff] %v10708_v25  ;;  %v3444_v23 = vpop.permute.xlu1 %3443  ;;  %v12147_v25 = vld [vmem:[#allocation28_spill] sm:$0xff] }
 0x908   : > { %6783 = vmatmul.mubr.msk.f32.vlgmr.msra.gmra.mrb[40].mxu0 %vm776_vm0, %v3444_v23  ;;  %7308 = vmatprep.subr.msk.bf16.mxu1 %vm9151_vm1, %v7306_v60 }
 0x909   : > { %6763 = vmatprep.mubr.msk.f32.mxu1 %vm1343_vm2, %v2699_v57 }
 0x90a   : > { %6764 = vmatmul.mubr.msk.f32.gmra.mrb[70].mxu1 %vm1343_vm2, %v2700_v30  ;;  %v3448_v26 = vpop.permute.xlu0 %3447  ;;  %v3426_v30 = vld [vmem:[#allocation8 + $0x88] sm:$0xff] }
 0x90b   : > { %v3627_v12 = vpop.permute.xlu1 %3626 }
 0x90c   : > { %6810 = vmatprep.mubr.msk.f32.mxu1 %vm776_vm0, %v3627_v12  ;;  %7311 = vmatpush3.bf16.xpose.msk.msra.mxu1 %vm9151_vm1, %v7306_v60 }
 0x90d   : > { %7314 = vmatprep.subr.msk.bf16.mxu1 %vm9151_vm1, %v7312_v32 }
 0x90e   : > { %v3452_v20 = vpop.permute.xlu0 %3451 }
 0x90f   : > { %v3446_v47 = vpop.permute.xlu1 %3445 }
 0x910   : > { %6785 = vmatprep.mubr.msk.f32.mxu0 %vm776_vm0, %v3446_v47 }
 0x911   : > { %6786 = vmatmul.mubr.msk.f32.gmra.mrb[42].mxu0 %vm776_vm0, %v3448_v26  ;;  %v3425_v26 = vld [vmem:[#allocation8 + $0x80] sm:$0xff] }
 0x912   : > { %v3456_v53 = vpop.permute.xlu0 %3455 }
 0x913   : > { %v3450_v18 = vpop.permute.xlu1 %3449 }
 0x914   : > { %6788 = vmatprep.mubr.msk.f32.mxu0 %vm776_vm0, %v3450_v18  ;;  %7317 = vmatpush3.bf16.xpose.msk.msra.mxu1 %vm9151_vm1, %v7312_v32 }
 0x915   : > { %6789 = vmatmul.mubr.msk.f32.gmra.mrb[44].mxu0 %vm776_vm0, %v3452_v20 }
 0x916   : > { %v3633_v39 = vpop.permute.xlu0 %3632 }
 0x917   : > { %v3454_v16 = vpop.permute.xlu1 %3453 }
 0x918   : > { %6791 = vmatprep.mubr.msk.f32.mxu0 %vm776_vm0, %v3454_v16 }
 0x919   : > { %6792 = vmatmul.mubr.msk.f32.gmra.mrb[46].mxu0 %vm776_vm0, %v3456_v53 }
 0x91a   : > { %v3637_v15 = vpop.permute.xlu0 %3636 }
 0x91b   : > { %v3631_v56 = vpop.permute.xlu1 %3630  ;;  %6811 = vmatmul.mubr.msk.f32.vlgmr.msra.gmra.mrb[72].mxu1 %vm776_vm0, %v3629_v22 }
 0x91c   : > { %6813 = vmatprep.mubr.msk.f32.mxu1 %vm776_vm0, %v3631_v56 }
 0x91e   : > { %v3641_v2 = vpop.permute.xlu0 %3640 }
 0x91f   : > { %v3635_v36 = vpop.permute.xlu1 %3634  ;;  %6814 = vmatmul.mubr.msk.f32.gmra.mrb[74].mxu1 %vm776_vm0, %v3633_v39 }
 0x920   : > { %6816 = vmatprep.mubr.msk.f32.mxu1 %vm776_vm0, %v3635_v36 }
 0x923   : > { %v3639_v6 = vpop.permute.xlu1 %3638  ;;  %6817 = vmatmul.mubr.msk.f32.gmra.mrb[76].mxu1 %vm776_vm0, %v3637_v15 }
 0x924   : > { %6819 = vmatprep.mubr.msk.f32.mxu1 %vm776_vm0, %v3639_v6 }
 0x927   : > { %6820 = vmatmul.mubr.msk.f32.gmra.mrb[78].mxu1 %vm776_vm0, %v3641_v2 }
 0x943   : > { %v10737_v44 = vpop.f32.mrb[38].mxu0 }
 0x944   : > { %12130 = vst [vmem:[#allocation110_spill] sm:$0xff] %v10737_v44  ;;  %v10739_v52 = vpop.f32.mrb[39].mxu0 }
 0x945   : > { %12131 = vst [vmem:[#allocation95_spill] sm:$0xff] %v10739_v52 }
 0x98f   : > { %v10741_v60 = vpop.f32.mrb[64].mxu1 }
 0x990   : > { %12132 = vst [vmem:[#allocation111_spill] sm:$0xff] %v10741_v60  ;;  %v10743_v22 = vpop.f32.mrb[65].mxu1  ;;  %v12140_v60 = vld [vmem:[#allocation47_spill] sm:$0xff] }
 0x991   : > { %12133 = vst [vmem:[#allocation107_spill] sm:$0xff] %v10743_v22 }
 0x997   : > { %v10745_v57 = vpop.f32.mrb[66].mxu1 }
 0x998   : > { %12134 = vst [vmem:[#allocation109_spill] sm:$0xff] %v10745_v57  ;;  %v10747_v43 = vpop.f32.mrb[67].mxu1 }
 0x999   : > { %12135 = vst [vmem:[#allocation108_spill] sm:$0xff] %v10747_v43 }
 0x99f   : > { %v10749_v29 = vpop.f32.mrb[68].mxu1 }
 0x9a0   : > { %12136 = vst [vmem:[#allocation101_spill] sm:$0xff] %v10749_v29  ;;  %v10751_v23 = vpop.f32.mrb[69].mxu1 }
 0x9a1   : > { %12137 = vst [vmem:[#allocation100_spill] sm:$0xff] %v10751_v23  ;;  %v3432_v23 = vld [vmem:[#allocation8 + $0xb8] sm:$0xff] }
 0x9db   : > { %v6784_v32 = vpop.f32.mrb[40].mxu0 }
 0x9dc   : > { %v10753_v12 = vadd.f32 %v6784_v32, %v3426_v30  ;;  %v3579_v20 = vpop.f32.mrb[41].mxu0 }
 0x9dd   : > { %v10755_v47 = vadd.f32 %v3579_v20, %v3425_v26  ;;  %v10757_v18 = vpop.f32.mrb[70].mxu1 }
 0x9de   : > { %12138 = vst [vmem:[#allocation105_spill] sm:$0xff] %v10757_v18  ;;  %v10759_v53 = vpop.f32.mrb[71].mxu1  ;;  %v3806_v16 = vsel %vm1343_vm2, %v10753_v12, -inf }
 0x9df   : > { %12139 = vst [vmem:[#allocation96_spill] sm:$0xff] %v10759_v53  ;;  %3807 = vmax.xlane.f32.xlu0 %v3806_v16  ;;  %v3803_v39 = vsel %vm1343_vm2, %v10755_v47, -inf  ;;  %v3428_v16 = vld [vmem:[#allocation8 + $0x98] sm:$0xff] }
 0x9e0   : > { %3804 = vmax.xlane.f32.xlu1 %v3803_v39 }
 0x9e4   : > { %v6787_v56 = vpop.f32.mrb[42].mxu0 }
 0x9e5   : > { %v3589_v36 = vpop.f32.mrb[43].mxu0 }
 0x9e8   : > { %v6790_v15 = vpop.f32.mrb[44].mxu0 }
 0x9e9   : > { %v3599_v6 = vpop.f32.mrb[45].mxu0 }
 0x9ec   : > { %v10765_v2 = vpop.f32.mrb[46].mxu0 }
 0x9ed   : > { %v3609_v32 = vpop.f32.mrb[47].mxu0  ;;  %v10839_v33 = vadd.f32 %v10765_v2, %v3432_v23 }
 0x9ee   : > { %v6812_v20 = vpop.f32.mrb[72].mxu1 }
 0x9ef   : > { %v10767_v29 = vadd.f32 %v6812_v20, %v3426_v30  ;;  %v3764_v18 = vpop.f32.mrb[73].mxu1  ;;  %v12142_v30 = vld [vmem:[#allocation59_spill] sm:$0xff] }
 0x9f0   : > { %v10769_v57 = vadd.f32 %v3764_v18, %v3425_v26  ;;  %v3430_v20 = vld [vmem:[#allocation8 + $0xa8] sm:$0xff]  ;;  %v3429_v18 = vld [vmem:[#allocation8 + $0xa0] sm:$0xff] }
 0x9f1   : > { %4372 = vrot.lane.b32.xlu1 %v12140_v60, %s8525_s27 }
 0x9f2   : > { %v6815_v44 = vpop.f32.mrb[74].mxu1 }
 0x9f3   : > { %v10773_v39 = vadd.f32 %v6815_v44, %v3428_v16  ;;  %v3774_v19 = vpop.f32.mrb[75].mxu1  ;;  %v12143_v44 = vld [vmem:[#allocation85_spill] sm:$0xff] }
 0x9f4   : > { %v10775_v37 = vadd.f32 %v3774_v19, %v3427_v3  ;;  %v12144_v19 = vld [vmem:[#allocation79_spill] sm:$0xff] }
 0x9f5   : > { %4374 = vrot.lane.b32.xlu0 %v12141_v62, %s8525_s27  ;;  %4376 = vrot.lane.b32.xlu1 %v12142_v30, %s8525_s27  ;;  %v3431_v62 = vld [vmem:[#allocation8 + $0xb0] sm:$0xff] }
 0x9f6   : > { %v6818_v26 = vpop.f32.mrb[76].mxu1  ;;  %v10833_v50 = vadd.f32 %v3609_v32, %v3431_v62 }
 0x9f7   : > { %v10781_v35 = vadd.f32 %v6818_v26, %v3430_v20  ;;  %v3784_v60 = vpop.f32.mrb[77].mxu1  ;;  %v12145_v26 = vld [vmem:[#allocation78_spill] sm:$0xff] }
 0x9f8   : > { %v10783_v53 = vadd.f32 %v3784_v60, %v3429_v18  ;;  %v12146_v60 = vld [vmem:[#allocation72_spill] sm:$0xff] }
 0x9f9   : > { %4540 = vrot.lane.b32.xlu0 %v12143_v44, %s8525_s27  ;;  %4538 = vrot.lane.b32.xlu1 %v12144_v19, %s8525_s27  ;;  %v12148_v44 = vld [vmem:[#allocation25_spill] sm:$0xff]  ;;  %v12149_v19 = vld [vmem:[#allocation43_spill] sm:$0xff] }
 0x9fa   : > { %v6821_v43 = vpop.f32.mrb[78].mxu1 }
 0x9fb   : > { %v10789_v22 = vadd.f32 %v6821_v43, %v3432_v23  ;;  %v3794_v30 = vpop.f32.mrb[79].mxu1  ;;  %v12150_v43 = vld [vmem:[#allocation44_spill] sm:$0xff]  ;;  %v12152_v23 = vld [vmem:[#allocation81_spill] sm:$0xff] }
 0x9fc   : > { %v10791_v52 = vadd.f32 %v3794_v30, %v3431_v62  ;;  %v10807_v30 = vadd.f32 %v3589_v36, %v3427_v3  ;;  %v4511_v3 = vpop.permute.xlu1 %4510 }
 0x9fd   : > { %4380 = vrot.lane.b32.xlu0 %v12145_v26, %s8525_s27  ;;  %4378 = vrot.lane.b32.xlu1 %v12146_v60, %s8525_s27  ;;  %v10809_v26 = vadd.f32 %v6787_v56, %v3428_v16  ;;  %v4513_v56 = vpop.permute.xlu0 %4512 }
 0x9fe   : > { %v3809_v60 = vsel %vm1343_vm2, %v10807_v30, -inf }
 0xa00   : > { %v4515_v36 = vpop.permute.xlu1 %4514 }
 0xa01   : > { %4384 = vrot.lane.b32.xlu0 %v12147_v25, %s8525_s27  ;;  %4382 = vrot.lane.b32.xlu1 %v12148_v44, %s8525_s27  ;;  %v3812_v25 = vsel %vm1343_vm2, %v10809_v26, -inf  ;;  %v10815_v44 = vadd.f32 %v3599_v6, %v3429_v18  ;;  %v4517_v16 = vpop.permute.xlu0 %4516  ;;  %v10827_v18 = vadd.f32 %v6790_v15, %v3430_v20  ;;  %v3821_v15 = vsel %vm1343_vm2, %v10833_v50, -inf }
 0xa02   : > { %v4567_v32 = vsel %vm776_vm0, %v4517_v16, 0.0 }
 0xa05   : > { %4386 = vrot.lane.b32.xlu0 %v12149_v19, %s8525_s27  ;;  %4388 = vrot.lane.b32.xlu1 %v12150_v43, %s8525_s27  ;;  %v3815_v19 = vsel %vm1343_vm2, %v10815_v44, -inf  ;;  %v10823_v43 = vpop.permute.xlu1 %4518 }
 0xa09   : > { %4392 = vrot.lane.b32.xlu1 %v12044_v48, %s8525_s27  ;;  %v12151_v48 = vld [vmem:[#allocation73_spill] sm:$0xff]  ;;  %v10825_v6 = vpop.permute.xlu1 %4526 }
 0xa24   : > { %3810 = vmax.xlane.f32.xlu0 %v3809_v60  ;;  %v4521_v60 = vpop.permute.xlu0 %4520 }
 0xa28   : > { %3813 = vmax.xlane.f32.xlu0 %v3812_v25  ;;  %v4529_v25 = vpop.permute.xlu0 %4528 }
 0xa2c   : > { %v4525_v45 = vpop.permute.xlu0 %4524 }
 0xa2d   : > { %3816 = vmax.xlane.f32.xlu1 %v3815_v19  ;;  %v3818_v19 = vsel %vm1343_vm2, %v10827_v18, -inf  ;;  %v4579_v51 = vsel %vm776_vm0, %v4525_v45, 0.0 }
 0xa30   : > { %v4533_v20 = vpop.permute.xlu0 %4532 }
 0xa31   : > { %v4591_v16 = vsel %vm776_vm0, %v4533_v20, 0.0 }
 0xa34   : > { %v4369_v62 = vpop.permute.xlu0 %4368 }
 0xa38   : > { %v4537_v2 = vpop.permute.xlu0 %4536 }
 0xa39   : > { %v4597_v61 = vsel %vm776_vm0, %v4537_v2, 0.0  ;;  %v4564_v2 = vsel %vm776_vm0, %v4515_v36, 0.0 }
 0xa3e   : > { %4390 = vrot.lane.b32.xlu0 %v12042_v28, %s8525_s27  ;;  %4394 = vrot.lane.b32.xlu1 %v12151_v48, %s8525_s27  ;;  %v10831_v28 = vpop.permute.xlu1 %4522  ;;  %v4558_v48 = vsel %vm776_vm0, %v4511_v3, 0.0 }
 0xa3f   : > { %v4576_v36 = vsel %vm776_vm0, %v10831_v28, 0.0 }
 0xa42   : > { %v10836_v54 = vpop.permute.xlu1 %4530 }
 0xa46   : > { %v4367_v34 = vpop.permute.xlu1 %4366 }
 0xa4a   : > { %v4535_v3 = vpop.permute.xlu1 %4534 }
 0xa5d   : > { %3819 = vmax.xlane.f32.xlu0 %v3818_v19  ;;  %v3824_v19 = vsel %vm1343_vm2, %v10839_v33, -inf }
 0xa62   : > { %4559 = vadd.xlane.f32.xlu1 %v4558_v48  ;;  %v4573_v48 = vsel %vm776_vm0, %v4521_v60, 0.0 }
 0xa66   : > { %3822 = vmax.xlane.f32.xlu1 %v3821_v15  ;;  %v4585_v15 = vsel %vm776_vm0, %v4529_v25, 0.0 }
 0xa6a   : > { %3825 = vmax.xlane.f32.xlu1 %v3824_v19  ;;  %v4371_v19 = vpop.permute.xlu0 %4370 }
 0xa6d   : > { %v10849_v58 = vpop.xlane.xlu1 %3804 }
 0xa6e   : > { %4568 = vadd.xlane.f32.xlu1 %v4567_v32  ;;  %v10854_v32 = vpop.xlane.xlu0 %3807 }
 0xa71   : > { %v4373_v31 = vpop.permute.xlu1 %4372 }
 0xa72   : > { %4574 = vadd.xlane.f32.xlu1 %v4573_v48  ;;  %v4417_v48 = vsel %vm776_vm0, %v4369_v62, 0.0  ;;  %v4423_v25 = vsel %vm776_vm0, %v4373_v31, 0.0 }
 0xa73   : > { %4396 = vrot.lane.b32.xlu0 %v12152_v23, %s8525_s27  ;;  %v4375_v23 = vpop.permute.xlu0 %4374 }
 0xa75   : > { %v4377_v60 = vpop.permute.xlu1 %4376 }
 0xa76   : > { %4586 = vadd.xlane.f32.xlu1 %v4585_v15 }
 0xa77   : > { %v4541_v45 = vpop.permute.xlu0 %4540 }
 0xa78   : > { %v4603_v24 = vsel %vm776_vm0, %v4541_v45, 0.0 }
 0xa79   : > { %v4539_v8 = vpop.permute.xlu1 %4538 }
 0xa7a   : > { %4580 = vadd.xlane.f32.xlu1 %v4579_v51  ;;  %v4429_v51 = vsel %vm776_vm0, %v4377_v60, 0.0  ;;  %v4570_v60 = vsel %vm776_vm0, %v10823_v43, 0.0  ;;  %v4588_v43 = vsel %vm776_vm0, %v10836_v54, 0.0  ;;  %v3851_v54 = vsub.f32 %v10755_v47, %v10849_v58 }
 0xa7b   : > { %v4381_v20 = vpop.permute.xlu0 %4380 }
 0xa7d   : > { %v4379_v15 = vpop.permute.xlu1 %4378 }
 0xa7e   : > { %4592 = vadd.xlane.f32.xlu1 %v4591_v16  ;;  %v4561_v16 = vsel %vm776_vm0, %v4513_v56, 0.0  ;;  %v4582_v56 = vsel %vm776_vm0, %v10825_v6, 0.0  ;;  %v4594_v6 = vsel %vm776_vm0, %v4535_v3, 0.0 }
 0xa81   : > { %v4383_v62 = vpop.permute.xlu1 %4382 }
 0xa82   : > { %4418 = vadd.xlane.f32.xlu1 %v4417_v48  ;;  %v4385_v48 = vpop.permute.xlu0 %4384 }
 0xa85   : > { %v4389_v31 = vpop.permute.xlu1 %4388 }
 0xa86   : > { %4598 = vadd.xlane.f32.xlu1 %v4597_v61  ;;  %v4435_v61 = vsel %vm776_vm0, %v4381_v20, 0.0  ;;  %v4414_v20 = vsel %vm776_vm0, %v4367_v34, 0.0  ;;  %v4387_v28 = vpop.permute.xlu0 %4386  ;;  %v4432_v34 = vsel %vm776_vm0, %v4379_v15, 0.0 }
 0xa89   : > { %v4393_v45 = vpop.permute.xlu1 %4392 }
 0xa8a   : > { %4424 = vadd.xlane.f32.xlu1 %v4423_v25  ;;  %v4441_v25 = vsel %vm776_vm0, %v4385_v48, 0.0 }
 0xa8e   : > { %4430 = vadd.xlane.f32.xlu1 %v4429_v51  ;;  %v4453_v51 = vsel %vm776_vm0, %v4393_v45, 0.0  ;;  %v3839_v45 = vsel %vm1343_vm2, %v10783_v53, -inf }
 0xa92   : > { %4562 = vadd.xlane.f32.xlu0 %v4561_v16  ;;  %4604 = vadd.xlane.f32.xlu1 %v4603_v24  ;;  %v4447_v24 = vsel %vm776_vm0, %v4389_v31, 0.0  ;;  %v4420_v16 = vsel %vm776_vm0, %v4371_v19, 0.0  ;;  %v3867_v31 = vmul.f32 1.442695, %v3851_v54  ;;  %v3842_v54 = vsel %vm1343_vm2, %v10781_v35, -inf }
 0xa94   : > { %8125 = vpow2.f32 %v3867_v31  ;;  %v3848_v31 = vsel %vm1343_vm2, %v10789_v22, -inf }
 0xa96   : > { %4565 = vadd.xlane.f32.xlu0 %v4564_v2  ;;  %4436 = vadd.xlane.f32.xlu1 %v4435_v61  ;;  %v4426_v2 = vsel %vm776_vm0, %v4375_v23, 0.0  ;;  %v4600_v61 = vsel %vm776_vm0, %v4539_v8, 0.0  ;;  %v4444_v23 = vsel %vm776_vm0, %v4387_v28, 0.0 }
 0xa9a   : > { %4571 = vadd.xlane.f32.xlu0 %v4570_v60  ;;  %4442 = vadd.xlane.f32.xlu1 %v4441_v25  ;;  %v4438_v60 = vsel %vm776_vm0, %v4383_v62, 0.0  ;;  %v3830_v62 = vsel %vm1343_vm2, %v10767_v29, -inf }
 0xa9e   : > { %4583 = vadd.xlane.f32.xlu0 %v4582_v56  ;;  %4448 = vadd.xlane.f32.xlu1 %v4447_v24  ;;  %v10889_v47 = vpop.eup %8125  ;;  %v3833_v24 = vsel %vm1343_vm2, %v10775_v37, -inf }
 0xa9f   : > { %v3899_v15 = vsel %vm1343_vm2, %v10889_v47, 0.0 }
 0xaa2   : > { %4577 = vadd.xlane.f32.xlu0 %v4576_v36  ;;  %4454 = vadd.xlane.f32.xlu1 %v4453_v51  ;;  %v3852_v36 = vsub.f32 %v10753_v12, %v10854_v32  ;;  %v3845_v51 = vsel %vm1343_vm2, %v10791_v52, -inf  ;;  %v3827_v12 = vsel %vm1343_vm2, %v10769_v57, -inf  ;;  %v12153_v32 = vld [vmem:[#allocation18_spill] sm:$0xff] }
 0xaa6   : > { %4589 = vadd.xlane.f32.xlu0 %v4588_v43  ;;  %v3869_v43 = vmul.f32 1.442695, %v3852_v36 }
 0xaa8   : > { %8127 = vpow2.f32 %v3869_v43 }
 0xaaa   : > { %4415 = vadd.xlane.f32.xlu0 %v4414_v20 }
 0xaae   : > { %4595 = vadd.xlane.f32.xlu0 %v4594_v6 }
 0xab1   : > { %v3811_v48 = vpop.xlane.xlu0 %3810 }
 0xab2   : > { %4421 = vadd.xlane.f32.xlu0 %v4420_v16 }
 0xab5   : > { %v3814_v3 = vpop.xlane.xlu0 %3813 }
 0xab6   : > { %4427 = vadd.xlane.f32.xlu0 %v4426_v2  ;;  %v10904_v2 = vpop.eup %8127 }
 0xab7   : > { %v3902_v28 = vsel %vm1343_vm2, %v10904_v2, 0.0 }
 0xab9   : > { %v4391_v25 = vpop.permute.xlu0 %4390 }
 0xaba   : > { %4601 = vadd.xlane.f32.xlu0 %v4600_v61  ;;  %v10884_v19 = vpop.xlane.xlu1 %3816  ;;  %v4450_v8 = vsel %vm776_vm0, %v4391_v25, 0.0  ;;  %v3836_v61 = vsel %vm1343_vm2, %v10773_v39, -inf }
 0xabe   : > { %4433 = vadd.xlane.f32.xlu0 %v4432_v34  ;;  %v4395_v56 = vpop.permute.xlu1 %4394  ;;  %v3853_v34 = vsub.f32 %v10807_v30, %v3811_v48  ;;  %v12155_v48 = vld [vmem:[#allocation87_spill] sm:$0xff] }
 0xabf   : > { %v4456_v58 = vsel %vm776_vm0, %v4395_v56, 0.0  ;;  %v12154_v56 = vld [vmem:[#allocation86_spill] sm:$0xff] }
 0xac2   : > { %4439 = vadd.xlane.f32.xlu0 %v4438_v60  ;;  %v3871_v60 = vmul.f32 1.442695, %v3853_v34 }
 0xac4   : > { %8129 = vpow2.f32 %v3871_v60 }
 0xac6   : > { %4445 = vadd.xlane.f32.xlu0 %v4444_v23  ;;  %v3854_v23 = vsub.f32 %v10809_v26, %v3814_v3  ;;  %v12156_v3 = vld [vmem:[#allocation88_spill] sm:$0xff] }
 0xac8   : > { %v3873_v25 = vmul.f32 1.442695, %v3854_v23  ;;  %v12157_v23 = vld [vmem:[#allocation30_spill] sm:$0xff] }
 0xaca   : > { %4451 = vadd.xlane.f32.xlu0 %v4450_v8  ;;  %8131 = vpow2.f32 %v3873_v25 }
 0xace   : > { %4457 = vadd.xlane.f32.xlu0 %v4456_v58  ;;  %v10920_v8 = vpop.eup %8129 }
 0xacf   : > { %v3905_v58 = vsel %vm1343_vm2, %v10920_v8, 0.0 }
 0xad2   : > { %3900 = vadd.xlane.f32.xlu0 %v3899_v15 }
 0xad4   : > { %v10926_v15 = vpop.eup %8131 }
 0xad5   : > { %v3908_v26 = vsel %vm1343_vm2, %v10926_v15, 0.0 }
 0xad6   : > { %3831 = vmax.xlane.f32.xlu0 %v3830_v62 }
 0xada   : > { %3834 = vmax.xlane.f32.xlu0 %v3833_v24 }
 0xade   : > { %3840 = vmax.xlane.f32.xlu0 %v3839_v45 }
 0xae2   : > { %3846 = vmax.xlane.f32.xlu0 %v3845_v51 }
 0xaea   : > { %v3820_v20 = vpop.xlane.xlu0 %3819 }
 0xaee   : > { %v4397_v6 = vpop.permute.xlu0 %4396 }
 0xaef   : > { %v4459_v16 = vsel %vm776_vm0, %v4397_v6, 0.0  ;;  %v4560_v30 = vpop.xlane.xlu1 %4559 }
 0xaf0   : > { %4460 = vadd.xlane.f32.xlu1 %v4459_v16  ;;  %v4606_v45 = vmax.f32 %v4560_v30, 1e-24  ;;  %v3855_v16 = vsub.f32 %v10815_v44, %v10884_v19  ;;  %v12158_v30 = vld [vmem:[#allocation89_spill] sm:$0xff] }
 0xaf2   : > { %v3875_v34 = vmul.f32 1.442695, %v3855_v16 }
 0xaf3   : > { %v3823_v62 = vpop.xlane.xlu1 %3822 }
 0xaf4   : > { %3903 = vadd.xlane.f32.xlu1 %v3902_v28 }
 0xaf7   : > { %v10934_v43 = vpop.xlane.xlu1 %3825 }
 0xaf8   : > { %3828 = vmax.xlane.f32.xlu1 %v3827_v12  ;;  %7686 = vrot.lane.b32.xlu0 %v12153_v32, %s8524_s12  ;;  %v3858_v59 = vsub.f32 %v10839_v33, %v10934_v43 }
 0xafb   : > { %v4569_v28 = vpop.xlane.xlu1 %4568 }
 0xafc   : > { %3837 = vmax.xlane.f32.xlu1 %v3836_v61  ;;  %v4609_v32 = vmax.f32 %v4569_v28, 1e-24 }
 0xb00   : > { %3843 = vmax.xlane.f32.xlu1 %v3842_v54 }
 0xb04   : > { %3849 = vmax.xlane.f32.xlu1 %v3848_v31  ;;  %v3856_v31 = vsub.f32 %v10827_v18, %v3820_v20 }
 0xb06   : > { %v3877_v44 = vmul.f32 1.442695, %v3856_v31 }
 0xb15   : > { %7691 = vrot.lane.b32.xlu1 %v12154_v56, %s8524_s12 }
 0xb17   : > { %3906 = vadd.xlane.f32.xlu0 %v3905_v58  ;;  %v10946_v58 = vpop.xlane.xlu1 %4574 }
 0xb19   : > { %7696 = vrot.lane.b32.xlu1 %v12155_v48, %s8524_s12 }
 0xb1b   : > { %3909 = vadd.xlane.f32.xlu0 %v3908_v26  ;;  %v10954_v18 = vpop.xlane.xlu1 %4586 }
 0xb1d   : > { %7701 = vrot.lane.b32.xlu1 %v12156_v3, %s8524_s12 }
 0xb1f   : > { %v4563_v24 = vpop.xlane.xlu0 %4562  ;;  %v10962_v16 = vpop.xlane.xlu1 %4580 }
 0xb20   : > { %v4607_v36 = vmax.f32 %v4563_v24, 1e-24 }
 0xb22   : > { %8133 = vrsqrt.f32 %v4607_v36 }
 0xb23   : > { %v4566_v51 = vpop.xlane.xlu0 %4565  ;;  %8135 = vrsqrt.f32 %v4606_v45 }
 0xb24   : > { %8137 = vpow2.f32 %v3875_v34  ;;  %v4608_v48 = vmax.f32 %v4566_v51, 1e-24 }
 0xb25   : > { %8139 = vpow2.f32 %v3877_v44 }
 0xb27   : > { %v10936_v6 = vpop.xlane.xlu0 %4571 }
 0xb2b   : > { %v10940_v12 = vpop.xlane.xlu0 %4583 }
 0xb2c   : > { %v8134_v61 = vpop.eup %8133 }
 0xb2d   : > { %v8136_v54 = vpop.eup %8135  ;;  %v4639_v25 = vmul.f32 %v8134_v61, %v12157_v23  ;;  %v10971_v23 = vpop.xlane.xlu1 %4592 }
 0xb2e   : > { %v4638_v26 = vmul.f32 %v8136_v54, %v12072_v41  ;;  %v10960_v36 = vpop.eup %8137  ;;  %v3857_v41 = vsub.f32 %v10833_v50, %v3823_v62 }
 0xb2f   : > { %v10943_v60 = vpop.xlane.xlu0 %4577  ;;  %v3911_v54 = vsel %vm1343_vm2, %v10960_v36, 0.0  ;;  %v10969_v34 = vpop.eup %8139 }
 0xb30   : > { %v7715_v24 = vpack.i.bf16 %v4639_v25, %v4638_v26  ;;  %v3879_v31 = vmul.f32 1.442695, %v3857_v41  ;;  %v3914_v26 = vsel %vm1343_vm2, %v10969_v34, 0.0 }
 0xb31   : > { %7706 = vrot.lane.b32.xlu0 %v12158_v30, %s8524_s12  ;;  %v10979_v50 = vpop.xlane.xlu1 %4418 }
 0xb32   : > { %8141 = vpow2.f32 %v3879_v31  ;;  %v12162_v31 = vld [vmem:[#allocation90_spill] sm:$0xff] }
 0xb33   : > { %v10951_v19 = vpop.xlane.xlu0 %4589  ;;  %8143 = vrsqrt.f32 %v4608_v48 }
 0xb34   : > { %8145 = vrsqrt.f32 %v4609_v32 }
 0xb35   : > { %7716 = vrot.lane.b32.xlu0 %v7715_v24, %s8525_s27  ;;  %v10983_v24 = vpop.xlane.xlu1 %4598 }
 0xb37   : > { %v10956_v20 = vpop.xlane.xlu0 %4415 }
 0xb3b   : > { %v10958_v45 = vpop.xlane.xlu0 %4595 }
 0xb3c   : > { %v10987_v41 = vpop.eup %8141 }
 0xb3d   : > { %v3917_v3 = vsel %vm1343_vm2, %v10987_v41, 0.0 }
 0xb3f   : > { %v10965_v61 = vpop.xlane.xlu0 %4421 }
 0xb41   : > { %3912 = vadd.xlane.f32.xlu1 %v3911_v54 }
 0xb43   : > { %v10973_v25 = vpop.xlane.xlu0 %4427 }
 0xb45   : > { %3915 = vadd.xlane.f32.xlu1 %v3914_v26  ;;  %v10993_v26 = vpop.xlane.xlu1 %4424 }
 0xb47   : > { %v10977_v44 = vpop.xlane.xlu0 %4601 }
 0xb49   : > { %v10999_v1 = vpop.xlane.xlu1 %4430 }
 0xb4b   : > { %v10981_v62 = vpop.xlane.xlu0 %4433 }
 0xb4c   : > { %12159 = vst [vmem:[#allocation97_spill] sm:$0xff] %v10981_v62 }
 0xb4f   : > { %v10985_v30 = vpop.xlane.xlu0 %4439 }
 0xb50   : > { %12160 = vst [vmem:[#allocation104_spill] sm:$0xff] %v10985_v30  ;;  %v11003_v30 = vpop.xlane.xlu1 %4604 }
 0xb53   : > { %v10989_v54 = vpop.xlane.xlu0 %4445 }
 0xb54   : > { %12161 = vst [vmem:[#allocation98_spill] sm:$0xff] %v10989_v54  ;;  %3918 = vadd.xlane.f32.xlu0 %v3917_v3  ;;  %v11009_v10 = vpop.xlane.xlu1 %4436 }
 0xb56   : > { %7711 = vrot.lane.b32.xlu1 %v12162_v31, %s8524_s12  ;;  %v8144_v31 = vpop.eup %8143 }
 0xb57   : > { %v10997_v56 = vpop.xlane.xlu0 %4451  ;;  %v8146_v51 = vpop.eup %8145  ;;  %v4640_v48 = vmul.f32 %v8144_v31, %v12078_v13 }
 0xb58   : > { %12163 = vst [vmem:[#allocation99_spill] sm:$0xff] %v10997_v56  ;;  %v3881_v56 = vmul.f32 1.442695, %v3858_v59  ;;  %v4641_v32 = vmul.f32 %v8146_v51, %v12080_v0  ;;  %v11018_v43 = vpop.xlane.xlu1 %4442 }
 0xb5a   : > { %v7730_v33 = vpack.i.bf16 %v4641_v32, %v4640_v48 }
 0xb5b   : > { %v11001_v9 = vpop.xlane.xlu0 %4457 }
 0xb5c   : > { %12164 = vst [vmem:[#allocation103_spill] sm:$0xff] %v11001_v9  ;;  %v11024_v13 = vpop.xlane.xlu1 %4448 }
 0xb5f   : > { %v3901_v54 = vpop.xlane.xlu0 %3900 }
 0xb60   : > { %8147 = vrcp.f32 %v3901_v54 }
 0xb61   : > { %8149 = vpow2.f32 %v3881_v56 }
 0xb63   : > { %v11005_v3 = vpop.xlane.xlu0 %3831 }
 0xb67   : > { %v11011_v28 = vpop.xlane.xlu0 %3834 }
 0xb6a   : > { %v8148_v9 = vpop.eup %8147  ;;  %7721 = vrot.lane.b32.xlu0 %v12079_v7, %s8524_s12 }
 0xb6b   : > { %v3841_v54 = vpop.xlane.xlu0 %3840  ;;  %v3963_v21 = vmul.f32 %v8148_v9, %v10889_v47  ;;  %v11026_v11 = vpop.eup %8149 }
 0xb6c   : > { %12165 = vst [vmem:[#allocation102_spill] sm:$0xff] %v11026_v11  ;;  %v11028_v9 = vpop.xlane.xlu1 %4454  ;;  %v3920_v47 = vsel %vm1343_vm2, %v11026_v11, 0.0  ;;  %v3863_v32 = vsub.f32 %v10783_v53, %v3841_v54 }
 0xb6d   : > { %6838 = vmatprep.mubr.msk.f32.mxu0 %vm1343_vm2, %v3963_v21 }
 0xb6e   : > { %7731 = vrot.lane.b32.xlu0 %v7730_v33, %s8525_s27 }
 0xb6f   : > { %v11022_v59 = vpop.xlane.xlu0 %3846 }
 0xb73   : > { %v7687_v31 = vpop.permute.xlu0 %7686 }
 0xb74   : > { %v7689_v62 = vunpack.i.h.bf16 %v7687_v31  ;;  %v7688_v7 = vunpack.i.l.bf16 %v7687_v31 }
 0xb76   : > { %v7318_v0 = vpack.c.bf16 %v7689_v62, %v7688_v7  ;;  %v3891_v62 = vmul.f32 1.442695, %v3863_v32  ;;  %v3860_v32 = vsub.f32 %v10767_v29, %v11005_v3 }
 0xb78   : > { %7319 = vmatprep.subr.bf16.mxu0 %v7318_v0 }
 0xb79   : > { %7321 = vmatpush3.bf16.msra.mxu0 %v7318_v0 }
 0xb7a   : > { %3921 = vadd.xlane.f32.xlu1 %v3920_v47 }
 0xb7d   : > { %v11032_v21 = vpop.xlane.xlu1 %4460 }
 0xb7e   : > { %12166 = vst [vmem:[#allocation21_spill] sm:$0xff] %v11032_v21 }
 0xb81   : > { %v3904_v56 = vpop.xlane.xlu1 %3903 }
 0xb85   : > { %v3829_v51 = vpop.xlane.xlu1 %3828 }
 0xb86   : > { %v3859_v48 = vsub.f32 %v10769_v57, %v3829_v51 }
 0xb88   : > { %v3883_v33 = vmul.f32 1.442695, %v3859_v48 }
 0xb89   : > { %v3838_v31 = vpop.xlane.xlu1 %3837 }
 0xb8a   : > { %8151 = vpow2.f32 %v3883_v33  ;;  %v3862_v7 = vsub.f32 %v10773_v39, %v3838_v31 }
 0xb8b   : > { %7726 = vrot.lane.b32.xlu1 %v12076_v46, %s8524_s12 }
 0xb8c   : > { %v3889_v0 = vmul.f32 1.442695, %v3862_v7 }
 0xb8d   : > { %v3844_v11 = vpop.xlane.xlu1 %3843 }
 0xb8e   : > { %8153 = vpow2.f32 %v3889_v0 }
 0xb8f   : > { %8155 = vpow2.f32 %v3891_v62 }
 0xb90   : > { %8157 = vrcp.f32 %v3904_v56  ;;  %v3861_v56 = vsub.f32 %v10775_v37, %v11011_v28 }
 0xb91   : > { %v11039_v47 = vpop.xlane.xlu1 %3849 }
 0xb94   : > { %v11041_v21 = vpop.eup %8151 }
 0xb95   : > { %v7692_v57 = vpop.permute.xlu1 %7691  ;;  %v3923_v53 = vsel %vm1343_vm2, %v11041_v21, 0.0 }
 0xb96   : > { %v7694_v54 = vunpack.i.h.bf16 %v7692_v57  ;;  %v7693_v51 = vunpack.i.l.bf16 %v7692_v57  ;;  %3924 = vadd.xlane.f32.xlu0 %v3923_v53  ;;  %v4610_v57 = vmax.f32 %v10936_v6, 1e-24  ;;  %v3864_v6 = vsub.f32 %v10781_v35, %v3844_v11 }
 0xb98   : > { %v11045_v39 = vpop.eup %8153  ;;  %v7322_v48 = vpack.c.bf16 %v7694_v54, %v7693_v51  ;;  %v3885_v54 = vmul.f32 1.442695, %v3860_v32  ;;  %8159 = vrsqrt.f32 %v4610_v57  ;;  %v3893_v28 = vmul.f32 1.442695, %v3864_v6 }
 0xb99   : > { %12167 = vst [vmem:[#allocation106_spill] sm:$0xff] %v11045_v39  ;;  %v7697_v33 = vpop.permute.xlu1 %7696  ;;  %v3932_v31 = vsel %vm1343_vm2, %v11045_v39, 0.0  ;;  %v11051_v7 = vpop.eup %8155 }
 0xb9a   : > { %v7699_v62 = vunpack.i.h.bf16 %v7697_v33  ;;  %v7698_v0 = vunpack.i.l.bf16 %v7697_v33  ;;  %3933 = vadd.xlane.f32.xlu0 %v3932_v31  ;;  %7323 = vmatprep.subr.bf16.mxu0 %v7322_v48  ;;  %v3935_v29 = vsel %vm1343_vm2, %v11051_v7, 0.0  ;;  %v4611_v33 = vmax.f32 %v10946_v58, 1e-24  ;;  %v8158_v39 = vpop.eup %8157 }
 0xb9b   : > { %7325 = vmatpush3.bf16.msra.mxu0 %v7322_v48  ;;  %v3887_v48 = vmul.f32 1.442695, %v3861_v56  ;;  %8161 = vpow2.f32 %v3885_v54  ;;  %v3964_v37 = vmul.f32 %v8158_v39, %v10904_v2 }
 0xb9c   : > { %v7326_v53 = vpack.c.bf16 %v7699_v62, %v7698_v0  ;;  %8163 = vrsqrt.f32 %v4611_v33  ;;  %v4614_v33 = vmax.f32 %v10940_v12, 1e-24 }
 0xb9d   : > { %v7702_v51 = vpop.permute.xlu1 %7701  ;;  %8165 = vpow2.f32 %v3887_v48 }
 0xb9e   : > { %v7704_v3 = vunpack.i.h.bf16 %v7702_v51  ;;  %v7703_v46 = vunpack.i.l.bf16 %v7702_v51  ;;  %3936 = vadd.xlane.f32.xlu0 %v3935_v29  ;;  %7327 = vmatprep.subr.bf16.mxu0 %v7326_v53 }
 0xb9f   : > { %7329 = vmatpush3.bf16.msra.mxu0 %v7326_v53 }
 0xba0   : > { %v7330_v31 = vpack.c.bf16 %v7704_v3, %v7703_v46 }
 0xba2   : > { %7331 = vmatprep.subr.bf16.mxu0 %v7330_v31  ;;  %v8160_v62 = vpop.eup %8159 }
 0xba3   : > { %7333 = vmatpush3.bf16.msra.mxu0 %v7330_v31  ;;  %v4642_v39 = vmul.f32 %v8160_v62, %v12081_v27 }
 0xba4   : > { %v3907_v32 = vpop.xlane.xlu0 %3906 }
 0xba5   : > { %8167 = vrcp.f32 %v3907_v32  ;;  %v11062_v0 = vpop.eup %8161  ;;  %v4615_v32 = vmax.f32 %v10954_v18, 1e-24  ;;  %v3866_v18 = vsub.f32 %v10789_v22, %v11039_v47 }
 0xba6   : > { %6839 = vmatmul.mubr.msk.f32.vlgmr.msra.gmra.mrb[48].mxu0 %vm1343_vm2, %v3964_v37  ;;  %8169 = vpow2.f32 %v3893_v28  ;;  %v8164_v11 = vpop.eup %8163  ;;  %v3926_v2 = vsel %vm1343_vm2, %v11062_v0, 0.0 }
 0xba7   : > { %v11064_v56 = vpop.eup %8165  ;;  %v4643_v3 = vmul.f32 %v8164_v11, %v12082_v63  ;;  %v12168_v11 = vld [vmem:[#allocation32_spill] sm:$0xff] }
 0xba8   : > { %v3910_v58 = vpop.xlane.xlu0 %3909  ;;  %v3929_v27 = vsel %vm1343_vm2, %v11064_v56, 0.0 }
 0xba9   : > { %8171 = vrcp.f32 %v3910_v58  ;;  %v7735_v37 = vpack.i.bf16 %v4643_v3, %v4642_v39 }
 0xbaa   : > { %8173 = vrsqrt.f32 %v4614_v33 }
 0xbab   : > { %8175 = vrsqrt.f32 %v4615_v32  ;;  %v4621_v32 = vmax.f32 %v11003_v30, 1e-24 }
 0xbac   : > { %v7707_v46 = vpop.permute.xlu0 %7706 }
 0xbad   : > { %v7709_v35 = vunpack.i.h.bf16 %v7707_v46  ;;  %v7708_v57 = vunpack.i.l.bf16 %v7707_v46 }
 0xbaf   : > { %v8168_v53 = vpop.eup %8167  ;;  %3927 = vadd.xlane.f32.xlu1 %v3926_v2  ;;  %v7334_v54 = vpack.c.bf16 %v7709_v35, %v7708_v57 }
 0xbb0   : > { %v7717_v51 = vpop.permute.xlu0 %7716  ;;  %v3965_v29 = vmul.f32 %v8168_v53, %v10920_v8  ;;  %v11072_v31 = vpop.eup %8169  ;;  %v4612_v53 = vmax.f32 %v10943_v60, 1e-24 }
 0xbb1   : > { %v7719_v48 = vunpack.i.h.bf16 %v7717_v51  ;;  %v7718_v6 = vunpack.i.l.bf16 %v7717_v51  ;;  %7335 = vmatprep.subr.bf16.mxu1 %v7334_v54  ;;  %v3938_v12 = vsel %vm1343_vm2, %v11072_v31, 0.0  ;;  %v4464_v51 = vmax.f32 %v10965_v61, 1e-24 }
 0xbb2   : > { %6841 = vmatprep.mubr.msk.f32.mxu0 %vm1343_vm2, %v3965_v29  ;;  %7337 = vmatpush3.bf16.msra.mxu1 %v7334_v54  ;;  %v4462_v54 = vmax.f32 %v10956_v20, 1e-24  ;;  %v3865_v29 = vsub.f32 %v10791_v52, %v11022_v59 }
 0xbb3   : > { %v8172_v28 = vpop.eup %8171  ;;  %v7350_v8 = vpack.c.bf16 %v7719_v48, %v7718_v6  ;;  %3930 = vadd.xlane.f32.xlu1 %v3929_v27 }
 0xbb4   : > { %7736 = vrot.lane.b32.xlu0 %v7735_v37, %s8525_s27  ;;  %v3966_v63 = vmul.f32 %v8172_v28, %v10926_v15  ;;  %v8174_v58 = vpop.eup %8173  ;;  %v3897_v15 = vmul.f32 1.442695, %v3866_v18  ;;  %v3895_v6 = vmul.f32 1.442695, %v3865_v29  ;;  %v4620_v37 = vmax.f32 %v10977_v44, 1e-24 }
 0xbb5   : > { %7352 = vmatprep.subr.msk.bf16.mxu0 %vm9151_vm1, %v7350_v8  ;;  %v8176_v62 = vpop.eup %8175  ;;  %v4646_v46 = vmul.f32 %v8174_v58, %v12077_v42  ;;  %v4613_v42 = vmax.f32 %v10962_v16, 1e-24  ;;  %v4467_v16 = vmax.f32 %v10999_v1, 1e-24  ;;  %v4616_v58 = vmax.f32 %v10951_v19, 1e-24 }
 0xbb6   : > { %6842 = vmatmul.mubr.msk.f32.gmra.mrb[50].mxu0 %vm1343_vm2, %v3966_v63  ;;  %v4647_v35 = vmul.f32 %v8176_v62, %v12168_v11  ;;  %8177 = vpow2.f32 %v3897_v15  ;;  %v4617_v15 = vmax.f32 %v10971_v23, 1e-24  ;;  %v4473_v19 = vmax.f32 %v11024_v13, 1e-24 }
 0xbb7   : > { %7355 = vmatpush3.bf16.xpose.msk.msra.mxu0 %vm9151_vm1, %v7350_v8  ;;  %3939 = vadd.xlane.f32.xlu1 %v3938_v12  ;;  %v4465_v29 = vmax.f32 %v10993_v26, 1e-24 }
 0xbb8   : > { %v7740_v57 = vpack.i.bf16 %v4647_v35, %v4646_v46 }
 0xbc0   : > { %v11092_v39 = vpop.eup %8177 }
 0xbc1   : > { %v3944_v47 = vsel %vm1343_vm2, %v11092_v39, 0.0 }
 0xbc8   : > { %7741 = vrot.lane.b32.xlu1 %v7740_v57, %s8525_s27 }
 0xbce   : > { %v3913_v2 = vpop.xlane.xlu1 %3912 }
 0xbcf   : > { %8179 = vrcp.f32 %v3913_v2  ;;  %v4618_v2 = vmax.f32 %v10958_v45, 1e-24  ;;  %v4619_v45 = vmax.f32 %v10983_v24, 1e-24 }
 0xbd2   : > { %v3916_v22 = vpop.xlane.xlu1 %3915 }
 0xbd3   : > { %8181 = vrcp.f32 %v3916_v22  ;;  %3945 = vadd.xlane.f32.xlu0 %v3944_v47 }
 0xbd4   : > { %8183 = vrsqrt.f32 %v4612_v53 }
 0xbd5   : > { %8185 = vrsqrt.f32 %v4462_v54 }
 0xbd6   : > { %v7712_v3 = vpop.permute.xlu1 %7711  ;;  %8187 = vrsqrt.f32 %v4613_v42 }
 0xbd7   : > { %v7714_v33 = vunpack.i.h.bf16 %v7712_v3  ;;  %v7713_v60 = vunpack.i.l.bf16 %v7712_v3  ;;  %8189 = vrsqrt.f32 %v4464_v51 }
 0xbd8   : > { %8191 = vpow2.f32 %v3895_v6  ;;  %v12169_v6 = vld [vmem:[#allocation21_spill] sm:$0xff] }
 0xbd9   : > { %v8180_v20 = vpop.eup %8179  ;;  %v7338_v48 = vpack.c.bf16 %v7714_v33, %v7713_v60  ;;  %8193 = vrsqrt.f32 %v4467_v16  ;;  %v4475_v60 = vmax.f32 %v11028_v9, 1e-24  ;;  %v12170_v16 = vld [vmem:[#allocation75_spill] sm:$0xff] }
 0xbda   : > { %v3967_v27 = vmul.f32 %v8180_v20, %v10960_v36  ;;  %v4469_v36 = vmax.f32 %v11009_v10, 1e-24  ;;  %8195 = vrsqrt.f32 %v4620_v37 }
 0xbdb   : > { %7339 = vmatprep.subr.bf16.mxu1 %v7338_v48 }
 0xbdc   : > { %6844 = vmatprep.mubr.msk.f32.mxu0 %vm1343_vm2, %v3967_v27  ;;  %7341 = vmatpush3.bf16.msra.mxu1 %v7338_v48  ;;  %v4477_v27 = vmax.f32 %v12169_v6, 1e-24 }
 0xbdd   : > { %v8182_v61 = vpop.eup %8181 }
 0xbde   : > { %v3968_v52 = vmul.f32 %v8182_v61, %v10969_v34  ;;  %v8184_v59 = vpop.eup %8183  ;;  %v4471_v34 = vmax.f32 %v11018_v43, 1e-24 }
 0xbdf   : > { %v8186_v28 = vpop.eup %8185  ;;  %v4644_v63 = vmul.f32 %v8184_v59, %v12087_v55  ;;  %v11119_v55 = vld [vmem:[%s11724_s3] ss:$0 sm:$0xff] }
 0xbe0   : > { %6845 = vmatmul.mubr.msk.f32.gmra.mrb[52].mxu0 %vm1343_vm2, %v3968_v52  ;;  %v8188_v8 = vpop.eup %8187  ;;  %v4494_v44 = vmul.f32 %v8186_v28, %v12086_v38 }
 0xbe1   : > { %v3919_v1 = vpop.xlane.xlu0 %3918  ;;  %v8190_v12 = vpop.eup %8189  ;;  %v4645_v30 = vmul.f32 %v8188_v8, %v12085_v49  ;;  %v4463_v49 = vmax.f32 %v10979_v50, 1e-24  ;;  %v11134_v50 = vld [vmem:[%s11725_s4] ss:$0 sm:$0xff]  ;;  %v12172_v8 = vld [vmem:[#allocation37_spill] sm:$0xff] }
 0xbe2   : > { %8197 = vrcp.f32 %v3919_v1  ;;  %v4654_v38 = vadd.f32 %v11119_v55, %v4494_v44  ;;  %v4496_v11 = vmul.f32 %v8190_v12, %v12095_v4  ;;  %v11123_v43 = vpop.eup %8191  ;;  %v12173_v44 = vld [vmem:[#allocation26_spill] sm:$0xff] }
 0xbe3   : > { %8199 = vrsqrt.f32 %v4621_v32  ;;  %v7745_v46 = vpack.i.bf16 %v4645_v30, %v4644_v63  ;;  %v8194_v23 = vpop.eup %8193  ;;  %v3941_v4 = vsel %vm1343_vm2, %v11123_v43, 0.0 }
 0xbe4   : > { %8201 = vrsqrt.f32 %v4469_v36  ;;  %v8196_v22 = vpop.eup %8195  ;;  %v4670_v13 = vmul.f32 %v11134_v50, %v4654_v38  ;;  %v4656_v47 = vadd.f32 %v11119_v55, %v4496_v11  ;;  %v4499_v48 = vmul.f32 %v8194_v23, %v12098_v5  ;;  %v12178_v23 = vld [vmem:[#allocation42_spill] sm:$0xff] }
 0xbe5   : > { %v7722_v18 = vpop.permute.xlu0 %7721  ;;  %8203 = vrsqrt.f32 %v4471_v34  ;;  %v4652_v26 = vmul.f32 %v8196_v22, %v12094_v17 }
 0xbe6   : > { %v7724_v62 = vunpack.i.h.bf16 %v7722_v18  ;;  %v7723_v10 = vunpack.i.l.bf16 %v7722_v18  ;;  %8205 = vrsqrt.f32 %v4616_v58  ;;  %v4672_v24 = vmul.f32 %v11134_v50, %v4656_v47  ;;  %v12174_v18 = vld [vmem:[#allocation49_spill] sm:$0xff] }
 0xbe7   : > { %8207 = vrsqrt.f32 %v4617_v15  ;;  %v4659_v59 = vadd.f32 %v11119_v55, %v4499_v48 }
 0xbe8   : > { %v7342_v35 = vpack.c.bf16 %v7724_v62, %v7723_v10  ;;  %8209 = vrsqrt.f32 %v4463_v49  ;;  %v12175_v62 = vld [vmem:[#allocation104_spill] sm:$0xff] }
 0xbe9   : > { %v7732_v57 = vpop.permute.xlu0 %7731  ;;  %7746 = vrot.lane.b32.xlu0 %v7745_v46, %s8525_s27  ;;  %8211 = vrsqrt.f32 %v4473_v19  ;;  %v4675_v1 = vmul.f32 %v11134_v50, %v4659_v59  ;;  %v4470_v10 = vmax.f32 %v12175_v62, 1e-24  ;;  %v12176_v46 = vld [vmem:[#allocation24_spill] sm:$0xff] }
 0xbea   : > { %v7734_v53 = vunpack.i.h.bf16 %v7732_v57  ;;  %v7733_v54 = vunpack.i.l.bf16 %v7732_v57  ;;  %7343 = vmatprep.subr.bf16.mxu1 %v7342_v35  ;;  %8213 = vrsqrt.f32 %v4618_v2 }
 0xbeb   : > { %7345 = vmatpush3.bf16.msra.mxu1 %v7342_v35  ;;  %8215 = vrsqrt.f32 %v4619_v45  ;;  %v12177_v35 = vld [vmem:[#allocation62_spill] sm:$0xff] }
 0xbec   : > { %v8198_v42 = vpop.eup %8197  ;;  %v7356_v51 = vpack.c.bf16 %v7734_v53, %v7733_v54  ;;  %3942 = vadd.xlane.f32.xlu1 %v3941_v4  ;;  %8217 = vrsqrt.f32 %v4465_v29  ;;  %v12179_v54 = vld [vmem:[#allocation66_spill] sm:$0xff] }
 0xbed   : > { %4703 = vrot.lane.b32.xlu0 %v4670_v13, %s8525_s27  ;;  %v3969_v3 = vmul.f32 %v8198_v42, %v10987_v41  ;;  %v8200_v33 = vpop.eup %8199  ;;  %v4466_v41 = vmax.f32 %v10973_v25, 1e-24  ;;  %8219 = vrsqrt.f32 %v4475_v60  ;;  %v12171_v25 = vld [vmem:[#allocation97_spill] sm:$0xff]  ;;  %v12180_v4 = vld [vmem:[#allocation98_spill] sm:$0xff] }
 0xbee   : > { %7358 = vmatprep.subr.msk.bf16.mxu0 %vm9151_vm1, %v7356_v51  ;;  %v8202_v20 = vpop.eup %8201  ;;  %v4653_v9 = vmul.f32 %v8200_v33, %v12092_v40  ;;  %v4468_v32 = vmax.f32 %v12171_v25, 1e-24  ;;  %v4472_v13 = vmax.f32 %v12180_v4, 1e-24  ;;  %v12181_v42 = vld [vmem:[#allocation46_spill] sm:$0xff] }
 0xbef   : > { %6847 = vmatprep.mubr.msk.f32.mxu0 %vm1343_vm2, %v3969_v3  ;;  %7361 = vmatpush3.bf16.xpose.msk.msra.mxu0 %vm9151_vm1, %v7356_v51  ;;  %v4501_v61 = vmul.f32 %v8202_v20, %v12170_v16  ;;  %v8204_v37 = vpop.eup %8203  ;;  %8221 = vrsqrt.f32 %v4466_v41  ;;  %v12182_v60 = vld [vmem:[#allocation58_spill] sm:$0xff]  ;;  %v12184_v16 = vld [vmem:[#allocation52_spill] sm:$0xff] }
 0xbf0   : > { %v7760_v52 = vpack.i.bf16 %v4653_v9, %v4652_v26  ;;  %v8206_v17 = vpop.eup %8205  ;;  %8223 = vrsqrt.f32 %v4477_v27  ;;  %v4503_v12 = vmul.f32 %v8204_v37, %v12173_v44  ;;  %v12183_v26 = vld [vmem:[#allocation99_spill] sm:$0xff]  ;;  %v12185_v37 = vld [vmem:[#allocation80_spill] sm:$0xff] }
 0xbf1   : > { %4707 = vrot.lane.b32.xlu0 %v4672_v24, %s8525_s27  ;;  %v8208_v28 = vpop.eup %8207  ;;  %v4661_v40 = vadd.f32 %v11119_v55, %v4501_v61  ;;  %v4648_v63 = vmul.f32 %v8206_v17, %v12172_v8  ;;  %8225 = vrsqrt.f32 %v4468_v32  ;;  %v4474_v48 = vmax.f32 %v12183_v26, 1e-24  ;;  %v12186_v17 = vld [vmem:[#allocation103_spill] sm:$0xff] }
 0xbf2   : > { %v8210_v5 = vpop.eup %8209  ;;  %v4649_v30 = vmul.f32 %v8208_v28, %v12174_v18  ;;  %v4663_v57 = vadd.f32 %v11119_v55, %v4503_v12  ;;  %8227 = vrsqrt.f32 %v4470_v10  ;;  %v4476_v28 = vmax.f32 %v12186_v17, 1e-24 }
 0xbf3   : > { %v8212_v36 = vpop.eup %8211  ;;  %v4677_v15 = vmul.f32 %v11134_v50, %v4661_v40  ;;  %v4495_v38 = vmul.f32 %v8210_v5, %v12176_v46  ;;  %8229 = vrsqrt.f32 %v4472_v13 }
 0xbf4   : > { %v8214_v34 = vpop.eup %8213  ;;  %v7750_v49 = vpack.i.bf16 %v4649_v30, %v4648_v63  ;;  %v4505_v2 = vmul.f32 %v8212_v36, %v12178_v23  ;;  %v4679_v3 = vmul.f32 %v11134_v50, %v4663_v57  ;;  %8231 = vrsqrt.f32 %v4474_v48  ;;  %v12188_v30 = vld [vmem:[#allocation20_spill] sm:$0xff] }
 0xbf5   : > { %7761 = vrot.lane.b32.xlu0 %v7760_v52, %s8525_s27  ;;  %v8216_v58 = vpop.eup %8215  ;;  %v4650_v19 = vmul.f32 %v8214_v34, %v12177_v35  ;;  %v4655_v47 = vadd.f32 %v11119_v55, %v4495_v38 }
 0xbf6   : > { %v8218_v11 = vpop.eup %8217  ;;  %v4651_v22 = vmul.f32 %v8216_v58, %v12179_v54  ;;  %v4665_v33 = vadd.f32 %v11119_v55, %v4505_v2  ;;  %v12190_v2 = vld [vmem:[#allocation102_spill] sm:$0xff] }
 0xbf7   : > { %v8220_v53 = vpop.eup %8219  ;;  %v4497_v45 = vmul.f32 %v8218_v11, %v12181_v42  ;;  %v4671_v41 = vmul.f32 %v11134_v50, %v4655_v47 }
 0xbf8   : > { %v7755_v29 = vpack.i.bf16 %v4651_v22, %v4650_v19  ;;  %v4507_v20 = vmul.f32 %v8220_v53, %v12182_v60  ;;  %v4681_v6 = vmul.f32 %v11134_v50, %v4665_v33  ;;  %v12191_v22 = vld [vmem:[#allocation53_spill] sm:$0xff] }
 0xbf9   : > { %4713 = vrot.lane.b32.xlu0 %v4675_v1, %s8525_s27  ;;  %v8222_v51 = vpop.eup %8221  ;;  %v4657_v9 = vadd.f32 %v11119_v55, %v4497_v45  ;;  %v12187_v1 = vld [vmem:[#allocation70_spill] sm:$0xff]  ;;  %v12192_v45 = vld [vmem:[#allocation71_spill] sm:$0xff] }
 0xbfa   : > { %v8224_v24 = vpop.eup %8223  ;;  %v4667_v27 = vadd.f32 %v11119_v55, %v4507_v20  ;;  %v4498_v61 = vmul.f32 %v8222_v51, %v12184_v16 }
 0xbfb   : > { %v4509_v52 = vmul.f32 %v8224_v24, %v12185_v37  ;;  %v8226_v59 = vpop.eup %8225  ;;  %v4673_v5 = vmul.f32 %v11134_v50, %v4657_v9 }
 0xbfc   : > { %v4683_v32 = vmul.f32 %v11134_v50, %v4667_v27  ;;  %v4658_v40 = vadd.f32 %v11119_v55, %v4498_v61  ;;  %v4500_v8 = vmul.f32 %v8226_v59, %v12187_v1  ;;  %v8228_v63 = vpop.eup %8227 }
 0xbfd   : > { %7751 = vrot.lane.b32.xlu1 %v7750_v49, %s8525_s27  ;;  %4717 = vrot.lane.b32.xlu0 %v4677_v15, %s8525_s27  ;;  %v4669_v36 = vadd.f32 %v11119_v55, %v4509_v52  ;;  %v4502_v58 = vmul.f32 %v8228_v63, %v12188_v30  ;;  %v8230_v62 = vpop.eup %8229  ;;  %v12189_v49 = vld [vmem:[#allocation40_spill] sm:$0xff] }
 0xbfe   : > { %v4674_v12 = vmul.f32 %v11134_v50, %v4658_v40  ;;  %v4660_v18 = vadd.f32 %v11119_v55, %v4500_v8  ;;  %v4504_v35 = vmul.f32 %v8230_v62, %v12189_v49  ;;  %v8232_v19 = vpop.eup %8231  ;;  %v12193_v40 = vld [vmem:[#allocation106_spill] sm:$0xff] }
 0xbff   : > { %v4685_v34 = vmul.f32 %v11134_v50, %v4669_v36  ;;  %v4662_v11 = vadd.f32 %v11119_v55, %v4502_v58  ;;  %v4506_v4 = vmul.f32 %v8232_v19, %v12191_v22 }
 0xc00   : > { %v4676_v38 = vmul.f32 %v11134_v50, %v4660_v18  ;;  %v4664_v54 = vadd.f32 %v11119_v55, %v4504_v35 }
 0xc01   : > { %7756 = vrot.lane.b32.xlu1 %v7755_v29, %s8525_s27  ;;  %4890 = vrot.lane.b32.xlu0 %v4679_v3, %s8525_s27  ;;  %v4678_v23 = vmul.f32 %v11134_v50, %v4662_v11  ;;  %v4666_v42 = vadd.f32 %v11119_v55, %v4506_v4 }
 0xc02   : > { %v4680_v47 = vmul.f32 %v11134_v50, %v4664_v54 }
 0xc03   : > { %v4682_v29 = vmul.f32 %v11134_v50, %v4666_v42 }
 0xc05   : > { %4705 = vrot.lane.b32.xlu1 %v4671_v41, %s8525_s27  ;;  %4894 = vrot.lane.b32.xlu0 %v4681_v6, %s8525_s27 }
 0xc07   : > { %v3922_v25 = vpop.xlane.xlu1 %3921 }
 0xc08   : > { %8233 = vrcp.f32 %v3922_v25 }
 0xc09   : > { %4709 = vrot.lane.b32.xlu1 %v4673_v5, %s8525_s27  ;;  %4898 = vrot.lane.b32.xlu0 %v4683_v32, %s8525_s27  ;;  %8235 = vrsqrt.f32 %v4476_v28 }
 0xc0b   : > { %v7727_v44 = vpop.permute.xlu1 %7726 }
 0xc0c   : > { %v7729_v10 = vunpack.i.h.bf16 %v7727_v44  ;;  %v7728_v15 = vunpack.i.l.bf16 %v7727_v44 }
 0xc0d   : > { %4711 = vrot.lane.b32.xlu1 %v4674_v12, %s8525_s27  ;;  %4902 = vrot.lane.b32.xlu0 %v4685_v34, %s8525_s27 }
 0xc0e   : > { %v7346_v46 = vpack.c.bf16 %v7729_v10, %v7728_v15 }
 0xc10   : > { %7347 = vmatprep.subr.bf16.mxu1 %v7346_v46 }
 0xc11   : > { %4715 = vrot.lane.b32.xlu1 %v4676_v38, %s8525_s27  ;;  %7349 = vmatpush3.bf16.msra.mxu1 %v7346_v46 }
 0xc12   : > { %v8234_v57 = vpop.eup %8233 }
 0xc13   : > { %v3970_v53 = vmul.f32 %v8234_v57, %v12190_v2  ;;  %v8236_v13 = vpop.eup %8235 }
 0xc14   : > { %v4508_v51 = vmul.f32 %v8236_v13, %v12192_v45 }
 0xc15   : > { %4888 = vrot.lane.b32.xlu1 %v4678_v23, %s8525_s27  ;;  %6848 = vmatmul.mubr.msk.f32.gmra.mrb[54].mxu0 %vm1343_vm2, %v3970_v53 }
 0xc16   : > { %v4668_v3 = vadd.f32 %v11119_v55, %v4508_v51 }
 0xc18   : > { %v4684_v33 = vmul.f32 %v11134_v50, %v4668_v3 }
 0xc19   : > { %4892 = vrot.lane.b32.xlu1 %v4680_v47, %s8525_s27 }
 0xc1d   : > { %4896 = vrot.lane.b32.xlu1 %v4682_v29, %s8525_s27 }
 0xc21   : > { %4900 = vrot.lane.b32.xlu1 %v4684_v33, %s8525_s27 }
 0xc23   : > { %v3925_v60 = vpop.xlane.xlu0 %3924 }
 0xc24   : > { %8237 = vrcp.f32 %v3925_v60 }
 0xc27   : > { %v3934_v20 = vpop.xlane.xlu0 %3933 }
 0xc2b   : > { %v3937_v24 = vpop.xlane.xlu0 %3936 }
 0xc2e   : > { %v8238_v26 = vpop.eup %8237 }
 0xc2f   : > { %v7737_v48 = vpop.permute.xlu0 %7736  ;;  %v3971_v41 = vmul.f32 %v8238_v26, %v11041_v21 }
 0xc30   : > { %v7739_v9 = vunpack.i.h.bf16 %v7737_v48  ;;  %v7738_v6 = vunpack.i.l.bf16 %v7737_v48 }
 0xc31   : > { %6866 = vmatprep.mubr.msk.f32.mxu1 %vm1343_vm2, %v3971_v41 }
 0xc32   : > { %v7362_v27 = vpack.c.bf16 %v7739_v9, %v7738_v6 }
 0xc34   : > { %7364 = vmatprep.subr.msk.bf16.mxu0 %vm9151_vm1, %v7362_v27 }
 0xc35   : > { %7367 = vmatpush3.bf16.xpose.msk.msra.mxu0 %vm9151_vm1, %v7362_v27 }
 0xc3c   : > { %v3928_v55 = vpop.xlane.xlu1 %3927 }
 0xc3d   : > { %8239 = vrcp.f32 %v3928_v55 }
 0xc3e   : > { %8241 = vrcp.f32 %v3934_v20 }
 0xc3f   : > { %8243 = vrcp.f32 %v3937_v24 }
 0xc40   : > { %v3931_v50 = vpop.xlane.xlu1 %3930 }
 0xc41   : > { %8245 = vrcp.f32 %v3931_v50 }
 0xc44   : > { %v3940_v16 = vpop.xlane.xlu1 %3939 }
 0xc45   : > { %8247 = vrcp.f32 %v3940_v16 }
 0xc47   : > { %v8240_v21 = vpop.eup %8239 }
 0xc48   : > { %v3972_v61 = vmul.f32 %v8240_v21, %v11062_v0  ;;  %v7742_v37 = vpop.permute.xlu1 %7741  ;;  %v8242_v52 = vpop.eup %8241 }
 0xc49   : > { %v7744_v59 = vunpack.i.h.bf16 %v7742_v37  ;;  %v7743_v17 = vunpack.i.l.bf16 %v7742_v37  ;;  %v8244_v28 = vpop.eup %8243  ;;  %v3974_v36 = vmul.f32 %v8242_v52, %v12193_v40  ;;  %v4688_v52 = vld [vmem:[#allocation8 + $0xc8] sm:$0xff]  ;;  %v4690_v40 = vld [vmem:[#allocation8 + $0xd8] sm:$0xff] }
 0xc4a   : > { %6867 = vmatmul.mubr.msk.f32.vlgmr.msra.gmra.mrb[80].mxu1 %vm1343_vm2, %v3972_v61  ;;  %v3975_v0 = vmul.f32 %v8244_v28, %v11051_v7 }
 0xc4b   : > { %v8246_v5 = vpop.eup %8245  ;;  %v7374_v25 = vpack.c.bf16 %v7744_v59, %v7743_v17  ;;  %v4687_v59 = vld [vmem:[#allocation8 + $0xc0] sm:$0xff] }
 0xc4c   : > { %v3973_v32 = vmul.f32 %v8246_v5, %v11064_v56 }
 0xc4d   : > { %7376 = vmatprep.subr.msk.bf16.mxu1 %vm9151_vm1, %v7374_v25 }
 0xc4e   : > { %6869 = vmatprep.mubr.msk.f32.mxu1 %vm1343_vm2, %v3973_v32  ;;  %7379 = vmatpush3.bf16.xpose.msk.msra.mxu1 %vm9151_vm1, %v7374_v25 }
 0xc4f   : > { %v8248_v1 = vpop.eup %8247  ;;  %6870 = vmatmul.mubr.msk.f32.gmra.mrb[82].mxu1 %vm1343_vm2, %v3974_v36 }
 0xc50   : > { %6872 = vmatprep.mubr.msk.f32.mxu1 %vm1343_vm2, %v3975_v0  ;;  %v3976_v8 = vmul.f32 %v8248_v1, %v11072_v31  ;;  %v4689_v1 = vld [vmem:[#allocation8 + $0xd0] sm:$0xff] }
 0xc53   : > { %6873 = vmatmul.mubr.msk.f32.gmra.mrb[84].mxu1 %vm1343_vm2, %v3976_v8 }
 0xc60   : > { %v3946_v56 = vpop.xlane.xlu0 %3945 }
 0xc61   : > { %8249 = vrcp.f32 %v3946_v56 }
 0xc64   : > { %v7747_v63 = vpop.permute.xlu0 %7746 }
 0xc65   : > { %v7749_v44 = vunpack.i.h.bf16 %v7747_v63  ;;  %v7748_v12 = vunpack.i.l.bf16 %v7747_v63 }
 0xc67   : > { %v7368_v34 = vpack.c.bf16 %v7749_v44, %v7748_v12 }
 0xc68   : > { %v4704_v18 = vpop.permute.xlu0 %4703 }
 0xc69   : > { %7370 = vmatprep.subr.msk.bf16.mxu0 %vm9151_vm1, %v7368_v34  ;;  %6894 = vmatprep.mubr.msk.f32.mxu0 %vm776_vm0, %v4704_v18 }
 0xc6a   : > { %7373 = vmatpush3.bf16.xpose.msk.msra.mxu0 %vm9151_vm1, %v7368_v34  ;;  %v4692_v34 = vld [vmem:[#allocation8 + $0xe8] sm:$0xff] }
 0xc6b   : > { %v8250_v19 = vpop.eup %8249 }
 0xc6c   : > { %v4708_v58 = vpop.permute.xlu0 %4707  ;;  %v3978_v4 = vmul.f32 %v8250_v19, %v11092_v39 }
 0xc70   : > { %v7762_v38 = vpop.permute.xlu0 %7761 }
 0xc71   : > { %v7764_v54 = vunpack.i.h.bf16 %v7762_v38  ;;  %v7763_v22 = vunpack.i.l.bf16 %v7762_v38  ;;  %v4694_v38 = vld [vmem:[#allocation8 + $0xf8] sm:$0xff] }
 0xc74   : > { %v4714_v13 = vpop.permute.xlu0 %4713 }
 0xc78   : > { %v4718_v39 = vpop.permute.xlu0 %4717 }
 0xc79   : > { %v3943_v7 = vpop.xlane.xlu1 %3942  ;;  %v11249_v30 = vpop.f32.mrb[48].mxu0 }
 0xc7a   : > { %8251 = vrcp.f32 %v3943_v7  ;;  %v11251_v31 = vpop.f32.mrb[49].mxu0 }
 0xc7c   : > { %v4891_v3 = vpop.permute.xlu0 %4890 }
 0xc7d   : > { %v7752_v62 = vpop.permute.xlu1 %7751 }
 0xc7e   : > { %v7754_v10 = vunpack.i.h.bf16 %v7752_v62  ;;  %v7753_v15 = vunpack.i.l.bf16 %v7752_v62 }
 0xc80   : > { %v7380_v46 = vpack.c.bf16 %v7754_v10, %v7753_v15  ;;  %v4895_v60 = vpop.permute.xlu0 %4894 }
 0xc81   : > { %v7757_v11 = vpop.permute.xlu1 %7756 }
 0xc82   : > { %v7759_v49 = vunpack.i.h.bf16 %v7757_v11  ;;  %v7758_v35 = vunpack.i.l.bf16 %v7757_v11  ;;  %7382 = vmatprep.subr.msk.bf16.mxu1 %vm9151_vm1, %v7380_v46 }
 0xc83   : > { %7385 = vmatpush3.bf16.xpose.msk.msra.mxu1 %vm9151_vm1, %v7380_v46 }
 0xc84   : > { %v8252_v57 = vpop.eup %8251  ;;  %v7386_v23 = vpack.c.bf16 %v7759_v49, %v7758_v35  ;;  %v4899_v26 = vpop.permute.xlu0 %4898  ;;  %v4693_v49 = vld [vmem:[#allocation8 + $0xf0] sm:$0xff] }
 0xc85   : > { %v4706_v2 = vpop.permute.xlu1 %4705  ;;  %v3977_v53 = vmul.f32 %v8252_v57, %v11123_v43  ;;  %v7392_v43 = vpack.c.bf16 %v7764_v54, %v7763_v22 }
 0xc86   : > { %6895 = vmatmul.mubr.msk.f32.vlgmr.msra.gmra.mrb[56].mxu0 %vm776_vm0, %v4706_v2  ;;  %7388 = vmatprep.subr.msk.bf16.mxu1 %vm9151_vm1, %v7386_v23 }
 0xc87   : > { %6875 = vmatprep.mubr.msk.f32.mxu1 %vm1343_vm2, %v3977_v53  ;;  %6897 = vmatprep.mubr.msk.f32.mxu0 %vm776_vm0, %v4708_v58  ;;  %v4691_v58 = vld [vmem:[#allocation8 + $0xe0] sm:$0xff] }
 0xc88   : > { %6876 = vmatmul.mubr.msk.f32.gmra.mrb[86].mxu1 %vm1343_vm2, %v3978_v4  ;;  %v4903_v14 = vpop.permute.xlu0 %4902 }
 0xc89   : > { %v4710_v47 = vpop.permute.xlu1 %4709  ;;  %v11265_v42 = vpop.f32.mrb[50].mxu0 }
 0xc8a   : > { %v11267_v45 = vpop.f32.mrb[51].mxu0  ;;  %6898 = vmatmul.mubr.msk.f32.gmra.mrb[58].mxu0 %vm776_vm0, %v4710_v47 }
 0xc8b   : > { %7391 = vmatpush3.bf16.xpose.msk.msra.mxu1 %vm9151_vm1, %v7386_v23 }
 0xc8c   : > { %7394 = vmatprep.subr.msk.bf16.mxu1 %vm9151_vm1, %v7392_v43 }
 0xc8d   : > { %v4712_v51 = vpop.permute.xlu1 %4711 }
 0xc8e   : > { %6900 = vmatprep.mubr.msk.f32.mxu0 %vm776_vm0, %v4712_v51 }
 0xc8f   : > { %6901 = vmatmul.mubr.msk.f32.gmra.mrb[60].mxu0 %vm776_vm0, %v4714_v13 }
 0xc91   : > { %v4716_v29 = vpop.permute.xlu1 %4715 }
 0xc92   : > { %6903 = vmatprep.mubr.msk.f32.mxu0 %vm776_vm0, %v4716_v29 }
 0xc93   : > { %6904 = vmatmul.mubr.msk.f32.gmra.mrb[62].mxu0 %vm776_vm0, %v4718_v39  ;;  %7397 = vmatpush3.bf16.xpose.msk.msra.mxu1 %vm9151_vm1, %v7392_v43 }
 0xc95   : > { %v4889_v33 = vpop.permute.xlu1 %4888 }
 0xc96   : > { %6922 = vmatprep.mubr.msk.f32.mxu1 %vm776_vm0, %v4889_v33 }
 0xc99   : > { %v4893_v20 = vpop.permute.xlu1 %4892 }
 0xc9a   : > { %6923 = vmatmul.mubr.msk.f32.vlgmr.msra.gmra.mrb[88].mxu1 %vm776_vm0, %v4891_v3 }
 0xc9b   : > { %6925 = vmatprep.mubr.msk.f32.mxu1 %vm776_vm0, %v4893_v20 }
 0xc9d   : > { %v4897_v24 = vpop.permute.xlu1 %4896 }
 0xc9e   : > { %6926 = vmatmul.mubr.msk.f32.gmra.mrb[90].mxu1 %vm776_vm0, %v4895_v60 }
 0xc9f   : > { %6928 = vmatprep.mubr.msk.f32.mxu1 %vm776_vm0, %v4897_v24 }
 0xca1   : > { %v4901_v48 = vpop.permute.xlu1 %4900 }
 0xca2   : > { %6929 = vmatmul.mubr.msk.f32.gmra.mrb[92].mxu1 %vm776_vm0, %v4899_v26 }
 0xca3   : > { %6931 = vmatprep.mubr.msk.f32.mxu1 %vm776_vm0, %v4901_v48 }
 0xca6   : > { %6932 = vmatmul.mubr.msk.f32.gmra.mrb[94].mxu1 %vm776_vm0, %v4903_v14 }
 0xcb3   : > { %v11288_v41 = vpop.f32.mrb[52].mxu0 }
 0xcb4   : > { %v11290_v9 = vpop.f32.mrb[53].mxu0 }
 0xce8   : > { %v11292_v6 = vpop.f32.mrb[54].mxu0 }
 0xce9   : > { %v11294_v27 = vpop.f32.mrb[55].mxu0 }
 0xd1d   : > { %v11296_v55 = vpop.f32.mrb[80].mxu1 }
 0xd1e   : > { %v11298_v50 = vpop.f32.mrb[81].mxu1 }
 0xd22   : > { %v11300_v16 = vpop.f32.mrb[82].mxu1 }
 0xd23   : > { %v11302_v21 = vpop.f32.mrb[83].mxu1 }
 0xd26   : > { %v11304_v61 = vpop.f32.mrb[84].mxu1 }
 0xd27   : > { %v11306_v37 = vpop.f32.mrb[85].mxu1 }
 0xd59   : > { %v6896_v17 = vpop.f32.mrb[56].mxu0 }
 0xd5a   : > { %v4847_v28 = vadd.f32 %v6896_v17, %v4688_v52  ;;  %v4841_v5 = vpop.f32.mrb[57].mxu0 }
 0xd5b   : > { %v4842_v25 = vadd.f32 %v4841_v5, %v4687_v59  ;;  %v11308_v32 = vpop.f32.mrb[86].mxu1 }
 0xd5c   : > { %v11310_v36 = vpop.f32.mrb[87].mxu1  ;;  %v5068_v0 = vsel %vm1343_vm2, %v4847_v28, -inf }
 0xd5d   : > { %5069 = vmax.xlane.f32.xlu0 %v5068_v0  ;;  %v6899_v8 = vpop.f32.mrb[58].mxu0  ;;  %v5065_v56 = vsel %vm1343_vm2, %v4842_v25, -inf }
 0xd5e   : > { %v4857_v63 = vadd.f32 %v6899_v8, %v4690_v40  ;;  %v4851_v44 = vpop.f32.mrb[59].mxu0  ;;  %5066 = vmax.xlane.f32.xlu1 %v5065_v56 }
 0xd5f   : > { %v4852_v12 = vadd.f32 %v4851_v44, %v4689_v1 }
 0xd60   : > { %v5074_v18 = vsel %vm1343_vm2, %v4857_v63, -inf }
 0xd61   : > { %v5071_v7 = vsel %vm1343_vm2, %v4852_v12, -inf }
 0xd62   : > { %v6902_v62 = vpop.f32.mrb[60].mxu0  ;;  %5072 = vmax.xlane.f32.xlu0 %v5071_v7  ;;  %5075 = vmax.xlane.f32.xlu1 %v5074_v18 }
 0xd63   : > { %v4867_v10 = vadd.f32 %v6902_v62, %v4692_v34  ;;  %v4861_v15 = vpop.f32.mrb[61].mxu0 }
 0xd64   : > { %v4862_v46 = vadd.f32 %v4861_v15, %v4691_v58 }
 0xd65   : > { %v5080_v11 = vsel %vm1343_vm2, %v4867_v10, -inf }
 0xd66   : > { %v6905_v35 = vpop.f32.mrb[62].mxu0  ;;  %5081 = vmax.xlane.f32.xlu1 %v5080_v11  ;;  %v5077_v19 = vsel %vm1343_vm2, %v4862_v46, -inf }
 0xd67   : > { %v4877_v57 = vadd.f32 %v6905_v35, %v4694_v38  ;;  %v4871_v23 = vpop.f32.mrb[63].mxu0  ;;  %5078 = vmax.xlane.f32.xlu0 %v5077_v19 }
 0xd68   : > { %v4872_v2 = vadd.f32 %v4871_v23, %v4693_v49 }
 0xd69   : > { %v5086_v53 = vsel %vm1343_vm2, %v4877_v57, -inf }
 0xd6a   : > { %5087 = vmax.xlane.f32.xlu1 %v5086_v53  ;;  %v5083_v54 = vsel %vm1343_vm2, %v4872_v2, -inf }
 0xd6b   : > { %5084 = vmax.xlane.f32.xlu0 %v5083_v54 }
 0xd6d   : > { %v6924_v22 = vpop.f32.mrb[88].mxu1 }
 0xd6e   : > { %v11320_v4 = vadd.f32 %v6924_v22, %v4688_v52  ;;  %v5026_v13 = vpop.f32.mrb[89].mxu1  ;;  %v12194_v52 = vld [vmem:[#allocation18_spill] sm:$0xff] }
 0xd6f   : > { %v11322_v47 = vadd.f32 %v5026_v13, %v4687_v59 }
 0xd71   : > { %v6927_v43 = vpop.f32.mrb[90].mxu1 }
 0xd72   : > { %v11324_v39 = vadd.f32 %v6927_v43, %v4690_v40  ;;  %v5036_v51 = vpop.f32.mrb[91].mxu1 }
 0xd73   : > { %v11326_v29 = vadd.f32 %v5036_v51, %v4689_v1 }
 0xd75   : > { %v6930_v3 = vpop.f32.mrb[92].mxu1 }
 0xd76   : > { %v11328_v33 = vadd.f32 %v6930_v3, %v4692_v34  ;;  %v5046_v60 = vpop.f32.mrb[93].mxu1 }
 0xd77   : > { %v11330_v20 = vadd.f32 %v5046_v60, %v4691_v58 }
 0xd79   : > { %v6933_v24 = vpop.f32.mrb[94].mxu1 }
 0xd7a   : > { %v11332_v26 = vadd.f32 %v6933_v24, %v4694_v38  ;;  %v5056_v48 = vpop.f32.mrb[95].mxu1 }
 0xd7b   : > { %v11334_v14 = vadd.f32 %v5056_v48, %v4693_v49 }
 0xd81   : > { %7766 = vrot.lane.b32.xlu0 %v12194_v52, %s8525_s27 }
 0xdea   : > { %v5070_v59 = vpop.xlane.xlu0 %5069 }
 0xdeb   : > { %v5114_v17 = vsub.f32 %v4847_v28, %v5070_v59  ;;  %v5067_v5 = vpop.xlane.xlu1 %5066 }
 0xdec   : > { %v5113_v40 = vsub.f32 %v4842_v25, %v5067_v5  ;;  %v5089_v5 = vsel %vm1343_vm2, %v11322_v47, -inf }
 0xded   : > { %v5131_v0 = vmul.f32 1.442695, %v5114_v17 }
 0xdee   : > { %v5129_v1 = vmul.f32 1.442695, %v5113_v40 }
 0xdef   : > { %8253 = vpow2.f32 %v5131_v0  ;;  %v5073_v8 = vpop.xlane.xlu0 %5072  ;;  %v5076_v56 = vpop.xlane.xlu1 %5075 }
 0xdf0   : > { %8255 = vpow2.f32 %v5129_v1  ;;  %v5115_v44 = vsub.f32 %v4852_v12, %v5073_v8  ;;  %v5116_v34 = vsub.f32 %v4857_v63, %v5076_v56  ;;  %v5095_v1 = vsel %vm1343_vm2, %v11326_v29, -inf }
 0xdf1   : > { %v5101_v8 = vsel %vm1343_vm2, %v11330_v20, -inf  ;;  %v5107_v56 = vsel %vm1343_vm2, %v11334_v14, -inf }
 0xdf2   : > { %v5133_v18 = vmul.f32 1.442695, %v5115_v44  ;;  %v5135_v7 = vmul.f32 1.442695, %v5116_v34  ;;  %v12195_v44 = vld [vmem:[#allocation86_spill] sm:$0xff]  ;;  %v12196_v34 = vld [vmem:[#allocation87_spill] sm:$0xff] }
 0xdf3   : > { %v5082_v58 = vpop.xlane.xlu1 %5081 }
 0xdf4   : > { %8257 = vpow2.f32 %v5133_v18  ;;  %v5118_v62 = vsub.f32 %v4867_v10, %v5082_v58  ;;  %v5079_v15 = vpop.xlane.xlu0 %5078  ;;  %v5092_v18 = vsel %vm1343_vm2, %v11320_v4, -inf  ;;  %v5104_v58 = vsel %vm1343_vm2, %v11328_v33, -inf }
 0xdf5   : > { %8259 = vpow2.f32 %v5135_v7  ;;  %v5117_v38 = vsub.f32 %v4862_v46, %v5079_v15  ;;  %v5098_v7 = vsel %vm1343_vm2, %v11324_v39, -inf  ;;  %v12197_v15 = vld [vmem:[#allocation88_spill] sm:$0xff] }
 0xdf6   : > { %v5139_v11 = vmul.f32 1.442695, %v5118_v62  ;;  %v5110_v62 = vsel %vm1343_vm2, %v11332_v26, -inf }
 0xdf7   : > { %v5137_v28 = vmul.f32 1.442695, %v5117_v38  ;;  %v5088_v49 = vpop.xlane.xlu1 %5087 }
 0xdf8   : > { %8261 = vpow2.f32 %v5139_v11  ;;  %v5120_v25 = vsub.f32 %v4877_v57, %v5088_v49  ;;  %v5085_v35 = vpop.xlane.xlu0 %5084 }
 0xdf9   : > { %v11338_v19 = vpop.eup %8253  ;;  %8263 = vpow2.f32 %v5137_v28  ;;  %v5119_v23 = vsub.f32 %v4872_v2, %v5085_v35 }
 0xdfa   : > { %v8256_v12 = vpop.eup %8255  ;;  %v5143_v63 = vmul.f32 1.442695, %v5120_v25  ;;  %v5164_v53 = vsel %vm1343_vm2, %v11338_v19, 0.0 }
 0xdfb   : > { %v5141_v54 = vmul.f32 1.442695, %v5119_v23  ;;  %5165 = vadd.xlane.f32.xlu1 %v5164_v53  ;;  %v5161_v10 = vsel %vm1343_vm2, %v8256_v12, 0.0 }
 0xdfc   : > { %8265 = vpow2.f32 %v5143_v63  ;;  %v7767_v46 = vpop.permute.xlu0 %7766  ;;  %5162 = vadd.xlane.f32.xlu0 %v5161_v10 }
 0xdfd   : > { %v7769_v22 = vunpack.i.h.bf16 %v7767_v46  ;;  %v7768_v13 = vunpack.i.l.bf16 %v7767_v46  ;;  %8267 = vpow2.f32 %v5141_v54 }
 0xdfe   : > { %v11343_v57 = vpop.eup %8257 }
 0xdff   : > { %v11345_v43 = vpop.eup %8259  ;;  %v7398_v2 = vpack.c.bf16 %v7769_v22, %v7768_v13  ;;  %v5167_v51 = vsel %vm1343_vm2, %v11343_v57, 0.0 }
 0xe00   : > { %5168 = vadd.xlane.f32.xlu0 %v5167_v51  ;;  %v5170_v3 = vsel %vm1343_vm2, %v11345_v43, 0.0 }
 0xe01   : > { %5171 = vadd.xlane.f32.xlu1 %v5170_v3  ;;  %7399 = vmatprep.subr.bf16.mxu0 %v7398_v2 }
 0xe02   : > { %v11351_v60 = vpop.eup %8261  ;;  %7401 = vmatpush3.bf16.msra.mxu0 %v7398_v2 }
 0xe03   : > { %v11353_v24 = vpop.eup %8263  ;;  %v5176_v48 = vsel %vm1343_vm2, %v11351_v60, 0.0 }
 0xe04   : > { %v5173_v52 = vsel %vm1343_vm2, %v11353_v24, 0.0 }
 0xe05   : > { %5177 = vadd.xlane.f32.xlu1 %v5176_v48  ;;  %5174 = vadd.xlane.f32.xlu0 %v5173_v52 }
 0xe06   : > { %v11359_v59 = vpop.eup %8265 }
 0xe07   : > { %v5182_v17 = vsel %vm1343_vm2, %v11359_v59, 0.0  ;;  %v11365_v40 = vpop.eup %8267 }
 0xe08   : > { %v5179_v0 = vsel %vm1343_vm2, %v11365_v40, 0.0 }
 0xe09   : > { %5183 = vadd.xlane.f32.xlu1 %v5182_v17  ;;  %5090 = vmax.xlane.f32.xlu0 %v5089_v5 }
 0xe0d   : > { %5180 = vadd.xlane.f32.xlu1 %v5179_v0  ;;  %5096 = vmax.xlane.f32.xlu0 %v5095_v1 }
 0xe11   : > { %5102 = vmax.xlane.f32.xlu0 %v5101_v8 }
 0xe15   : > { %5108 = vmax.xlane.f32.xlu0 %v5107_v56 }
 0xe1e   : > { %7771 = vrot.lane.b32.xlu1 %v12195_v44, %s8525_s27 }
 0xe2b   : > { %7776 = vrot.lane.b32.xlu0 %v12196_v34, %s8525_s27 }
 0xe42   : > { %5093 = vmax.xlane.f32.xlu1 %v5092_v18  ;;  %v12198_v18 = vld [vmem:[#allocation89_spill] sm:$0xff] }
 0xe46   : > { %5099 = vmax.xlane.f32.xlu1 %v5098_v7 }
 0xe4a   : > { %5105 = vmax.xlane.f32.xlu1 %v5104_v58 }
 0xe4e   : > { %5111 = vmax.xlane.f32.xlu1 %v5110_v62 }
 0xe5f   : > { %7781 = vrot.lane.b32.xlu1 %v12197_v15, %s8525_s27 }
 0xe88   : > { %v5166_v38 = vpop.xlane.xlu1 %5165 }
 0xe89   : > { %v5163_v11 = vpop.xlane.xlu0 %5162 }
 0xe8a   : > { %8269 = vrcp.f32 %v5163_v11 }
 0xe8d   : > { %v5169_v28 = vpop.xlane.xlu0 %5168 }
 0xe8e   : > { %v5172_v49 = vpop.xlane.xlu1 %5171 }
 0xe92   : > { %v11389_v25 = vpop.xlane.xlu1 %5177  ;;  %v5175_v35 = vpop.xlane.xlu0 %5174 }
 0xe94   : > { %v8270_v23 = vpop.eup %8269 }
 0xe95   : > { %v5225_v63 = vmul.f32 %v8270_v23, %v8256_v12 }
 0xe96   : > { %v11391_v53 = vpop.xlane.xlu1 %5183  ;;  %v5091_v54 = vpop.xlane.xlu0 %5090 }
 0xe97   : > { %v5121_v10 = vsub.f32 %v11322_v47, %v5091_v54  ;;  %6950 = vmatprep.mubr.msk.f32.mxu0 %vm1343_vm2, %v5225_v63 }
 0xe99   : > { %v5145_v46 = vmul.f32 1.442695, %v5121_v10 }
 0xe9a   : > { %v5181_v22 = vpop.xlane.xlu1 %5180  ;;  %v5097_v13 = vpop.xlane.xlu0 %5096 }
 0xe9b   : > { %8271 = vpow2.f32 %v5145_v46  ;;  %v5123_v62 = vsub.f32 %v11326_v29, %v5097_v13 }
 0xe9d   : > { %v5149_v63 = vmul.f32 1.442695, %v5123_v62  ;;  %v12200_v62 = vld [vmem:[#allocation91_spill] sm:$0xff] }
 0xe9e   : > { %v7772_v2 = vpop.permute.xlu1 %7771  ;;  %v5103_v51 = vpop.xlane.xlu0 %5102 }
 0xe9f   : > { %v7774_v3 = vunpack.i.h.bf16 %v7772_v2  ;;  %v7773_v48 = vunpack.i.l.bf16 %v7772_v2  ;;  %v5125_v52 = vsub.f32 %v11330_v20, %v5103_v51 }
 0xea1   : > { %v7402_v17 = vpack.c.bf16 %v7774_v3, %v7773_v48  ;;  %v5153_v5 = vmul.f32 1.442695, %v5125_v52 }
 0xea2   : > { %v11396_v12 = vpop.xlane.xlu0 %5108 }
 0xea3   : > { %8273 = vpow2.f32 %v5153_v5  ;;  %7403 = vmatprep.subr.bf16.mxu0 %v7402_v17 }
 0xea4   : > { %7405 = vmatpush3.bf16.msra.mxu0 %v7402_v17 }
 0xea5   : > { %v11398_v47 = vpop.eup %8271 }
 0xea6   : > { %v7777_v0 = vpop.permute.xlu0 %7776  ;;  %v5185_v1 = vsel %vm1343_vm2, %v11398_v47, 0.0 }
 0xea7   : > { %v7779_v8 = vunpack.i.h.bf16 %v7777_v0  ;;  %v7778_v56 = vunpack.i.l.bf16 %v7777_v0  ;;  %5186 = vadd.xlane.f32.xlu0 %v5185_v1 }
 0xea9   : > { %v7406_v44 = vpack.c.bf16 %v7779_v8, %v7778_v56 }
 0xeab   : > { %7407 = vmatprep.subr.bf16.mxu0 %v7406_v44 }
 0xeac   : > { %7409 = vmatpush3.bf16.msra.mxu0 %v7406_v44 }
 0xead   : > { %v11402_v20 = vpop.eup %8273 }
 0xeae   : > { %v5197_v34 = vsel %vm1343_vm2, %v11402_v20, 0.0 }
 0xeaf   : > { %5198 = vadd.xlane.f32.xlu0 %v5197_v34 }
 0xec5   : > { %7786 = vrot.lane.b32.xlu0 %v12198_v18, %s8525_s27 }
 0xecf   : > { %v5094_v7 = vpop.xlane.xlu1 %5093 }
 0xed0   : > { %v5122_v58 = vsub.f32 %v11320_v4, %v5094_v7 }
 0xed2   : > { %v5147_v15 = vmul.f32 1.442695, %v5122_v58 }
 0xed3   : > { %v5100_v11 = vpop.xlane.xlu1 %5099 }
 0xed4   : > { %8275 = vpow2.f32 %v5147_v15  ;;  %v5124_v23 = vsub.f32 %v11324_v39, %v5100_v11  ;;  %v12207_v11 = vld [vmem:[#allocation92_spill] sm:$0xff] }
 0xed5   : > { %8277 = vrcp.f32 %v5166_v38 }
 0xed6   : > { %v5151_v54 = vmul.f32 1.442695, %v5124_v23  ;;  %v12208_v23 = vld [vmem:[#allocation57_spill] sm:$0xff] }
 0xed7   : > { %v5106_v10 = vpop.xlane.xlu1 %5105 }
 0xed8   : > { %8279 = vpow2.f32 %v5151_v54  ;;  %v5126_v46 = vsub.f32 %v11328_v33, %v5106_v10 }
 0xed9   : > { %8281 = vrcp.f32 %v5169_v28 }
 0xeda   : > { %8283 = vpow2.f32 %v5149_v63  ;;  %v5155_v2 = vmul.f32 1.442695, %v5126_v46  ;;  %v12209_v63 = vld [vmem:[#allocation69_spill] sm:$0xff] }
 0xedb   : > { %v5112_v51 = vpop.xlane.xlu1 %5111  ;;  %8285 = vrcp.f32 %v5172_v49 }
 0xedc   : > { %v5128_v4 = vsub.f32 %v11332_v26, %v5112_v51  ;;  %8287 = vpow2.f32 %v5155_v2  ;;  %v12210_v51 = vld [vmem:[#allocation93_spill] sm:$0xff] }
 0xedd   : > { %8289 = vrcp.f32 %v5175_v35 }
 0xede   : > { %v11413_v29 = vpop.eup %8275  ;;  %v5159_v13 = vmul.f32 1.442695, %v5128_v4  ;;  %v12211_v4 = vld [vmem:[#allocation60_spill] sm:$0xff] }
 0xedf   : > { %v7782_v39 = vpop.permute.xlu1 %7781  ;;  %v5188_v38 = vsel %vm1343_vm2, %v11413_v29, 0.0  ;;  %v8278_v33 = vpop.eup %8277 }
 0xee0   : > { %8291 = vpow2.f32 %v5159_v13  ;;  %v7784_v3 = vunpack.i.h.bf16 %v7782_v39  ;;  %v7783_v48 = vunpack.i.l.bf16 %v7782_v39  ;;  %5189 = vadd.xlane.f32.xlu1 %v5188_v38  ;;  %v5226_v17 = vmul.f32 %v8278_v33, %v11338_v19  ;;  %v12214_v13 = vld [vmem:[#allocation111_spill] sm:$0xff]  ;;  %v12216_v38 = vld [vmem:[#allocation101_spill] sm:$0xff]  ;;  %v5644_v33 = vld [vmem:[#allocation9] sm:$0xff] }
 0xee1   : > { %8293 = vrcp.f32 %v11389_v25 }
 0xee2   : > { %v11417_v28 = vpop.eup %8279  ;;  %v7410_v26 = vpack.c.bf16 %v7784_v3, %v7783_v48  ;;  %8295 = vrcp.f32 %v5181_v22  ;;  %v12217_v48 = vld [vmem:[#allocation105_spill] sm:$0xff] }
 0xee3   : > { %v8282_v49 = vpop.eup %8281  ;;  %v5194_v52 = vsel %vm1343_vm2, %v11417_v28, 0.0  ;;  %8297 = vrcp.f32 %v11391_v53 }
 0xee4   : > { %v11422_v35 = vpop.eup %8283  ;;  %5195 = vadd.xlane.f32.xlu1 %v5194_v52  ;;  %7411 = vmatprep.subr.bf16.mxu0 %v7410_v26  ;;  %v5227_v25 = vmul.f32 %v8282_v49, %v11343_v57  ;;  %v5647_v52 = vld [vmem:[#allocation9 + $0x18] sm:$0xff] }
 0xee5   : > { %7413 = vmatpush3.bf16.msra.mxu0 %v7410_v26  ;;  %v8286_v5 = vpop.eup %8285  ;;  %v5191_v0 = vsel %vm1343_vm2, %v11422_v35, 0.0  ;;  %v5645_v26 = vld [vmem:[#allocation9 + $0x8] sm:$0xff] }
 0xee6   : > { %v11429_v1 = vpop.eup %8287  ;;  %v5228_v56 = vmul.f32 %v8286_v5, %v11345_v43  ;;  %v7430_v49 = vpack.c.bf16 %v5645_v26, %v5644_v33 }
 0xee7   : > { %v8290_v22 = vpop.eup %8289  ;;  %v5200_v19 = vsel %vm1343_vm2, %v11429_v1, 0.0 }
 0xee8   : > { %5192 = vadd.xlane.f32.xlu1 %v5191_v0  ;;  %6951 = vmatmul.mubr.msk.f32.vlgmr.msra.gmra.mrb[64].mxu0 %vm1343_vm2, %v5226_v17  ;;  %v5229_v57 = vmul.f32 %v8290_v22, %v11353_v24  ;;  %v12199_v24 = vld [vmem:[#allocation90_spill] sm:$0xff]  ;;  %v5649_v22 = vld [vmem:[#allocation9 + $0x28] sm:$0xff] }
 0xee9   : > { %6953 = vmatprep.mubr.msk.f32.mxu0 %vm1343_vm2, %v5227_v25  ;;  %v5648_v25 = vld [vmem:[#allocation9 + $0x20] sm:$0xff]  ;;  %7431 = vmatprep.subr.bf16.mxu0 %v7430_v49 }
 0xeea   : > { %v11433_v8 = vpop.eup %8291  ;;  %7433 = vmatpush3.bf16.msra.mxu0 %v7430_v49 }
 0xeeb   : > { %v5206_v53 = vsel %vm1343_vm2, %v11433_v8, 0.0  ;;  %v8294_v44 = vpop.eup %8293 }
 0xeec   : > { %5201 = vadd.xlane.f32.xlu1 %v5200_v19  ;;  %5207 = vadd.xlane.f32.xlu0 %v5206_v53  ;;  %v8296_v34 = vpop.eup %8295  ;;  %v5230_v18 = vmul.f32 %v8294_v44, %v11351_v60  ;;  %v12201_v60 = vld [vmem:[#allocation55_spill] sm:$0xff] }
 0xeed   : > { %6954 = vmatmul.mubr.msk.f32.gmra.mrb[66].mxu0 %vm1343_vm2, %v5228_v56  ;;  %v8298_v7 = vpop.eup %8297  ;;  %v5231_v58 = vmul.f32 %v8296_v34, %v11365_v40  ;;  %v12202_v40 = vld [vmem:[#allocation95_spill] sm:$0xff]  ;;  %v7438_v56 = vpack.c.bf16 %v5649_v22, %v5648_v25  ;;  %v5650_v34 = vld [vmem:[#allocation9 + $0x30] sm:$0xff] }
 0xeee   : > { %6956 = vmatprep.mubr.msk.f32.mxu0 %vm1343_vm2, %v5229_v57  ;;  %v5232_v43 = vmul.f32 %v8298_v7, %v11359_v59  ;;  %v5127_v59 = vsub.f32 %v11334_v14, %v11396_v12 }
 0xef0   : > { %v5157_v15 = vmul.f32 1.442695, %v5127_v59  ;;  %v5653_v59 = vld [vmem:[#allocation9 + $0x48] sm:$0xff] }
 0xef1   : > { %6957 = vmatmul.mubr.msk.f32.gmra.mrb[68].mxu0 %vm1343_vm2, %v5230_v18  ;;  %v5651_v18 = vld [vmem:[#allocation9 + $0x38] sm:$0xff] }
 0xef2   : > { %6959 = vmatprep.mubr.msk.f32.mxu0 %vm1343_vm2, %v5231_v58  ;;  %8299 = vpow2.f32 %v5157_v15 }
 0xef5   : > { %6960 = vmatmul.mubr.msk.f32.gmra.mrb[70].mxu0 %vm1343_vm2, %v5232_v43 }
 0xefd   : > { %7791 = vrot.lane.b32.xlu1 %v12199_v24, %s8525_s27  ;;  %v7442_v24 = vpack.c.bf16 %v5651_v18, %v5650_v34 }
 0xf01   : > { %7796 = vrot.lane.b32.xlu1 %v12200_v62, %s8525_s27 }
 0xf02   : > { %4301 = vrot.lane.b32.xlu0 %v11251_v31, %s8524_s12  ;;  %v12203_v31 = vld [vmem:[#allocation107_spill] sm:$0xff] }
 0xf06   : > { %4305 = vrot.lane.b32.xlu0 %v11267_v45, %s8524_s12  ;;  %v11471_v45 = vpop.eup %8299 }
 0xf07   : > { %v5203_v14 = vsel %vm1343_vm2, %v11471_v45, 0.0 }
 0xf0a   : > { %3047 = vrot.lane.b32.xlu0 %v12201_v60, %s8525_s27  ;;  %v5652_v60 = vld [vmem:[#allocation9 + $0x40] sm:$0xff] }
 0xf0e   : > { %4309 = vrot.lane.b32.xlu0 %v11290_v9, %s8524_s12  ;;  %v12204_v9 = vld [vmem:[#allocation108_spill] sm:$0xff] }
 0xf12   : > { %3051 = vrot.lane.b32.xlu0 %v12202_v40, %s8525_s27  ;;  %v7446_v40 = vpack.c.bf16 %v5653_v59, %v5652_v60 }
 0xf16   : > { %4313 = vrot.lane.b32.xlu0 %v11294_v27, %s8524_s12  ;;  %v12205_v27 = vld [vmem:[#allocation100_spill] sm:$0xff] }
 0xf1a   : > { %3055 = vrot.lane.b32.xlu0 %v12203_v31, %s8525_s27 }
 0xf1e   : > { %4317 = vrot.lane.b32.xlu0 %v11298_v50, %s8524_s12  ;;  %v12206_v50 = vld [vmem:[#allocation96_spill] sm:$0xff] }
 0xf22   : > { %3059 = vrot.lane.b32.xlu0 %v12204_v9, %s8525_s27 }
 0xf25   : > { %5204 = vadd.xlane.f32.xlu1 %v5203_v14 }
 0xf26   : > { %4321 = vrot.lane.b32.xlu0 %v11302_v21, %s8524_s12 }
 0xf2a   : > { %3063 = vrot.lane.b32.xlu0 %v12205_v27, %s8525_s27 }
 0xf2e   : > { %4325 = vrot.lane.b32.xlu0 %v11306_v37, %s8524_s12 }
 0xf32   : > { %3067 = vrot.lane.b32.xlu0 %v12206_v50, %s8525_s27 }
 0xf34   : > { %v5187_v12 = vpop.xlane.xlu0 %5186 }
 0xf35   : > { %8301 = vrcp.f32 %v5187_v12 }
 0xf36   : > { %7801 = vrot.lane.b32.xlu1 %v12207_v11, %s8525_s27  ;;  %4329 = vrot.lane.b32.xlu0 %v11310_v36, %s8524_s12 }
 0xf3a   : > { %3039 = vrot.lane.b32.xlu1 %v12208_v23, %s8525_s27 }
 0xf3c   : > { %v11491_v21 = vpop.xlane.xlu0 %5198 }
 0xf3e   : > { %3041 = vrot.lane.b32.xlu1 %v12209_v63, %s8525_s27 }
 0xf3f   : > { %v8302_v37 = vpop.eup %8301 }
 0xf40   : > { %v7787_v54 = vpop.permute.xlu0 %7786  ;;  %v5233_v10 = vmul.f32 %v8302_v37, %v11398_v47  ;;  %v12212_v47 = vld [vmem:[#allocation94_spill] sm:$0xff]  ;;  %v5654_v37 = vld [vmem:[#allocation9 + $0x50] sm:$0xff] }
 0xf41   : > { %v7789_v46 = vunpack.i.h.bf16 %v7787_v54  ;;  %v7788_v2 = vunpack.i.l.bf16 %v7787_v54  ;;  %v5655_v54 = vld [vmem:[#allocation9 + $0x58] sm:$0xff] }
 0xf42   : > { %4303 = vrot.lane.b32.xlu1 %v11249_v30, %s8524_s12  ;;  %6978 = vmatprep.mubr.msk.f32.mxu1 %vm1343_vm2, %v5233_v10  ;;  %v12213_v30 = vld [vmem:[#allocation110_spill] sm:$0xff]  ;;  %v7450_v10 = vpack.c.bf16 %v5655_v54, %v5654_v37 }
 0xf43   : > { %v7414_v36 = vpack.c.bf16 %v7789_v46, %v7788_v2 }
 0xf45   : > { %7415 = vmatprep.subr.bf16.mxu1 %v7414_v36 }
 0xf46   : > { %3043 = vrot.lane.b32.xlu1 %v12210_v51, %s8525_s27  ;;  %7417 = vmatpush3.bf16.msra.mxu1 %v7414_v36  ;;  %v5656_v36 = vld [vmem:[#allocation9 + $0x60] sm:$0xff]  ;;  %v5657_v51 = vld [vmem:[#allocation9 + $0x68] sm:$0xff] }
 0xf4a   : > { %3045 = vrot.lane.b32.xlu1 %v12211_v4, %s8525_s27  ;;  %v7454_v4 = vpack.c.bf16 %v5657_v51, %v5656_v36 }
 0xf4e   : > { %4307 = vrot.lane.b32.xlu1 %v11265_v42, %s8524_s12  ;;  %v12215_v42 = vld [vmem:[#allocation109_spill] sm:$0xff] }
 0xf52   : > { %3049 = vrot.lane.b32.xlu1 %v12212_v47, %s8525_s27 }
 0xf56   : > { %4311 = vrot.lane.b32.xlu1 %v11288_v41, %s8524_s12 }
 0xf5a   : > { %3053 = vrot.lane.b32.xlu1 %v12213_v30, %s8525_s27  ;;  %v5658_v30 = vld [vmem:[#allocation9 + $0x70] sm:$0xff] }
 0xf5e   : > { %4315 = vrot.lane.b32.xlu1 %v11292_v6, %s8524_s12 }
 0xf62   : > { %3057 = vrot.lane.b32.xlu1 %v12214_v13, %s8525_s27  ;;  %v5659_v13 = vld [vmem:[#allocation9 + $0x78] sm:$0xff] }
 0xf66   : > { %4319 = vrot.lane.b32.xlu1 %v11296_v55, %s8524_s12 }
 0xf6a   : > { %3061 = vrot.lane.b32.xlu1 %v12215_v42, %s8525_s27 }
 0xf6d   : > { %v11519_v39 = vpop.xlane.xlu1 %5189 }
 0xf6e   : > { %4323 = vrot.lane.b32.xlu1 %v11300_v16, %s8524_s12  ;;  %v5646_v16 = vld [vmem:[#allocation9 + $0x10] sm:$0xff]  ;;  %8303 = vrcp.f32 %v11519_v39 }
 0xf6f   : > { %v7434_v0 = vpack.c.bf16 %v5647_v52, %v5646_v16 }
 0xf71   : > { %v11523_v41 = vpop.xlane.xlu1 %5195  ;;  %7435 = vmatprep.subr.bf16.mxu0 %v7434_v0 }
 0xf72   : > { %3065 = vrot.lane.b32.xlu1 %v12216_v38, %s8525_s27  ;;  %7437 = vmatpush3.bf16.msra.mxu0 %v7434_v0  ;;  %v7458_v38 = vpack.c.bf16 %v5659_v13, %v5658_v30 }
 0xf73   : > { %7439 = vmatprep.subr.bf16.mxu0 %v7438_v56 }
 0xf75   : > { %v11527_v6 = vpop.xlane.xlu1 %5192 }
 0xf76   : > { %4327 = vrot.lane.b32.xlu1 %v11304_v61, %s8524_s12  ;;  %7441 = vmatpush3.bf16.msra.mxu0 %v7438_v56  ;;  %8305 = vrcp.f32 %v11527_v6 }
 0xf77   : > { %7443 = vmatprep.subr.bf16.mxu0 %v7442_v24  ;;  %8307 = vrcp.f32 %v11523_v41 }
 0xf78   : > { %8309 = vrcp.f32 %v11491_v21 }
 0xf79   : > { %v11531_v3 = vpop.xlane.xlu0 %5207  ;;  %v11533_v55 = vpop.xlane.xlu1 %5201 }
 0xf7a   : > { %3069 = vrot.lane.b32.xlu1 %v12217_v48, %s8525_s27  ;;  %7445 = vmatpush3.bf16.msra.mxu0 %v7442_v24  ;;  %8311 = vrcp.f32 %v11533_v55  ;;  %v8304_v48 = vpop.eup %8303  ;;  %s8442_s27 = sshll.u32 %s8526_s18, 4  ;;  %s8443_s27 = int_to_ptr.vmem [resolvable:$false] %s8442_s27 }
 0xf7b   : > { %7447 = vmatprep.subr.bf16.mxu0 %v7446_v40  ;;  %v5234_v55 = vmul.f32 %v8304_v48, %v11413_v29  ;;  %s8444_s10 = scalar_lea.vmem %s8443_s27, 4096 }
 0xf7d   : > { %v11537_v17 = vpop.permute.xlu0 %4301  ;;  %v7792_v5 = vpop.permute.xlu1 %7791 }
 0xf7e   : > { %v7794_v19 = vunpack.i.h.bf16 %v7792_v5  ;;  %v7793_v61 = vunpack.i.l.bf16 %v7792_v5  ;;  %7449 = vmatpush3.bf16.msra.mxu0 %v7446_v40 }
 0xf7f   : > { %7451 = vmatprep.subr.bf16.mxu0 %v7450_v10 }
 0xf80   : > { %v7418_v53 = vpack.c.bf16 %v7794_v19, %v7793_v61  ;;  %v8306_v26 = vpop.eup %8305 }
 0xf81   : > { %v11539_v44 = vpop.permute.xlu0 %4305  ;;  %v7797_v57 = vpop.permute.xlu1 %7796  ;;  %v5235_v52 = vmul.f32 %v8306_v26, %v11422_v35 }
 0xf82   : > { %v7799_v7 = vunpack.i.h.bf16 %v7797_v57  ;;  %v7798_v58 = vunpack.i.l.bf16 %v7797_v57  ;;  %7419 = vmatprep.subr.bf16.mxu1 %v7418_v53  ;;  %7453 = vmatpush3.bf16.msra.mxu0 %v7450_v10  ;;  %v8308_v16 = vpop.eup %8307 }
 0xf83   : > { %7421 = vmatpush3.bf16.msra.mxu1 %v7418_v53  ;;  %7455 = vmatprep.subr.bf16.mxu0 %v7454_v4  ;;  %v8310_v5 = vpop.eup %8309 }
 0xf84   : > { %v7422_v43 = vpack.c.bf16 %v7799_v7, %v7798_v58  ;;  %v8312_v25 = vpop.eup %8311  ;;  %v5237_v22 = vmul.f32 %v8310_v5, %v11402_v20 }
 0xf85   : > { %v3048_v62 = vpop.permute.xlu0 %3047 }
 0xf86   : > { %3092 = vst.msk [vmem:[#allocation2 + $0x20] sm:$0xff] %vm3087_vm3, %v3048_v62  ;;  %7423 = vmatprep.subr.bf16.mxu1 %v7422_v43  ;;  %7457 = vmatpush3.bf16.msra.mxu0 %v7454_v4 }
 0xf87   : > { %7425 = vmatpush3.bf16.msra.mxu1 %v7422_v43  ;;  %7459 = vmatprep.subr.bf16.mxu0 %v7458_v38 }
 0xf89   : > { %v4310_v15 = vpop.permute.xlu0 %4309 }
 0xf8a   : > { %4354 = vst.msk [vmem:[#allocation2 + $0x20] sm:$0xff] %vm4349_vm4, %v4310_v15  ;;  %7461 = vmatpush3.bf16.msra.mxu0 %v7458_v38 }
 0xf8d   : > { %v3052_v31 = vpop.permute.xlu0 %3051 }
 0xf8e   : > { %3094 = vst.msk [vmem:[#allocation2 + $0x30] sm:$0xff] %vm3087_vm3, %v3052_v31 }
 0xf91   : > { %v4314_v9 = vpop.permute.xlu0 %4313 }
 0xf92   : > { %4356 = vst.msk [vmem:[#allocation2 + $0x30] sm:$0xff] %vm4349_vm4, %v4314_v9 }
 0xf95   : > { %v3056_v14 = vpop.permute.xlu0 %3055 }
 0xf96   : > { %3096 = vst.msk [vmem:[#allocation2 + $0x40] sm:$0xff] %vm3087_vm3, %v3056_v14 }
 0xf99   : > { %v4318_v27 = vpop.permute.xlu0 %4317 }
 0xf9a   : > { %4358 = vst.msk [vmem:[#allocation2 + $0x40] sm:$0xff] %vm4349_vm4, %v4318_v27 }
 0xf9d   : > { %v3060_v50 = vpop.permute.xlu0 %3059 }
 0xf9e   : > { %3098 = vst.msk [vmem:[#allocation2 + $0x50] sm:$0xff] %vm3087_vm3, %v3060_v50 }
 0xfa1   : > { %v4322_v12 = vpop.permute.xlu0 %4321 }
 0xfa2   : > { %4360 = vst.msk [vmem:[#allocation2 + $0x50] sm:$0xff] %vm4349_vm4, %v4322_v12 }
 0xfa5   : > { %v3064_v11 = vpop.permute.xlu0 %3063 }
 0xfa6   : > { %3100 = vst.msk [vmem:[#allocation2 + $0x60] sm:$0xff] %vm3087_vm3, %v3064_v11 }
 0xfa9   : > { %v4326_v23 = vpop.permute.xlu0 %4325 }
 0xfaa   : > { %4362 = vst.msk [vmem:[#allocation2 + $0x60] sm:$0xff] %vm4349_vm4, %v4326_v23 }
 0xfad   : > { %v3068_v63 = vpop.permute.xlu0 %3067 }
 0xfae   : > { %3102 = vst.msk [vmem:[#allocation2 + $0x70] sm:$0xff] %vm3087_vm3, %v3068_v63 }
 0xfb1   : > { %v4330_v46 = vpop.permute.xlu0 %4329 }
 0xfb2   : > { %4364 = vst.msk [vmem:[#allocation2 + $0x70] sm:$0xff] %vm4349_vm4, %v4330_v46  ;;  %v5205_v2 = vpop.xlane.xlu1 %5204 }
 0xfb3   : > { %8313 = vrcp.f32 %v5205_v2 }
 0xfb4   : > { %8315 = vrcp.f32 %v11531_v3 }
 0xfb6   : > { %v7802_v47 = vpop.permute.xlu1 %7801 }
 0xfb7   : > { %v7804_v42 = vunpack.i.h.bf16 %v7802_v47  ;;  %v7803_v39 = vunpack.i.l.bf16 %v7802_v47 }
 0xfb9   : > { %v7426_v6 = vpack.c.bf16 %v7804_v42, %v7803_v39 }
 0xfba   : > { %v3040_v33 = vpop.permute.xlu1 %3039 }
 0xfbb   : > { %3088 = vst.msk [vmem:[#allocation2] sm:$0xff] %vm3087_vm3, %v3040_v33  ;;  %v6952_v21 = vpop.f32.mrb[64].mxu0  ;;  %7427 = vmatprep.subr.bf16.mxu1 %v7426_v6 }
 0xfbc   : > { %4350 = vst.msk [vmem:[#allocation2] sm:$0xff] %vm4349_vm4, %v11537_v17  ;;  %7429 = vmatpush3.bf16.msra.mxu1 %v7426_v6  ;;  %5565 = vrot.lane.b32.xlu1 %v6952_v21, %s8523_s14  ;;  %v5355_v41 = vpop.f32.mrb[65].mxu0  ;;  %v5236_v17 = vmul.f32 %v8308_v16, %v11417_v28  ;;  %v5238_v28 = vmul.f32 %v8312_v25, %v11429_v1 }
 0xfbd   : > { %v8314_v35 = vpop.eup %8313 }
 0xfbe   : > { %v3042_v49 = vpop.permute.xlu1 %3041  ;;  %v8316_v53 = vpop.eup %8315  ;;  %v5239_v20 = vmul.f32 %v8314_v35, %v11471_v45 }
 0xfbf   : > { %3089 = vst.msk [vmem:[#allocation2 + $0x8] sm:$0xff] %vm3087_vm3, %v3042_v49  ;;  %6979 = vmatmul.mubr.msk.f32.vlgmr.msra.gmra.mrb[96].mxu1 %vm1343_vm2, %v5234_v55  ;;  %v5240_v1 = vmul.f32 %v8316_v53, %v11433_v8  ;;  %v11628_v55 = vld [vmem:[%s11728_s7] ss:$0 sm:$0xff] }
 0xfc0   : > { %v6955_v0 = vpop.f32.mrb[66].mxu0  ;;  %6981 = vmatprep.mubr.msk.f32.mxu1 %vm1343_vm2, %v5235_v52  ;;  %5563 = vrot.lane.b32.xlu1 %v5355_v41, %s8523_s14 }
 0xfc1   : > { %v5365_v3 = vpop.f32.mrb[67].mxu0 }
 0xfc2   : > { %5567 = vrot.lane.b32.xlu0 %v5365_v3, %s8523_s14  ;;  %v4304_v29 = vpop.permute.xlu1 %4303 }
 0xfc3   : > { %4351 = vst.msk [vmem:[#allocation2 + $0x8] sm:$0xff] %vm4349_vm4, %v4304_v29  ;;  %6982 = vmatmul.mubr.msk.f32.gmra.mrb[98].mxu1 %vm1343_vm2, %v5236_v17 }
 0xfc4   : > { %v6958_v19 = vpop.f32.mrb[68].mxu0  ;;  %6984 = vmatprep.mubr.msk.f32.mxu1 %vm1343_vm2, %v5237_v22  ;;  %4331 = vrot.lane.b32.xlu1 %v11308_v32, %s8524_s12 }
 0xfc5   : > { %v5375_v61 = vpop.f32.mrb[69].mxu0 }
 0xfc6   : > { %5571 = vrot.lane.b32.xlu0 %v5375_v61, %s8523_s14  ;;  %v3044_v56 = vpop.permute.xlu1 %3043 }
 0xfc7   : > { %3090 = vst.msk [vmem:[#allocation2 + $0x10] sm:$0xff] %vm3087_vm3, %v3044_v56  ;;  %6985 = vmatmul.mubr.msk.f32.gmra.mrb[100].mxu1 %vm1343_vm2, %v5238_v28 }
 0xfc8   : > { %4352 = vst.msk [vmem:[#allocation2 + $0x10] sm:$0xff] %vm4349_vm4, %v11539_v44  ;;  %v6961_v57 = vpop.f32.mrb[70].mxu0  ;;  %6987 = vmatprep.mubr.msk.f32.mxu1 %vm1343_vm2, %v5239_v20  ;;  %5569 = vrot.lane.b32.xlu1 %v6955_v0, %s8523_s14 }
 0xfc9   : > { %v5385_v32 = vpop.f32.mrb[71].mxu0 }
 0xfca   : > { %5575 = vrot.lane.b32.xlu0 %v5385_v32, %s8523_s14  ;;  %v3046_v34 = vpop.permute.xlu1 %3045 }
 0xfcb   : > { %3091 = vst.msk [vmem:[#allocation2 + $0x18] sm:$0xff] %vm3087_vm3, %v3046_v34  ;;  %6988 = vmatmul.mubr.msk.f32.gmra.mrb[102].mxu1 %vm1343_vm2, %v5240_v1 }
 0xfcc   : > { %5573 = vrot.lane.b32.xlu1 %v6958_v19, %s8523_s14 }
 0xfce   : > { %v4308_v45 = vpop.permute.xlu1 %4307 }
 0xfcf   : > { %4353 = vst.msk [vmem:[#allocation2 + $0x18] sm:$0xff] %vm4349_vm4, %v4308_v45 }
 0xfd0   : > { %5577 = vrot.lane.b32.xlu1 %v6961_v57, %s8523_s14 }
 0xfd2   : > { %v3050_v44 = vpop.permute.xlu1 %3049 }
 0xfd3   : > { %3093 = vst.msk [vmem:[#allocation2 + $0x28] sm:$0xff] %vm3087_vm3, %v3050_v44 }
 0xfd6   : > { %v4312_v18 = vpop.permute.xlu1 %4311 }
 0xfd7   : > { %4355 = vst.msk [vmem:[#allocation2 + $0x28] sm:$0xff] %vm4349_vm4, %v4312_v18 }
 0xfda   : > { %v3054_v8 = vpop.permute.xlu1 %3053 }
 0xfdb   : > { %3095 = vst.msk [vmem:[#allocation2 + $0x38] sm:$0xff] %vm3087_vm3, %v3054_v8 }
 0xfde   : > { %v4316_v7 = vpop.permute.xlu1 %4315 }
 0xfdf   : > { %4357 = vst.msk [vmem:[#allocation2 + $0x38] sm:$0xff] %vm4349_vm4, %v4316_v7 }
 0xfe2   : > { %v3058_v58 = vpop.permute.xlu1 %3057 }
 0xfe3   : > { %3097 = vst.msk [vmem:[#allocation2 + $0x48] sm:$0xff] %vm3087_vm3, %v3058_v58 }
 0xfe6   : > { %v4320_v43 = vpop.permute.xlu1 %4319 }
 0xfe7   : > { %4359 = vst.msk [vmem:[#allocation2 + $0x48] sm:$0xff] %vm4349_vm4, %v4320_v43 }
 0xfea   : > { %v3062_v24 = vpop.permute.xlu1 %3061 }
 0xfeb   : > { %3099 = vst.msk [vmem:[#allocation2 + $0x58] sm:$0xff] %vm3087_vm3, %v3062_v24 }
 0xfee   : > { %v4324_v62 = vpop.permute.xlu1 %4323 }
 0xfef   : > { %4361 = vst.msk [vmem:[#allocation2 + $0x58] sm:$0xff] %vm4349_vm4, %v4324_v62 }
 0xff2   : > { %v3066_v60 = vpop.permute.xlu1 %3065 }
 0xff3   : > { %3101 = vst.msk [vmem:[#allocation2 + $0x68] sm:$0xff] %vm3087_vm3, %v3066_v60 }
 0xff6   : > { %v4328_v59 = vpop.permute.xlu1 %4327 }
 0xff7   : > { %4363 = vst.msk [vmem:[#allocation2 + $0x68] sm:$0xff] %vm4349_vm4, %v4328_v59 }
 0xffa   : > { %v3070_v40 = vpop.permute.xlu1 %3069 }
 0xffb   : > { %3103 = vst.msk [vmem:[#allocation2 + $0x78] sm:$0xff] %vm3087_vm3, %v3070_v40 }
0x102e   : > { %v5566_v15 = vpop.permute.xlu1 %5565 }
0x102f   : > { %5613 = vst.msk [vmem:[#allocation2 + $0x8] sm:$0xff] %vm5611_vm5, %v5566_v15 }
0x1032   : > { %v5564_v31 = vpop.permute.xlu1 %5563 }
0x1033   : > { %5612 = vst.msk [vmem:[#allocation2] sm:$0xff] %vm5611_vm5, %v5564_v31 }
0x1034   : > { %v5568_v9 = vpop.permute.xlu0 %5567 }
0x1035   : > { %5614 = vst.msk [vmem:[#allocation2 + $0x10] sm:$0xff] %vm5611_vm5, %v5568_v9 }
0x1036   : > { %v4332_v14 = vpop.permute.xlu1 %4331  ;;  %v5629_v11 = vld [vmem:[#allocation2 + $0x8] sm:$0xff] }
0x1037   : > { %4365 = vst.msk [vmem:[#allocation2 + $0x78] sm:$0xff] %vm4349_vm4, %v4332_v14 }
0x1038   : > { %v5572_v27 = vpop.permute.xlu0 %5571 }
0x1039   : > { %5616 = vst.msk [vmem:[#allocation2 + $0x20] sm:$0xff] %vm5611_vm5, %v5572_v27 }
0x103a   : > { %v5570_v50 = vpop.permute.xlu1 %5569  ;;  %v5628_v12 = vld [vmem:[#allocation2] sm:$0xff] }
0x103b   : > { %5615 = vst.msk [vmem:[#allocation2 + $0x18] sm:$0xff] %vm5611_vm5, %v5570_v50  ;;  %7022 = vmatprep.mubr.f32.mxu0 %v5628_v12 }
0x103c   : > { %v5576_v23 = vpop.permute.xlu0 %5575  ;;  %7023 = vmatmul.mubr.f32.vlgmr.msra.gmra.mrb[72].mxu0 %v5629_v11  ;;  %v5630_v63 = vld [vmem:[#allocation2 + $0x10] sm:$0xff] }
0x103d   : > { %5618 = vst.msk [vmem:[#allocation2 + $0x30] sm:$0xff] %vm5611_vm5, %v5576_v23  ;;  %7025 = vmatprep.mubr.f32.mxu0 %v5630_v63 }
0x103e   : > { %v5574_v37 = vpop.permute.xlu1 %5573 }
0x103f   : > { %5617 = vst.msk [vmem:[#allocation2 + $0x28] sm:$0xff] %vm5611_vm5, %v5574_v37 }
0x1040   : > { %v5632_v46 = vld [vmem:[#allocation2 + $0x20] sm:$0xff] }
0x1042   : > { %v5578_v54 = vpop.permute.xlu1 %5577  ;;  %v5631_v10 = vld [vmem:[#allocation2 + $0x18] sm:$0xff] }
0x1043   : > { %5619 = vst.msk [vmem:[#allocation2 + $0x38] sm:$0xff] %vm5611_vm5, %v5578_v54  ;;  %7026 = vmatmul.mubr.f32.gmra.mrb[74].mxu0 %v5631_v10 }
0x1044   : > { %7028 = vmatprep.mubr.f32.mxu0 %v5632_v46  ;;  %v5634_v36 = vld [vmem:[#allocation2 + $0x30] sm:$0xff] }
0x1046   : > { %v5633_v2 = vld [vmem:[#allocation2 + $0x28] sm:$0xff] }
0x1047   : > { %7029 = vmatmul.mubr.f32.gmra.mrb[76].mxu0 %v5633_v2 }
0x1048   : > { %7031 = vmatprep.mubr.f32.mxu0 %v5634_v36 }
0x104a   : > { %v5635_v51 = vld [vmem:[#allocation2 + $0x38] sm:$0xff] }
0x104b   : > { %7032 = vmatmul.mubr.f32.gmra.mrb[78].mxu0 %v5635_v51 }
0x1092   : > { %v6980_v4 = vpop.f32.mrb[96].mxu1 }
0x1093   : > { %v5508_v47 = vpop.f32.mrb[97].mxu1  ;;  %5581 = vrot.lane.b32.xlu1 %v6980_v4, %s8523_s14 }
0x1094   : > { %5579 = vrot.lane.b32.xlu0 %v5508_v47, %s8523_s14 }
0x1096   : > { %v6983_v30 = vpop.f32.mrb[98].mxu1 }
0x1097   : > { %v5518_v13 = vpop.f32.mrb[99].mxu1  ;;  %5585 = vrot.lane.b32.xlu1 %v6983_v30, %s8523_s14 }
0x1098   : > { %5583 = vrot.lane.b32.xlu0 %v5518_v13, %s8523_s14 }
0x109a   : > { %v6986_v42 = vpop.f32.mrb[100].mxu1 }
0x109b   : > { %v5528_v39 = vpop.f32.mrb[101].mxu1  ;;  %5589 = vrot.lane.b32.xlu1 %v6986_v42, %s8523_s14 }
0x109c   : > { %5587 = vrot.lane.b32.xlu0 %v5528_v39, %s8523_s14 }
0x109e   : > { %v6989_v38 = vpop.f32.mrb[102].mxu1 }
0x109f   : > { %v5538_v6 = vpop.f32.mrb[103].mxu1  ;;  %5593 = vrot.lane.b32.xlu1 %v6989_v38, %s8523_s14 }
0x10a0   : > { %5591 = vrot.lane.b32.xlu0 %v5538_v6, %s8523_s14  ;;  %s11636_s14 = scalar_lea.vmem [#allocation11], %s5956_s25  ;;  %s6165_s25 = sshll.u32 %s8595_s9, 11 }
0x10a1   : > { %s5843_s26 = sshll.u32 %s11636_s14, 4  ;;  %s11672_s13 = scalar_lea.hbm %s11729_s8, %s6165_s25  ;;  %s11674_s26 = int_to_ptr.vmem [resolvable:$true] %s5843_s26 }
0x10a2   : > { %s5829_s9 = scalar_lea.sflag [#allocation5], %s8773_s24  ;;  %s8438_s21 = scalar_lea.vmem %s11674_s26, 2048 }
0x10a3   : > { %p8439_p10 = scmp.ne.s32.totalorder %s11674_s26, %s8438_s21  ;;  %p8445_p12 = scmp.lt.s32.totalorder %s11674_s26, %s8443_s27 }
0x10a4   : > { %p8446_p2 = scmp.lt.s32.totalorder %s8444_s10, %s8438_s21 }
0x10a5   : > { %p8440_p3 = pnand %p8439_p10, %p8722_p5 }
0x10a6   : > { %p8447_p1 = por %p8446_p2, %p8445_p12 }
0x10a7   : > { %p8441_p7 = pneg %p8440_p3 }
0x10a9   : > { %p8448_p4 = pnand %p8447_p1, %p8441_p7 }
0x1105   : > { %v5582_v48 = vpop.permute.xlu1 %5581 }
0x1106   : > { %5621 = vst.msk [vmem:[#allocation2 + $0x48] sm:$0xff] %vm5611_vm5, %v5582_v48  ;;  %v5580_v33 = vpop.permute.xlu0 %5579 }
0x1107   : > { %5620 = vst.msk [vmem:[#allocation2 + $0x40] sm:$0xff] %vm5611_vm5, %v5580_v33 }
0x1109   : > { %v5586_v26 = vpop.permute.xlu1 %5585 }
0x110a   : > { %5623 = vst.msk [vmem:[#allocation2 + $0x58] sm:$0xff] %vm5611_vm5, %v5586_v26  ;;  %v5584_v21 = vpop.permute.xlu0 %5583 }
0x110b   : > { %5622 = vst.msk [vmem:[#allocation2 + $0x50] sm:$0xff] %vm5611_vm5, %v5584_v21 }
0x110d   : > { %v5590_v41 = vpop.permute.xlu1 %5589  ;;  %v5637_v5 = vld [vmem:[#allocation2 + $0x48] sm:$0xff] }
0x110e   : > { %5625 = vst.msk [vmem:[#allocation2 + $0x68] sm:$0xff] %vm5611_vm5, %v5590_v41  ;;  %v5588_v16 = vpop.permute.xlu0 %5587  ;;  %v5636_v49 = vld [vmem:[#allocation2 + $0x40] sm:$0xff] }
0x110f   : > { %5624 = vst.msk [vmem:[#allocation2 + $0x60] sm:$0xff] %vm5611_vm5, %v5588_v16  ;;  %v7024_v52 = vpop.f32.mrb[72].mxu0  ;;  %7034 = vmatprep.mubr.f32.mxu0 %v5636_v49 }
0x1110   : > { %v5739_v0 = vadd.f32 %v7024_v52, %v11628_v55  ;;  %v5733_v3 = vpop.f32.mrb[73].mxu0  ;;  %7035 = vmatmul.mubr.f32.gmra.mrb[80].mxu0 %v5637_v5 }
0x1111   : > { %v5734_v17 = vadd.f32 %v11628_v55, %v5733_v3  ;;  %v5594_v25 = vpop.permute.xlu1 %5593  ;;  %v5639_v35 = vld [vmem:[#allocation2 + $0x58] sm:$0xff] }
0x1112   : > { %5813 = vst [vmem:[%s11636_s14 + $0x8] sm:$0xff] %v5739_v0  ;;  %5627 = vst.msk [vmem:[#allocation2 + $0x78] sm:$0xff] %vm5611_vm5, %v5594_v25  ;;  %v5592_v29 = vpop.permute.xlu0 %5591  ;;  %v5638_v22 = vld [vmem:[#allocation2 + $0x50] sm:$0xff] }
0x1113   : > { %5812 = vst [vmem:[%s11636_s14] sm:$0xff] %v5734_v17  ;;  %5626 = vst.msk [vmem:[#allocation2 + $0x70] sm:$0xff] %vm5611_vm5, %v5592_v29  ;;  %7037 = vmatprep.mubr.f32.mxu0 %v5638_v22 }
0x1114   : > { %7038 = vmatmul.mubr.f32.gmra.mrb[82].mxu0 %v5639_v35 }
0x1115   : > { %v5641_v56 = vld [vmem:[#allocation2 + $0x68] sm:$0xff] }
0x1116   : > { %v7027_v19 = vpop.f32.mrb[74].mxu0  ;;  %v5640_v61 = vld [vmem:[#allocation2 + $0x60] sm:$0xff] }
0x1117   : > { %v5749_v28 = vadd.f32 %v7027_v19, %v11628_v55  ;;  %v5743_v53 = vpop.f32.mrb[75].mxu0  ;;  %7040 = vmatprep.mubr.f32.mxu0 %v5640_v61 }
0x1118   : > { %v5744_v20 = vadd.f32 %v11628_v55, %v5743_v53  ;;  %7041 = vmatmul.mubr.f32.gmra.mrb[84].mxu0 %v5641_v56 }
0x1119   : > { %5815 = vst [vmem:[%s11636_s14 + $0x18] sm:$0xff] %v5749_v28  ;;  %v5643_v45 = vld [vmem:[#allocation2 + $0x78] sm:$0xff] }
0x111a   : > { %5814 = vst [vmem:[%s11636_s14 + $0x10] sm:$0xff] %v5744_v20  ;;  %v7030_v57 = vpop.f32.mrb[76].mxu0  ;;  %v5642_v32 = vld [vmem:[#allocation2 + $0x70] sm:$0xff] }
0x111b   : > { %v5759_v1 = vadd.f32 %v7030_v57, %v11628_v55  ;;  %v5753_v34 = vpop.f32.mrb[77].mxu0  ;;  %7043 = vmatprep.mubr.f32.mxu0 %v5642_v32 }
0x111c   : > { %v5754_v44 = vadd.f32 %v11628_v55, %v5753_v34  ;;  %7044 = vmatmul.mubr.f32.gmra.mrb[86].mxu0 %v5643_v45 }
0x111d   : > { %5817 = vst [vmem:[%s11636_s14 + $0x28] sm:$0xff] %v5759_v1 }
0x111e   : > { %5816 = vst [vmem:[%s11636_s14 + $0x20] sm:$0xff] %v5754_v44  ;;  %v7033_v18 = vpop.f32.mrb[78].mxu0 }
0x111f   : > { %v5769_v8 = vadd.f32 %v7033_v18, %v11628_v55  ;;  %v5763_v7 = vpop.f32.mrb[79].mxu0 }
0x1120   : > { %v5764_v58 = vadd.f32 %v11628_v55, %v5763_v7 }
0x1121   : > { %5819 = vst [vmem:[%s11636_s14 + $0x38] sm:$0xff] %v5769_v8 }
0x1122   : > { %5818 = vst [vmem:[%s11636_s14 + $0x30] sm:$0xff] %v5764_v58 }
0x11e3   : > { %v7036_v43 = vpop.f32.mrb[80].mxu0 }
0x11e4   : > { %v5779_v24 = vadd.f32 %v7036_v43, %v11628_v55  ;;  %v5773_v62 = vpop.f32.mrb[81].mxu0 }
0x11e5   : > { %v5774_v60 = vadd.f32 %v11628_v55, %v5773_v62 }
0x11e6   : > { %5821 = vst [vmem:[%s11636_s14 + $0x48] sm:$0xff] %v5779_v24 }
0x11e7   : > { %5820 = vst [vmem:[%s11636_s14 + $0x40] sm:$0xff] %v5774_v60  ;;  %v7039_v59 = vpop.f32.mrb[82].mxu0 }
0x11e8   : > { %v5789_v40 = vadd.f32 %v7039_v59, %v11628_v55  ;;  %v5783_v15 = vpop.f32.mrb[83].mxu0 }
0x11e9   : > { %v5784_v31 = vadd.f32 %v11628_v55, %v5783_v15 }
0x11ea   : > { %5823 = vst [vmem:[%s11636_s14 + $0x58] sm:$0xff] %v5789_v40 }
0x11eb   : > { %5822 = vst [vmem:[%s11636_s14 + $0x50] sm:$0xff] %v5784_v31  ;;  %v7042_v9 = vpop.f32.mrb[84].mxu0 }
0x11ec   : > { %v5799_v14 = vadd.f32 %v7042_v9, %v11628_v55  ;;  %v5793_v27 = vpop.f32.mrb[85].mxu0 }
0x11ed   : > { %v5794_v50 = vadd.f32 %v11628_v55, %v5793_v27 }
0x11ee   : > { %5825 = vst [vmem:[%s11636_s14 + $0x68] sm:$0xff] %v5799_v14 }
0x11ef   : > { %5824 = vst [vmem:[%s11636_s14 + $0x60] sm:$0xff] %v5794_v50  ;;  %v7045_v12 = vpop.f32.mrb[86].mxu0 }
0x11f0   : > { %v5809_v11 = vadd.f32 %v7045_v12, %v11628_v55  ;;  %v5803_v23 = vpop.f32.mrb[87].mxu0 }
0x11f1   : > { %v5804_v63 = vadd.f32 %v11628_v55, %v5803_v23 }
0x11f2   : > { %5827 = vst [vmem:[%s11636_s14 + $0x78] sm:$0xff] %v5809_v11 }
0x11f3   : > { %5826 = vst [vmem:[%s11636_s14 + $0x70] sm:$0xff] %v5804_v63 }
0x11f4   : > { %8451 = shalt.err (!%p8448_p4)
}
0x11f5   : > { %s8452_s20 = scalar_lea.hbm %s11672_s13, 2048  ;;  %s8456_s12 = scalar_lea.hbm %s11729_s8, 4096 }
0x11f6   : > { %p8453_p9 = scmp.ne.s32.totalorder %s11672_s13, %s8452_s20  ;;  %p8457_p8 = scmp.lt.u32.totalorder %s11672_s13, %s11729_s8 }
0x11f7   : > { %p8458_p13 = scmp.lt.u32.totalorder %s8456_s12, %s8452_s20  ;;  %p8460_p10 = scmp.lt.u32.totalorder %s8452_s20, %s11672_s13 }
0x11f8   : > { %p8454_p0 = pnand %p8453_p9, %p8722_p5 }
0x11f9   : > { %p8459_p6 = por %p8458_p13, %p8457_p8 }
0x11fa   : > { %p8455_p11 = pneg %p8454_p0 }
0x11fb   : > { %p8461_p3 = por %p8460_p10, %p8459_p6 }
0x11fd   : > { %p8462_p7 = pnand %p8461_p3, %p8455_p11 }
0x11ff   : > { %8465 = shalt.err (!%p8462_p7)
}
0x1200   : > { %s8527_s25 = smov 128   ;;  %s8528_s1 = smov 8  }
0x1201   : > { %7492 = dma.vmem_to_hbm [thread:$0]  (%p8722_p5), %s11674_s26, 2048, %s11672_s13, %s5829_s9, %s8527_s25, %s8527_s25, %s8528_s1  }
0x1202 PF: > { %s12218_s11 = sld [smem:[#allocation16_spill]]  ;;  %s12219_s21 = sld [smem:[#allocation17_spill]] }
0x1203   : > { %p12221_p2 = scmp.ge.s32.totalorder %s8512_s30, 2 }
0x1208   : > { %s5858_s18 = sand.u32 1, %s12218_s11   ;;  %p12220_p12 = scmp.ne.s32.totalorder %s12219_s21, 0 }
0x1209   : > { %s5859_s27 = scalar_lea.sflag [#allocation5], %s5858_s18 }
0x120a   : > { %p7509_p1 = pnand %p12221_p2, %p12220_p12 }
0x120c   : > { %8495 = dma.done.wait (!%p7509_p1), %s5859_s27, 2048  }
0x120d   : > { %8497 = vsyncadd (!%p7509_p1), %s5859_s27, 4294965248  ;;  %p23_p4 = scmp.ge.s32.totalorder %s8687_s22, 4   ;;  %s12222_s27 = smov %s8504_s28 }
0x120e   : > { %s12223_s28 = smov %s8508_s29  ;;  %s12224_s29 = smov %s8718_s17 }
0x120f   : > { %s12225_s30 = smov %s8687_s22  ;;  %25 = sbr.rel (!%p23_p4) target bundleno = 9 (0x9), region = 112 }
0x1216   :  { %5864 = vsyncpa [#allocation4], 1 }
0x1217   :  { %5866 = vsyncpa [#allocation4 + $0x1], 1 }
0x1218   :  { %5867 = vsyncpa [#allocation7], 1 }
0x1219   :  { %5868 = vsyncpa [#allocation10], 1 }
0x121a   :  { %5869 = vsyncpa [#allocation5], 1 }
0x121b   :  { %5871 = vsyncpa [#allocation5 + $0x1], 1 }

</bundles_post_ra>
